<compile_context>
chip_gen: v5e
topology: v5e:2x2
jax: 0.10.0
libtpu: 0.0.40
codegen_flags: <defaults>
</compile_context>

<pallas_src>
import functools
import math

import jax
import jax.numpy as jnp
from jax.experimental import pallas as pl
from jax.experimental.pallas import tpu as pltpu

BN_EPS = 1e-5
STRIDES = (2, 2, 4, 2)
CHANNELS = ((3, 8), (8, 16), (16, 32), (32, 64))
CIN_PAD = (8, 8, 16, 32)  # per-layer input-channel lane padding (layer 1: 3 -> 8)


def _layer_dims(H, W):
    dims = []
    h, w = H, W
    for s in STRIDES:
        ho = (h + 2 - 3) // s + 1
        wo = (w + 2 - 3) // s + 1
        dims.append((ho, wo, s))
        h, w = ho, wo
    return tuple(dims)


def _conv4_kernel(x_ref,
                  w1, g1, b1, w2, g2, b2, w3, g3, b3, w4, g4, b4,
                  o_ref,
                  xp2, xp3, xp4,
                  *, dims):
    """Fused Conv4 forward.

    x_ref : (N, H+2, W+2, 8)   layer-1 input, already halo- and channel-padded
    w*    : (9*Cin_pad, Cout)  im2col conv weights (zero rows on pad channels)
    g*/b* : (1, Cout)          BN affine
    o_ref : (N, Ho4, Wo4, 64)  final activation (only HBM write)
    xp*   : (N, Ho_l+2, Wo_l+2, Cout_l)  padded activation scratch, layers 2-4 inputs
    dims  : static tuple of (Ho, Wo, stride) per layer
    """
    N = x_ref.shape[0]
    src_refs = (x_ref, xp2, xp3, xp4)
    wrefs = (w1, w2, w3, w4)
    grefs = (g1, g2, g3, g4)
    brefs = (b1, b2, b3, b4)

    # Zero the intermediate padded scratches once: border = conv halo
    # (padding=1); interiors are overwritten by the producing layer below.
    for xp in (xp2, xp3, xp4):
        xp[...] = jnp.zeros(xp.shape, dtype=xp.dtype)

    for li in range(4):
        Ho, Wo, stride = dims[li]
        rows = N * Ho * Wo
        src = src_refs[li]
        cin_p = src.shape[-1]

        # im2col: 9 strided taps (N, Ho, Wo, cin_p) laid out along lanes.
        # Piece widths (8/16/32) divide 128, so no piece straddles a lane tile.
        pieces = []
        for kh in range(3):
            for kw in range(3):
                tap = src[:, pl.ds(kh, Ho, stride), pl.ds(kw, Wo, stride), :]
                pieces.append(tap.reshape(rows, cin_p))
        patch = jnp.concatenate(pieces, axis=1)            # (rows, 9*cin_p)

        # One MXU matmul per layer, f32 accumulation.
        acc = jnp.dot(patch, wrefs[li][...],
                      preferred_element_type=jnp.float32)  # (rows, Cout)

        # BatchNorm2d, training mode: batch statistics over (N, Ho, Wo),
        # biased variance, then affine transform (rsqrt -> EUP).
        mean = jnp.mean(acc, axis=0, keepdims=True)
        centered = acc - mean
        var = jnp.mean(centered * centered, axis=0, keepdims=True)
        y = centered * jax.lax.rsqrt(var + BN_EPS)
        y = y * grefs[li][...] + brefs[li][...]

        # ReLU
        y = jnp.maximum(y, 0.0)
        cout = y.shape[-1]
        y = y.reshape(N, Ho, Wo, cout)

        if li < 3:
            # Feed the next layer: interior of its padded scratch (border
            # stays zero = conv padding).  Never leaves VMEM.
            src_refs[li + 1][:, 1:Ho + 1, 1:Wo + 1, :] = y
        else:
            # Only the final activation goes back to HBM.
            o_ref[...] = y


def prep_layer_params(w_oihw, gamma, beta, cin_pad):
    """Torch-layout (Cout, Cin, 3, 3) conv weight + BN affine -> im2col layout
    with the input channels zero-padded to cin_pad lanes."""
    cout, cin = w_oihw.shape[0], w_oihw.shape[1]
    w_hwio = jnp.transpose(w_oihw, (2, 3, 1, 0))                      # (3,3,Cin,Cout)
    w_pad = jnp.pad(w_hwio, ((0, 0), (0, 0), (0, cin_pad - cin), (0, 0)))
    w_mat = w_pad.reshape(9 * cin_pad, cout).astype(jnp.float32)      # row = (kh*3+kw)*cin_pad + ci
    g = gamma.astype(jnp.float32).reshape(1, cout)
    b = beta.astype(jnp.float32).reshape(1, cout)
    return w_mat, g, b


def init_params(key):
    """Deterministic init matching the PyTorch module:
    conv weight ~ N(0, sqrt(2 / (3*3*Cout))), BN gamma=1, beta=0."""
    params = []
    for (cin, cout), cpad in zip(CHANNELS, CIN_PAD):
        key, sub = jax.random.split(key)
        std = math.sqrt(2.0 / (3 * 3 * cout))
        w_oihw = std * jax.random.normal(sub, (cout, cin, 3, 3), dtype=jnp.float32)
        gamma = jnp.ones((cout,), jnp.float32)
        beta = jnp.zeros((cout,), jnp.float32)
        params.append(prep_layer_params(w_oihw, gamma, beta, cpad))
    return params


@functools.partial(jax.jit, static_argnames=("flatten",))
def conv4_forward(x_nchw, params, flatten=True):
    N, C, H, W = x_nchw.shape
    dims = _layer_dims(H, W)
    Ho4, Wo4 = dims[-1][0], dims[-1][1]
    cout_last = CHANNELS[-1][1]

    # NCHW -> NHWC transpose, conv halo (padding=1) and channel pad 3->8 for
    # layer 1, all in one fused XLA op at the wrapper boundary.
    x_nhwc = jnp.transpose(x_nchw, (0, 2, 3, 1)).astype(jnp.float32)
    x_pad = jnp.pad(x_nhwc, ((0, 0), (1, 1), (1, 1), (0, CIN_PAD[0] - C)))

    kernel = functools.partial(_conv4_kernel, dims=dims)
    vmem = pl.BlockSpec(memory_space=pltpu.MemorySpace.VMEM)

    # Padded-activation scratch for the inputs of layers 2..4 (VMEM only).
    scratch_shapes = [
        pltpu.VMEM((N, dims[l][0] + 2, dims[l][1] + 2, CHANNELS[l][1]), jnp.float32)
        for l in range(3)
    ]

    flat_params = [p for layer in params for p in layer]

    flops = 0
    for l, (ho, wo, _) in enumerate(dims):
        flops += 2 * N * ho * wo * (9 * CIN_PAD[l]) * CHANNELS[l][1]
    bytes_accessed = 4 * (int(x_pad.size) + sum(int(p.size) for p in flat_params)
                          + N * Ho4 * Wo4 * cout_last)

    out_nhwc = pl.pallas_call(
        kernel,
        out_shape=jax.ShapeDtypeStruct((N, Ho4, Wo4, cout_last), jnp.float32),
        in_specs=[vmem] * (1 + len(flat_params)),
        out_specs=vmem,
        scratch_shapes=scratch_shapes,
        compiler_params=pltpu.CompilerParams(vmem_limit_bytes=32 * 1024 * 1024),
        cost_estimate=pl.CostEstimate(
            flops=flops,
            transcendentals=sum(c for _, c in CHANNELS),
            bytes_accessed=bytes_accessed),
    )(x_pad, *flat_params)

    out = jnp.transpose(out_nhwc, (0, 3, 1, 2))  # NCHW so flatten order matches torch
    if flatten:
        out = out.reshape(N, -1)
    return out


if __name__ == "__main__":
    key = jax.random.PRNGKey(0)
    pkey, xkey = jax.random.split(key)
    params = init_params(pkey)

    # 32x32 input -> spatial 16 -> 8 -> 2 -> 1; flattened features = 64
    x = jax.random.normal(xkey, (2, 3, 32, 32), dtype=jnp.float32)

    out = conv4_forward(x, params, flatten=True)
    out = jax.block_until_ready(out)

    assert out.shape == (2, 64), out.shape
    assert bool(jnp.all(jnp.isfinite(out)))
    print("KERNEL_OK")
</pallas_src>

<mosaic_0001>
module attributes {stable_mosaic.version = 11 : i64} {
  func.func @_conv4_kernel(%arg0: memref<2x34x34x8xf32, #tpu.memory_space<vmem>>, %arg1: memref<72x8xf32, #tpu.memory_space<vmem>>, %arg2: memref<1x8xf32, #tpu.memory_space<vmem>>, %arg3: memref<1x8xf32, #tpu.memory_space<vmem>>, %arg4: memref<72x16xf32, #tpu.memory_space<vmem>>, %arg5: memref<1x16xf32, #tpu.memory_space<vmem>>, %arg6: memref<1x16xf32, #tpu.memory_space<vmem>>, %arg7: memref<144x32xf32, #tpu.memory_space<vmem>>, %arg8: memref<1x32xf32, #tpu.memory_space<vmem>>, %arg9: memref<1x32xf32, #tpu.memory_space<vmem>>, %arg10: memref<288x64xf32, #tpu.memory_space<vmem>>, %arg11: memref<1x64xf32, #tpu.memory_space<vmem>>, %arg12: memref<1x64xf32, #tpu.memory_space<vmem>>, %arg13: memref<2x1x1x64xf32, #tpu.memory_space<vmem>>, %arg14: memref<2x18x18x8xf32, #tpu.memory_space<vmem>>, %arg15: memref<2x10x10x16xf32, #tpu.memory_space<vmem>>, %arg16: memref<2x4x4x32xf32, #tpu.memory_space<vmem>>) attributes {dimension_semantics = [], scalar_prefetch = 0 : i64, scratch_operands = 3 : i64, tpu.core_type = #tpu.core_type<tc>} {
    %cst = arith.constant 0.000000e+00 : f32
    %0 = vector.broadcast %cst : f32 to vector<2x18x18x8xf32>
    %c0 = arith.constant 0 : index
    %c0_0 = arith.constant 0 : index
    %c0_1 = arith.constant 0 : index
    %c0_2 = arith.constant 0 : index
    %1 = vector.load %arg14[%c0, %c0_0, %c0_1, %c0_2] : memref<2x18x18x8xf32, #tpu.memory_space<vmem>>, vector<2x18x18x8xf32>
    tpu.vector_store %arg14[%c0, %c0_0, %c0_1, %c0_2], %0 {strides = array<i32>} : memref<2x18x18x8xf32, #tpu.memory_space<vmem>>, vector<2x18x18x8xf32>,
    %cst_3 = arith.constant 0.000000e+00 : f32
    %2 = vector.broadcast %cst_3 : f32 to vector<2x10x10x16xf32>
    %c0_4 = arith.constant 0 : index
    %c0_5 = arith.constant 0 : index
    %c0_6 = arith.constant 0 : index
    %c0_7 = arith.constant 0 : index
    %3 = vector.load %arg15[%c0_4, %c0_5, %c0_6, %c0_7] : memref<2x10x10x16xf32, #tpu.memory_space<vmem>>, vector<2x10x10x16xf32>
    tpu.vector_store %arg15[%c0_4, %c0_5, %c0_6, %c0_7], %2 {strides = array<i32>} : memref<2x10x10x16xf32, #tpu.memory_space<vmem>>, vector<2x10x10x16xf32>,
    %cst_8 = arith.constant 0.000000e+00 : f32
    %4 = vector.broadcast %cst_8 : f32 to vector<2x4x4x32xf32>
    %c0_9 = arith.constant 0 : index
    %c0_10 = arith.constant 0 : index
    %c0_11 = arith.constant 0 : index
    %c0_12 = arith.constant 0 : index
    %5 = vector.load %arg16[%c0_9, %c0_10, %c0_11, %c0_12] : memref<2x4x4x32xf32, #tpu.memory_space<vmem>>, vector<2x4x4x32xf32>
    tpu.vector_store %arg16[%c0_9, %c0_10, %c0_11, %c0_12], %4 {strides = array<i32>} : memref<2x4x4x32xf32, #tpu.memory_space<vmem>>, vector<2x4x4x32xf32>,
    %c0_13 = arith.constant 0 : index
    %c0_14 = arith.constant 0 : index
    %c0_15 = arith.constant 0 : index
    %c0_16 = arith.constant 0 : index
    %6 = tpu.strided_load %arg0[%c0_13, %c0_14, %c0_15, %c0_16] {strides = array<i32: 1, 2, 2, 1>} : memref<2x34x34x8xf32, #tpu.memory_space<vmem>>, vector<2x16x16x8xf32>
    %7 = vector.shape_cast %6 : vector<2x16x16x8xf32> to vector<512x8xf32>
    %c0_17 = arith.constant 0 : index
    %c0_18 = arith.constant 0 : index
    %c1 = arith.constant 1 : index
    %c0_19 = arith.constant 0 : index
    %8 = tpu.strided_load %arg0[%c0_17, %c0_18, %c1, %c0_19] {strides = array<i32: 1, 2, 2, 1>} : memref<2x34x34x8xf32, #tpu.memory_space<vmem>>, vector<2x16x16x8xf32>
    %9 = vector.shape_cast %8 : vector<2x16x16x8xf32> to vector<512x8xf32>
    %c0_20 = arith.constant 0 : index
    %c0_21 = arith.constant 0 : index
    %c2 = arith.constant 2 : index
    %c0_22 = arith.constant 0 : index
    %10 = tpu.strided_load %arg0[%c0_20, %c0_21, %c2, %c0_22] {strides = array<i32: 1, 2, 2, 1>} : memref<2x34x34x8xf32, #tpu.memory_space<vmem>>, vector<2x16x16x8xf32>
    %11 = vector.shape_cast %10 : vector<2x16x16x8xf32> to vector<512x8xf32>
    %c0_23 = arith.constant 0 : index
    %c1_24 = arith.constant 1 : index
    %c0_25 = arith.constant 0 : index
    %c0_26 = arith.constant 0 : index
    %12 = tpu.strided_load %arg0[%c0_23, %c1_24, %c0_25, %c0_26] {strides = array<i32: 1, 2, 2, 1>} : memref<2x34x34x8xf32, #tpu.memory_space<vmem>>, vector<2x16x16x8xf32>
    %13 = vector.shape_cast %12 : vector<2x16x16x8xf32> to vector<512x8xf32>
    %c0_27 = arith.constant 0 : index
    %c1_28 = arith.constant 1 : index
    %c1_29 = arith.constant 1 : index
    %c0_30 = arith.constant 0 : index
    %14 = tpu.strided_load %arg0[%c0_27, %c1_28, %c1_29, %c0_30] {strides = array<i32: 1, 2, 2, 1>} : memref<2x34x34x8xf32, #tpu.memory_space<vmem>>, vector<2x16x16x8xf32>
    %15 = vector.shape_cast %14 : vector<2x16x16x8xf32> to vector<512x8xf32>
    %c0_31 = arith.constant 0 : index
    %c1_32 = arith.constant 1 : index
    %c2_33 = arith.constant 2 : index
    %c0_34 = arith.constant 0 : index
    %16 = tpu.strided_load %arg0[%c0_31, %c1_32, %c2_33, %c0_34] {strides = array<i32: 1, 2, 2, 1>} : memref<2x34x34x8xf32, #tpu.memory_space<vmem>>, vector<2x16x16x8xf32>
    %17 = vector.shape_cast %16 : vector<2x16x16x8xf32> to vector<512x8xf32>
    %c0_35 = arith.constant 0 : index
    %c2_36 = arith.constant 2 : index
    %c0_37 = arith.constant 0 : index
    %c0_38 = arith.constant 0 : index
    %18 = tpu.strided_load %arg0[%c0_35, %c2_36, %c0_37, %c0_38] {strides = array<i32: 1, 2, 2, 1>} : memref<2x34x34x8xf32, #tpu.memory_space<vmem>>, vector<2x16x16x8xf32>
    %19 = vector.shape_cast %18 : vector<2x16x16x8xf32> to vector<512x8xf32>
    %c0_39 = arith.constant 0 : index
    %c2_40 = arith.constant 2 : index
    %c1_41 = arith.constant 1 : index
    %c0_42 = arith.constant 0 : index
    %20 = tpu.strided_load %arg0[%c0_39, %c2_40, %c1_41, %c0_42] {strides = array<i32: 1, 2, 2, 1>} : memref<2x34x34x8xf32, #tpu.memory_space<vmem>>, vector<2x16x16x8xf32>
    %21 = vector.shape_cast %20 : vector<2x16x16x8xf32> to vector<512x8xf32>
    %c0_43 = arith.constant 0 : index
    %c2_44 = arith.constant 2 : index
    %c2_45 = arith.constant 2 : index
    %c0_46 = arith.constant 0 : index
    %22 = tpu.strided_load %arg0[%c0_43, %c2_44, %c2_45, %c0_46] {strides = array<i32: 1, 2, 2, 1>} : memref<2x34x34x8xf32, #tpu.memory_space<vmem>>, vector<2x16x16x8xf32>
    %23 = vector.shape_cast %22 : vector<2x16x16x8xf32> to vector<512x8xf32>
    %24 = tpu.concatenate %7, %9, %11, %13, %15, %17, %19, %21, %23 in 1 : vector<512x8xf32>, vector<512x8xf32>, vector<512x8xf32>, vector<512x8xf32>, vector<512x8xf32>, vector<512x8xf32>, vector<512x8xf32>, vector<512x8xf32>, vector<512x8xf32> -> vector<512x72xf32>
    %c0_47 = arith.constant 0 : index
    %c0_48 = arith.constant 0 : index
    %25 = vector.load %arg1[%c0_47, %c0_48] : memref<72x8xf32, #tpu.memory_space<vmem>>, vector<72x8xf32>
    %cst_49 = arith.constant dense<0.000000e+00> : vector<512x8xf32>
    %26 = tpu.matmul %24, %25, %cst_49 {dimension_numbers = #tpu.dot_dimension_numbers<[1], [0], [0], [1], [0, 0, 1, 1], [], []>} : vector<512x72xf32>, vector<72x8xf32>, vector<512x8xf32> -> vector<512x8xf32>
    %cst_50 = arith.constant dense<0.000000e+00> : vector<8xf32>
    %27 = vector.multi_reduction <add>, %26, %cst_50 [0] : vector<512x8xf32> to vector<8xf32>
    %28 = vector.shape_cast %27 : vector<8xf32> to vector<1x8xf32>
    %cst_51 = arith.constant 5.120000e+02 : f32
    %29 = vector.broadcast %cst_51 : f32 to vector<1x8xf32>
    %30 = arith.divf %28, %29 : vector<1x8xf32>
    %31 = vector.broadcast %30 : vector<1x8xf32> to vector<512x8xf32>
    %32 = arith.subf %26, %31 : vector<512x8xf32>
    %33 = arith.mulf %32, %32 : vector<512x8xf32>
    %cst_52 = arith.constant dense<0.000000e+00> : vector<8xf32>
    %34 = vector.multi_reduction <add>, %33, %cst_52 [0] : vector<512x8xf32> to vector<8xf32>
    %35 = vector.shape_cast %34 : vector<8xf32> to vector<1x8xf32>
    %cst_53 = arith.constant 5.120000e+02 : f32
    %36 = vector.broadcast %cst_53 : f32 to vector<1x8xf32>
    %37 = arith.divf %35, %36 : vector<1x8xf32>
    %cst_54 = arith.constant 9.99999974E-6 : f32
    %38 = vector.broadcast %cst_54 : f32 to vector<1x8xf32>
    %39 = arith.addf %37, %38 : vector<1x8xf32>
    %40 = math.rsqrt %39 : vector<1x8xf32>
    %41 = vector.broadcast %40 : vector<1x8xf32> to vector<512x8xf32>
    %42 = arith.mulf %32, %41 : vector<512x8xf32>
    %c0_55 = arith.constant 0 : index
    %c0_56 = arith.constant 0 : index
    %43 = vector.load %arg2[%c0_55, %c0_56] : memref<1x8xf32, #tpu.memory_space<vmem>>, vector<1x8xf32>
    %44 = vector.broadcast %43 : vector<1x8xf32> to vector<512x8xf32>
    %45 = arith.mulf %42, %44 : vector<512x8xf32>
    %c0_57 = arith.constant 0 : index
    %c0_58 = arith.constant 0 : index
    %46 = vector.load %arg3[%c0_57, %c0_58] : memref<1x8xf32, #tpu.memory_space<vmem>>, vector<1x8xf32>
    %47 = vector.broadcast %46 : vector<1x8xf32> to vector<512x8xf32>
    %48 = arith.addf %45, %47 : vector<512x8xf32>
    %cst_59 = arith.constant 0.000000e+00 : f32
    %49 = vector.broadcast %cst_59 : f32 to vector<512x8xf32>
    %50 = arith.maximumf %48, %49 : vector<512x8xf32>
    %51 = vector.shape_cast %50 : vector<512x8xf32> to vector<2x16x16x8xf32>
    %c0_60 = arith.constant 0 : index
    %c1_61 = arith.constant 1 : index
    %c1_62 = arith.constant 1 : index
    %c0_63 = arith.constant 0 : index
    %52 = vector.load %arg14[%c0_60, %c1_61, %c1_62, %c0_63] : memref<2x18x18x8xf32, #tpu.memory_space<vmem>>, vector<2x16x16x8xf32>
    tpu.vector_store %arg14[%c0_60, %c1_61, %c1_62, %c0_63], %51 {strides = array<i32>} : memref<2x18x18x8xf32, #tpu.memory_space<vmem>>, vector<2x16x16x8xf32>,
    %c0_64 = arith.constant 0 : index
    %c0_65 = arith.constant 0 : index
    %c0_66 = arith.constant 0 : index
    %c0_67 = arith.constant 0 : index
    %53 = tpu.strided_load %arg14[%c0_64, %c0_65, %c0_66, %c0_67] {strides = array<i32: 1, 2, 2, 1>} : memref<2x18x18x8xf32, #tpu.memory_space<vmem>>, vector<2x8x8x8xf32>
    %54 = vector.shape_cast %53 : vector<2x8x8x8xf32> to vector<128x8xf32>
    %c0_68 = arith.constant 0 : index
    %c0_69 = arith.constant 0 : index
    %c1_70 = arith.constant 1 : index
    %c0_71 = arith.constant 0 : index
    %55 = tpu.strided_load %arg14[%c0_68, %c0_69, %c1_70, %c0_71] {strides = array<i32: 1, 2, 2, 1>} : memref<2x18x18x8xf32, #tpu.memory_space<vmem>>, vector<2x8x8x8xf32>
    %56 = vector.shape_cast %55 : vector<2x8x8x8xf32> to vector<128x8xf32>
    %c0_72 = arith.constant 0 : index
    %c0_73 = arith.constant 0 : index
    %c2_74 = arith.constant 2 : index
    %c0_75 = arith.constant 0 : index
    %57 = tpu.strided_load %arg14[%c0_72, %c0_73, %c2_74, %c0_75] {strides = array<i32: 1, 2, 2, 1>} : memref<2x18x18x8xf32, #tpu.memory_space<vmem>>, vector<2x8x8x8xf32>
    %58 = vector.shape_cast %57 : vector<2x8x8x8xf32> to vector<128x8xf32>
    %c0_76 = arith.constant 0 : index
    %c1_77 = arith.constant 1 : index
    %c0_78 = arith.constant 0 : index
    %c0_79 = arith.constant 0 : index
    %59 = tpu.strided_load %arg14[%c0_76, %c1_77, %c0_78, %c0_79] {strides = array<i32: 1, 2, 2, 1>} : memref<2x18x18x8xf32, #tpu.memory_space<vmem>>, vector<2x8x8x8xf32>
    %60 = vector.shape_cast %59 : vector<2x8x8x8xf32> to vector<128x8xf32>
    %c0_80 = arith.constant 0 : index
    %c1_81 = arith.constant 1 : index
    %c1_82 = arith.constant 1 : index
    %c0_83 = arith.constant 0 : index
    %61 = tpu.strided_load %arg14[%c0_80, %c1_81, %c1_82, %c0_83] {strides = array<i32: 1, 2, 2, 1>} : memref<2x18x18x8xf32, #tpu.memory_space<vmem>>, vector<2x8x8x8xf32>
    %62 = vector.shape_cast %61 : vector<2x8x8x8xf32> to vector<128x8xf32>
    %c0_84 = arith.constant 0 : index
    %c1_85 = arith.constant 1 : index
    %c2_86 = arith.constant 2 : index
    %c0_87 = arith.constant 0 : index
    %63 = tpu.strided_load %arg14[%c0_84, %c1_85, %c2_86, %c0_87] {strides = array<i32: 1, 2, 2, 1>} : memref<2x18x18x8xf32, #tpu.memory_space<vmem>>, vector<2x8x8x8xf32>
    %64 = vector.shape_cast %63 : vector<2x8x8x8xf32> to vector<128x8xf32>
    %c0_88 = arith.constant 0 : index
    %c2_89 = arith.constant 2 : index
    %c0_90 = arith.constant 0 : index
    %c0_91 = arith.constant 0 : index
    %65 = tpu.strided_load %arg14[%c0_88, %c2_89, %c0_90, %c0_91] {strides = array<i32: 1, 2, 2, 1>} : memref<2x18x18x8xf32, #tpu.memory_space<vmem>>, vector<2x8x8x8xf32>
    %66 = vector.shape_cast %65 : vector<2x8x8x8xf32> to vector<128x8xf32>
    %c0_92 = arith.constant 0 : index
    %c2_93 = arith.constant 2 : index
    %c1_94 = arith.constant 1 : index
    %c0_95 = arith.constant 0 : index
    %67 = tpu.strided_load %arg14[%c0_92, %c2_93, %c1_94, %c0_95] {strides = array<i32: 1, 2, 2, 1>} : memref<2x18x18x8xf32, #tpu.memory_space<vmem>>, vector<2x8x8x8xf32>
    %68 = vector.shape_cast %67 : vector<2x8x8x8xf32> to vector<128x8xf32>
    %c0_96 = arith.constant 0 : index
    %c2_97 = arith.constant 2 : index
    %c2_98 = arith.constant 2 : index
    %c0_99 = arith.constant 0 : index
    %69 = tpu.strided_load %arg14[%c0_96, %c2_97, %c2_98, %c0_99] {strides = array<i32: 1, 2, 2, 1>} : memref<2x18x18x8xf32, #tpu.memory_space<vmem>>, vector<2x8x8x8xf32>
    %70 = vector.shape_cast %69 : vector<2x8x8x8xf32> to vector<128x8xf32>
    %71 = tpu.concatenate %54, %56, %58, %60, %62, %64, %66, %68, %70 in 1 : vector<128x8xf32>, vector<128x8xf32>, vector<128x8xf32>, vector<128x8xf32>, vector<128x8xf32>, vector<128x8xf32>, vector<128x8xf32>, vector<128x8xf32>, vector<128x8xf32> -> vector<128x72xf32>
    %c0_100 = arith.constant 0 : index
    %c0_101 = arith.constant 0 : index
    %72 = vector.load %arg4[%c0_100, %c0_101] : memref<72x16xf32, #tpu.memory_space<vmem>>, vector<72x16xf32>
    %cst_102 = arith.constant dense<0.000000e+00> : vector<128x16xf32>
    %73 = tpu.matmul %71, %72, %cst_102 {dimension_numbers = #tpu.dot_dimension_numbers<[1], [0], [0], [1], [0, 0, 1, 1], [], []>} : vector<128x72xf32>, vector<72x16xf32>, vector<128x16xf32> -> vector<128x16xf32>
    %cst_103 = arith.constant dense<0.000000e+00> : vector<16xf32>
    %74 = vector.multi_reduction <add>, %73, %cst_103 [0] : vector<128x16xf32> to vector<16xf32>
    %75 = vector.shape_cast %74 : vector<16xf32> to vector<1x16xf32>
    %cst_104 = arith.constant 1.280000e+02 : f32
    %76 = vector.broadcast %cst_104 : f32 to vector<1x16xf32>
    %77 = arith.divf %75, %76 : vector<1x16xf32>
    %78 = vector.broadcast %77 : vector<1x16xf32> to vector<128x16xf32>
    %79 = arith.subf %73, %78 : vector<128x16xf32>
    %80 = arith.mulf %79, %79 : vector<128x16xf32>
    %cst_105 = arith.constant dense<0.000000e+00> : vector<16xf32>
    %81 = vector.multi_reduction <add>, %80, %cst_105 [0] : vector<128x16xf32> to vector<16xf32>
    %82 = vector.shape_cast %81 : vector<16xf32> to vector<1x16xf32>
    %cst_106 = arith.constant 1.280000e+02 : f32
    %83 = vector.broadcast %cst_106 : f32 to vector<1x16xf32>
    %84 = arith.divf %82, %83 : vector<1x16xf32>
    %cst_107 = arith.constant 9.99999974E-6 : f32
    %85 = vector.broadcast %cst_107 : f32 to vector<1x16xf32>
    %86 = arith.addf %84, %85 : vector<1x16xf32>
    %87 = math.rsqrt %86 : vector<1x16xf32>
    %88 = vector.broadcast %87 : vector<1x16xf32> to vector<128x16xf32>
    %89 = arith.mulf %79, %88 : vector<128x16xf32>
    %c0_108 = arith.constant 0 : index
    %c0_109 = arith.constant 0 : index
    %90 = vector.load %arg5[%c0_108, %c0_109] : memref<1x16xf32, #tpu.memory_space<vmem>>, vector<1x16xf32>
    %91 = vector.broadcast %90 : vector<1x16xf32> to vector<128x16xf32>
    %92 = arith.mulf %89, %91 : vector<128x16xf32>
    %c0_110 = arith.constant 0 : index
    %c0_111 = arith.constant 0 : index
    %93 = vector.load %arg6[%c0_110, %c0_111] : memref<1x16xf32, #tpu.memory_space<vmem>>, vector<1x16xf32>
    %94 = vector.broadcast %93 : vector<1x16xf32> to vector<128x16xf32>
    %95 = arith.addf %92, %94 : vector<128x16xf32>
    %cst_112 = arith.constant 0.000000e+00 : f32
    %96 = vector.broadcast %cst_112 : f32 to vector<128x16xf32>
    %97 = arith.maximumf %95, %96 : vector<128x16xf32>
    %98 = vector.shape_cast %97 : vector<128x16xf32> to vector<2x8x8x16xf32>
    %c0_113 = arith.constant 0 : index
    %c1_114 = arith.constant 1 : index
    %c1_115 = arith.constant 1 : index
    %c0_116 = arith.constant 0 : index
    %99 = vector.load %arg15[%c0_113, %c1_114, %c1_115, %c0_116] : memref<2x10x10x16xf32, #tpu.memory_space<vmem>>, vector<2x8x8x16xf32>
    tpu.vector_store %arg15[%c0_113, %c1_114, %c1_115, %c0_116], %98 {strides = array<i32>} : memref<2x10x10x16xf32, #tpu.memory_space<vmem>>, vector<2x8x8x16xf32>,
    %c0_117 = arith.constant 0 : index
    %c0_118 = arith.constant 0 : index
    %c0_119 = arith.constant 0 : index
    %c0_120 = arith.constant 0 : index
    %100 = tpu.strided_load %arg15[%c0_117, %c0_118, %c0_119, %c0_120] {strides = array<i32: 1, 4, 4, 1>} : memref<2x10x10x16xf32, #tpu.memory_space<vmem>>, vector<2x2x2x16xf32>
    %101 = vector.shape_cast %100 : vector<2x2x2x16xf32> to vector<8x16xf32>
    %c0_121 = arith.constant 0 : index
    %c0_122 = arith.constant 0 : index
    %c1_123 = arith.constant 1 : index
    %c0_124 = arith.constant 0 : index
    %102 = tpu.strided_load %arg15[%c0_121, %c0_122, %c1_123, %c0_124] {strides = array<i32: 1, 4, 4, 1>} : memref<2x10x10x16xf32, #tpu.memory_space<vmem>>, vector<2x2x2x16xf32>
    %103 = vector.shape_cast %102 : vector<2x2x2x16xf32> to vector<8x16xf32>
    %c0_125 = arith.constant 0 : index
    %c0_126 = arith.constant 0 : index
    %c2_127 = arith.constant 2 : index
    %c0_128 = arith.constant 0 : index
    %104 = tpu.strided_load %arg15[%c0_125, %c0_126, %c2_127, %c0_128] {strides = array<i32: 1, 4, 4, 1>} : memref<2x10x10x16xf32, #tpu.memory_space<vmem>>, vector<2x2x2x16xf32>
    %105 = vector.shape_cast %104 : vector<2x2x2x16xf32> to vector<8x16xf32>
    %c0_129 = arith.constant 0 : index
    %c1_130 = arith.constant 1 : index
    %c0_131 = arith.constant 0 : index
    %c0_132 = arith.constant 0 : index
    %106 = tpu.strided_load %arg15[%c0_129, %c1_130, %c0_131, %c0_132] {strides = array<i32: 1, 4, 4, 1>} : memref<2x10x10x16xf32, #tpu.memory_space<vmem>>, vector<2x2x2x16xf32>
    %107 = vector.shape_cast %106 : vector<2x2x2x16xf32> to vector<8x16xf32>
    %c0_133 = arith.constant 0 : index
    %c1_134 = arith.constant 1 : index
    %c1_135 = arith.constant 1 : index
    %c0_136 = arith.constant 0 : index
    %108 = tpu.strided_load %arg15[%c0_133, %c1_134, %c1_135, %c0_136] {strides = array<i32: 1, 4, 4, 1>} : memref<2x10x10x16xf32, #tpu.memory_space<vmem>>, vector<2x2x2x16xf32>
    %109 = vector.shape_cast %108 : vector<2x2x2x16xf32> to vector<8x16xf32>
    %c0_137 = arith.constant 0 : index
    %c1_138 = arith.constant 1 : index
    %c2_139 = arith.constant 2 : index
    %c0_140 = arith.constant 0 : index
    %110 = tpu.strided_load %arg15[%c0_137, %c1_138, %c2_139, %c0_140] {strides = array<i32: 1, 4, 4, 1>} : memref<2x10x10x16xf32, #tpu.memory_space<vmem>>, vector<2x2x2x16xf32>
    %111 = vector.shape_cast %110 : vector<2x2x2x16xf32> to vector<8x16xf32>
    %c0_141 = arith.constant 0 : index
    %c2_142 = arith.constant 2 : index
    %c0_143 = arith.constant 0 : index
    %c0_144 = arith.constant 0 : index
    %112 = tpu.strided_load %arg15[%c0_141, %c2_142, %c0_143, %c0_144] {strides = array<i32: 1, 4, 4, 1>} : memref<2x10x10x16xf32, #tpu.memory_space<vmem>>, vector<2x2x2x16xf32>
    %113 = vector.shape_cast %112 : vector<2x2x2x16xf32> to vector<8x16xf32>
    %c0_145 = arith.constant 0 : index
    %c2_146 = arith.constant 2 : index
    %c1_147 = arith.constant 1 : index
    %c0_148 = arith.constant 0 : index
    %114 = tpu.strided_load %arg15[%c0_145, %c2_146, %c1_147, %c0_148] {strides = array<i32: 1, 4, 4, 1>} : memref<2x10x10x16xf32, #tpu.memory_space<vmem>>, vector<2x2x2x16xf32>
    %115 = vector.shape_cast %114 : vector<2x2x2x16xf32> to vector<8x16xf32>
    %c0_149 = arith.constant 0 : index
    %c2_150 = arith.constant 2 : index
    %c2_151 = arith.constant 2 : index
    %c0_152 = arith.constant 0 : index
    %116 = tpu.strided_load %arg15[%c0_149, %c2_150, %c2_151, %c0_152] {strides = array<i32: 1, 4, 4, 1>} : memref<2x10x10x16xf32, #tpu.memory_space<vmem>>, vector<2x2x2x16xf32>
    %117 = vector.shape_cast %116 : vector<2x2x2x16xf32> to vector<8x16xf32>
    %118 = tpu.concatenate %101, %103, %105, %107, %109, %111, %113, %115, %117 in 1 : vector<8x16xf32>, vector<8x16xf32>, vector<8x16xf32>, vector<8x16xf32>, vector<8x16xf32>, vector<8x16xf32>, vector<8x16xf32>, vector<8x16xf32>, vector<8x16xf32> -> vector<8x144xf32>
    %c0_153 = arith.constant 0 : index
    %c0_154 = arith.constant 0 : index
    %119 = vector.load %arg7[%c0_153, %c0_154] : memref<144x32xf32, #tpu.memory_space<vmem>>, vector<144x32xf32>
    %cst_155 = arith.constant dense<0.000000e+00> : vector<8x32xf32>
    %120 = tpu.matmul %118, %119, %cst_155 {dimension_numbers = #tpu.dot_dimension_numbers<[1], [0], [0], [1], [0, 0, 1, 1], [], []>} : vector<8x144xf32>, vector<144x32xf32>, vector<8x32xf32> -> vector<8x32xf32>
    %cst_156 = arith.constant dense<0.000000e+00> : vector<32xf32>
    %121 = vector.multi_reduction <add>, %120, %cst_156 [0] : vector<8x32xf32> to vector<32xf32>
    %122 = vector.shape_cast %121 : vector<32xf32> to vector<1x32xf32>
    %cst_157 = arith.constant 8.000000e+00 : f32
    %123 = vector.broadcast %cst_157 : f32 to vector<1x32xf32>
    %124 = arith.divf %122, %123 : vector<1x32xf32>
    %125 = vector.broadcast %124 : vector<1x32xf32> to vector<8x32xf32>
    %126 = arith.subf %120, %125 : vector<8x32xf32>
    %127 = arith.mulf %126, %126 : vector<8x32xf32>
    %cst_158 = arith.constant dense<0.000000e+00> : vector<32xf32>
    %128 = vector.multi_reduction <add>, %127, %cst_158 [0] : vector<8x32xf32> to vector<32xf32>
    %129 = vector.shape_cast %128 : vector<32xf32> to vector<1x32xf32>
    %cst_159 = arith.constant 8.000000e+00 : f32
    %130 = vector.broadcast %cst_159 : f32 to vector<1x32xf32>
    %131 = arith.divf %129, %130 : vector<1x32xf32>
    %cst_160 = arith.constant 9.99999974E-6 : f32
    %132 = vector.broadcast %cst_160 : f32 to vector<1x32xf32>
    %133 = arith.addf %131, %132 : vector<1x32xf32>
    %134 = math.rsqrt %133 : vector<1x32xf32>
    %135 = vector.broadcast %134 : vector<1x32xf32> to vector<8x32xf32>
    %136 = arith.mulf %126, %135 : vector<8x32xf32>
    %c0_161 = arith.constant 0 : index
    %c0_162 = arith.constant 0 : index
    %137 = vector.load %arg8[%c0_161, %c0_162] : memref<1x32xf32, #tpu.memory_space<vmem>>, vector<1x32xf32>
    %138 = vector.broadcast %137 : vector<1x32xf32> to vector<8x32xf32>
    %139 = arith.mulf %136, %138 : vector<8x32xf32>
    %c0_163 = arith.constant 0 : index
    %c0_164 = arith.constant 0 : index
    %140 = vector.load %arg9[%c0_163, %c0_164] : memref<1x32xf32, #tpu.memory_space<vmem>>, vector<1x32xf32>
    %141 = vector.broadcast %140 : vector<1x32xf32> to vector<8x32xf32>
    %142 = arith.addf %139, %141 : vector<8x32xf32>
    %cst_165 = arith.constant 0.000000e+00 : f32
    %143 = vector.broadcast %cst_165 : f32 to vector<8x32xf32>
    %144 = arith.maximumf %142, %143 : vector<8x32xf32>
    %145 = vector.shape_cast %144 : vector<8x32xf32> to vector<2x2x2x32xf32>
    %c0_166 = arith.constant 0 : index
    %c1_167 = arith.constant 1 : index
    %c1_168 = arith.constant 1 : index
    %c0_169 = arith.constant 0 : index
    %146 = vector.load %arg16[%c0_166, %c1_167, %c1_168, %c0_169] : memref<2x4x4x32xf32, #tpu.memory_space<vmem>>, vector<2x2x2x32xf32>
    tpu.vector_store %arg16[%c0_166, %c1_167, %c1_168, %c0_169], %145 {strides = array<i32>} : memref<2x4x4x32xf32, #tpu.memory_space<vmem>>, vector<2x2x2x32xf32>,
    %c0_170 = arith.constant 0 : index
    %c0_171 = arith.constant 0 : index
    %c0_172 = arith.constant 0 : index
    %c0_173 = arith.constant 0 : index
    %147 = tpu.strided_load %arg16[%c0_170, %c0_171, %c0_172, %c0_173] {strides = array<i32: 1, 2, 2, 1>} : memref<2x4x4x32xf32, #tpu.memory_space<vmem>>, vector<2x1x1x32xf32>
    %148 = vector.shape_cast %147 : vector<2x1x1x32xf32> to vector<2x32xf32>
    %c0_174 = arith.constant 0 : index
    %c0_175 = arith.constant 0 : index
    %c1_176 = arith.constant 1 : index
    %c0_177 = arith.constant 0 : index
    %149 = tpu.strided_load %arg16[%c0_174, %c0_175, %c1_176, %c0_177] {strides = array<i32: 1, 2, 2, 1>} : memref<2x4x4x32xf32, #tpu.memory_space<vmem>>, vector<2x1x1x32xf32>
    %150 = vector.shape_cast %149 : vector<2x1x1x32xf32> to vector<2x32xf32>
    %c0_178 = arith.constant 0 : index
    %c0_179 = arith.constant 0 : index
    %c2_180 = arith.constant 2 : index
    %c0_181 = arith.constant 0 : index
    %151 = tpu.strided_load %arg16[%c0_178, %c0_179, %c2_180, %c0_181] {strides = array<i32: 1, 2, 2, 1>} : memref<2x4x4x32xf32, #tpu.memory_space<vmem>>, vector<2x1x1x32xf32>
    %152 = vector.shape_cast %151 : vector<2x1x1x32xf32> to vector<2x32xf32>
    %c0_182 = arith.constant 0 : index
    %c1_183 = arith.constant 1 : index
    %c0_184 = arith.constant 0 : index
    %c0_185 = arith.constant 0 : index
    %153 = tpu.strided_load %arg16[%c0_182, %c1_183, %c0_184, %c0_185] {strides = array<i32: 1, 2, 2, 1>} : memref<2x4x4x32xf32, #tpu.memory_space<vmem>>, vector<2x1x1x32xf32>
    %154 = vector.shape_cast %153 : vector<2x1x1x32xf32> to vector<2x32xf32>
    %c0_186 = arith.constant 0 : index
    %c1_187 = arith.constant 1 : index
    %c1_188 = arith.constant 1 : index
    %c0_189 = arith.constant 0 : index
    %155 = tpu.strided_load %arg16[%c0_186, %c1_187, %c1_188, %c0_189] {strides = array<i32: 1, 2, 2, 1>} : memref<2x4x4x32xf32, #tpu.memory_space<vmem>>, vector<2x1x1x32xf32>
    %156 = vector.shape_cast %155 : vector<2x1x1x32xf32> to vector<2x32xf32>
    %c0_190 = arith.constant 0 : index
    %c1_191 = arith.constant 1 : index
    %c2_192 = arith.constant 2 : index
    %c0_193 = arith.constant 0 : index
    %157 = tpu.strided_load %arg16[%c0_190, %c1_191, %c2_192, %c0_193] {strides = array<i32: 1, 2, 2, 1>} : memref<2x4x4x32xf32, #tpu.memory_space<vmem>>, vector<2x1x1x32xf32>
    %158 = vector.shape_cast %157 : vector<2x1x1x32xf32> to vector<2x32xf32>
    %c0_194 = arith.constant 0 : index
    %c2_195 = arith.constant 2 : index
    %c0_196 = arith.constant 0 : index
    %c0_197 = arith.constant 0 : index
    %159 = tpu.strided_load %arg16[%c0_194, %c2_195, %c0_196, %c0_197] {strides = array<i32: 1, 2, 2, 1>} : memref<2x4x4x32xf32, #tpu.memory_space<vmem>>, vector<2x1x1x32xf32>
    %160 = vector.shape_cast %159 : vector<2x1x1x32xf32> to vector<2x32xf32>
    %c0_198 = arith.constant 0 : index
    %c2_199 = arith.constant 2 : index
    %c1_200 = arith.constant 1 : index
    %c0_201 = arith.constant 0 : index
    %161 = tpu.strided_load %arg16[%c0_198, %c2_199, %c1_200, %c0_201] {strides = array<i32: 1, 2, 2, 1>} : memref<2x4x4x32xf32, #tpu.memory_space<vmem>>, vector<2x1x1x32xf32>
    %162 = vector.shape_cast %161 : vector<2x1x1x32xf32> to vector<2x32xf32>
    %c0_202 = arith.constant 0 : index
    %c2_203 = arith.constant 2 : index
    %c2_204 = arith.constant 2 : index
    %c0_205 = arith.constant 0 : index
    %163 = tpu.strided_load %arg16[%c0_202, %c2_203, %c2_204, %c0_205] {strides = array<i32: 1, 2, 2, 1>} : memref<2x4x4x32xf32, #tpu.memory_space<vmem>>, vector<2x1x1x32xf32>
    %164 = vector.shape_cast %163 : vector<2x1x1x32xf32> to vector<2x32xf32>
    %165 = tpu.concatenate %148, %150, %152, %154, %156, %158, %160, %162, %164 in 1 : vector<2x32xf32>, vector<2x32xf32>, vector<2x32xf32>, vector<2x32xf32>, vector<2x32xf32>, vector<2x32xf32>, vector<2x32xf32>, vector<2x32xf32>, vector<2x32xf32> -> vector<2x288xf32>
    %c0_206 = arith.constant 0 : index
    %c0_207 = arith.constant 0 : index
    %166 = vector.load %arg10[%c0_206, %c0_207] : memref<288x64xf32, #tpu.memory_space<vmem>>, vector<288x64xf32>
    %cst_208 = arith.constant dense<0.000000e+00> : vector<2x64xf32>
    %167 = tpu.matmul %165, %166, %cst_208 {dimension_numbers = #tpu.dot_dimension_numbers<[1], [0], [0], [1], [0, 0, 1, 1], [], []>} : vector<2x288xf32>, vector<288x64xf32>, vector<2x64xf32> -> vector<2x64xf32>
    %cst_209 = arith.constant dense<0.000000e+00> : vector<64xf32>
    %168 = vector.multi_reduction <add>, %167, %cst_209 [0] : vector<2x64xf32> to vector<64xf32>
    %169 = vector.shape_cast %168 : vector<64xf32> to vector<1x64xf32>
    %cst_210 = arith.constant 2.000000e+00 : f32
    %170 = vector.broadcast %cst_210 : f32 to vector<1x64xf32>
    %171 = arith.divf %169, %170 : vector<1x64xf32>
    %172 = vector.broadcast %171 : vector<1x64xf32> to vector<2x64xf32>
    %173 = arith.subf %167, %172 : vector<2x64xf32>
    %174 = arith.mulf %173, %173 : vector<2x64xf32>
    %cst_211 = arith.constant dense<0.000000e+00> : vector<64xf32>
    %175 = vector.multi_reduction <add>, %174, %cst_211 [0] : vector<2x64xf32> to vector<64xf32>
    %176 = vector.shape_cast %175 : vector<64xf32> to vector<1x64xf32>
    %cst_212 = arith.constant 2.000000e+00 : f32
    %177 = vector.broadcast %cst_212 : f32 to vector<1x64xf32>
    %178 = arith.divf %176, %177 : vector<1x64xf32>
    %cst_213 = arith.constant 9.99999974E-6 : f32
    %179 = vector.broadcast %cst_213 : f32 to vector<1x64xf32>
    %180 = arith.addf %178, %179 : vector<1x64xf32>
    %181 = math.rsqrt %180 : vector<1x64xf32>
    %182 = vector.broadcast %181 : vector<1x64xf32> to vector<2x64xf32>
    %183 = arith.mulf %173, %182 : vector<2x64xf32>
    %c0_214 = arith.constant 0 : index
    %c0_215 = arith.constant 0 : index
    %184 = vector.load %arg11[%c0_214, %c0_215] : memref<1x64xf32, #tpu.memory_space<vmem>>, vector<1x64xf32>
    %185 = vector.broadcast %184 : vector<1x64xf32> to vector<2x64xf32>
    %186 = arith.mulf %183, %185 : vector<2x64xf32>
    %c0_216 = arith.constant 0 : index
    %c0_217 = arith.constant 0 : index
    %187 = vector.load %arg12[%c0_216, %c0_217] : memref<1x64xf32, #tpu.memory_space<vmem>>, vector<1x64xf32>
    %188 = vector.broadcast %187 : vector<1x64xf32> to vector<2x64xf32>
    %189 = arith.addf %186, %188 : vector<2x64xf32>
    %cst_218 = arith.constant 0.000000e+00 : f32
    %190 = vector.broadcast %cst_218 : f32 to vector<2x64xf32>
    %191 = arith.maximumf %189, %190 : vector<2x64xf32>
    %192 = vector.shape_cast %191 : vector<2x64xf32> to vector<2x1x1x64xf32>
    %c0_219 = arith.constant 0 : index
    %c0_220 = arith.constant 0 : index
    %c0_221 = arith.constant 0 : index
    %c0_222 = arith.constant 0 : index
    %193 = vector.load %arg13[%c0_219, %c0_220, %c0_221, %c0_222] : memref<2x1x1x64xf32, #tpu.memory_space<vmem>>, vector<2x1x1x64xf32>
    tpu.vector_store %arg13[%c0_219, %c0_220, %c0_221, %c0_222], %192 {strides = array<i32>} : memref<2x1x1x64xf32, #tpu.memory_space<vmem>>, vector<2x1x1x64xf32>,
    return
  }
}

</mosaic_0001>

<bundles_post_ra>
// kernel: conv4_forward.1
= control target key start
LH: loop header
LB: loop body
LE: loop exit
PB: predicated region body
PF: predicated region fallthrough
CT: control target
= control target key end

     0   :  { %s13874_s29 = smov 8   ;;  %s13860_s0 = inlined_call_operand.vmem [shape: f32[2,34,34,8], index: 0, kind: input, shape index: {}]   ;;  %s13861_s1 = inlined_call_operand.vmem [shape: f32[72,8], index: 1, kind: input, shape index: {}]   ;;  %s13862_s2 = inlined_call_operand.vmem [shape: f32[1,8], index: 2, kind: input, shape index: {}]   ;;  %s13863_s3 = inlined_call_operand.vmem [shape: f32[1,8], index: 3, kind: input, shape index: {}]   ;;  %s13864_s4 = inlined_call_operand.vmem [shape: f32[72,16], index: 4, kind: input, shape index: {}]   ;;  %s13865_s5 = inlined_call_operand.vmem [shape: f32[1,16], index: 5, kind: input, shape index: {}]   ;;  %s13866_s6 = inlined_call_operand.vmem [shape: f32[1,16], index: 6, kind: input, shape index: {}]   ;;  %s13867_s7 = inlined_call_operand.vmem [shape: f32[144,32], index: 7, kind: input, shape index: {}]   ;;  %s13868_s8 = inlined_call_operand.vmem [shape: f32[1,32], index: 8, kind: input, shape index: {}]   ;;  %s13869_s9 = inlined_call_operand.vmem [shape: f32[1,32], index: 9, kind: input, shape index: {}]   ;;  %s13870_s10 = inlined_call_operand.vmem [shape: f32[288,64], index: 10, kind: input, shape index: {}]   ;;  %s13871_s11 = inlined_call_operand.vmem [shape: f32[1,64], index: 11, kind: input, shape index: {}]   ;;  %s13872_s12 = inlined_call_operand.vmem [shape: f32[1,64], index: 12, kind: input, shape index: {}]   ;;  %s13873_s13 = inlined_call_operand.hbm [shape: f32[2,1,1,64], index: 13, kind: output, shape index: {}]  }
   0x1   :  { %v7514_v0 = vld [vmem:[%s13860_s0 + $0xa1] ss:$2 sm:$0xff]  ;;  %v7512_v1 = vld [vmem:[%s13860_s0 + $0x51] ss:$2 sm:$0xff] }
   0x2   :  { %1429 = vrot.lane.b32.xlu2 %v7514_v0, %s13874_s29  ;;  %1425 = vrot.lane.b32.xlu1 %v7512_v1, %s13874_s29  ;;  %v7510_v2 = vld [vmem:[%s13860_s0 + $0x1] ss:$2 sm:$0xff]  ;;  %v7515_v3 = vld [vmem:[%s13860_s0 + $0xb1] ss:$2 sm:$0xff] }
   0x3   :  { %1421 = vrot.lane.b32.xlu0 %v7510_v2, %s13874_s29  ;;  %v7513_v4 = vld [vmem:[%s13860_s0 + $0x61] ss:$2 sm:$0xff]  ;;  %v7511_v5 = vld [vmem:[%s13860_s0 + $0x11] ss:$2 sm:$0xff] }
   0x4   :  { %18 = vsyncpa [#allocation6], 0  ;;  %v7518_v6 = vld [vmem:[%s13860_s0 + $0x141] ss:$2 sm:$0xff]  ;;  %v7516_v8 = vld [vmem:[%s13860_s0 + $0xf1] ss:$2 sm:$0xff] }
   0x5   :  { %v7517_v7 = vld [vmem:[%s13860_s0 + $0x101] ss:$2 sm:$0xff]  ;;  %v7520_v10 = vld [vmem:[%s13860_s0 + $0x191] ss:$2 sm:$0xff]  ;;  %s8205_s30 = smov 16   ;;  %s8206_s20 = smov 40  }
   0x6   :  { %v7521_v9 = vld [vmem:[%s13860_s0 + $0x1a1] ss:$2 sm:$0xff]  ;;  %v7519_v11 = vld [vmem:[%s13860_s0 + $0x151] ss:$2 sm:$0xff]  ;;  %s8207_s21 = smov 32   ;;  %s8208_s22 = smov 24  }
   0x7   :  { %v7524_v12 = vld [vmem:[%s13860_s0 + $0x231] ss:$2 sm:$0xff]  ;;  %v7522_v14 = vld [vmem:[%s13860_s0 + $0x1e1] ss:$2 sm:$0xff]  ;;  %s8209_s14 = smov 64   ;;  %s8210_s15 = smov 56  }
   0x8   :  { %v7523_v13 = vld [vmem:[%s13860_s0 + $0x1f1] ss:$2 sm:$0xff]  ;;  %v7526_v16 = vld [vmem:[%s13860_s0 + $0x281] ss:$2 sm:$0xff]  ;;  %s8211_s16 = smov 48   ;;  %vm45_vm0 = vcmask 64512  }
   0x9   :  { %v7527_v15 = vld [vmem:[%s13860_s0 + $0x291] ss:$2 sm:$0xff]  ;;  %v7525_v17 = vld [vmem:[%s13860_s0 + $0x241] ss:$2 sm:$0xff]  ;;  %vm3533_vm1 = vcmask 195584   ;;  %vm155_vm2 = vcmask 130048  }
   0xa   :  { %1431 = vrot.lane.b32.xlu2 %v7515_v3, %s13874_s29  ;;  %1427 = vrot.lane.b32.xlu1 %v7513_v4, %s13874_s29  ;;  %v7530_v18 = vld [vmem:[%s13860_s0 + $0x321] ss:$2 sm:$0xff]  ;;  %v7528_v20 = vld [vmem:[%s13860_s0 + $0x2d1] ss:$2 sm:$0xff]  ;;  %vm3598_vm3 = vcmask 261120   ;;  %vm3663_vm4 = vcmask 326656  }
   0xb   :  { %1423 = vrot.lane.b32.xlu0 %v7511_v5, %s13874_s29  ;;  %v7529_v19 = vld [vmem:[%s13860_s0 + $0x2e1] ss:$2 sm:$0xff]  ;;  %v7532_v22 = vld [vmem:[%s13860_s0 + $0x371] ss:$2 sm:$0xff]  ;;  %vm3728_vm5 = vcmask 392192   ;;  %vm3793_vm6 = vcmask 457728  }
   0xc   :  { %v7533_v21 = vld [vmem:[%s13860_s0 + $0x381] ss:$2 sm:$0xff]  ;;  %v7531_v23 = vld [vmem:[%s13860_s0 + $0x331] ss:$2 sm:$0xff]  ;;  %vm3858_vm7 = vcmask 523264   ;;  %vm3932_vm8 = vcmask 588800  }
   0xd   :  { %v7536_v24 = vld [vmem:[%s13860_s0 + $0x411] ss:$2 sm:$0xff]  ;;  %v7534_v26 = vld [vmem:[%s13860_s0 + $0x3c1] ss:$2 sm:$0xff]  ;;  %vm48_vm9 = vcmask 58368   ;;  %s8215_s28 = smov 80  }
   0xe   :  { %v7535_v25 = vld [vmem:[%s13860_s0 + $0x3d1] ss:$2 sm:$0xff]  ;;  %v7538_v28 = vld [vmem:[%s13860_s0 + $0x461] ss:$2 sm:$0xff]  ;;  %s8217_s19 = smov 112   ;;  %s8220_s23 = smov [#allocation5]  }
   0xf   :  { %v7539_v27 = vld [vmem:[%s13860_s0 + $0x471] ss:$2 sm:$0xff]  ;;  %v7537_v29 = vld [vmem:[%s13860_s0 + $0x421] ss:$2 sm:$0xff]  ;;  %s6925_s24 = sshll.u32 %s8220_s23, 4  ;;  %s6926_s24 = int_to_ptr.vmem [resolvable:$true] %s6925_s24 }
  0x10   :  { %v7542_v30 = vld [vmem:[%s13860_s0 + $0x551] ss:$2 sm:$0xff]  ;;  %v7541_v31 = vld [vmem:[%s13860_s0 + $0x4c1] ss:$2 sm:$0xff] }
  0x11   :  { %v7540_v32 = vld [vmem:[%s13860_s0 + $0x4b1] ss:$2 sm:$0xff]  ;;  %v7544_v34 = vld [vmem:[%s13860_s0 + $0x5a1] ss:$2 sm:$0xff] }
  0x12   :  { %1437 = vrot.lane.b32.xlu2 %v7518_v6, %s13874_s29  ;;  %1435 = vrot.lane.b32.xlu1 %v7517_v7, %s13874_s29  ;;  %v7545_v33 = vld [vmem:[%s13860_s0 + $0x5b1] ss:$2 sm:$0xff]  ;;  %v7543_v35 = vld [vmem:[%s13860_s0 + $0x561] ss:$2 sm:$0xff] }
  0x13   :  { %1433 = vrot.lane.b32.xlu0 %v7516_v8, %s13874_s29  ;;  %v7548_v37 = vld [vmem:[%s13860_s0 + $0x641] ss:$2 sm:$0xff]  ;;  %v7546_v39 = vld [vmem:[%s13860_s0 + $0x5f1] ss:$2 sm:$0xff] }
  0x14   :  { %v7547_v38 = vld [vmem:[%s13860_s0 + $0x601] ss:$2 sm:$0xff]  ;;  %v7550_v42 = vld [vmem:[%s13860_s0 + $0x691] ss:$2 sm:$0xff] }
  0x15   :  { %v7551_v41 = vld [vmem:[%s13860_s0 + $0x6a1] ss:$2 sm:$0xff]  ;;  %v7549_v43 = vld [vmem:[%s13860_s0 + $0x651] ss:$2 sm:$0xff] }
  0x16   :  { %v7554_v45 = vld [vmem:[%s13860_s0 + $0x731] ss:$2 sm:$0xff]  ;;  %v7552_v47 = vld [vmem:[%s13860_s0 + $0x6e1] ss:$2 sm:$0xff] }
  0x17   :  { %v7553_v46 = vld [vmem:[%s13860_s0 + $0x6f1] ss:$2 sm:$0xff]  ;;  %v7556_v52 = vld [vmem:[%s13860_s0 + $0x781] ss:$2 sm:$0xff] }
  0x18   :  { %v7557_v51 = vld [vmem:[%s13860_s0 + $0x791] ss:$2 sm:$0xff]  ;;  %v7555_v53 = vld [vmem:[%s13860_s0 + $0x741] ss:$2 sm:$0xff] }
  0x19   :  { %v7560_v57 = vld [vmem:[%s13860_s0 + $0x821] ss:$2 sm:$0xff]  ;;  %v7558_v59 = vld [vmem:[%s13860_s0 + $0x7d1] ss:$2 sm:$0xff] }
  0x1a   :  { %1443 = vrot.lane.b32.xlu2 %v7521_v9, %s13874_s29  ;;  %1441 = vrot.lane.b32.xlu1 %v7520_v10, %s13874_s29  ;;  %v7559_v58 = vld [vmem:[%s13860_s0 + $0x7e1] ss:$2 sm:$0xff]  ;;  %v7562_v0 = vld [vmem:[%s13860_s0 + $0x871] ss:$2 sm:$0xff] }
  0x1b   :  { %1439 = vrot.lane.b32.xlu0 %v7519_v11, %s13874_s29  ;;  %v7563_v63 = vld [vmem:[%s13860_s0 + $0x881] ss:$2 sm:$0xff]  ;;  %v7561_v1 = vld [vmem:[%s13860_s0 + $0x831] ss:$2 sm:$0xff] }
  0x1c   :  { %v7566_v5 = vld [vmem:[%s13860_s0 + $0x911] ss:$2 sm:$0xff]  ;;  %v7564_v7 = vld [vmem:[%s13860_s0 + $0x8c1] ss:$2 sm:$0xff] }
  0x1d   :  { %v7565_v6 = vld [vmem:[%s13860_s0 + $0x8d1] ss:$2 sm:$0xff] }
  0x1e   :  { %v7569_v11 = vld [vmem:[%s13860_s0 + $0x971] ss:$2 sm:$0xff] }
  0x22   :  { %1449 = vrot.lane.b32.xlu2 %v7524_v12, %s13874_s29  ;;  %1447 = vrot.lane.b32.xlu1 %v7523_v13, %s13874_s29  ;;  %v7568_v12 = vld [vmem:[%s13860_s0 + $0x961] ss:$2 sm:$0xff] }
  0x23   :  { %1445 = vrot.lane.b32.xlu0 %v7522_v14, %s13874_s29  ;;  %v7567_v13 = vld [vmem:[%s13860_s0 + $0x921] ss:$2 sm:$0xff] }
  0x2a   :  { %1455 = vrot.lane.b32.xlu2 %v7527_v15, %s13874_s29  ;;  %1453 = vrot.lane.b32.xlu1 %v7526_v16, %s13874_s29 }
  0x2b   :  { %1451 = vrot.lane.b32.xlu0 %v7525_v17, %s13874_s29  ;;  %v7572_v17 = vld [vmem:[%s13860_s0 + $0xa01] ss:$2 sm:$0xff] }
  0x32   :  { %1461 = vrot.lane.b32.xlu2 %v7530_v18, %s13874_s29  ;;  %1459 = vrot.lane.b32.xlu1 %v7529_v19, %s13874_s29  ;;  %v7571_v18 = vld [vmem:[%s13860_s0 + $0x9c1] ss:$2 sm:$0xff]  ;;  %v7570_v19 = vld [vmem:[%s13860_s0 + $0x9b1] ss:$2 sm:$0xff] }
  0x33   :  { %1457 = vrot.lane.b32.xlu0 %v7528_v20, %s13874_s29 }
  0x3a   :  { %1467 = vrot.lane.b32.xlu2 %v7533_v21, %s13874_s29  ;;  %1465 = vrot.lane.b32.xlu1 %v7532_v22, %s13874_s29 }
  0x3b   :  { %1463 = vrot.lane.b32.xlu0 %v7531_v23, %s13874_s29  ;;  %v7575_v23 = vld [vmem:[%s13860_s0 + $0x12] ss:$2 sm:$0xff] }
  0x42   :  { %1473 = vrot.lane.b32.xlu2 %v7536_v24, %s13874_s29  ;;  %1471 = vrot.lane.b32.xlu1 %v7535_v25, %s13874_s29  ;;  %v7574_v24 = vld [vmem:[%s13860_s0 + $0x2] ss:$2 sm:$0xff]  ;;  %v7573_v25 = vld [vmem:[%s13860_s0 + $0xa11] ss:$2 sm:$0xff] }
  0x43   :  { %1469 = vrot.lane.b32.xlu0 %v7534_v26, %s13874_s29 }
  0x4a   :  { %1479 = vrot.lane.b32.xlu2 %v7539_v27, %s13874_s29  ;;  %1477 = vrot.lane.b32.xlu1 %v7538_v28, %s13874_s29 }
  0x4b   :  { %1475 = vrot.lane.b32.xlu0 %v7537_v29, %s13874_s29  ;;  %v7578_v29 = vld [vmem:[%s13860_s0 + $0xa2] ss:$2 sm:$0xff] }
  0x52   :  { %1485 = vrot.lane.b32.xlu2 %v7542_v30, %s13874_s29  ;;  %1483 = vrot.lane.b32.xlu1 %v7541_v31, %s13874_s29  ;;  %v7577_v30 = vld [vmem:[%s13860_s0 + $0x62] ss:$2 sm:$0xff]  ;;  %v7576_v31 = vld [vmem:[%s13860_s0 + $0x52] ss:$2 sm:$0xff] }
  0x53   :  { %1481 = vrot.lane.b32.xlu0 %v7540_v32, %s13874_s29 }
  0x5a   :  { %1491 = vrot.lane.b32.xlu2 %v7545_v33, %s13874_s29  ;;  %1489 = vrot.lane.b32.xlu1 %v7544_v34, %s13874_s29 }
  0x5b   :  { %1487 = vrot.lane.b32.xlu0 %v7543_v35, %s13874_s29  ;;  %v7581_v35 = vld [vmem:[%s13860_s0 + $0x102] ss:$2 sm:$0xff] }
  0x5c   :  { %v8436_v36 = vpop.permute.xlu2 %1429 }
  0x62   :  { %1497 = vrot.lane.b32.xlu2 %v7548_v37, %s13874_s29  ;;  %1495 = vrot.lane.b32.xlu1 %v7547_v38, %s13874_s29  ;;  %v7580_v37 = vld [vmem:[%s13860_s0 + $0xf2] ss:$2 sm:$0xff] }
  0x63   :  { %1493 = vrot.lane.b32.xlu0 %v7546_v39, %s13874_s29  ;;  %v7579_v38 = vld [vmem:[%s13860_s0 + $0xb2] ss:$2 sm:$0xff] }
  0x64   :  { %v8450_v40 = vpop.permute.xlu2 %1431 }
  0x6a   :  { %1503 = vrot.lane.b32.xlu2 %v7551_v41, %s13874_s29  ;;  %1501 = vrot.lane.b32.xlu1 %v7550_v42, %s13874_s29 }
  0x6b   :  { %1499 = vrot.lane.b32.xlu0 %v7549_v43, %s13874_s29  ;;  %v7584_v43 = vld [vmem:[%s13860_s0 + $0x192] ss:$2 sm:$0xff] }
  0x6c   :  { %v8464_v44 = vpop.permute.xlu2 %1437 }
  0x72   :  { %1509 = vrot.lane.b32.xlu2 %v7554_v45, %s13874_s29  ;;  %1507 = vrot.lane.b32.xlu1 %v7553_v46, %s13874_s29  ;;  %v7583_v45 = vld [vmem:[%s13860_s0 + $0x152] ss:$2 sm:$0xff]  ;;  %v7582_v46 = vld [vmem:[%s13860_s0 + $0x142] ss:$2 sm:$0xff] }
  0x73   :  { %1505 = vrot.lane.b32.xlu0 %v7552_v47, %s13874_s29 }
  0x74   :  { %v8478_v48 = vpop.permute.xlu2 %1443  ;;  %v8480_v49 = vpop.permute.xlu1 %1425 }
  0x75   :  { %v8482_v50 = vpop.permute.xlu0 %1421 }
  0x7a   :  { %1515 = vrot.lane.b32.xlu2 %v7557_v51, %s13874_s29  ;;  %1513 = vrot.lane.b32.xlu1 %v7556_v52, %s13874_s29 }
  0x7b   :  { %1511 = vrot.lane.b32.xlu0 %v7555_v53, %s13874_s29  ;;  %v7587_v53 = vld [vmem:[%s13860_s0 + $0x1f2] ss:$2 sm:$0xff] }
  0x7c   :  { %v8496_v54 = vpop.permute.xlu2 %1449  ;;  %v8498_v55 = vpop.permute.xlu1 %1427 }
  0x7d   :  { %v8500_v56 = vpop.permute.xlu0 %1423 }
  0x82   :  { %1521 = vrot.lane.b32.xlu2 %v7560_v57, %s13874_s29  ;;  %1519 = vrot.lane.b32.xlu1 %v7559_v58, %s13874_s29  ;;  %v7586_v57 = vld [vmem:[%s13860_s0 + $0x1e2] ss:$2 sm:$0xff] }
  0x83   :  { %1517 = vrot.lane.b32.xlu0 %v7558_v59, %s13874_s29  ;;  %v7585_v58 = vld [vmem:[%s13860_s0 + $0x1a2] ss:$2 sm:$0xff] }
  0x84   :  { %v8514_v60 = vpop.permute.xlu2 %1455  ;;  %v8516_v61 = vpop.permute.xlu1 %1435 }
  0x85   :  { %v8518_v62 = vpop.permute.xlu0 %1433 }
  0x8a   :  { %1527 = vrot.lane.b32.xlu2 %v7563_v63, %s13874_s29  ;;  %1525 = vrot.lane.b32.xlu1 %v7562_v0, %s13874_s29 }
  0x8b   :  { %1523 = vrot.lane.b32.xlu0 %v7561_v1, %s13874_s29  ;;  %v7590_v1 = vld [vmem:[%s13860_s0 + $0x282] ss:$2 sm:$0xff] }
  0x8c   :  { %v8532_v2 = vpop.permute.xlu2 %1461  ;;  %v8534_v3 = vpop.permute.xlu1 %1441 }
  0x8d   :  { %13919 = vst [vmem:[#allocation8_spill] sm:$0xff] %v8532_v2  ;;  %v8536_v4 = vpop.permute.xlu0 %1439  ;;  %v7704_v2 = vld [vmem:[%s13860_s0 + $0x79] ss:$2 sm:$0xff] }
  0x92   :  { %1533 = vrot.lane.b32.xlu2 %v7566_v5, %s13874_s29  ;;  %1531 = vrot.lane.b32.xlu1 %v7565_v6, %s13874_s29  ;;  %v7589_v5 = vld [vmem:[%s13860_s0 + $0x242] ss:$2 sm:$0xff]  ;;  %v7588_v6 = vld [vmem:[%s13860_s0 + $0x232] ss:$2 sm:$0xff] }
  0x93   :  { %1529 = vrot.lane.b32.xlu0 %v7564_v7, %s13874_s29 }
  0x94   :  { %v8550_v8 = vpop.permute.xlu2 %1467  ;;  %v8552_v9 = vpop.permute.xlu1 %1447 }
  0x95   :  { %13920 = vst [vmem:[#allocation9_spill] sm:$0xff] %v8550_v8  ;;  %v8554_v10 = vpop.permute.xlu0 %1445  ;;  %v7628_v8 = vld [vmem:[%s13860_s0 + $0x8c2] ss:$2 sm:$0xff] }
  0x9a   :  { %1539 = vrot.lane.b32.xlu2 %v7569_v11, %s13874_s29  ;;  %1537 = vrot.lane.b32.xlu1 %v7568_v12, %s13874_s29 }
  0x9b   :  { %1535 = vrot.lane.b32.xlu0 %v7567_v13, %s13874_s29  ;;  %v7593_v13 = vld [vmem:[%s13860_s0 + $0x2e2] ss:$2 sm:$0xff] }
  0x9c   :  { %v8568_v14 = vpop.permute.xlu2 %1473  ;;  %v8570_v15 = vpop.permute.xlu1 %1453 }
  0x9d   :  { %13921 = vst [vmem:[#allocation10_spill] sm:$0xff] %v8568_v14  ;;  %v8572_v16 = vpop.permute.xlu0 %1451  ;;  %v7632_v14 = vld [vmem:[%s13860_s0 + $0x962] ss:$2 sm:$0xff] }
  0xa2   :  { %1545 = vrot.lane.b32.xlu2 %v7572_v17, %s13874_s29  ;;  %1543 = vrot.lane.b32.xlu1 %v7571_v18, %s13874_s29  ;;  %v7592_v17 = vld [vmem:[%s13860_s0 + $0x2d2] ss:$2 sm:$0xff] }
  0xa3   :  { %1541 = vrot.lane.b32.xlu0 %v7570_v19, %s13874_s29  ;;  %v7591_v18 = vld [vmem:[%s13860_s0 + $0x292] ss:$2 sm:$0xff] }
  0xa4   :  { %v8586_v20 = vpop.permute.xlu2 %1479  ;;  %v8588_v21 = vpop.permute.xlu1 %1459 }
  0xa5   :  { %13922 = vst [vmem:[#allocation11_spill] sm:$0xff] %v8588_v21  ;;  %v8590_v22 = vpop.permute.xlu0 %1457  ;;  %v7961_v21 = vld [vmem:[%s13860_s0 + $0xb2] ss:$2 sm:$0xff] }
  0xa6   :  { %13923 = vst [vmem:[#allocation12_spill] sm:$0xff] %v8590_v22 }
  0xaa   :  { %1679 = vrot.lane.b32.xlu2 %v7575_v23, %s8205_s30  ;;  %1677 = vrot.lane.b32.xlu1 %v7574_v24, %s8205_s30 }
  0xab   :  { %1547 = vrot.lane.b32.xlu0 %v7573_v25, %s13874_s29  ;;  %v7596_v25 = vld [vmem:[%s13860_s0 + $0x372] ss:$2 sm:$0xff] }
  0xac   :  { %v8604_v26 = vpop.permute.xlu2 %1485  ;;  %v8606_v27 = vpop.permute.xlu1 %1465 }
  0xad   :  { %13924 = vst [vmem:[#allocation13_spill] sm:$0xff] %v8606_v27  ;;  %v8608_v28 = vpop.permute.xlu0 %1463  ;;  %v7635_v27 = vld [vmem:[%s13860_s0 + $0x9c2] ss:$2 sm:$0xff] }
  0xae   :  { %13925 = vst [vmem:[#allocation14_spill] sm:$0xff] %v8608_v28  ;;  %v7958_v28 = vld [vmem:[%s13860_s0 + $0x52] ss:$2 sm:$0xff] }
  0xb2   :  { %1685 = vrot.lane.b32.xlu2 %v7578_v29, %s8205_s30  ;;  %1683 = vrot.lane.b32.xlu1 %v7577_v30, %s8205_s30  ;;  %v7595_v29 = vld [vmem:[%s13860_s0 + $0x332] ss:$2 sm:$0xff]  ;;  %v7594_v30 = vld [vmem:[%s13860_s0 + $0x322] ss:$2 sm:$0xff] }
  0xb3   :  { %1681 = vrot.lane.b32.xlu0 %v7576_v31, %s8205_s30 }
  0xb4   :  { %v8622_v32 = vpop.permute.xlu2 %1491  ;;  %v8624_v33 = vpop.permute.xlu1 %1471 }
  0xb5   :  { %13926 = vst [vmem:[#allocation15_spill] sm:$0xff] %v8624_v33  ;;  %v8626_v34 = vpop.permute.xlu0 %1469  ;;  %v7766_v33 = vld [vmem:[%s13860_s0 + $0x2a] ss:$2 sm:$0xff] }
  0xb6   :  { %13927 = vst [vmem:[#allocation16_spill] sm:$0xff] %v8626_v34  ;;  %v7767_v34 = vld [vmem:[%s13860_s0 + $0x3a] ss:$2 sm:$0xff] }
  0xba   :  { %1691 = vrot.lane.b32.xlu2 %v7581_v35, %s8205_s30  ;;  %1689 = vrot.lane.b32.xlu1 %v7580_v37, %s8205_s30 }
  0xbb   :  { %1687 = vrot.lane.b32.xlu0 %v7579_v38, %s8205_s30  ;;  %v7599_v38 = vld [vmem:[%s13860_s0 + $0x3d2] ss:$2 sm:$0xff] }
  0xbc   :  { %v8640_v39 = vpop.permute.xlu2 %1497  ;;  %v8642_v41 = vpop.permute.xlu1 %1477 }
  0xbd   :  { %13928 = vst [vmem:[#allocation17_spill] sm:$0xff] %v8640_v39  ;;  %v8644_v42 = vpop.permute.xlu0 %1475  ;;  %v7895_v39 = vld [vmem:[%s13860_s0 + $0x61] ss:$2 sm:$0xff] }
  0xbe   :  { %13929 = vst [vmem:[#allocation18_spill] sm:$0xff] %v8642_v41 }
  0xbf   :  { %13930 = vst [vmem:[#allocation19_spill] sm:$0xff] %v8644_v42 }
  0xc2   :  { %1697 = vrot.lane.b32.xlu2 %v7584_v43, %s8205_s30  ;;  %1695 = vrot.lane.b32.xlu1 %v7583_v45, %s8205_s30  ;;  %v7598_v43 = vld [vmem:[%s13860_s0 + $0x3c2] ss:$2 sm:$0xff] }
  0xc3   :  { %1693 = vrot.lane.b32.xlu0 %v7582_v46, %s8205_s30  ;;  %v7597_v45 = vld [vmem:[%s13860_s0 + $0x382] ss:$2 sm:$0xff] }
  0xc4   :  { %v8658_v47 = vpop.permute.xlu2 %1503  ;;  %v8660_v51 = vpop.permute.xlu1 %1483 }
  0xc5   :  { %13931 = vst [vmem:[#allocation20_spill] sm:$0xff] %v8658_v47  ;;  %v8662_v52 = vpop.permute.xlu0 %1481  ;;  %v7629_v47 = vld [vmem:[%s13860_s0 + $0x8d2] ss:$2 sm:$0xff] }
  0xca   :  { %1703 = vrot.lane.b32.xlu2 %v7587_v53, %s8205_s30  ;;  %1701 = vrot.lane.b32.xlu1 %v7586_v57, %s8205_s30 }
  0xcb   :  { %1699 = vrot.lane.b32.xlu0 %v7585_v58, %s8205_s30  ;;  %v7602_v58 = vld [vmem:[%s13860_s0 + $0x462] ss:$2 sm:$0xff] }
  0xcc   :  { %v8676_v59 = vpop.permute.xlu2 %1509  ;;  %v8678_v63 = vpop.permute.xlu1 %1489 }
  0xcd   :  { %13932 = vst [vmem:[#allocation21_spill] sm:$0xff] %v8676_v59  ;;  %v8680_v0 = vpop.permute.xlu0 %1487  ;;  %v7616_v59 = vld [vmem:[%s13860_s0 + $0x6e2] ss:$2 sm:$0xff] }
  0xd2   :  { %1709 = vrot.lane.b32.xlu2 %v7590_v1, %s8205_s30  ;;  %1707 = vrot.lane.b32.xlu1 %v7589_v5, %s8205_s30  ;;  %v7601_v1 = vld [vmem:[%s13860_s0 + $0x422] ss:$2 sm:$0xff]  ;;  %v7600_v5 = vld [vmem:[%s13860_s0 + $0x412] ss:$2 sm:$0xff] }
  0xd3   :  { %1705 = vrot.lane.b32.xlu0 %v7588_v6, %s8205_s30 }
  0xd4   :  { %v8694_v7 = vpop.permute.xlu2 %1515  ;;  %v8696_v11 = vpop.permute.xlu1 %1495 }
  0xd5   :  { %13933 = vst [vmem:[#allocation22_spill] sm:$0xff] %v8696_v11  ;;  %v8698_v12 = vpop.permute.xlu0 %1493  ;;  %v7769_v11 = vld [vmem:[%s13860_s0 + $0x8a] ss:$2 sm:$0xff] }
  0xd6   :  { %13934 = vst [vmem:[#allocation23_spill] sm:$0xff] %v8698_v12 }
  0xda   :  { %1715 = vrot.lane.b32.xlu2 %v7593_v13, %s8205_s30  ;;  %1713 = vrot.lane.b32.xlu1 %v7592_v17, %s8205_s30 }
  0xdb   :  { %1711 = vrot.lane.b32.xlu0 %v7591_v18, %s8205_s30  ;;  %v7605_v18 = vld [vmem:[%s13860_s0 + $0x4c2] ss:$2 sm:$0xff] }
  0xdc   :  { %v8712_v19 = vpop.permute.xlu2 %1521  ;;  %v8714_v23 = vpop.permute.xlu1 %1501 }
  0xdd   :  { %13935 = vst [vmem:[#allocation24_spill] sm:$0xff] %v8712_v19  ;;  %v8716_v24 = vpop.permute.xlu0 %1499  ;;  %v7896_v19 = vld [vmem:[%s13860_s0 + $0xa1] ss:$2 sm:$0xff] }
  0xde   :  { %13936 = vst [vmem:[#allocation25_spill] sm:$0xff] %v8714_v23  ;;  %v7631_v23 = vld [vmem:[%s13860_s0 + $0x922] ss:$2 sm:$0xff] }
  0xdf   :  { %13937 = vst [vmem:[#allocation26_spill] sm:$0xff] %v8716_v24  ;;  %v7702_v24 = vld [vmem:[%s13860_s0 + $0x29] ss:$2 sm:$0xff] }
  0xe2   :  { %1721 = vrot.lane.b32.xlu2 %v7596_v25, %s8205_s30  ;;  %1719 = vrot.lane.b32.xlu1 %v7595_v29, %s8205_s30  ;;  %v7604_v25 = vld [vmem:[%s13860_s0 + $0x4b2] ss:$2 sm:$0xff] }
  0xe3   :  { %1717 = vrot.lane.b32.xlu0 %v7594_v30, %s8205_s30  ;;  %v7603_v29 = vld [vmem:[%s13860_s0 + $0x472] ss:$2 sm:$0xff] }
  0xe4   :  { %v8730_v31 = vpop.permute.xlu2 %1527  ;;  %v8732_v35 = vpop.permute.xlu1 %1507 }
  0xe5   :  { %13938 = vst [vmem:[#allocation27_spill] sm:$0xff] %v8730_v31  ;;  %v8734_v37 = vpop.permute.xlu0 %1505 }
  0xe6   :  { %13939 = vst [vmem:[#allocation28_spill] sm:$0xff] %v8732_v35  ;;  %v7623_v35 = vld [vmem:[%s13860_s0 + $0x7e2] ss:$2 sm:$0xff] }
  0xe7   :  { %13940 = vst [vmem:[#allocation29_spill] sm:$0xff] %v8734_v37  ;;  %v7626_v37 = vld [vmem:[%s13860_s0 + $0x872] ss:$2 sm:$0xff] }
  0xea   :  { %1727 = vrot.lane.b32.xlu2 %v7599_v38, %s8205_s30  ;;  %1725 = vrot.lane.b32.xlu1 %v7598_v43, %s8205_s30 }
  0xeb   :  { %1723 = vrot.lane.b32.xlu0 %v7597_v45, %s8205_s30  ;;  %v7608_v45 = vld [vmem:[%s13860_s0 + $0x5a2] ss:$2 sm:$0xff] }
  0xec   :  { %v8748_v46 = vpop.permute.xlu2 %1533  ;;  %v8750_v53 = vpop.permute.xlu1 %1513 }
  0xed   :  { %13941 = vst [vmem:[#allocation30_spill] sm:$0xff] %v8748_v46  ;;  %v8752_v57 = vpop.permute.xlu0 %1511  ;;  %v7619_v46 = vld [vmem:[%s13860_s0 + $0x742] ss:$2 sm:$0xff] }
  0xee   :  { %13942 = vst [vmem:[#allocation31_spill] sm:$0xff] %v8750_v53  ;;  %v7614_v53 = vld [vmem:[%s13860_s0 + $0x692] ss:$2 sm:$0xff] }
  0xef   :  { %13943 = vst [vmem:[#allocation32_spill] sm:$0xff] %v8752_v57  ;;  %v7613_v57 = vld [vmem:[%s13860_s0 + $0x652] ss:$2 sm:$0xff] }
  0xf2   :  { %1733 = vrot.lane.b32.xlu2 %v7602_v58, %s8205_s30  ;;  %1731 = vrot.lane.b32.xlu1 %v7601_v1, %s8205_s30  ;;  %v7607_v58 = vld [vmem:[%s13860_s0 + $0x562] ss:$2 sm:$0xff]  ;;  %v7606_v1 = vld [vmem:[%s13860_s0 + $0x552] ss:$2 sm:$0xff] }
  0xf3   :  { %1729 = vrot.lane.b32.xlu0 %v7600_v5, %s8205_s30 }
  0xf4   :  { %v8766_v6 = vpop.permute.xlu2 %1539  ;;  %v8768_v13 = vpop.permute.xlu1 %1519 }
  0xf5   :  { %13944 = vst [vmem:[#allocation33_spill] sm:$0xff] %v8766_v6  ;;  %v8770_v17 = vpop.permute.xlu0 %1517 }
  0xf6   :  { %13945 = vst [vmem:[#allocation34_spill] sm:$0xff] %v8768_v13 }
  0xf7   :  { %13946 = vst [vmem:[#allocation35_spill] sm:$0xff] %v8770_v17 }
  0xfa   :  { %1739 = vrot.lane.b32.xlu2 %v7605_v18, %s8205_s30  ;;  %1737 = vrot.lane.b32.xlu1 %v7604_v25, %s8205_s30 }
  0xfb   :  { %1735 = vrot.lane.b32.xlu0 %v7603_v29, %s8205_s30  ;;  %v7611_v29 = vld [vmem:[%s13860_s0 + $0x602] ss:$2 sm:$0xff] }
  0xfc   :  { %v8784_v30 = vpop.permute.xlu2 %1545  ;;  %v8786_v38 = vpop.permute.xlu1 %1525 }
  0xfd   :  { %13947 = vst [vmem:[#allocation36_spill] sm:$0xff] %v8784_v30  ;;  %v8788_v43 = vpop.permute.xlu0 %1523  ;;  %v7610_v30 = vld [vmem:[%s13860_s0 + $0x5f2] ss:$2 sm:$0xff] }
  0xfe   :  { %13948 = vst [vmem:[#allocation37_spill] sm:$0xff] %v8786_v38  ;;  %v7634_v38 = vld [vmem:[%s13860_s0 + $0x9b2] ss:$2 sm:$0xff] }
  0xff   :  { %13949 = vst [vmem:[#allocation38_spill] sm:$0xff] %v8788_v43 }
 0x102   :  { %1745 = vrot.lane.b32.xlu2 %v7608_v45, %s8205_s30  ;;  %1743 = vrot.lane.b32.xlu1 %v7607_v58, %s8205_s30  ;;  %v7609_v45 = vld [vmem:[%s13860_s0 + $0x5b2] ss:$2 sm:$0xff] }
 0x103   :  { %1741 = vrot.lane.b32.xlu0 %v7606_v1, %s8205_s30 }
 0x104   :  { %v8802_v5 = vpop.permute.xlu2 %1679  ;;  %v8804_v18 = vpop.permute.xlu1 %1531 }
 0x105   :  { %13950 = vst [vmem:[#allocation39_spill] sm:$0xff] %v8804_v18  ;;  %v8806_v25 = vpop.permute.xlu0 %1529  ;;  %v7622_v18 = vld [vmem:[%s13860_s0 + $0x7d2] ss:$2 sm:$0xff] }
 0x106   :  { %13951 = vst [vmem:[#allocation40_spill] sm:$0xff] %v8806_v25  ;;  %v7625_v25 = vld [vmem:[%s13860_s0 + $0x832] ss:$2 sm:$0xff] }
 0x10a   :  { %1751 = vrot.lane.b32.xlu2 %v7611_v29, %s8205_s30  ;;  %1749 = vrot.lane.b32.xlu1 %v7610_v30, %s8205_s30  ;;  %v7612_v30 = vld [vmem:[%s13860_s0 + $0x642] ss:$2 sm:$0xff] }
 0x10b   :  { %1747 = vrot.lane.b32.xlu0 %v7609_v45, %s8205_s30 }
 0x10c   :  { %v8820_v58 = vpop.permute.xlu2 %1685  ;;  %v8822_v1 = vpop.permute.xlu1 %1537 }
 0x10d   :  { %13952 = vst [vmem:[#allocation41_spill] sm:$0xff] %v8822_v1  ;;  %v8824_v6 = vpop.permute.xlu0 %1535 }
 0x10e   :  { %13953 = vst [vmem:[#allocation42_spill] sm:$0xff] %v8824_v6  ;;  %v7617_v6 = vld [vmem:[%s13860_s0 + $0x6f2] ss:$2 sm:$0xff] }
 0x112   :  { %1757 = vrot.lane.b32.xlu2 %v7614_v53, %s8205_s30  ;;  %1755 = vrot.lane.b32.xlu1 %v7613_v57, %s8205_s30  ;;  %v7615_v53 = vld [vmem:[%s13860_s0 + $0x6a2] ss:$2 sm:$0xff] }
 0x113   :  { %1753 = vrot.lane.b32.xlu0 %v7612_v30, %s8205_s30 }
 0x114   :  { %v8838_v29 = vpop.permute.xlu2 %1691  ;;  %v8840_v45 = vpop.permute.xlu1 %1543 }
 0x115   :  { %13954 = vst [vmem:[#allocation43_spill] sm:$0xff] %v8840_v45  ;;  %v8842_v1 = vpop.permute.xlu0 %1541 }
 0x116   :  { %13955 = vst [vmem:[#allocation44_spill] sm:$0xff] %v8842_v1  ;;  %v7620_v1 = vld [vmem:[%s13860_s0 + $0x782] ss:$2 sm:$0xff] }
 0x11a   :  { %1763 = vrot.lane.b32.xlu2 %v7617_v6, %s8205_s30  ;;  %1761 = vrot.lane.b32.xlu1 %v7616_v59, %s8205_s30  ;;  %v7618_v59 = vld [vmem:[%s13860_s0 + $0x732] ss:$2 sm:$0xff] }
 0x11b   :  { %1759 = vrot.lane.b32.xlu0 %v7615_v53, %s8205_s30 }
 0x11c   :  { %v8856_v57 = vpop.permute.xlu2 %1697  ;;  %v8858_v30 = vpop.permute.xlu1 %1677 }
 0x11d   :  { %v8860_v45 = vpop.permute.xlu0 %1547 }
 0x11e   :  { %13956 = vst [vmem:[#allocation45_spill] sm:$0xff] %v8860_v45 }
 0x122   :  { %1769 = vrot.lane.b32.xlu2 %v7620_v1, %s8205_s30  ;;  %1767 = vrot.lane.b32.xlu1 %v7619_v46, %s8205_s30  ;;  %v7621_v46 = vld [vmem:[%s13860_s0 + $0x792] ss:$2 sm:$0xff] }
 0x123   :  { %1765 = vrot.lane.b32.xlu0 %v7618_v59, %s8205_s30 }
 0x124   :  { %v8874_v6 = vpop.permute.xlu2 %1703  ;;  %v8876_v53 = vpop.permute.xlu1 %1683 }
 0x125   :  { %v8878_v45 = vpop.permute.xlu0 %1681 }
 0x12a   :  { %1775 = vrot.lane.b32.xlu2 %v7623_v35, %s8205_s30  ;;  %1773 = vrot.lane.b32.xlu1 %v7622_v18, %s8205_s30  ;;  %v7624_v35 = vld [vmem:[%s13860_s0 + $0x822] ss:$2 sm:$0xff] }
 0x12b   :  { %1771 = vrot.lane.b32.xlu0 %v7621_v46, %s8205_s30 }
 0x12c   :  { %v8892_v1 = vpop.permute.xlu2 %1709  ;;  %v8894_v59 = vpop.permute.xlu1 %1689 }
 0x12d   :  { %v8896_v41 = vpop.permute.xlu0 %1687 }
 0x132   :  { %1781 = vrot.lane.b32.xlu2 %v7626_v37, %s8205_s30  ;;  %1779 = vrot.lane.b32.xlu1 %v7625_v25, %s8205_s30  ;;  %v7627_v37 = vld [vmem:[%s13860_s0 + $0x882] ss:$2 sm:$0xff] }
 0x133   :  { %1777 = vrot.lane.b32.xlu0 %v7624_v35, %s8205_s30 }
 0x134   :  { %v8910_v18 = vpop.permute.xlu2 %1715  ;;  %v8912_v46 = vpop.permute.xlu1 %1695 }
 0x135   :  { %13957 = vst [vmem:[#allocation46_spill] sm:$0xff] %v8910_v18  ;;  %v8914_v42 = vpop.permute.xlu0 %1693  ;;  %v7705_v18 = vld [vmem:[%s13860_s0 + $0x89] ss:$2 sm:$0xff] }
 0x13a   :  { %1787 = vrot.lane.b32.xlu2 %v7629_v47, %s8205_s30  ;;  %1785 = vrot.lane.b32.xlu1 %v7628_v8, %s8205_s30  ;;  %v7630_v8 = vld [vmem:[%s13860_s0 + $0x912] ss:$2 sm:$0xff] }
 0x13b   :  { %1783 = vrot.lane.b32.xlu0 %v7627_v37, %s8205_s30 }
 0x13c   :  { %v8928_v25 = vpop.permute.xlu2 %1721  ;;  %v8930_v35 = vpop.permute.xlu1 %1701 }
 0x13d   :  { %13958 = vst [vmem:[#allocation47_spill] sm:$0xff] %v8928_v25  ;;  %v8932_v31 = vpop.permute.xlu0 %1699 }
 0x142   :  { %1793 = vrot.lane.b32.xlu2 %v7632_v14, %s8205_s30  ;;  %1791 = vrot.lane.b32.xlu1 %v7631_v23, %s8205_s30  ;;  %v7633_v14 = vld [vmem:[%s13860_s0 + $0x972] ss:$2 sm:$0xff] }
 0x143   :  { %1789 = vrot.lane.b32.xlu0 %v7630_v8, %s8205_s30 }
 0x144   :  { %v8946_v47 = vpop.permute.xlu2 %1727  ;;  %v8948_v37 = vpop.permute.xlu1 %1707 }
 0x145   :  { %13959 = vst [vmem:[#allocation48_spill] sm:$0xff] %v8946_v47  ;;  %v8950_v25 = vpop.permute.xlu0 %1705 }
 0x14a   :  { %1799 = vrot.lane.b32.xlu2 %v7635_v27, %s8205_s30  ;;  %1797 = vrot.lane.b32.xlu1 %v7634_v38, %s8205_s30  ;;  %v7638_v27 = vld [vmem:[%s13860_s0 + $0x28] ss:$2 sm:$0xff] }
 0x14b   :  { %1795 = vrot.lane.b32.xlu0 %v7633_v14, %s8205_s30 }
 0x14c   :  { %v8964_v23 = vpop.permute.xlu2 %1733  ;;  %v8966_v8 = vpop.permute.xlu1 %1713 }
 0x14d   :  { %13960 = vst [vmem:[#allocation49_spill] sm:$0xff] %v8964_v23  ;;  %v8968_v47 = vpop.permute.xlu0 %1711 }
 0x14e   :  { %13961 = vst [vmem:[#allocation50_spill] sm:$0xff] %v8966_v8 }
 0x152   :  { %2445 = vrot.lane.b32.xlu2 %v7766_v33, %s8206_s20  ;;  %2189 = vrot.lane.b32.xlu1 %v7702_v24, %s8207_s21  ;;  %v7894_v33 = vld [vmem:[%s13860_s0 + $0x51] ss:$2 sm:$0xff]  ;;  %v7830_v24 = vld [vmem:[%s13860_s0 + $0x50] ss:$2 sm:$0xff] }
 0x153   :  { %1933 = vrot.lane.b32.xlu0 %v7638_v27, %s8208_s22 }
 0x154   :  { %v8982_v38 = vpop.permute.xlu2 %1739  ;;  %v8984_v14 = vpop.permute.xlu1 %1719 }
 0x155   :  { %13962 = vst [vmem:[#allocation51_spill] sm:$0xff] %v8984_v14  ;;  %v8986_v23 = vpop.permute.xlu0 %1717 }
 0x156   :  { %13963 = vst [vmem:[#allocation52_spill] sm:$0xff] %v8986_v23  ;;  %v7959_v23 = vld [vmem:[%s13860_s0 + $0x62] ss:$2 sm:$0xff] }
 0x15a   :  { %3213 = vrot.lane.b32.xlu2 %v7958_v28, %s8209_s14  ;;  %2957 = vrot.lane.b32.xlu1 %v7894_v33, %s8210_s15  ;;  %v7703_v28 = vld [vmem:[%s13860_s0 + $0x39] ss:$2 sm:$0xff]  ;;  %v7639_v33 = vld [vmem:[%s13860_s0 + $0x38] ss:$2 sm:$0xff] }
 0x15b   :  { %2701 = vrot.lane.b32.xlu0 %v7830_v24, %s8211_s16 }
 0x15c   :  { %v9000_v27 = vpop.permute.xlu2 %1745  ;;  %v9002_v14 = vpop.permute.xlu1 %1725 }
 0x15d   :  { %13964 = vst [vmem:[#allocation53_spill] sm:$0xff] %v9002_v14  ;;  %v9004_v43 = vpop.permute.xlu0 %1723 }
 0x15e   :  { %13965 = vst [vmem:[#allocation54_spill] sm:$0xff] %v9004_v43 }
 0x162   :  { %2447 = vrot.lane.b32.xlu2 %v7767_v34, %s8206_s20  ;;  %2191 = vrot.lane.b32.xlu1 %v7703_v28, %s8207_s21  ;;  %v7831_v34 = vld [vmem:[%s13860_s0 + $0x60] ss:$2 sm:$0xff] }
 0x163   :  { %1935 = vrot.lane.b32.xlu0 %v7639_v33, %s8208_s22 }
 0x164   :  { %v9018_v24 = vpop.permute.xlu2 %1751  ;;  %v9020_v43 = vpop.permute.xlu1 %1731 }
 0x165   :  { %13966 = vst [vmem:[#allocation55_spill] sm:$0xff] %v9018_v24  ;;  %v9022_v14 = vpop.permute.xlu0 %1729  ;;  %v7960_v24 = vld [vmem:[%s13860_s0 + $0xa2] ss:$2 sm:$0xff] }
 0x166   :  { %13967 = vst [vmem:[#allocation56_spill] sm:$0xff] %v9020_v43 }
 0x167   :  { %13968 = vst [vmem:[#allocation57_spill] sm:$0xff] %v9022_v14  ;;  %v7768_v14 = vld [vmem:[%s13860_s0 + $0x7a] ss:$2 sm:$0xff] }
 0x16a   :  { %3215 = vrot.lane.b32.xlu2 %v7959_v23, %s8209_s14  ;;  %2959 = vrot.lane.b32.xlu1 %v7895_v39, %s8210_s15  ;;  %v7640_v39 = vld [vmem:[%s13860_s0 + $0x78] ss:$2 sm:$0xff] }
 0x16b   :  { %2703 = vrot.lane.b32.xlu0 %v7831_v34, %s8211_s16 }
 0x16c   :  { %v9036_v28 = vpop.permute.xlu2 %1757  ;;  %v9038_v33 = vpop.permute.xlu1 %1737 }
 0x16d   :  { %13969 = vst [vmem:[#allocation58_spill] sm:$0xff] %v9036_v28  ;;  %v9040_v43 = vpop.permute.xlu0 %1735 }
 0x172   :  { %2449 = vrot.lane.b32.xlu2 %v7768_v14, %s8206_s20  ;;  %2193 = vrot.lane.b32.xlu1 %v7704_v2, %s8207_s21  ;;  %v7832_v2 = vld [vmem:[%s13860_s0 + $0xa0] ss:$2 sm:$0xff] }
 0x173   :  { %1937 = vrot.lane.b32.xlu0 %v7640_v39, %s8208_s22 }
 0x174   :  { %v9054_v23 = vpop.permute.xlu2 %1763  ;;  %v9056_v34 = vpop.permute.xlu1 %1743 }
 0x175   :  { %13970 = vst [vmem:[#allocation59_spill] sm:$0xff] %v9054_v23  ;;  %v9058_v28 = vpop.permute.xlu0 %1741 }
 0x17a   :  { %3217 = vrot.lane.b32.xlu2 %v7960_v24, %s8209_s14  ;;  %2961 = vrot.lane.b32.xlu1 %v7896_v19, %s8210_s15  ;;  %v7641_v19 = vld [vmem:[%s13860_s0 + $0x88] ss:$2 sm:$0xff] }
 0x17b   :  { %2705 = vrot.lane.b32.xlu0 %v7832_v2, %s8211_s16 }
 0x17c   :  { %v9072_v14 = vpop.permute.xlu2 %1769  ;;  %v9074_v39 = vpop.permute.xlu1 %1749 }
 0x17d   :  { %13971 = vst [vmem:[#allocation60_spill] sm:$0xff] %v9072_v14  ;;  %v9076_v23 = vpop.permute.xlu0 %1747 }
 0x17e   :  { %13972 = vst [vmem:[#allocation61_spill] sm:$0xff] %v9074_v39  ;;  %v7897_v39 = vld [vmem:[%s13860_s0 + $0xb1] ss:$2 sm:$0xff] }
 0x17f   :  { %13973 = vst [vmem:[#allocation62_spill] sm:$0xff] %v9076_v23 }
 0x182   :  { %2451 = vrot.lane.b32.xlu2 %v7769_v11, %s8206_s20  ;;  %2195 = vrot.lane.b32.xlu1 %v7705_v18, %s8207_s21  ;;  %v7833_v11 = vld [vmem:[%s13860_s0 + $0xb0] ss:$2 sm:$0xff] }
 0x183   :  { %1939 = vrot.lane.b32.xlu0 %v7641_v19, %s8208_s22 }
 0x184   :  { %v9090_v24 = vpop.permute.xlu2 %1775  ;;  %v9092_v2 = vpop.permute.xlu1 %1755 }
 0x185   :  { %13974 = vst [vmem:[#allocation63_spill] sm:$0xff] %v9090_v24  ;;  %v9094_v14 = vpop.permute.xlu0 %1753  ;;  %v7706_v24 = vld [vmem:[%s13860_s0 + $0xc9] ss:$2 sm:$0xff] }
 0x186   :  { %13975 = vst [vmem:[#allocation64_spill] sm:$0xff] %v9092_v2 }
 0x187   :  { %13976 = vst [vmem:[#allocation65_spill] sm:$0xff] %v9094_v14  ;;  %v7770_v14 = vld [vmem:[%s13860_s0 + $0xca] ss:$2 sm:$0xff] }
 0x18a   :  { %3219 = vrot.lane.b32.xlu2 %v7961_v21, %s8209_s14  ;;  %2963 = vrot.lane.b32.xlu1 %v7897_v39, %s8210_s15  ;;  %v7642_v21 = vld [vmem:[%s13860_s0 + $0xc8] ss:$2 sm:$0xff] }
 0x18b   :  { %2707 = vrot.lane.b32.xlu0 %v7833_v11, %s8211_s16 }
 0x18c   :  { %v9108_v18 = vpop.permute.xlu2 %1781  ;;  %v9110_v19 = vpop.permute.xlu1 %1761 }
 0x18d   :  { %13977 = vst [vmem:[#allocation66_spill] sm:$0xff] %v9108_v18  ;;  %v9112_v2 = vpop.permute.xlu0 %1759  ;;  %v7898_v18 = vld [vmem:[%s13860_s0 + $0xf1] ss:$2 sm:$0xff] }
 0x18e   :  { %13978 = vst [vmem:[#allocation67_spill] sm:$0xff] %v9110_v19 }
 0x18f   :  { %13979 = vst [vmem:[#allocation68_spill] sm:$0xff] %v9112_v2  ;;  %v7962_v2 = vld [vmem:[%s13860_s0 + $0xf2] ss:$2 sm:$0xff] }
 0x192   :  { %2453 = vrot.lane.b32.xlu2 %v7770_v14, %s8206_s20  ;;  %2197 = vrot.lane.b32.xlu1 %v7706_v24, %s8207_s21  ;;  %v7834_v14 = vld [vmem:[%s13860_s0 + $0xf0] ss:$2 sm:$0xff] }
 0x193   :  { %1941 = vrot.lane.b32.xlu0 %v7642_v21, %s8208_s22 }
 0x194   :  { %v9126_v39 = vpop.permute.xlu2 %1787  ;;  %v9128_v11 = vpop.permute.xlu1 %1767 }
 0x195   :  { %13980 = vst [vmem:[#allocation69_spill] sm:$0xff] %v9126_v39  ;;  %v9130_v19 = vpop.permute.xlu0 %1765  ;;  %v3930_v39 = vld [vmem:[%s13861_s1 + $0x38] sm:$0xff] }
 0x196   :  { %13981 = vst [vmem:[#allocation70_spill] sm:$0xff] %v9128_v11 }
 0x197   :  { %13982 = vst [vmem:[#allocation71_spill] sm:$0xff] %v9130_v19  ;;  %v3931_v19 = vld [vmem:[%s13861_s1 + $0x40] sm:$0xff] }
 0x198   :  { %4132 = vmatpush.msra.mxu0 %v3931_v19  ;;  %8105 = vmatpush.msra.mxu2 %v3931_v19 }
 0x199   :  { %8106 = vmatpush.msra.mxu3 %v3931_v19  ;;  %8104 = vmatpush.msra.mxu1 %v3931_v19 }
 0x19a   :  { %3221 = vrot.lane.b32.xlu2 %v7962_v2, %s8209_s14  ;;  %2965 = vrot.lane.b32.xlu1 %v7898_v18, %s8210_s15  ;;  %v7771_v2 = vld [vmem:[%s13860_s0 + $0xda] ss:$2 sm:$0xff]  ;;  %v7707_v18 = vld [vmem:[%s13860_s0 + $0xd9] ss:$2 sm:$0xff] }
 0x19b   :  { %2709 = vrot.lane.b32.xlu0 %v7834_v14, %s8211_s16  ;;  %v7643_v14 = vld [vmem:[%s13860_s0 + $0xd8] ss:$2 sm:$0xff]  ;;  %4133 = vmatpush.msra.mxu0 %v3930_v39 }
 0x19c   :  { %v9144_v24 = vpop.permute.xlu2 %1793  ;;  %v9146_v21 = vpop.permute.xlu1 %1773  ;;  %8108 = vmatpush.msra.mxu2 %v3930_v39  ;;  %8109 = vmatpush.msra.mxu3 %v3930_v39 }
 0x19d   :  { %13983 = vst [vmem:[#allocation72_spill] sm:$0xff] %v9144_v24  ;;  %v9148_v11 = vpop.permute.xlu0 %1771  ;;  %v3929_v24 = vld [vmem:[%s13861_s1 + $0x30] sm:$0xff]  ;;  %8107 = vmatpush.msra.mxu1 %v3930_v39  ;;  %v7835_v39 = vld [vmem:[%s13860_s0 + $0x100] ss:$2 sm:$0xff] }
 0x19e   :  { %13984 = vst [vmem:[#allocation73_spill] sm:$0xff] %v9146_v21  ;;  %4134 = vmatpush.msra.mxu0 %v3929_v24  ;;  %8111 = vmatpush.msra.mxu2 %v3929_v24  ;;  %v7964_v21 = vld [vmem:[%s13860_s0 + $0x142] ss:$2 sm:$0xff] }
 0x19f   :  { %8112 = vmatpush.msra.mxu3 %v3929_v24  ;;  %8110 = vmatpush.msra.mxu1 %v3929_v24  ;;  %v3925_v24 = vld [vmem:[%s13861_s1 + $0x10] sm:$0xff] }
 0x1a2   :  { %2455 = vrot.lane.b32.xlu2 %v7771_v2, %s8206_s20  ;;  %2199 = vrot.lane.b32.xlu1 %v7707_v18, %s8207_s21  ;;  %v3928_v2 = vld [vmem:[%s13861_s1 + $0x28] sm:$0xff] }
 0x1a3   :  { %1943 = vrot.lane.b32.xlu0 %v7643_v14, %s8208_s22  ;;  %4135 = vmatpush.msra.mxu0 %v3928_v2  ;;  %v7963_v18 = vld [vmem:[%s13860_s0 + $0x102] ss:$2 sm:$0xff]  ;;  %v7899_v14 = vld [vmem:[%s13860_s0 + $0x101] ss:$2 sm:$0xff] }
 0x1a4   :  { %v9171_v13 = vpop.permute.xlu2 %1799  ;;  %v9173_v12 = vpop.permute.xlu1 %1779  ;;  %8114 = vmatpush.msra.mxu2 %v3928_v2  ;;  %8115 = vmatpush.msra.mxu3 %v3928_v2 }
 0x1a5   :  { %13985 = vst [vmem:[#allocation74_spill] sm:$0xff] %v9171_v13  ;;  %v9175_v19 = vpop.permute.xlu0 %1777  ;;  %v3927_v13 = vld [vmem:[%s13861_s1 + $0x20] sm:$0xff]  ;;  %8113 = vmatpush.msra.mxu1 %v3928_v2  ;;  %v3924_v2 = vld [vmem:[%s13861_s1 + $0x8] sm:$0xff] }
 0x1a6   :  { %13986 = vst [vmem:[#allocation75_spill] sm:$0xff] %v9173_v12  ;;  %4136 = vmatpush.msra.mxu0 %v3927_v13  ;;  %v3926_v12 = vld [vmem:[%s13861_s1 + $0x18] sm:$0xff]  ;;  %8117 = vmatpush.msra.mxu2 %v3927_v13 }
 0x1a7   :  { %13987 = vst [vmem:[#allocation76_spill] sm:$0xff] %v9175_v19  ;;  %8118 = vmatpush.msra.mxu3 %v3927_v13  ;;  %8116 = vmatpush.msra.mxu1 %v3927_v13  ;;  %v7644_v13 = vld [vmem:[%s13860_s0 + $0x118] ss:$2 sm:$0xff] }
 0x1a8   :  { %4137 = vmatpush.msra.mxu0 %v3926_v12  ;;  %8120 = vmatpush.msra.mxu2 %v3926_v12 }
 0x1a9   :  { %8121 = vmatpush.msra.mxu3 %v3926_v12  ;;  %8119 = vmatpush.msra.mxu1 %v3926_v12 }
 0x1aa   :  { %3223 = vrot.lane.b32.xlu2 %v7963_v18, %s8209_s14  ;;  %2967 = vrot.lane.b32.xlu1 %v7899_v14, %s8210_s15  ;;  %v3923_v18 = vld [vmem:[%s13861_s1] sm:$0xff]  ;;  %s14127_s1 = smov 8  }
 0x1ab   :  { %2711 = vrot.lane.b32.xlu0 %v7835_v39, %s8211_s16  ;;  %4138 = vmatpush.msra.mxu0 %v3925_v24  ;;  %v7772_v14 = vld [vmem:[%s13860_s0 + $0x11a] ss:$2 sm:$0xff]  ;;  %v7708_v39 = vld [vmem:[%s13860_s0 + $0x119] ss:$2 sm:$0xff] }
 0x1ac   :  { %v9201_v19 = vpop.permute.xlu2 %2445  ;;  %v9203_v8 = vpop.permute.xlu1 %1785  ;;  %8123 = vmatpush.msra.mxu2 %v3925_v24  ;;  %8124 = vmatpush.msra.mxu3 %v3925_v24 }
 0x1ad   :  { %13988 = vst [vmem:[#allocation77_spill] sm:$0xff] %v9203_v8  ;;  %v9205_v22 = vpop.permute.xlu0 %1783  ;;  %4139 = vmatpush.msra.mxu0 %v3924_v2  ;;  %8122 = vmatpush.msra.mxu1 %v3925_v24  ;;  %v7900_v24 = vld [vmem:[%s13860_s0 + $0x141] ss:$2 sm:$0xff] }
 0x1ae   :  { %13989 = vst [vmem:[#allocation78_spill] sm:$0xff] %v9205_v22  ;;  %8126 = vmatpush.msra.mxu2 %v3924_v2  ;;  %8127 = vmatpush.msra.mxu3 %v3924_v2 }
 0x1af   :  { %4140 = vmatpush.msra.mxu0 %v3923_v18  ;;  %8125 = vmatpush.msra.mxu1 %v3924_v2 }
 0x1b0   :  { %8129 = vmatpush.msra.mxu2 %v3923_v18  ;;  %8130 = vmatpush.msra.mxu3 %v3923_v18 }
 0x1b1   :  { %8128 = vmatpush.msra.mxu1 %v3923_v18 }
 0x1b2   :  { %2457 = vrot.lane.b32.xlu2 %v7772_v14, %s8206_s20  ;;  %2201 = vrot.lane.b32.xlu1 %v7708_v39, %s8207_s21  ;;  %v7836_v14 = vld [vmem:[%s13860_s0 + $0x140] ss:$2 sm:$0xff] }
 0x1b3   :  { %1945 = vrot.lane.b32.xlu0 %v7644_v13, %s8208_s22  ;;  %v7773_v13 = vld [vmem:[%s13860_s0 + $0x12a] ss:$2 sm:$0xff] }
 0x1b4   :  { %v3214_v8 = vpop.permute.xlu2 %3213  ;;  %v9225_v22 = vpop.permute.xlu1 %1791 }
 0x1b5   :  { %13990 = vst [vmem:[#allocation79_spill] sm:$0xff] %v9225_v22  ;;  %v9227_v12 = vpop.permute.xlu0 %1789  ;;  %v7709_v22 = vld [vmem:[%s13860_s0 + $0x129] ss:$2 sm:$0xff] }
 0x1b6   :  { %13991 = vst [vmem:[#allocation80_spill] sm:$0xff] %v9227_v12 }
 0x1ba   :  { %3225 = vrot.lane.b32.xlu2 %v7964_v21, %s8209_s14  ;;  %2969 = vrot.lane.b32.xlu1 %v7900_v24, %s8210_s15  ;;  %v7645_v21 = vld [vmem:[%s13860_s0 + $0x128] ss:$2 sm:$0xff] }
 0x1bb   :  { %2713 = vrot.lane.b32.xlu0 %v7836_v14, %s8211_s16  ;;  %v206_v24 = vld [vmem:[%s13860_s0] ss:$2 sm:$0xff] }
 0x1bc   :  { %v9241_v2 = vpop.permute.xlu2 %2447  ;;  %v9243_v18 = vpop.permute.xlu1 %1797 }
 0x1bd   :  { %13992 = vst [vmem:[#allocation81_spill] sm:$0xff] %v9243_v18  ;;  %v9245_v39 = vpop.permute.xlu0 %1795 }
 0x1be   :  { %13993 = vst [vmem:[#allocation82_spill] sm:$0xff] %v9245_v39  ;;  %v3405_v39 = vsel %vm45_vm0, %v206_v24, %v8482_v50  ;;  %v7837_v50 = vld [vmem:[%s13860_s0 + $0x150] ss:$2 sm:$0xff] }
 0x1bf   :  { %v3469_v23 = vsel %vm155_vm2, %v3405_v39, %v8858_v30 }
 0x1c2   :  { %2459 = vrot.lane.b32.xlu2 %v7773_v13, %s8206_s20  ;;  %2203 = vrot.lane.b32.xlu1 %v7709_v22, %s8207_s21  ;;  %v7965_v22 = vld [vmem:[%s13860_s0 + $0x152] ss:$2 sm:$0xff]  ;;  %v7901_v13 = vld [vmem:[%s13860_s0 + $0x151] ss:$2 sm:$0xff] }
 0x1c3   :  { %1947 = vrot.lane.b32.xlu0 %v7645_v21, %s8208_s22 }
 0x1c4   :  { %v3216_v14 = vpop.permute.xlu2 %3215  ;;  %v2190_v18 = vpop.permute.xlu1 %2189 }
 0x1c5   :  { %v1934_v12 = vpop.permute.xlu0 %1933 }
 0x1c6   :  { %v3534_v17 = vsel %vm3533_vm1, %v3469_v23, %v1934_v12 }
 0x1c7   :  { %v3599_v21 = vsel %vm3598_vm3, %v3534_v17, %v2190_v18  ;;  %v7774_v18 = vld [vmem:[%s13860_s0 + $0x16a] ss:$2 sm:$0xff] }
 0x1c8   :  { %v3664_v39 = vsel %vm3663_vm4, %v3599_v21, %v9201_v19  ;;  %v7646_v19 = vld [vmem:[%s13860_s0 + $0x168] ss:$2 sm:$0xff] }
 0x1ca   :  { %3227 = vrot.lane.b32.xlu2 %v7965_v22, %s8209_s14  ;;  %2971 = vrot.lane.b32.xlu1 %v7901_v13, %s8210_s15  ;;  %v7710_v22 = vld [vmem:[%s13860_s0 + $0x169] ss:$2 sm:$0xff] }
 0x1cb   :  { %2715 = vrot.lane.b32.xlu0 %v7837_v50, %s8211_s16  ;;  %v7447_v50 = vld [vmem:[%s13860_s0 + $0x10] ss:$2 sm:$0xff] }
 0x1cc   :  { %v9280_v30 = vpop.permute.xlu2 %2449  ;;  %v2958_v23 = vpop.permute.xlu1 %2957 }
 0x1cd   :  { %v2702_v12 = vpop.permute.xlu0 %2701 }
 0x1ce   :  { %v3729_v24 = vsel %vm3728_vm5, %v3664_v39, %v2702_v12 }
 0x1cf   :  { %v3794_v17 = vsel %vm3793_vm6, %v3729_v24, %v2958_v23 }
 0x1d0   :  { %v3859_v13 = vsel %vm3858_vm7, %v3794_v17, %v3214_v8  ;;  %v3406_v8 = vsel %vm45_vm0, %v7447_v50, %v8500_v56  ;;  %v7966_v17 = vld [vmem:[%s13860_s0 + $0x192] ss:$2 sm:$0xff] }
 0x1d1   :  { %8022 = vmatmul.msk.f32.vlgmr.msra.gmra.mxu0 %vm3932_vm8, %v3859_v13  ;;  %v3470_v39 = vsel %vm155_vm2, %v3406_v8, %v8802_v5 }
 0x1d2   :  { %2461 = vrot.lane.b32.xlu2 %v7774_v18, %s8206_s20  ;;  %2205 = vrot.lane.b32.xlu1 %v7710_v22, %s8207_s21  ;;  %v7902_v18 = vld [vmem:[%s13860_s0 + $0x191] ss:$2 sm:$0xff]  ;;  %v7838_v22 = vld [vmem:[%s13860_s0 + $0x190] ss:$2 sm:$0xff] }
 0x1d3   :  { %1949 = vrot.lane.b32.xlu0 %v7646_v19, %s8208_s22 }
 0x1d4   :  { %v3218_v21 = vpop.permute.xlu2 %3217  ;;  %v2192_v23 = vpop.permute.xlu1 %2191 }
 0x1d5   :  { %v1936_v12 = vpop.permute.xlu0 %1935 }
 0x1d6   :  { %v3535_v24 = vsel %vm3533_vm1, %v3470_v39, %v1936_v12  ;;  %v7711_v39 = vld [vmem:[%s13860_s0 + $0x179] ss:$2 sm:$0xff] }
 0x1d7   :  { %v3600_v56 = vsel %vm3598_vm3, %v3535_v24, %v2192_v23  ;;  %v7775_v23 = vld [vmem:[%s13860_s0 + $0x17a] ss:$2 sm:$0xff] }
 0x1d8   :  { %v3665_v50 = vsel %vm3663_vm4, %v3600_v56, %v9241_v2  ;;  %v7448_v2 = vld [vmem:[%s13860_s0 + $0x50] ss:$2 sm:$0xff] }
 0x1da   :  { %3229 = vrot.lane.b32.xlu2 %v7966_v17, %s8209_s14  ;;  %2973 = vrot.lane.b32.xlu1 %v7902_v18, %s8210_s15  ;;  %v7647_v17 = vld [vmem:[%s13860_s0 + $0x178] ss:$2 sm:$0xff] }
 0x1db   :  { %2717 = vrot.lane.b32.xlu0 %v7838_v22, %s8211_s16 }
 0x1dc   :  { %v2452_v5 = vpop.permute.xlu2 %2451  ;;  %v2960_v13 = vpop.permute.xlu1 %2959 }
 0x1dd   :  { %v2704_v19 = vpop.permute.xlu0 %2703 }
 0x1de   :  { %v3730_v8 = vsel %vm3728_vm5, %v3665_v50, %v2704_v19  ;;  %v7967_v50 = vld [vmem:[%s13860_s0 + $0x1a2] ss:$2 sm:$0xff] }
 0x1df   :  { %v3795_v12 = vsel %vm3793_vm6, %v3730_v8, %v2960_v13  ;;  %v7903_v8 = vld [vmem:[%s13860_s0 + $0x1a1] ss:$2 sm:$0xff] }
 0x1e0   :  { %v3860_v24 = vsel %vm3858_vm7, %v3795_v12, %v3216_v14  ;;  %v3407_v14 = vsel %vm45_vm0, %v7448_v2, %v8480_v49  ;;  %v7839_v12 = vld [vmem:[%s13860_s0 + $0x1a0] ss:$2 sm:$0xff] }
 0x1e1   :  { %8023 = vmatmul.msk.f32.gmra.mxu0 %vm3932_vm8, %v3860_v24  ;;  %v3471_v13 = vsel %vm155_vm2, %v3407_v14, %v8878_v45  ;;  %v7712_v14 = vld [vmem:[%s13860_s0 + $0x1b9] ss:$2 sm:$0xff] }
 0x1e2   :  { %2463 = vrot.lane.b32.xlu2 %v7775_v23, %s8206_s20  ;;  %2207 = vrot.lane.b32.xlu1 %v7711_v39, %s8207_s21 }
 0x1e3   :  { %1951 = vrot.lane.b32.xlu0 %v7647_v17, %s8208_s22 }
 0x1e4   :  { %v3220_v18 = vpop.permute.xlu2 %3219  ;;  %v2194_v22 = vpop.permute.xlu1 %2193 }
 0x1e5   :  { %v1938_v56 = vpop.permute.xlu0 %1937 }
 0x1e6   :  { %v3536_v19 = vsel %vm3533_vm1, %v3471_v13, %v1938_v56  ;;  %v7648_v13 = vld [vmem:[%s13860_s0 + $0x1b8] ss:$2 sm:$0xff] }
 0x1e7   :  { %v3601_v49 = vsel %vm3598_vm3, %v3536_v19, %v2194_v22  ;;  %v7776_v22 = vld [vmem:[%s13860_s0 + $0x1ba] ss:$2 sm:$0xff] }
 0x1e8   :  { %v3666_v24 = vsel %vm3663_vm4, %v3601_v49, %v9280_v30  ;;  %v7449_v30 = vld [vmem:[%s13860_s0 + $0x60] ss:$2 sm:$0xff] }
 0x1ea   :  { %3231 = vrot.lane.b32.xlu2 %v7967_v50, %s8209_s14  ;;  %2975 = vrot.lane.b32.xlu1 %v7903_v8, %s8210_s15 }
 0x1eb   :  { %2719 = vrot.lane.b32.xlu0 %v7839_v12, %s8211_s16 }
 0x1ec   :  { %v2454_v45 = vpop.permute.xlu2 %2453  ;;  %v2962_v23 = vpop.permute.xlu1 %2961 }
 0x1ed   :  { %v2706_v39 = vpop.permute.xlu0 %2705 }
 0x1ee   :  { %v3731_v17 = vsel %vm3728_vm5, %v3666_v24, %v2706_v39  ;;  %v7904_v39 = vld [vmem:[%s13860_s0 + $0x1e1] ss:$2 sm:$0xff]  ;;  %v7840_v24 = vld [vmem:[%s13860_s0 + $0x1e0] ss:$2 sm:$0xff] }
 0x1ef   :  { %v3796_v2 = vsel %vm3793_vm6, %v3731_v17, %v2962_v23  ;;  %v7968_v23 = vld [vmem:[%s13860_s0 + $0x1e2] ss:$2 sm:$0xff] }
 0x1f0   :  { %v3861_v56 = vsel %vm3858_vm7, %v3796_v2, %v3218_v21  ;;  %v3408_v21 = vsel %vm45_vm0, %v7449_v30, %v8498_v55  ;;  %v7667_v30 = vld [vmem:[%s13860_s0 + $0x498] ss:$2 sm:$0xff] }
 0x1f1   :  { %8024 = vmatmul.msk.f32.gmra.mxu0 %vm3932_vm8, %v3861_v56  ;;  %v3472_v12 = vsel %vm155_vm2, %v3408_v21, %v8876_v53  ;;  %v7649_v21 = vld [vmem:[%s13860_s0 + $0x1c8] ss:$2 sm:$0xff] }
 0x1f2   :  { %2465 = vrot.lane.b32.xlu2 %v7776_v22, %s8206_s20  ;;  %2209 = vrot.lane.b32.xlu1 %v7712_v14, %s8207_s21 }
 0x1f3   :  { %1953 = vrot.lane.b32.xlu0 %v7648_v13, %s8208_s22  ;;  %v7713_v13 = vld [vmem:[%s13860_s0 + $0x1c9] ss:$2 sm:$0xff] }
 0x1f4   :  { %v3222_v19 = vpop.permute.xlu2 %3221  ;;  %v2196_v50 = vpop.permute.xlu1 %2195 }
 0x1f5   :  { %v1940_v8 = vpop.permute.xlu0 %1939 }
 0x1f6   :  { %v3537_v49 = vsel %vm3533_vm1, %v3472_v12, %v1940_v8 }
 0x1f7   :  { %v3602_v55 = vsel %vm3598_vm3, %v3537_v49, %v2196_v50 }
 0x1f8   :  { %v3667_v22 = vsel %vm3663_vm4, %v3602_v55, %v2452_v5  ;;  %v7450_v5 = vld [vmem:[%s13860_s0 + $0xa0] ss:$2 sm:$0xff] }
 0x1f9   :  { %v7777_v55 = vld [vmem:[%s13860_s0 + $0x1ca] ss:$2 sm:$0xff] }
 0x1fa   :  { %3233 = vrot.lane.b32.xlu2 %v7968_v23, %s8209_s14  ;;  %2977 = vrot.lane.b32.xlu1 %v7904_v39, %s8210_s15 }
 0x1fb   :  { %2721 = vrot.lane.b32.xlu0 %v7840_v24, %s8211_s16  ;;  %v7795_v24 = vld [vmem:[%s13860_s0 + $0x49a] ss:$2 sm:$0xff] }
 0x1fc   :  { %v2456_v53 = vpop.permute.xlu2 %2455  ;;  %v2964_v17 = vpop.permute.xlu1 %2963 }
 0x1fd   :  { %v2708_v2 = vpop.permute.xlu0 %2707 }
 0x1fe   :  { %v3732_v14 = vsel %vm3728_vm5, %v3667_v22, %v2708_v2 }
 0x1ff   :  { %v3797_v56 = vsel %vm3793_vm6, %v3732_v14, %v2964_v17  ;;  %v7731_v17 = vld [vmem:[%s13860_s0 + $0x499] ss:$2 sm:$0xff] }
 0x200   :  { %v3862_v50 = vsel %vm3858_vm7, %v3797_v56, %v3220_v18  ;;  %v3409_v18 = vsel %vm45_vm0, %v7450_v5, %v8436_v36  ;;  %v7841_v5 = vld [vmem:[%s13860_s0 + $0x1f0] ss:$2 sm:$0xff] }
 0x201   :  { %8025 = vmatmul.msk.f32.gmra.mxu0 %vm3932_vm8, %v3862_v50  ;;  %v3473_v23 = vsel %vm155_vm2, %v3409_v18, %v8820_v58  ;;  %v7859_v50 = vld [vmem:[%s13860_s0 + $0x4c0] ss:$2 sm:$0xff] }
 0x202   :  { %2211 = vrot.lane.b32.xlu2 %v7713_v13, %s8207_s21  ;;  %1991 = vrot.lane.b32.xlu1 %v7667_v30, %s8208_s22  ;;  %v7905_v30 = vld [vmem:[%s13860_s0 + $0x1f1] ss:$2 sm:$0xff] }
 0x203   :  { %1955 = vrot.lane.b32.xlu0 %v7649_v21, %s8208_s22 }
 0x204   :  { %v3224_v8 = vpop.permute.xlu2 %3223  ;;  %v2198_v12 = vpop.permute.xlu1 %2197 }
 0x205   :  { %v1942_v49 = vpop.permute.xlu0 %1941 }
 0x206   :  { %v3538_v39 = vsel %vm3533_vm1, %v3473_v23, %v1942_v49 }
 0x207   :  { %v3603_v36 = vsel %vm3598_vm3, %v3538_v39, %v2198_v12 }
 0x208   :  { %v3668_v14 = vsel %vm3663_vm4, %v3603_v36, %v2454_v45  ;;  %v7451_v45 = vld [vmem:[%s13860_s0 + $0xb0] ss:$2 sm:$0xff] }
 0x20a   :  { %2503 = vrot.lane.b32.xlu2 %v7795_v24, %s8206_s20  ;;  %2467 = vrot.lane.b32.xlu1 %v7777_v55, %s8206_s20  ;;  %v7987_v24 = vld [vmem:[%s13860_s0 + $0x4c2] ss:$2 sm:$0xff]  ;;  %v7969_v55 = vld [vmem:[%s13860_s0 + $0x1f2] ss:$2 sm:$0xff] }
 0x20b   :  { %2247 = vrot.lane.b32.xlu0 %v7731_v17, %s8207_s21  ;;  %v7923_v17 = vld [vmem:[%s13860_s0 + $0x4c1] ss:$2 sm:$0xff] }
 0x20c   :  { %v2458_v58 = vpop.permute.xlu2 %2457  ;;  %v2966_v2 = vpop.permute.xlu1 %2965 }
 0x20d   :  { %v2710_v22 = vpop.permute.xlu0 %2709 }
 0x20e   :  { %v3733_v56 = vsel %vm3728_vm5, %v3668_v14, %v2710_v22 }
 0x20f   :  { %v3798_v13 = vsel %vm3793_vm6, %v3733_v56, %v2966_v2 }
 0x210   :  { %v3863_v21 = vsel %vm3858_vm7, %v3798_v13, %v3222_v19  ;;  %v3410_v19 = vsel %vm45_vm0, %v7451_v45, %v8450_v40  ;;  %v7714_v13 = vld [vmem:[%s13860_s0 + $0x209] ss:$2 sm:$0xff] }
 0x211   :  { %8026 = vmatmul.msk.f32.gmra.mxu0 %vm3932_vm8, %v3863_v21  ;;  %v3474_v23 = vsel %vm155_vm2, %v3410_v19, %v8896_v41  ;;  %v7650_v21 = vld [vmem:[%s13860_s0 + $0x208] ss:$2 sm:$0xff] }
 0x212   :  { %2979 = vrot.lane.b32.xlu2 %v7905_v30, %s8210_s15  ;;  %2759 = vrot.lane.b32.xlu1 %v7859_v50, %s8211_s16  ;;  %v7668_v30 = vld [vmem:[%s13860_s0 + $0x4d8] ss:$2 sm:$0xff] }
 0x213   :  { %2723 = vrot.lane.b32.xlu0 %v7841_v5, %s8211_s16 }
 0x214   :  { %v3226_v12 = vpop.permute.xlu2 %3225  ;;  %v2200_v18 = vpop.permute.xlu1 %2199 }
 0x215   :  { %v1944_v49 = vpop.permute.xlu0 %1943 }
 0x216   :  { %v3539_v39 = vsel %vm3533_vm1, %v3474_v23, %v1944_v49  ;;  %v7796_v23 = vld [vmem:[%s13860_s0 + $0x4da] ss:$2 sm:$0xff] }
 0x217   :  { %v3604_v40 = vsel %vm3598_vm3, %v3539_v39, %v2200_v18  ;;  %v7778_v39 = vld [vmem:[%s13860_s0 + $0x20a] ss:$2 sm:$0xff] }
 0x218   :  { %v3669_v22 = vsel %vm3663_vm4, %v3604_v40, %v2456_v53  ;;  %v7452_v53 = vld [vmem:[%s13860_s0 + $0xf0] ss:$2 sm:$0xff] }
 0x21a   :  { %3271 = vrot.lane.b32.xlu2 %v7987_v24, %s8209_s14  ;;  %3235 = vrot.lane.b32.xlu1 %v7969_v55, %s8209_s14  ;;  %v7732_v24 = vld [vmem:[%s13860_s0 + $0x4d9] ss:$2 sm:$0xff] }
 0x21b   :  { %3015 = vrot.lane.b32.xlu0 %v7923_v17, %s8210_s15 }
 0x21c   :  { %v9475_v41 = vpop.permute.xlu2 %2459  ;;  %v2968_v36 = vpop.permute.xlu1 %2967 }
 0x21d   :  { %v2712_v2 = vpop.permute.xlu0 %2711 }
 0x21e   :  { %v3734_v14 = vsel %vm3728_vm5, %v3669_v22, %v2712_v2  ;;  %v7906_v22 = vld [vmem:[%s13860_s0 + $0x231] ss:$2 sm:$0xff] }
 0x21f   :  { %v3799_v56 = vsel %vm3793_vm6, %v3734_v14, %v2968_v36  ;;  %v7860_v14 = vld [vmem:[%s13860_s0 + $0x500] ss:$2 sm:$0xff] }
 0x220   :  { %v3864_v50 = vsel %vm3858_vm7, %v3799_v56, %v3224_v8  ;;  %v3411_v8 = vsel %vm45_vm0, %v7452_v53, %v8518_v62  ;;  %v13876_v56 = vmov 0.0  }
 0x221   :  { %8027 = vmatmul.msk.f32.gmra.mxu0 %vm3932_vm8, %v3864_v50  ;;  %v3475_v19 = vsel %vm155_vm2, %v3411_v8, %v8894_v59  ;;  %50 = vst.msk [vmem:[#allocation2 + $0x18] sm:$0xff] %vm45_vm0, %v13876_v56 }
 0x222   :  { %2213 = vrot.lane.b32.xlu2 %v7714_v13, %s8207_s21  ;;  %1993 = vrot.lane.b32.xlu1 %v7668_v30, %s8208_s22  ;;  %51 = vst.msk [vmem:[#allocation2 + $0x20] sm:$0xff] %vm45_vm0, %v13876_v56  ;;  %v7453_v30 = vld [vmem:[%s13860_s0 + $0x100] ss:$2 sm:$0xff] }
 0x223   :  { %1957 = vrot.lane.b32.xlu0 %v7650_v21, %s8208_s22  ;;  %46 = vst.msk [vmem:[#allocation2] sm:$0xff] %vm45_vm0, %v13876_v56  ;;  %v3412_v21 = vsel %vm45_vm0, %v7453_v30, %v8516_v61  ;;  %v7970_v61 = vld [vmem:[%s13860_s0 + $0x232] ss:$2 sm:$0xff] }
 0x224   :  { %v9497_v5 = vpop.permute.xlu2 %3227  ;;  %v2202_v45 = vpop.permute.xlu1 %2201  ;;  %47 = vst.msk [vmem:[#allocation2 + $0x8] sm:$0xff] %vm45_vm0, %v13876_v56 }
 0x225   :  { %v1946_v18 = vpop.permute.xlu0 %1945  ;;  %53 = vst.msk [vmem:[#allocation2 + $0x30] sm:$0xff] %vm45_vm0, %v13876_v56 }
 0x226   :  { %v3540_v49 = vsel %vm3533_vm1, %v3475_v19, %v1946_v18  ;;  %54 = vst.msk [vmem:[#allocation2 + $0x38] sm:$0xff] %vm45_vm0, %v13876_v56  ;;  %v7988_v18 = vld [vmem:[%s13860_s0 + $0x502] ss:$2 sm:$0xff] }
 0x227   :  { %v3605_v62 = vsel %vm3598_vm3, %v3540_v49, %v2202_v45  ;;  %56 = vst.msk [vmem:[#allocation2 + $0x48] sm:$0xff] %vm45_vm0, %v13876_v56  ;;  %v3476_v45 = vsel %vm155_vm2, %v3412_v21, %v8838_v29  ;;  %v7924_v29 = vld [vmem:[%s13860_s0 + $0x501] ss:$2 sm:$0xff] }
 0x228   :  { %v3670_v40 = vsel %vm3663_vm4, %v3605_v62, %v2458_v58  ;;  %v7842_v58 = vld [vmem:[%s13860_s0 + $0x230] ss:$2 sm:$0xff]  ;;  %57 = vst.msk [vmem:[#allocation2 + $0x50] sm:$0xff] %vm45_vm0, %v13876_v56 }
 0x229   :  { %59 = vst.msk [vmem:[#allocation2 + $0x60] sm:$0xff] %vm45_vm0, %v13876_v56 }
 0x22a   :  { %2505 = vrot.lane.b32.xlu2 %v7796_v23, %s8206_s20  ;;  %2469 = vrot.lane.b32.xlu1 %v7778_v39, %s8206_s20  ;;  %60 = vst.msk [vmem:[#allocation2 + $0x68] sm:$0xff] %vm45_vm0, %v13876_v56 }
 0x22b   :  { %2249 = vrot.lane.b32.xlu0 %v7732_v24, %s8207_s21  ;;  %62 = vst.msk [vmem:[#allocation2 + $0x78] sm:$0xff] %vm45_vm0, %v13876_v56 }
 0x22c   :  { %v9517_v59 = vpop.permute.xlu2 %2461  ;;  %v2970_v55 = vpop.permute.xlu1 %2969  ;;  %63 = vst.msk [vmem:[#allocation2 + $0x80] sm:$0xff] %vm45_vm0, %v13876_v56 }
 0x22d   :  { %v2714_v17 = vpop.permute.xlu0 %2713  ;;  %65 = vst.msk [vmem:[#allocation2 + $0x90] sm:$0xff] %vm45_vm0, %v13876_v56 }
 0x22e   :  { %v3735_v36 = vsel %vm3728_vm5, %v3670_v40, %v2714_v17  ;;  %66 = vst.msk [vmem:[#allocation2 + $0x98] sm:$0xff] %vm45_vm0, %v13876_v56  ;;  %v7715_v17 = vld [vmem:[%s13860_s0 + $0x219] ss:$2 sm:$0xff]  ;;  %v7669_v40 = vld [vmem:[%s13860_s0 + $0x4e8] ss:$2 sm:$0xff] }
 0x22f   :  { %v3800_v2 = vsel %vm3793_vm6, %v3735_v36, %v2970_v55  ;;  %68 = vst.msk [vmem:[#allocation2 + $0xa8] sm:$0xff] %vm45_vm0, %v13876_v56  ;;  %v7651_v36 = vld [vmem:[%s13860_s0 + $0x218] ss:$2 sm:$0xff] }
 0x230   :  { %v3865_v13 = vsel %vm3858_vm7, %v3800_v2, %v3226_v12  ;;  %69 = vst.msk [vmem:[#allocation2 + $0xb0] sm:$0xff] %vm45_vm0, %v13876_v56  ;;  %v7454_v2 = vld [vmem:[%s13860_s0 + $0x140] ss:$2 sm:$0xff] }
 0x231   :  { %8028 = vmatmul.msk.f32.gmra.mxu0 %vm3932_vm8, %v3865_v13  ;;  %71 = vst.msk [vmem:[#allocation2 + $0xc0] sm:$0xff] %vm45_vm0, %v13876_v56 }
 0x232   :  { %2981 = vrot.lane.b32.xlu2 %v7906_v22, %s8210_s15  ;;  %2761 = vrot.lane.b32.xlu1 %v7860_v14, %s8211_s16  ;;  %72 = vst.msk [vmem:[#allocation2 + $0xc8] sm:$0xff] %vm45_vm0, %v13876_v56  ;;  %v3413_v14 = vsel %vm45_vm0, %v7454_v2, %v8464_v44  ;;  %v7779_v44 = vld [vmem:[%s13860_s0 + $0x21a] ss:$2 sm:$0xff] }
 0x233   :  { %2725 = vrot.lane.b32.xlu0 %v7842_v58, %s8211_s16  ;;  %74 = vst.msk [vmem:[#allocation2 + $0xd8] sm:$0xff] %vm45_vm0, %v13876_v56  ;;  %v3477_v58 = vsel %vm155_vm2, %v3413_v14, %v8914_v42  ;;  %v7733_v42 = vld [vmem:[%s13860_s0 + $0x4e9] ss:$2 sm:$0xff] }
 0x234   :  { %v9549_v12 = vpop.permute.xlu2 %3229  ;;  %v2204_v50 = vpop.permute.xlu1 %2203  ;;  %75 = vst.msk [vmem:[#allocation2 + $0xe0] sm:$0xff] %vm45_vm0, %v13876_v56 }
 0x235   :  { %v1948_v53 = vpop.permute.xlu0 %1947  ;;  %77 = vst.msk [vmem:[#allocation2 + $0xf0] sm:$0xff] %vm45_vm0, %v13876_v56 }
 0x236   :  { %v3541_v8 = vsel %vm3533_vm1, %v3476_v45, %v1948_v53  ;;  %78 = vst.msk [vmem:[#allocation2 + $0xf8] sm:$0xff] %vm45_vm0, %v13876_v56 }
 0x237   :  { %v3606_v19 = vsel %vm3598_vm3, %v3541_v8, %v2204_v50  ;;  %80 = vst.msk [vmem:[#allocation2 + $0x108] sm:$0xff] %vm45_vm0, %v13876_v56  ;;  %v7797_v50 = vld [vmem:[%s13860_s0 + $0x4ea] ss:$2 sm:$0xff] }
 0x238   :  { %v3671_v24 = vsel %vm3663_vm4, %v3606_v19, %v9475_v41  ;;  %81 = vst.msk [vmem:[#allocation2 + $0x110] sm:$0xff] %vm45_vm0, %v13876_v56  ;;  %v7907_v19 = vld [vmem:[%s13860_s0 + $0x241] ss:$2 sm:$0xff] }
 0x239   :  { %83 = vst.msk [vmem:[#allocation2 + $0x120] sm:$0xff] %vm45_vm0, %v13876_v56 }
 0x23a   :  { %3273 = vrot.lane.b32.xlu2 %v7988_v18, %s8209_s14  ;;  %3237 = vrot.lane.b32.xlu1 %v7970_v61, %s8209_s14  ;;  %84 = vst.msk [vmem:[#allocation2 + $0x128] sm:$0xff] %vm45_vm0, %v13876_v56 }
 0x23b   :  { %3017 = vrot.lane.b32.xlu0 %v7924_v29, %s8210_s15  ;;  %86 = vst.msk [vmem:[#allocation2 + $0x138] sm:$0xff] %vm45_vm0, %v13876_v56 }
 0x23c   :  { %v9585_v49 = vpop.permute.xlu2 %2463  ;;  %v2972_v23 = vpop.permute.xlu1 %2971  ;;  %87 = vst.msk [vmem:[#allocation2 + $0x140] sm:$0xff] %vm45_vm0, %v13876_v56 }
 0x23d   :  { %v2716_v39 = vpop.permute.xlu0 %2715  ;;  %89 = vst.msk [vmem:[#allocation2 + $0x150] sm:$0xff] %vm45_vm0, %v13876_v56 }
 0x23e   :  { %v3736_v62 = vsel %vm3728_vm5, %v3671_v24, %v2716_v39  ;;  %90 = vst.msk [vmem:[#allocation2 + $0x158] sm:$0xff] %vm45_vm0, %v13876_v56  ;;  %v7843_v39 = vld [vmem:[%s13860_s0 + $0x240] ss:$2 sm:$0xff]  ;;  %v7455_v24 = vld [vmem:[%s13860_s0 + $0x150] ss:$2 sm:$0xff] }
 0x23f   :  { %v3801_v55 = vsel %vm3793_vm6, %v3736_v62, %v2972_v23  ;;  %92 = vst.msk [vmem:[#allocation2 + $0x168] sm:$0xff] %vm45_vm0, %v13876_v56 }
 0x240   :  { %v3866_v41 = vsel %vm3858_vm7, %v3801_v55, %v9497_v5  ;;  %93 = vst.msk [vmem:[#allocation2 + $0x170] sm:$0xff] %vm45_vm0, %v13876_v56  ;;  %v3414_v55 = vsel %vm45_vm0, %v7455_v24, %v8536_v4  ;;  %v7971_v4 = vld [vmem:[%s13860_s0 + $0x242] ss:$2 sm:$0xff] }
 0x241   :  { %8029 = vmatmul.msk.f32.gmra.mxu0 %vm3932_vm8, %v3866_v41  ;;  %95 = vst.msk [vmem:[#allocation2 + $0x180] sm:$0xff] %vm45_vm0, %v13876_v56 }
 0x242   :  { %2215 = vrot.lane.b32.xlu2 %v7715_v17, %s8207_s21  ;;  %1995 = vrot.lane.b32.xlu1 %v7669_v40, %s8208_s22  ;;  %96 = vst.msk [vmem:[#allocation2 + $0x188] sm:$0xff] %vm45_vm0, %v13876_v56  ;;  %v3478_v40 = vsel %vm155_vm2, %v3414_v55, %v8912_v46  ;;  %v7925_v46 = vld [vmem:[%s13860_s0 + $0x511] ss:$2 sm:$0xff] }
 0x243   :  { %1959 = vrot.lane.b32.xlu0 %v7651_v36, %s8208_s22  ;;  %101 = vst.msk [vmem:[#allocation2 + $0x1b0] sm:$0xff] %vm45_vm0, %v13876_v56  ;;  %v7989_v36 = vld [vmem:[%s13860_s0 + $0x512] ss:$2 sm:$0xff] }
 0x244   :  { %v9625_v5 = vpop.permute.xlu2 %3231  ;;  %v2206_v22 = vpop.permute.xlu1 %2205  ;;  %102 = vst.msk [vmem:[#allocation2 + $0x1b8] sm:$0xff] %vm45_vm0, %v13876_v56 }
 0x245   :  { %v1950_v13 = vpop.permute.xlu0 %1949  ;;  %104 = vst.msk [vmem:[#allocation2 + $0x1c8] sm:$0xff] %vm45_vm0, %v13876_v56 }
 0x246   :  { %v3542_v30 = vsel %vm3533_vm1, %v3477_v58, %v1950_v13  ;;  %105 = vst.msk [vmem:[#allocation2 + $0x1d0] sm:$0xff] %vm45_vm0, %v13876_v56 }
 0x247   :  { %v3607_v21 = vsel %vm3598_vm3, %v3542_v30, %v2206_v22  ;;  %107 = vst.msk [vmem:[#allocation2 + $0x1e0] sm:$0xff] %vm45_vm0, %v13876_v56 }
 0x248   :  { %v3672_v18 = vsel %vm3663_vm4, %v3607_v21, %v9517_v59  ;;  %v7861_v59 = vld [vmem:[%s13860_s0 + $0x510] ss:$2 sm:$0xff]  ;;  %108 = vst.msk [vmem:[#allocation2 + $0x1e8] sm:$0xff] %vm45_vm0, %v13876_v56 }
 0x249   :  { %110 = vst.msk [vmem:[#allocation2 + $0x1f8] sm:$0xff] %vm45_vm0, %v13876_v56  ;;  %v7652_v21 = vld [vmem:[%s13860_s0 + $0x258] ss:$2 sm:$0xff] }
 0x24a   :  { %2507 = vrot.lane.b32.xlu2 %v7797_v50, %s8206_s20  ;;  %2471 = vrot.lane.b32.xlu1 %v7779_v44, %s8206_s20  ;;  %111 = vst.msk [vmem:[#allocation2 + $0x200] sm:$0xff] %vm45_vm0, %v13876_v56  ;;  %v7716_v44 = vld [vmem:[%s13860_s0 + $0x259] ss:$2 sm:$0xff] }
 0x24b   :  { %2251 = vrot.lane.b32.xlu0 %v7733_v42, %s8207_s21  ;;  %113 = vst.msk [vmem:[#allocation2 + $0x210] sm:$0xff] %vm45_vm0, %v13876_v56  ;;  %v7670_v42 = vld [vmem:[%s13860_s0 + $0x578] ss:$2 sm:$0xff] }
 0x24c   :  { %v9661_v53 = vpop.permute.xlu2 %2465  ;;  %v2974_v45 = vpop.permute.xlu1 %2973  ;;  %114 = vst.msk [vmem:[#allocation2 + $0x218] sm:$0xff] %vm45_vm0, %v13876_v56 }
 0x24d   :  { %v2718_v8 = vpop.permute.xlu0 %2717  ;;  %116 = vst.msk [vmem:[#allocation2 + $0x228] sm:$0xff] %vm45_vm0, %v13876_v56 }
 0x24e   :  { %v3737_v61 = vsel %vm3728_vm5, %v3672_v18, %v2718_v8  ;;  %117 = vst.msk [vmem:[#allocation2 + $0x230] sm:$0xff] %vm45_vm0, %v13876_v56 }
 0x24f   :  { %v3802_v29 = vsel %vm3793_vm6, %v3737_v61, %v2974_v45  ;;  %119 = vst.msk [vmem:[#allocation2 + $0x240] sm:$0xff] %vm45_vm0, %v13876_v56  ;;  %v7456_v45 = vld [vmem:[%s13860_s0 + $0x190] ss:$2 sm:$0xff] }
 0x250   :  { %v3867_v23 = vsel %vm3858_vm7, %v3802_v29, %v9549_v12  ;;  %120 = vst.msk [vmem:[#allocation2 + $0x248] sm:$0xff] %vm45_vm0, %v13876_v56  ;;  %v3415_v18 = vsel %vm45_vm0, %v7456_v45, %v8534_v3  ;;  %v7780_v3 = vld [vmem:[%s13860_s0 + $0x25a] ss:$2 sm:$0xff] }
 0x251   :  { %8030 = vmatmul.msk.f32.gmra.mxu0 %vm3932_vm8, %v3867_v23  ;;  %122 = vst.msk [vmem:[#allocation2 + $0x258] sm:$0xff] %vm45_vm0, %v13876_v56  ;;  %v3479_v29 = vsel %vm155_vm2, %v3415_v18, %v8856_v57  ;;  %v7734_v57 = vld [vmem:[%s13860_s0 + $0x579] ss:$2 sm:$0xff]  ;;  %v7653_v45 = vld [vmem:[%s13860_s0 + $0x268] ss:$2 sm:$0xff] }
 0x252   :  { %2983 = vrot.lane.b32.xlu2 %v7907_v19, %s8210_s15  ;;  %2763 = vrot.lane.b32.xlu1 %v7861_v59, %s8211_s16  ;;  %123 = vst.msk [vmem:[#allocation2 + $0x260] sm:$0xff] %vm45_vm0, %v13876_v56  ;;  %v7798_v59 = vld [vmem:[%s13860_s0 + $0x57a] ss:$2 sm:$0xff] }
 0x253   :  { %2727 = vrot.lane.b32.xlu0 %v7843_v39, %s8211_s16  ;;  %125 = vst.msk [vmem:[#allocation2 + $0x270] sm:$0xff] %vm45_vm0, %v13876_v56  ;;  %v7475_v18 = vld [vmem:[%s13860_s0 + $0x470] ss:$2 sm:$0xff] }
 0x254   :  { %v9699_v12 = vpop.permute.xlu2 %3233  ;;  %v2208_v62 = vpop.permute.xlu1 %2207  ;;  %126 = vst.msk [vmem:[#allocation2 + $0x278] sm:$0xff] %vm45_vm0, %v13876_v56 }
 0x255   :  { %v1952_v17 = vpop.permute.xlu0 %1951  ;;  %128 = vst.msk [vmem:[#allocation2 + $0x288] sm:$0xff] %vm45_vm0, %v13876_v56 }
 0x256   :  { %v3543_v41 = vsel %vm3533_vm1, %v3478_v40, %v1952_v17  ;;  %129 = vst.msk [vmem:[#allocation2 + $0x290] sm:$0xff] %vm45_vm0, %v13876_v56 }
 0x257   :  { %v3608_v2 = vsel %vm3598_vm3, %v3543_v41, %v2208_v62  ;;  %131 = vst.msk [vmem:[#allocation2 + $0x2a0] sm:$0xff] %vm45_vm0, %v13876_v56  ;;  %v7908_v41 = vld [vmem:[%s13860_s0 + $0x281] ss:$2 sm:$0xff] }
 0x258   :  { %v3673_v58 = vsel %vm3663_vm4, %v3608_v2, %v9585_v49  ;;  %132 = vst.msk [vmem:[#allocation2 + $0x2a8] sm:$0xff] %vm45_vm0, %v13876_v56 }
 0x259   :  { %134 = vst.msk [vmem:[#allocation2 + $0x2b8] sm:$0xff] %vm45_vm0, %v13876_v56 }
 0x25a   :  { %3275 = vrot.lane.b32.xlu2 %v7989_v36, %s8209_s14  ;;  %3239 = vrot.lane.b32.xlu1 %v7971_v4, %s8209_s14  ;;  %135 = vst.msk [vmem:[#allocation2 + $0x2c0] sm:$0xff] %vm45_vm0, %v13876_v56  ;;  %v7862_v36 = vld [vmem:[%s13860_s0 + $0x5a0] ss:$2 sm:$0xff] }
 0x25b   :  { %3019 = vrot.lane.b32.xlu0 %v7925_v46, %s8210_s15  ;;  %137 = vst.msk [vmem:[#allocation2 + $0x2d0] sm:$0xff] %vm45_vm0, %v13876_v56  ;;  %v7844_v4 = vld [vmem:[%s13860_s0 + $0x280] ss:$2 sm:$0xff] }
 0x25c   :  { %v9735_v22 = vpop.permute.xlu2 %2211  ;;  %v2976_v14 = vpop.permute.xlu1 %2975  ;;  %138 = vst.msk [vmem:[#allocation2 + $0x2d8] sm:$0xff] %vm45_vm0, %v13876_v56 }
 0x25d   :  { %v2720_v13 = vpop.permute.xlu0 %2719  ;;  %140 = vst.msk [vmem:[#allocation2 + $0x2e8] sm:$0xff] %vm45_vm0, %v13876_v56 }
 0x25e   :  { %v3738_v30 = vsel %vm3728_vm5, %v3673_v58, %v2720_v13  ;;  %141 = vst.msk [vmem:[#allocation2 + $0x2f0] sm:$0xff] %vm45_vm0, %v13876_v56  ;;  %v7972_v13 = vld [vmem:[%s13860_s0 + $0x282] ss:$2 sm:$0xff]  ;;  %v7926_v58 = vld [vmem:[%s13860_s0 + $0x5a1] ss:$2 sm:$0xff] }
 0x25f   :  { %v3803_v50 = vsel %vm3793_vm6, %v3738_v30, %v2976_v14  ;;  %143 = vst.msk [vmem:[#allocation2 + $0x300] sm:$0xff] %vm45_vm0, %v13876_v56  ;;  %v7990_v14 = vld [vmem:[%s13860_s0 + $0x5a2] ss:$2 sm:$0xff] }
 0x260   :  { %v3868_v49 = vsel %vm3858_vm7, %v3803_v50, %v9625_v5  ;;  %144 = vst.msk [vmem:[#allocation2 + $0x308] sm:$0xff] %vm45_vm0, %v13876_v56 }
 0x261   :  { %8031 = vmatmul.msk.f32.gmra.mxu0 %vm3932_vm8, %v3868_v49  ;;  %146 = vst.msk [vmem:[#allocation2 + $0x318] sm:$0xff] %vm45_vm0, %v13876_v56  ;;  %v7717_v49 = vld [vmem:[%s13860_s0 + $0x269] ss:$2 sm:$0xff] }
 0x262   :  { %2217 = vrot.lane.b32.xlu2 %v7716_v44, %s8207_s21  ;;  %1997 = vrot.lane.b32.xlu1 %v7670_v42, %s8208_s22  ;;  %147 = vst.msk [vmem:[#allocation2 + $0x320] sm:$0xff] %vm45_vm0, %v13876_v56  ;;  %v7457_v42 = vld [vmem:[%s13860_s0 + $0x1a0] ss:$2 sm:$0xff] }
 0x263   :  { %1961 = vrot.lane.b32.xlu0 %v7652_v21, %s8208_s22  ;;  %149 = vst.msk [vmem:[#allocation2 + $0x330] sm:$0xff] %vm45_vm0, %v13876_v56  ;;  %v7671_v21 = vld [vmem:[%s13860_s0 + $0x588] ss:$2 sm:$0xff] }
 0x264   :  { %v9775_v5 = vpop.permute.xlu2 %2503  ;;  %v2210_v8 = vpop.permute.xlu1 %2209  ;;  %150 = vst.msk [vmem:[#allocation2 + $0x338] sm:$0xff] %vm45_vm0, %v13876_v56 }
 0x265   :  { %v1954_v61 = vpop.permute.xlu0 %1953  ;;  %156 = vst.msk [vmem:[#allocation3] sm:$0xff] %vm155_vm2, %v13876_v56 }
 0x266   :  { %v3544_v19 = vsel %vm3533_vm1, %v3479_v29, %v1954_v61  ;;  %159 = vst.msk [vmem:[#allocation3 + $0x10] sm:$0xff] %vm155_vm2, %v13876_v56 }
 0x267   :  { %v3609_v23 = vsel %vm3598_vm3, %v3544_v19, %v2210_v8  ;;  %161 = vst.msk [vmem:[#allocation3 + $0x20] sm:$0xff] %vm155_vm2, %v13876_v56  ;;  %v3416_v8 = vsel %vm45_vm0, %v7457_v42, %v8478_v48  ;;  %v7973_v42 = vld [vmem:[%s13860_s0 + $0x292] ss:$2 sm:$0xff] }
 0x268   :  { %v3674_v55 = vsel %vm3663_vm4, %v3609_v23, %v9661_v53  ;;  %165 = vst.msk [vmem:[#allocation3 + $0x40] sm:$0xff] %vm155_vm2, %v13876_v56  ;;  %v3480_v61 = vsel %vm155_vm2, %v3416_v8, %v8932_v31  ;;  %v7799_v23 = vld [vmem:[%s13860_s0 + $0x58a] ss:$2 sm:$0xff] }
 0x269   :  { %167 = vst.msk [vmem:[#allocation3 + $0x50] sm:$0xff] %vm155_vm2, %v13876_v56 }
 0x26a   :  { %2509 = vrot.lane.b32.xlu2 %v7798_v59, %s8206_s20  ;;  %2473 = vrot.lane.b32.xlu1 %v7780_v3, %s8206_s20  ;;  %169 = vst.msk [vmem:[#allocation3 + $0x60] sm:$0xff] %vm155_vm2, %v13876_v56  ;;  %v3434_v3 = vsel %vm45_vm0, %v7475_v18, %v8586_v20  ;;  %v7781_v20 = vld [vmem:[%s13860_s0 + $0x26a] ss:$2 sm:$0xff] }
 0x26b   :  { %2253 = vrot.lane.b32.xlu0 %v7734_v57, %s8207_s21  ;;  %177 = vst.msk [vmem:[#allocation3 + $0xa0] sm:$0xff] %vm155_vm2, %v13876_v56  ;;  %v3498_v31 = vsel %vm155_vm2, %v3434_v3, %v9040_v43  ;;  %v7735_v43 = vld [vmem:[%s13860_s0 + $0x589] ss:$2 sm:$0xff]  ;;  %v7458_v18 = vld [vmem:[%s13860_s0 + $0x1e0] ss:$2 sm:$0xff] }
 0x26c   :  { %v9811_v39 = vpop.permute.xlu2 %2979  ;;  %v2978_v24 = vpop.permute.xlu1 %2977  ;;  %179 = vst.msk [vmem:[#allocation3 + $0xb0] sm:$0xff] %vm155_vm2, %v13876_v56  ;;  %v7476_v3 = vld [vmem:[%s13860_s0 + $0x4b0] ss:$2 sm:$0xff] }
 0x26d   :  { %v2722_v62 = vpop.permute.xlu0 %2721  ;;  %181 = vst.msk [vmem:[#allocation3 + $0xc0] sm:$0xff] %vm155_vm2, %v13876_v56 }
 0x26e   :  { %v3739_v17 = vsel %vm3728_vm5, %v3674_v55, %v2722_v62  ;;  %185 = vst.msk [vmem:[#allocation3 + $0xe0] sm:$0xff] %vm155_vm2, %v13876_v56 }
 0x26f   :  { %v3804_v40 = vsel %vm3793_vm6, %v3739_v17, %v2978_v24  ;;  %187 = vst.msk [vmem:[#allocation3 + $0xf0] sm:$0xff] %vm155_vm2, %v13876_v56 }
 0x270   :  { %v3869_v53 = vsel %vm3858_vm7, %v3804_v40, %v9699_v12  ;;  %189 = vst.msk [vmem:[#allocation3 + $0x100] sm:$0xff] %vm155_vm2, %v13876_v56 }
 0x271   :  { %8032 = vmatmul.msk.f32.gmra.mxu0 %vm3932_vm8, %v3869_v53  ;;  %52 = vst.msk [vmem:[#allocation2 + $0x28] sm:$0x3] %vm48_vm9, %v13876_v56 }
 0x272   :  { %2985 = vrot.lane.b32.xlu2 %v7908_v41, %s8210_s15  ;;  %2765 = vrot.lane.b32.xlu1 %v7862_v36, %s8211_s16  ;;  %49 = vst.msk [vmem:[#allocation2 + $0x10] sm:$0x3] %vm48_vm9, %v13876_v56 }
 0x273   :  { %2729 = vrot.lane.b32.xlu0 %v7844_v4, %s8211_s16  ;;  %55 = vst.msk [vmem:[#allocation2 + $0x40] sm:$0x3] %vm48_vm9, %v13876_v56 }
 0x274   :  { %v9848_v12 = vpop.permute.xlu2 %3271  ;;  %v1992_v46 = vpop.permute.xlu1 %1991  ;;  %58 = vst.msk [vmem:[#allocation2 + $0x58] sm:$0x3] %vm48_vm9, %v13876_v56 }
 0x275   :  { %v1956_v2 = vpop.permute.xlu0 %1955  ;;  %v3563_v24 = vsel %vm3533_vm1, %v3498_v31, %v1992_v46  ;;  %61 = vst.msk [vmem:[#allocation2 + $0x70] sm:$0x3] %vm48_vm9, %v13876_v56 }
 0x276   :  { %v3545_v48 = vsel %vm3533_vm1, %v3480_v61, %v1956_v2  ;;  %64 = vst.msk [vmem:[#allocation2 + $0x88] sm:$0x3] %vm48_vm9, %v13876_v56  ;;  %v7718_v61 = vld [vmem:[%s13860_s0 + $0x2a9] ss:$2 sm:$0xff] }
 0x277   :  { %v3610_v57 = vsel %vm3598_vm3, %v3545_v48, %v9735_v22  ;;  %67 = vst.msk [vmem:[#allocation2 + $0xa0] sm:$0x3] %vm48_vm9, %v13876_v56  ;;  %v7672_v48 = vld [vmem:[%s13860_s0 + $0x5c8] ss:$2 sm:$0xff] }
 0x278   :  { %70 = vst.msk [vmem:[#allocation2 + $0xb8] sm:$0x3] %vm48_vm9, %v13876_v56 }
 0x279   :  { %73 = vst.msk [vmem:[#allocation2 + $0xd0] sm:$0x3] %vm48_vm9, %v13876_v56 }
 0x27a   :  { %3277 = vrot.lane.b32.xlu2 %v7990_v14, %s8209_s14  ;;  %3241 = vrot.lane.b32.xlu1 %v7972_v13, %s8209_s14  ;;  %v7863_v14 = vld [vmem:[%s13860_s0 + $0x5b0] ss:$2 sm:$0xff]  ;;  %76 = vst.msk [vmem:[#allocation2 + $0xe8] sm:$0x3] %vm48_vm9, %v13876_v56 }
 0x27b   :  { %3021 = vrot.lane.b32.xlu0 %v7926_v58, %s8210_s15  ;;  %v7845_v13 = vld [vmem:[%s13860_s0 + $0x290] ss:$2 sm:$0xff]  ;;  %79 = vst.msk [vmem:[#allocation2 + $0x100] sm:$0x3] %vm48_vm9, %v13876_v56 }
 0x27c   :  { %v9872_v30 = vpop.permute.xlu2 %2213  ;;  %v2468_v50 = vpop.permute.xlu1 %2467  ;;  %82 = vst.msk [vmem:[#allocation2 + $0x118] sm:$0x3] %vm48_vm9, %v13876_v56 }
 0x27d   :  { %v2248_v44 = vpop.permute.xlu0 %2247  ;;  %v3675_v62 = vsel %vm3663_vm4, %v3610_v57, %v2468_v50  ;;  %85 = vst.msk [vmem:[#allocation2 + $0x130] sm:$0x3] %vm48_vm9, %v13876_v56 }
 0x27e   :  { %v3628_v55 = vsel %vm3598_vm3, %v3563_v24, %v2248_v44  ;;  %v7991_v44 = vld [vmem:[%s13860_s0 + $0x5b2] ss:$2 sm:$0xff]  ;;  %88 = vst.msk [vmem:[#allocation2 + $0x148] sm:$0x3] %vm48_vm9, %v13876_v56 }
 0x27f   :  { %v3693_v17 = vsel %vm3663_vm4, %v3628_v55, %v9775_v5  ;;  %91 = vst.msk [vmem:[#allocation2 + $0x160] sm:$0x3] %vm48_vm9, %v13876_v56 }
 0x280   :  { %94 = vst.msk [vmem:[#allocation2 + $0x178] sm:$0x3] %vm48_vm9, %v13876_v56 }
 0x281   :  { %97 = vst.msk [vmem:[#allocation2 + $0x190] sm:$0x3] %vm48_vm9, %v13876_v56 }
 0x282   :  { %2219 = vrot.lane.b32.xlu2 %v7717_v49, %s8207_s21  ;;  %1999 = vrot.lane.b32.xlu1 %v7671_v21, %s8208_s22  ;;  %v7927_v49 = vld [vmem:[%s13860_s0 + $0x5b1] ss:$2 sm:$0xff]  ;;  %103 = vst.msk [vmem:[#allocation2 + $0x1c0] sm:$0x3] %vm48_vm9, %v13876_v56 }
 0x283   :  { %1963 = vrot.lane.b32.xlu0 %v7653_v45, %s8208_s22  ;;  %106 = vst.msk [vmem:[#allocation2 + $0x1d8] sm:$0x3] %vm48_vm9, %v13876_v56 }
 0x284   :  { %v9905_v29 = vpop.permute.xlu2 %2505  ;;  %v2760_v19 = vpop.permute.xlu1 %2759  ;;  %109 = vst.msk [vmem:[#allocation2 + $0x1f0] sm:$0x3] %vm48_vm9, %v13876_v56 }
 0x285   :  { %v2724_v59 = vpop.permute.xlu0 %2723  ;;  %v3758_v53 = vsel %vm3728_vm5, %v3693_v17, %v2760_v19  ;;  %112 = vst.msk [vmem:[#allocation2 + $0x208] sm:$0x3] %vm48_vm9, %v13876_v56  ;;  %v7654_v19 = vld [vmem:[%s13860_s0 + $0x2a8] ss:$2 sm:$0xff] }
 0x286   :  { %v3740_v22 = vsel %vm3728_vm5, %v3675_v62, %v2724_v59  ;;  %115 = vst.msk [vmem:[#allocation2 + $0x220] sm:$0x3] %vm48_vm9, %v13876_v56  ;;  %v3417_v59 = vsel %vm45_vm0, %v7458_v18, %v8554_v10 }
 0x287   :  { %v3805_v36 = vsel %vm3793_vm6, %v3740_v22, %v9811_v39  ;;  %v7909_v39 = vld [vmem:[%s13860_s0 + $0x291] ss:$2 sm:$0xff]  ;;  %118 = vst.msk [vmem:[#allocation2 + $0x238] sm:$0x3] %vm48_vm9, %v13876_v56  ;;  %v3481_v31 = vsel %vm155_vm2, %v3417_v59, %v8930_v35  ;;  %v3435_v35 = vsel %vm45_vm0, %v7476_v3, %v8662_v52  ;;  %v7685_v52 = vld [vmem:[%s13860_s0 + $0x7b8] ss:$2 sm:$0xff] }
 0x288   :  { %121 = vst.msk [vmem:[#allocation2 + $0x250] sm:$0x3] %vm48_vm9, %v13876_v56  ;;  %v3499_v24 = vsel %vm155_vm2, %v3435_v35, %v9038_v33  ;;  %v7736_v22 = vld [vmem:[%s13860_s0 + $0x5c9] ss:$2 sm:$0xff] }
 0x289   :  { %124 = vst.msk [vmem:[#allocation2 + $0x268] sm:$0x3] %vm48_vm9, %v13876_v56  ;;  %v7928_v59 = vld [vmem:[%s13860_s0 + $0x5f1] ss:$2 sm:$0xff] }
 0x28a   :  { %2511 = vrot.lane.b32.xlu2 %v7799_v23, %s8206_s20  ;;  %2475 = vrot.lane.b32.xlu1 %v7781_v20, %s8206_s20  ;;  %127 = vst.msk [vmem:[#allocation2 + $0x280] sm:$0x3] %vm48_vm9, %v13876_v56 }
 0x28b   :  { %2255 = vrot.lane.b32.xlu0 %v7735_v43, %s8207_s21  ;;  %130 = vst.msk [vmem:[#allocation2 + $0x298] sm:$0x3] %vm48_vm9, %v13876_v56  ;;  %v7782_v43 = vld [vmem:[%s13860_s0 + $0x2aa] ss:$2 sm:$0xff] }
 0x28c   :  { %v9941_v40 = vpop.permute.xlu2 %2981  ;;  %v3236_v41 = vpop.permute.xlu1 %3235  ;;  %133 = vst.msk [vmem:[#allocation2 + $0x2b0] sm:$0x3] %vm48_vm9, %v13876_v56 }
 0x28d   :  { %v3016_v4 = vpop.permute.xlu0 %3015  ;;  %v3870_v46 = vsel %vm3858_vm7, %v3805_v36, %v3236_v41  ;;  %136 = vst.msk [vmem:[#allocation2 + $0x2c8] sm:$0x3] %vm48_vm9, %v13876_v56 }
 0x28e   :  { %v3823_v2 = vsel %vm3793_vm6, %v3758_v53, %v3016_v4  ;;  %8033 = vmatmul.msk.f32.gmra.mxu0 %vm3932_vm8, %v3870_v46  ;;  %139 = vst.msk [vmem:[#allocation2 + $0x2e0] sm:$0x3] %vm48_vm9, %v13876_v56 }
 0x28f   :  { %v3888_v5 = vsel %vm3858_vm7, %v3823_v2, %v9848_v12  ;;  %142 = vst.msk [vmem:[#allocation2 + $0x2f8] sm:$0x3] %vm48_vm9, %v13876_v56 }
 0x290   :  { %8051 = vmatmul.msk.f32.vlgmr.msra.gmra.mxu2 %vm3932_vm8, %v3888_v5  ;;  %145 = vst.msk [vmem:[#allocation2 + $0x310] sm:$0x3] %vm48_vm9, %v13876_v56 }
 0x291   :  { %148 = vst.msk [vmem:[#allocation2 + $0x328] sm:$0x3] %vm48_vm9, %v13876_v56 }
 0x292   :  { %2987 = vrot.lane.b32.xlu2 %v7909_v39, %s8210_s15  ;;  %2767 = vrot.lane.b32.xlu1 %v7863_v14, %s8211_s16  ;;  %151 = vst.msk [vmem:[#allocation2 + $0x340] sm:$0x3] %vm48_vm9, %v13876_v56  ;;  %v7846_v14 = vld [vmem:[%s13860_s0 + $0x2d0] ss:$2 sm:$0xff]  ;;  %vm6548_vm9 = vcmask 916480  }
 0x293   :  { %2731 = vrot.lane.b32.xlu0 %v7845_v13, %s8211_s16  ;;  %v7800_v13 = vld [vmem:[%s13860_s0 + $0x5ca] ss:$2 sm:$0xff] }
 0x294   :  { %v9980_v12 = vpop.permute.xlu2 %3273  ;;  %v1994_v58 = vpop.permute.xlu1 %1993 }
 0x295   :  { %v1958_v50 = vpop.permute.xlu0 %1957  ;;  %v3564_v55 = vsel %vm3533_vm1, %v3499_v24, %v1994_v58 }
 0x296   :  { %v3546_v10 = vsel %vm3533_vm1, %v3481_v31, %v1958_v50  ;;  %v7477_v31 = vld [vmem:[%s13860_s0 + $0x4c0] ss:$2 sm:$0xff] }
 0x297   :  { %v3611_v62 = vsel %vm3598_vm3, %v3546_v10, %v9872_v30 }
 0x29a   :  { %3279 = vrot.lane.b32.xlu2 %v7991_v44, %s8209_s14  ;;  %3243 = vrot.lane.b32.xlu1 %v7973_v42, %s8209_s14  ;;  %v7910_v44 = vld [vmem:[%s13860_s0 + $0x2d1] ss:$2 sm:$0xff]  ;;  %v7813_v42 = vld [vmem:[%s13860_s0 + $0x7ba] ss:$2 sm:$0xff] }
 0x29b   :  { %3023 = vrot.lane.b32.xlu0 %v7927_v49, %s8210_s15  ;;  %v7864_v49 = vld [vmem:[%s13860_s0 + $0x5f0] ss:$2 sm:$0xff] }
 0x29c   :  { %v10008_v21 = vpop.permute.xlu2 %2215  ;;  %v2470_v45 = vpop.permute.xlu1 %2469 }
 0x29d   :  { %v2250_v8 = vpop.permute.xlu0 %2249  ;;  %v3676_v33 = vsel %vm3663_vm4, %v3611_v62, %v2470_v45 }
 0x29e   :  { %v3629_v30 = vsel %vm3598_vm3, %v3564_v55, %v2250_v8 }
 0x29f   :  { %v3694_v41 = vsel %vm3663_vm4, %v3629_v30, %v9905_v29 }
 0x2a2   :  { %2221 = vrot.lane.b32.xlu2 %v7718_v61, %s8207_s21  ;;  %2001 = vrot.lane.b32.xlu1 %v7672_v48, %s8208_s22  ;;  %v7459_v61 = vld [vmem:[%s13860_s0 + $0x1f0] ss:$2 sm:$0xff] }
 0x2a3   :  { %1965 = vrot.lane.b32.xlu0 %v7654_v19, %s8208_s22  ;;  %v7974_v48 = vld [vmem:[%s13860_s0 + $0x2d2] ss:$2 sm:$0xff]  ;;  %v3418_v3 = vsel %vm45_vm0, %v7459_v61, %v8552_v9  ;;  %v3436_v9 = vsel %vm45_vm0, %v7477_v31, %v8660_v51 }
 0x2a4   :  { %v10049_v57 = vpop.permute.xlu2 %2507  ;;  %v2762_v23 = vpop.permute.xlu1 %2761  ;;  %v7877_v19 = vld [vmem:[%s13860_s0 + $0x7e0] ss:$2 sm:$0xff]  ;;  %v3482_v10 = vsel %vm155_vm2, %v3418_v3, %v8874_v6  ;;  %v3500_v62 = vsel %vm155_vm2, %v3436_v9, %v8982_v38 }
 0x2a5   :  { %v2726_v20 = vpop.permute.xlu0 %2725  ;;  %v3759_v46 = vsel %vm3728_vm5, %v3694_v41, %v2762_v23  ;;  %v8005_v6 = vld [vmem:[%s13860_s0 + $0x7e2] ss:$2 sm:$0xff]  ;;  %v7992_v51 = vld [vmem:[%s13860_s0 + $0x5f2] ss:$2 sm:$0xff] }
 0x2a6   :  { %v3741_v17 = vsel %vm3728_vm5, %v3676_v33, %v2726_v20  ;;  %v7801_v61 = vld [vmem:[%s13860_s0 + $0x5da] ss:$2 sm:$0xff] }
 0x2a7   :  { %v3806_v4 = vsel %vm3793_vm6, %v3741_v17, %v9941_v40  ;;  %v7749_v40 = vld [vmem:[%s13860_s0 + $0x7b9] ss:$2 sm:$0xff]  ;;  %v7814_v9 = vld [vmem:[%s13860_s0 + $0x7fa] ss:$2 sm:$0xff] }
 0x2aa   :  { %2477 = vrot.lane.b32.xlu2 %v7782_v43, %s8206_s20  ;;  %2027 = vrot.lane.b32.xlu1 %v7685_v52, %s8208_s22  ;;  %v7941_v52 = vld [vmem:[%s13860_s0 + $0x7e1] ss:$2 sm:$0xff] }
 0x2ab   :  { %2257 = vrot.lane.b32.xlu0 %v7736_v22, %s8207_s21 }
 0x2ac   :  { %v2984_v36 = vpop.permute.xlu2 %2983  ;;  %v3238_v53 = vpop.permute.xlu1 %3237 }
 0x2ad   :  { %v3018_v2 = vpop.permute.xlu0 %3017  ;;  %v3871_v5 = vsel %vm3858_vm7, %v3806_v4, %v3238_v53 }
 0x2ae   :  { %v3824_v39 = vsel %vm3793_vm6, %v3759_v46, %v3018_v2  ;;  %8034 = vmatmul.msk.f32.gmra.mxu0 %vm3932_vm8, %v3871_v5 }
 0x2af   :  { %v3889_v29 = vsel %vm3858_vm7, %v3824_v39, %v9980_v12  ;;  %v7719_v39 = vld [vmem:[%s13860_s0 + $0x2b9] ss:$2 sm:$0xff] }
 0x2b0   :  { %8052 = vmatmul.msk.f32.gmra.mxu2 %vm3932_vm8, %v3889_v29 }
 0x2b2   :  { %2733 = vrot.lane.b32.xlu2 %v7846_v14, %s8211_s16  ;;  %2283 = vrot.lane.b32.xlu1 %v7749_v40, %s8207_s21 }
 0x2b3   :  { %2513 = vrot.lane.b32.xlu0 %v7800_v13, %s8206_s20  ;;  %v7783_v13 = vld [vmem:[%s13860_s0 + $0x2ba] ss:$2 sm:$0xff] }
 0x2b4   :  { %v3276_v12 = vpop.permute.xlu2 %3275  ;;  %v1996_v58 = vpop.permute.xlu1 %1995 }
 0x2b5   :  { %v1960_v50 = vpop.permute.xlu0 %1959  ;;  %v3565_v55 = vsel %vm3533_vm1, %v3500_v62, %v1996_v58  ;;  %v7737_v58 = vld [vmem:[%s13860_s0 + $0x5d9] ss:$2 sm:$0xff] }
 0x2b6   :  { %v3547_v23 = vsel %vm3533_vm1, %v3482_v10, %v1960_v50 }
 0x2b7   :  { %v3612_v43 = vsel %vm3598_vm3, %v3547_v23, %v10008_v21 }
 0x2ba   :  { %2989 = vrot.lane.b32.xlu2 %v7910_v44, %s8210_s15  ;;  %2539 = vrot.lane.b32.xlu1 %v7813_v42, %s8206_s20 }
 0x2bb   :  { %2769 = vrot.lane.b32.xlu0 %v7864_v49, %s8211_s16  ;;  %v7460_v49 = vld [vmem:[%s13860_s0 + $0x230] ss:$2 sm:$0xff] }
 0x2bc   :  { %v10126_v45 = vpop.permute.xlu2 %2217  ;;  %v2472_v8 = vpop.permute.xlu1 %2471 }
 0x2bd   :  { %v2252_v18 = vpop.permute.xlu0 %2251  ;;  %v3677_v33 = vsel %vm3663_vm4, %v3612_v43, %v2472_v8  ;;  %v7847_v8 = vld [vmem:[%s13860_s0 + $0x2e0] ss:$2 sm:$0xff] }
 0x2be   :  { %v3630_v38 = vsel %vm3598_vm3, %v3565_v55, %v2252_v18  ;;  %v7750_v18 = vld [vmem:[%s13860_s0 + $0x7f9] ss:$2 sm:$0xff] }
 0x2bf   :  { %v3695_v22 = vsel %vm3663_vm4, %v3630_v38, %v10049_v57  ;;  %v7673_v57 = vld [vmem:[%s13860_s0 + $0x5d8] ss:$2 sm:$0xff] }
 0x2c2   :  { %3245 = vrot.lane.b32.xlu2 %v7974_v48, %s8209_s14  ;;  %2795 = vrot.lane.b32.xlu1 %v7877_v19, %s8211_s16  ;;  %v3419_v48 = vsel %vm45_vm0, %v7460_v49, %v8496_v54  ;;  %v7478_v19 = vld [vmem:[%s13860_s0 + $0x550] ss:$2 sm:$0xff] }
 0x2c3   :  { %3025 = vrot.lane.b32.xlu0 %v7928_v59, %s8210_s15  ;;  %v3483_v59 = vsel %vm155_vm2, %v3419_v48, %v8950_v25  ;;  %v3437_v54 = vsel %vm45_vm0, %v7478_v19, %v8604_v26  ;;  %v7911_v25 = vld [vmem:[%s13860_s0 + $0x2e1] ss:$2 sm:$0xff]  ;;  %v7865_v26 = vld [vmem:[%s13860_s0 + $0x600] ss:$2 sm:$0xff] }
 0x2c4   :  { %v10151_v20 = vpop.permute.xlu2 %2509  ;;  %v2764_v35 = vpop.permute.xlu1 %2763 }
 0x2c5   :  { %v2728_v24 = vpop.permute.xlu0 %2727  ;;  %v3760_v53 = vsel %vm3728_vm5, %v3695_v22, %v2764_v35  ;;  %v3501_v35 = vsel %vm155_vm2, %v3437_v54, %v9058_v28 }
 0x2c6   :  { %v3742_v21 = vsel %vm3728_vm5, %v3677_v33, %v2728_v24 }
 0x2c7   :  { %v3807_v41 = vsel %vm3793_vm6, %v3742_v21, %v2984_v36  ;;  %v7655_v36 = vld [vmem:[%s13860_s0 + $0x2b8] ss:$2 sm:$0xff] }
 0x2ca   :  { %3307 = vrot.lane.b32.xlu2 %v8005_v6, %s8209_s14  ;;  %3051 = vrot.lane.b32.xlu1 %v7941_v52, %s8210_s15 }
 0x2cb   :  { %3281 = vrot.lane.b32.xlu0 %v7992_v51, %s8209_s14 }
 0x2cc   :  { %v2986_v30 = vpop.permute.xlu2 %2985  ;;  %v3240_v17 = vpop.permute.xlu1 %3239 }
 0x2cd   :  { %v3020_v4 = vpop.permute.xlu0 %3019  ;;  %v3872_v46 = vsel %vm3858_vm7, %v3807_v41, %v3240_v17  ;;  %v7975_v41 = vld [vmem:[%s13860_s0 + $0x2e2] ss:$2 sm:$0xff] }
 0x2ce   :  { %v3825_v2 = vsel %vm3793_vm6, %v3760_v53, %v3020_v4  ;;  %8035 = vmatmul.msk.f32.gmra.mxu0 %vm3932_vm8, %v3872_v46 }
 0x2cf   :  { %v3890_v5 = vsel %vm3858_vm7, %v3825_v2, %v3276_v12  ;;  %v7686_v12 = vld [vmem:[%s13860_s0 + $0x7f8] ss:$2 sm:$0xff] }
 0x2d0   :  { %8053 = vmatmul.msk.f32.gmra.mxu2 %vm3932_vm8, %v3890_v5  ;;  %v8006_v2 = vld [vmem:[%s13860_s0 + $0x822] ss:$2 sm:$0xff]  ;;  %v7942_v5 = vld [vmem:[%s13860_s0 + $0x821] ss:$2 sm:$0xff] }
 0x2d2   :  { %2223 = vrot.lane.b32.xlu2 %v7719_v39, %s8207_s21  ;;  %2003 = vrot.lane.b32.xlu1 %v7673_v57, %s8208_s22  ;;  %v7993_v39 = vld [vmem:[%s13860_s0 + $0x602] ss:$2 sm:$0xff] }
 0x2d3   :  { %1967 = vrot.lane.b32.xlu0 %v7655_v36, %s8208_s22 }
 0x2d4   :  { %v3278_v29 = vpop.permute.xlu2 %3277  ;;  %v1998_v14 = vpop.permute.xlu1 %1997 }
 0x2d5   :  { %v1962_v40 = vpop.permute.xlu0 %1961  ;;  %v3566_v62 = vsel %vm3533_vm1, %v3501_v35, %v1998_v14  ;;  %v7461_v14 = vld [vmem:[%s13860_s0 + $0x240] ss:$2 sm:$0xff] }
 0x2d6   :  { %v3548_v3 = vsel %vm3533_vm1, %v3483_v59, %v1962_v40  ;;  %v7720_v40 = vld [vmem:[%s13860_s0 + $0x2f9] ss:$2 sm:$0xff]  ;;  %v7687_v59 = vld [vmem:[%s13860_s0 + $0x808] ss:$2 sm:$0xff] }
 0x2d7   :  { %v3613_v24 = vsel %vm3598_vm3, %v3548_v3, %v10126_v45 }
 0x2da   :  { %2479 = vrot.lane.b32.xlu2 %v7783_v13, %s8206_s20  ;;  %2029 = vrot.lane.b32.xlu1 %v7686_v12, %s8208_s22  ;;  %v7674_v13 = vld [vmem:[%s13860_s0 + $0x618] ss:$2 sm:$0xff] }
 0x2db   :  { %2259 = vrot.lane.b32.xlu0 %v7737_v58, %s8207_s21  ;;  %v7656_v12 = vld [vmem:[%s13860_s0 + $0x2f8] ss:$2 sm:$0xff]  ;;  %v3420_v58 = vsel %vm45_vm0, %v7461_v14, %v8572_v16 }
 0x2dc   :  { %v10208_v50 = vpop.permute.xlu2 %2219  ;;  %v2474_v44 = vpop.permute.xlu1 %2473 }
 0x2dd   :  { %v2254_v42 = vpop.permute.xlu0 %2253  ;;  %v3678_v43 = vsel %vm3663_vm4, %v3613_v24, %v2474_v44  ;;  %v7479_v44 = vld [vmem:[%s13860_s0 + $0x560] ss:$2 sm:$0xff] }
 0x2de   :  { %v3631_v28 = vsel %vm3598_vm3, %v3566_v62, %v2254_v42  ;;  %v3484_v42 = vsel %vm155_vm2, %v3420_v58, %v8948_v37  ;;  %v3438_v16 = vsel %vm45_vm0, %v7479_v44, %v8680_v0  ;;  %v7784_v37 = vld [vmem:[%s13860_s0 + $0x2fa] ss:$2 sm:$0xff]  ;;  %v7738_v0 = vld [vmem:[%s13860_s0 + $0x619] ss:$2 sm:$0xff] }
 0x2df   :  { %v3696_v6 = vsel %vm3663_vm4, %v3631_v28, %v10151_v20  ;;  %v7878_v20 = vld [vmem:[%s13860_s0 + $0x820] ss:$2 sm:$0xff]  ;;  %v3502_v48 = vsel %vm155_vm2, %v3438_v16, %v9056_v34  ;;  %v7493_v16 = vld [vmem:[%s13860_s0 + $0x790] ss:$2 sm:$0xff] }
 0x2e0   :  { %v7848_v28 = vld [vmem:[%s13860_s0 + $0x320] ss:$2 sm:$0xff] }
 0x2e2   :  { %2735 = vrot.lane.b32.xlu2 %v7847_v8, %s8211_s16  ;;  %2285 = vrot.lane.b32.xlu1 %v7750_v18, %s8207_s21 }
 0x2e3   :  { %2515 = vrot.lane.b32.xlu0 %v7801_v61, %s8206_s20 }
 0x2e4   :  { %v10233_v31 = vpop.permute.xlu2 %2511  ;;  %v2766_v10 = vpop.permute.xlu1 %2765 }
 0x2e5   :  { %v2730_v23 = vpop.permute.xlu0 %2729  ;;  %v3761_v51 = vsel %vm3728_vm5, %v3696_v6, %v2766_v10  ;;  %v7462_v6 = vld [vmem:[%s13860_s0 + $0x280] ss:$2 sm:$0xff] }
 0x2e6   :  { %v3743_v45 = vsel %vm3728_vm5, %v3678_v43, %v2730_v23 }
 0x2e7   :  { %v3808_v33 = vsel %vm3793_vm6, %v3743_v45, %v2986_v30  ;;  %v7929_v30 = vld [vmem:[%s13860_s0 + $0x601] ss:$2 sm:$0xff]  ;;  %v7802_v45 = vld [vmem:[%s13860_s0 + $0x61a] ss:$2 sm:$0xff] }
 0x2ea   :  { %2991 = vrot.lane.b32.xlu2 %v7911_v25, %s8210_s15  ;;  %2541 = vrot.lane.b32.xlu1 %v7814_v9, %s8206_s20 }
 0x2eb   :  { %2771 = vrot.lane.b32.xlu0 %v7865_v26, %s8211_s16 }
 0x2ec   :  { %v2988_v52 = vpop.permute.xlu2 %2987  ;;  %v3242_v55 = vpop.permute.xlu1 %3241 }
 0x2ed   :  { %v3022_v38 = vpop.permute.xlu0 %3021  ;;  %v3873_v21 = vsel %vm3858_vm7, %v3808_v33, %v3242_v55 }
 0x2ee   :  { %v3826_v22 = vsel %vm3793_vm6, %v3761_v51, %v3022_v38  ;;  %8036 = vmatmul.msk.f32.gmra.mxu0 %vm3932_vm8, %v3873_v21 }
 0x2ef   :  { %v3891_v17 = vsel %vm3858_vm7, %v3826_v22, %v3278_v29 }
 0x2f0   :  { %8054 = vmatmul.msk.f32.gmra.mxu2 %vm3932_vm8, %v3891_v17  ;;  %v7912_v17 = vld [vmem:[%s13860_s0 + $0x321] ss:$2 sm:$0xff] }
 0x2f2   :  { %3247 = vrot.lane.b32.xlu2 %v7975_v41, %s8209_s14  ;;  %2797 = vrot.lane.b32.xlu1 %v7878_v20, %s8211_s16  ;;  %v7815_v41 = vld [vmem:[%s13860_s0 + $0x80a] ss:$2 sm:$0xff] }
 0x2f3   :  { %3027 = vrot.lane.b32.xlu0 %v7929_v30, %s8210_s15  ;;  %v7866_v20 = vld [vmem:[%s13860_s0 + $0x640] ss:$2 sm:$0xff] }
 0x2f4   :  { %v3280_v53 = vpop.permute.xlu2 %3279  ;;  %v2000_v4 = vpop.permute.xlu1 %1999 }
 0x2f5   :  { %v1964_v46 = vpop.permute.xlu0 %1963  ;;  %v3567_v3 = vsel %vm3533_vm1, %v3502_v48, %v2000_v4 }
 0x2f6   :  { %v3549_v49 = vsel %vm3533_vm1, %v3484_v42, %v1964_v46 }
 0x2f7   :  { %v3614_v19 = vsel %vm3598_vm3, %v3549_v49, %v10208_v50  ;;  %v7721_v49 = vld [vmem:[%s13860_s0 + $0x309] ss:$2 sm:$0xff] }
 0x2fa   :  { %3309 = vrot.lane.b32.xlu2 %v8006_v2, %s8209_s14  ;;  %3053 = vrot.lane.b32.xlu1 %v7942_v5, %s8210_s15  ;;  %v7976_v5 = vld [vmem:[%s13860_s0 + $0x322] ss:$2 sm:$0xff] }
 0x2fb   :  { %3283 = vrot.lane.b32.xlu0 %v7993_v39, %s8209_s14  ;;  %v7879_v39 = vld [vmem:[%s13860_s0 + $0x830] ss:$2 sm:$0xff] }
 0x2fc   :  { %v2222_v57 = vpop.permute.xlu2 %2221  ;;  %v2476_v36 = vpop.permute.xlu1 %2475 }
 0x2fd   :  { %v2256_v29 = vpop.permute.xlu0 %2255  ;;  %v3679_v10 = vsel %vm3663_vm4, %v3614_v19, %v2476_v36 }
 0x2fe   :  { %v3632_v34 = vsel %vm3598_vm3, %v3567_v3, %v2256_v29  ;;  %v3452_v3 = vsel %vm45_vm0, %v7493_v16, %v8694_v7  ;;  %v7481_v16 = vld [vmem:[%s13860_s0 + $0x5b0] ss:$2 sm:$0xff] }
 0x2ff   :  { %v3697_v23 = vsel %vm3663_vm4, %v3632_v34, %v10233_v31  ;;  %v7751_v31 = vld [vmem:[%s13860_s0 + $0x809] ss:$2 sm:$0xff] }
 0x302   :  { %2225 = vrot.lane.b32.xlu2 %v7720_v40, %s8207_s21  ;;  %2005 = vrot.lane.b32.xlu1 %v7674_v13, %s8208_s22  ;;  %v8007_v40 = vld [vmem:[%s13860_s0 + $0x832] ss:$2 sm:$0xff]  ;;  %v7943_v13 = vld [vmem:[%s13860_s0 + $0x831] ss:$2 sm:$0xff] }
 0x303   :  { %1969 = vrot.lane.b32.xlu0 %v7656_v12, %s8208_s22  ;;  %v7994_v12 = vld [vmem:[%s13860_s0 + $0x642] ss:$2 sm:$0xff] }
 0x304   :  { %v2478_v8 = vpop.permute.xlu2 %2477  ;;  %v2768_v18 = vpop.permute.xlu1 %2767 }
 0x305   :  { %v2732_v61 = vpop.permute.xlu0 %2731  ;;  %v3762_v25 = vsel %vm3728_vm5, %v3697_v23, %v2768_v18  ;;  %v7657_v18 = vld [vmem:[%s13860_s0 + $0x308] ss:$2 sm:$0xff] }
 0x306   :  { %v3744_v50 = vsel %vm3728_vm5, %v3679_v10, %v2732_v61  ;;  %v7480_v61 = vld [vmem:[%s13860_s0 + $0x5a0] ss:$2 sm:$0xff] }
 0x307   :  { %v3809_v24 = vsel %vm3793_vm6, %v3744_v50, %v2988_v52  ;;  %v3421_v52 = vsel %vm45_vm0, %v7462_v6, %v8570_v15  ;;  %v7785_v10 = vld [vmem:[%s13860_s0 + $0x30a] ss:$2 sm:$0xff]  ;;  %v3516_v50 = vsel %vm155_vm2, %v3452_v3, %v9148_v11  ;;  %v3440_v3 = vsel %vm45_vm0, %v7481_v16, %v8622_v32  ;;  %v7740_v32 = vld [vmem:[%s13860_s0 + $0x669] ss:$2 sm:$0xff] }
 0x308   :  { %v3485_v51 = vsel %vm155_vm2, %v3421_v52, %v8892_v1  ;;  %v7849_v6 = vld [vmem:[%s13860_s0 + $0x330] ss:$2 sm:$0xff]  ;;  %v7752_v52 = vld [vmem:[%s13860_s0 + $0x849] ss:$2 sm:$0xff] }
 0x30a   :  { %2481 = vrot.lane.b32.xlu2 %v7784_v37, %s8206_s20  ;;  %2031 = vrot.lane.b32.xlu1 %v7687_v59, %s8208_s22  ;;  %v3439_v59 = vsel %vm45_vm0, %v7480_v61, %v8678_v63  ;;  %v7739_v63 = vld [vmem:[%s13860_s0 + $0x629] ss:$2 sm:$0xff]  ;;  %v7658_v61 = vld [vmem:[%s13860_s0 + $0x348] ss:$2 sm:$0xff] }
 0x30b   :  { %2261 = vrot.lane.b32.xlu0 %v7738_v0, %s8207_s21  ;;  %v7688_v0 = vld [vmem:[%s13860_s0 + $0x848] ss:$2 sm:$0xff]  ;;  %v3503_v34 = vsel %vm155_vm2, %v3439_v59, %v9000_v27 }
 0x30c   :  { %v2734_v54 = vpop.permute.xlu2 %2733  ;;  %v3244_v35 = vpop.permute.xlu1 %3243 }
 0x30d   :  { %v3024_v9 = vpop.permute.xlu0 %3023  ;;  %v3874_v62 = vsel %vm3858_vm7, %v3809_v24, %v3244_v35 }
 0x30e   :  { %v3827_v43 = vsel %vm3793_vm6, %v3762_v25, %v3024_v9  ;;  %8037 = vmatmul.msk.f32.gmra.mxu0 %vm3932_vm8, %v3874_v62 }
 0x30f   :  { %v3892_v26 = vsel %vm3858_vm7, %v3827_v43, %v3280_v53 }
 0x310   :  { %8055 = vmatmul.msk.f32.gmra.mxu2 %vm3932_vm8, %v3892_v26 }
 0x312   :  { %2737 = vrot.lane.b32.xlu2 %v7848_v28, %s8211_s16  ;;  %2287 = vrot.lane.b32.xlu1 %v7751_v31, %s8207_s21 }
 0x313   :  { %2517 = vrot.lane.b32.xlu0 %v7802_v45, %s8206_s20 }
 0x314   :  { %v2990_v55 = vpop.permute.xlu2 %2989  ;;  %v2002_v33 = vpop.permute.xlu1 %2001 }
 0x315   :  { %v1966_v38 = vpop.permute.xlu0 %1965  ;;  %v3568_v7 = vsel %vm3533_vm1, %v3503_v34, %v2002_v33  ;;  %v7463_v33 = vld [vmem:[%s13860_s0 + $0x290] ss:$2 sm:$0xff] }
 0x316   :  { %v3550_v21 = vsel %vm3533_vm1, %v3485_v51, %v1966_v38  ;;  %v3422_v51 = vsel %vm45_vm0, %v7463_v33, %v8514_v60  ;;  %v7689_v34 = vld [vmem:[%s13860_s0 + $0x858] ss:$2 sm:$0xff]  ;;  %v7726_v33 = vld [vmem:[%s13860_s0 + $0x3e9] ss:$2 sm:$0xff] }
 0x317   :  { %v3615_v22 = vsel %vm3598_vm3, %v3550_v21, %v2222_v57  ;;  %v7930_v57 = vld [vmem:[%s13860_s0 + $0x641] ss:$2 sm:$0xff] }
 0x318   :  { %v3680_v15 = vsel %vm3663_vm4, %v3615_v22, %v2478_v8  ;;  %v7675_v8 = vld [vmem:[%s13860_s0 + $0x628] ss:$2 sm:$0xff]  ;;  %v3486_v22 = vsel %vm155_vm2, %v3422_v51, %v8968_v47 }
 0x319   :  { %v3745_v1 = vsel %vm3728_vm5, %v3680_v15, %v2734_v54  ;;  %v7804_v51 = vld [vmem:[%s13860_s0 + $0x66a] ss:$2 sm:$0xff] }
 0x31a   :  { %2993 = vrot.lane.b32.xlu2 %v7912_v17, %s8210_s15  ;;  %2543 = vrot.lane.b32.xlu1 %v7815_v41, %s8206_s20  ;;  %v3810_v4 = vsel %vm3793_vm6, %v3745_v1, %v2990_v55  ;;  %v7803_v55 = vld [vmem:[%s13860_s0 + $0x62a] ss:$2 sm:$0xff] }
 0x31b   :  { %2773 = vrot.lane.b32.xlu0 %v7866_v20, %s8211_s16  ;;  %v7913_v20 = vld [vmem:[%s13860_s0 + $0x331] ss:$2 sm:$0xff]  ;;  %v7816_v1 = vld [vmem:[%s13860_s0 + $0x84a] ss:$2 sm:$0xff] }
 0x31c   :  { %v3246_v30 = vpop.permute.xlu2 %3245  ;;  %v2028_v53 = vpop.permute.xlu1 %2027 }
 0x31d   :  { %v2258_v46 = vpop.permute.xlu0 %2257  ;;  %v3875_v2 = vsel %vm3858_vm7, %v3810_v4, %v3246_v30  ;;  %v3581_v23 = vsel %vm3533_vm1, %v3516_v50, %v2028_v53  ;;  %v7867_v30 = vld [vmem:[%s13860_s0 + $0x650] ss:$2 sm:$0xff] }
 0x31e   :  { %8038 = vmatmul.msk.f32.gmra.mxu0 %vm3932_vm8, %v3875_v2  ;;  %v3633_v54 = vsel %vm3598_vm3, %v3568_v7, %v2258_v46  ;;  %v7662_v50 = vld [vmem:[%s13860_s0 + $0x3e8] ss:$2 sm:$0xff] }
 0x322   :  { %3249 = vrot.lane.b32.xlu2 %v7976_v5, %s8209_s14  ;;  %2799 = vrot.lane.b32.xlu1 %v7879_v39, %s8211_s16  ;;  %v7977_v39 = vld [vmem:[%s13860_s0 + $0x332] ss:$2 sm:$0xff] }
 0x323   :  { %3029 = vrot.lane.b32.xlu0 %v7930_v57, %s8210_s15  ;;  %v7880_v57 = vld [vmem:[%s13860_s0 + $0x870] ss:$2 sm:$0xff] }
 0x324   :  { %v3308_v36 = vpop.permute.xlu2 %3307  ;;  %v2284_v29 = vpop.permute.xlu1 %2283 }
 0x325   :  { %v2514_v14 = vpop.permute.xlu0 %2513  ;;  %v3646_v35 = vsel %vm3598_vm3, %v3581_v23, %v2284_v29  ;;  %v13996_v23 = vld [vmem:[#allocation73_spill] sm:$0xff] }
 0x326   :  { %v3698_v27 = vsel %vm3663_vm4, %v3633_v54, %v2514_v14 }
 0x32a   :  { %3311 = vrot.lane.b32.xlu2 %v8007_v40, %s8209_s14  ;;  %3055 = vrot.lane.b32.xlu1 %v7943_v13, %s8210_s15  ;;  %v8008_v13 = vld [vmem:[%s13860_s0 + $0x872] ss:$2 sm:$0xff] }
 0x32b   :  { %3285 = vrot.lane.b32.xlu0 %v7994_v12, %s8209_s14  ;;  %v7944_v12 = vld [vmem:[%s13860_s0 + $0x871] ss:$2 sm:$0xff] }
 0x32c   :  { %v2224_v58 = vpop.permute.xlu2 %2223  ;;  %v2540_v44 = vpop.permute.xlu1 %2539 }
 0x32d   :  { %v2770_v42 = vpop.permute.xlu0 %2769  ;;  %v3711_v11 = vsel %vm3663_vm4, %v3646_v35, %v2540_v44 }
 0x32e   :  { %v3763_v24 = vsel %vm3728_vm5, %v3698_v27, %v2770_v42 }
 0x332   :  { %2227 = vrot.lane.b32.xlu2 %v7721_v49, %s8207_s21  ;;  %2007 = vrot.lane.b32.xlu1 %v7675_v8, %s8208_s22  ;;  %v7722_v8 = vld [vmem:[%s13860_s0 + $0x349] ss:$2 sm:$0xff] }
 0x333   :  { %1971 = vrot.lane.b32.xlu0 %v7657_v18, %s8208_s22  ;;  %v7676_v18 = vld [vmem:[%s13860_s0 + $0x668] ss:$2 sm:$0xff] }
 0x334   :  { %v2480_v48 = vpop.permute.xlu2 %2479  ;;  %v2796_v19 = vpop.permute.xlu1 %2795 }
 0x335   :  { %v3026_v37 = vpop.permute.xlu0 %3025  ;;  %v3776_v25 = vsel %vm3728_vm5, %v3711_v11, %v2796_v19 }
 0x336   :  { %v3828_v43 = vsel %vm3793_vm6, %v3763_v24, %v3026_v37 }
 0x33a   :  { %2483 = vrot.lane.b32.xlu2 %v7785_v10, %s8206_s20  ;;  %2033 = vrot.lane.b32.xlu1 %v7688_v0, %s8208_s22  ;;  %v13994_v10 = vld [vmem:[#allocation35_spill] sm:$0xff] }
 0x33b   :  { %2263 = vrot.lane.b32.xlu0 %v7739_v63, %s8207_s21  ;;  %v13995_v63 = vld [vmem:[#allocation62_spill] sm:$0xff] }
 0x33c   :  { %v2736_v9 = vpop.permute.xlu2 %2735  ;;  %v3052_v62 = vpop.permute.xlu1 %3051  ;;  %v3504_v7 = vsel %vm155_vm2, %v3440_v3, %v13995_v63  ;;  %v7482_v3 = vld [vmem:[%s13860_s0 + $0x5f0] ss:$2 sm:$0xff]  ;;  %v13999_v63 = vld [vmem:[#allocation23_spill] sm:$0xff] }
 0x33d   :  { %v3841_v26 = vsel %vm3793_vm6, %v3776_v25, %v3052_v62  ;;  %v3282_v28 = vpop.permute.xlu0 %3281 }
 0x33e   :  { %v3893_v31 = vsel %vm3858_vm7, %v3828_v43, %v3282_v28  ;;  %v3906_v45 = vsel %vm3858_vm7, %v3841_v26, %v3308_v36  ;;  %v7931_v36 = vld [vmem:[%s13860_s0 + $0x651] ss:$2 sm:$0xff] }
 0x33f   :  { %8056 = vmatmul.msk.f32.gmra.mxu2 %vm3932_vm8, %v3893_v31  ;;  %8069 = vmatmul.msk.f32.vlgmr.msra.gmra.mxu3 %vm3932_vm8, %v3906_v45 }
 0x342   :  { %2739 = vrot.lane.b32.xlu2 %v7849_v6, %s8211_s16  ;;  %2289 = vrot.lane.b32.xlu1 %v7752_v52, %s8207_s21 }
 0x343   :  { %2519 = vrot.lane.b32.xlu0 %v7803_v55, %s8206_s20 }
 0x344   :  { %v2992_v38 = vpop.permute.xlu2 %2991  ;;  %v2004_v21 = vpop.permute.xlu1 %2003 }
 0x345   :  { %v1968_v17 = vpop.permute.xlu0 %1967  ;;  %v3569_v35 = vsel %vm3533_vm1, %v3504_v7, %v2004_v21  ;;  %v7464_v21 = vld [vmem:[%s13860_s0 + $0x2d0] ss:$2 sm:$0xff]  ;;  %v3441_v7 = vsel %vm45_vm0, %v7482_v3, %v13999_v63 }
 0x346   :  { %v3551_v41 = vsel %vm3533_vm1, %v3486_v22, %v1968_v17  ;;  %v13997_v22 = vld [vmem:[#allocation12_spill] sm:$0xff]  ;;  %v7791_v63 = vld [vmem:[%s13860_s0 + $0x3fa] ss:$2 sm:$0xff] }
 0x347   :  { %v3616_v15 = vsel %vm3598_vm3, %v3551_v41, %v2224_v58  ;;  %v7995_v58 = vld [vmem:[%s13860_s0 + $0x652] ss:$2 sm:$0xff]  ;;  %v3423_v17 = vsel %vm45_vm0, %v7464_v21, %v13997_v22 }
 0x348   :  { %v3681_v60 = vsel %vm3663_vm4, %v3616_v15, %v2480_v48  ;;  %v7494_v48 = vld [vmem:[%s13860_s0 + $0x7d0] ss:$2 sm:$0xff] }
 0x349   :  { %v3746_v47 = vsel %vm3728_vm5, %v3681_v60, %v2736_v9  ;;  %v3453_v0 = vsel %vm45_vm0, %v7494_v48, %v13994_v10  ;;  %v7495_v10 = vld [vmem:[%s13860_s0 + $0x7e0] ss:$2 sm:$0xff] }
 0x34a   :  { %2995 = vrot.lane.b32.xlu2 %v7913_v20, %s8210_s15  ;;  %2545 = vrot.lane.b32.xlu1 %v7816_v1, %s8206_s20  ;;  %v3811_v46 = vsel %vm3793_vm6, %v3746_v47, %v2992_v38  ;;  %v3517_v54 = vsel %vm155_vm2, %v3453_v0, %v13996_v23  ;;  %v7786_v38 = vld [vmem:[%s13860_s0 + $0x34a] ss:$2 sm:$0xff]  ;;  %v13998_v20 = vld [vmem:[#allocation50_spill] sm:$0xff] }
 0x34b   :  { %2775 = vrot.lane.b32.xlu0 %v7867_v30, %s8211_s16  ;;  %v3487_v1 = vsel %vm155_vm2, %v3423_v17, %v13998_v20  ;;  %v14000_v23 = vld [vmem:[#allocation34_spill] sm:$0xff] }
 0x34c   :  { %v3248_v53 = vpop.permute.xlu2 %3247  ;;  %v2030_v4 = vpop.permute.xlu1 %2029  ;;  %v7659_v20 = vld [vmem:[%s13860_s0 + $0x358] ss:$2 sm:$0xff] }
 0x34d   :  { %v2260_v2 = vpop.permute.xlu0 %2259  ;;  %v3876_v5 = vsel %vm3858_vm7, %v3811_v46, %v3248_v53  ;;  %v3582_v27 = vsel %vm3533_vm1, %v3517_v54, %v2030_v4  ;;  %v7868_v53 = vld [vmem:[%s13860_s0 + $0x690] ss:$2 sm:$0xff]  ;;  %v3454_v54 = vsel %vm45_vm0, %v7495_v10, %v14000_v23  ;;  %v7496_v23 = vld [vmem:[%s13860_s0 + $0x820] ss:$2 sm:$0xff] }
 0x34e   :  { %8039 = vmatmul.msk.f32.gmra.mxu0 %vm3932_vm8, %v3876_v5  ;;  %v3634_v11 = vsel %vm3598_vm3, %v3569_v35, %v2260_v2  ;;  %v7850_v4 = vld [vmem:[%s13860_s0 + $0x370] ss:$2 sm:$0xff]  ;;  %v7753_v2 = vld [vmem:[%s13860_s0 + $0x859] ss:$2 sm:$0xff] }
 0x34f   :  { %v7982_v35 = vld [vmem:[%s13860_s0 + $0x412] ss:$2 sm:$0xff] }
 0x352   :  { %3251 = vrot.lane.b32.xlu2 %v7977_v39, %s8209_s14  ;;  %2801 = vrot.lane.b32.xlu1 %v7880_v57, %s8211_s16 }
 0x353   :  { %3031 = vrot.lane.b32.xlu0 %v7931_v36, %s8210_s15 }
 0x354   :  { %v3310_v29 = vpop.permute.xlu2 %3309  ;;  %v2286_v14 = vpop.permute.xlu1 %2285 }
 0x355   :  { %v2516_v40 = vpop.permute.xlu0 %2515  ;;  %v3647_v24 = vsel %vm3598_vm3, %v3582_v27, %v2286_v14  ;;  %v14001_v27 = vld [vmem:[#allocation61_spill] sm:$0xff] }
 0x356   :  { %v3699_v25 = vsel %vm3663_vm4, %v3634_v11, %v2516_v40  ;;  %v7914_v40 = vld [vmem:[%s13860_s0 + $0x371] ss:$2 sm:$0xff]  ;;  %v3505_v11 = vsel %vm155_vm2, %v3441_v7, %v14001_v27  ;;  %v7483_v7 = vld [vmem:[%s13860_s0 + $0x600] ss:$2 sm:$0xff] }
 0x357   :  { %v14005_v27 = vld [vmem:[#allocation22_spill] sm:$0xff] }
 0x35a   :  { %3313 = vrot.lane.b32.xlu2 %v8008_v13, %s8209_s14  ;;  %3057 = vrot.lane.b32.xlu1 %v7944_v12, %s8210_s15  ;;  %v7817_v13 = vld [vmem:[%s13860_s0 + $0x85a] ss:$2 sm:$0xff]  ;;  %v7790_v12 = vld [vmem:[%s13860_s0 + $0x3ea] ss:$2 sm:$0xff] }
 0x35b   :  { %3287 = vrot.lane.b32.xlu0 %v7995_v58, %s8209_s14 }
 0x35c   :  { %v2226_v44 = vpop.permute.xlu2 %2225  ;;  %v2542_v42 = vpop.permute.xlu1 %2541 }
 0x35d   :  { %v2772_v49 = vpop.permute.xlu0 %2771  ;;  %v3712_v9 = vsel %vm3663_vm4, %v3647_v24, %v2542_v42  ;;  %v14002_v24 = vld [vmem:[#allocation63_spill] sm:$0xff] }
 0x35e   :  { %v3764_v62 = vsel %vm3728_vm5, %v3699_v25, %v2772_v49  ;;  %v7881_v49 = vld [vmem:[%s13860_s0 + $0x880] ss:$2 sm:$0xff]  ;;  %v3518_v25 = vsel %vm155_vm2, %v3454_v54, %v14002_v24 }
 0x35f   :  { %v14006_v24 = vld [vmem:[#allocation24_spill] sm:$0xff] }
 0x362   :  { %2229 = vrot.lane.b32.xlu2 %v7722_v8, %s8207_s21  ;;  %2009 = vrot.lane.b32.xlu1 %v7676_v18, %s8208_s22  ;;  %v7854_v8 = vld [vmem:[%s13860_s0 + $0x410] ss:$2 sm:$0xff]  ;;  %v7932_v18 = vld [vmem:[%s13860_s0 + $0x691] ss:$2 sm:$0xff] }
 0x363   :  { %1973 = vrot.lane.b32.xlu0 %v7658_v61, %s8208_s22 }
 0x364   :  { %v2482_v19 = vpop.permute.xlu2 %2481  ;;  %v2798_v37 = vpop.permute.xlu1 %2797 }
 0x365   :  { %v3028_v59 = vpop.permute.xlu0 %3027  ;;  %v3777_v43 = vsel %vm3728_vm5, %v3712_v9, %v2798_v37  ;;  %v7996_v37 = vld [vmem:[%s13860_s0 + $0x692] ss:$2 sm:$0xff]  ;;  %v7945_v9 = vld [vmem:[%s13860_s0 + $0x881] ss:$2 sm:$0xff] }
 0x366   :  { %v3829_v31 = vsel %vm3793_vm6, %v3764_v62, %v3028_v59  ;;  %v7978_v59 = vld [vmem:[%s13860_s0 + $0x372] ss:$2 sm:$0xff] }
 0x36a   :  { %2035 = vrot.lane.b32.xlu2 %v7689_v34, %s8208_s22  ;;  %1981 = vrot.lane.b32.xlu1 %v7662_v50, %s8208_s22 }
 0x36b   :  { %2265 = vrot.lane.b32.xlu0 %v7740_v32, %s8207_s21  ;;  %v8009_v32 = vld [vmem:[%s13860_s0 + $0x882] ss:$2 sm:$0xff] }
 0x36c   :  { %v2738_v26 = vpop.permute.xlu2 %2737  ;;  %v3054_v28 = vpop.permute.xlu1 %3053 }
 0x36d   :  { %v3842_v45 = vsel %vm3793_vm6, %v3777_v43, %v3054_v28  ;;  %v3284_v6 = vpop.permute.xlu0 %3283 }
 0x36e   :  { %v3894_v52 = vsel %vm3858_vm7, %v3829_v31, %v3284_v6  ;;  %v3907_v55 = vsel %vm3858_vm7, %v3842_v45, %v3310_v29 }
 0x36f   :  { %8057 = vmatmul.msk.f32.gmra.mxu2 %vm3932_vm8, %v3894_v52  ;;  %8070 = vmatmul.msk.f32.gmra.mxu3 %vm3932_vm8, %v3907_v55 }
 0x372   :  { %2237 = vrot.lane.b32.xlu2 %v7726_v33, %s8207_s21  ;;  %2521 = vrot.lane.b32.xlu1 %v7804_v51, %s8206_s20 }
 0x373   :  { %2485 = vrot.lane.b32.xlu0 %v7786_v38, %s8206_s20 }
 0x374   :  { %v2994_v41 = vpop.permute.xlu2 %2993  ;;  %v2006_v15 = vpop.permute.xlu1 %2005 }
 0x375   :  { %v1970_v60 = vpop.permute.xlu0 %1969  ;;  %v3570_v62 = vsel %vm3533_vm1, %v3505_v11, %v2006_v15  ;;  %v7677_v15 = vld [vmem:[%s13860_s0 + $0x678] ss:$2 sm:$0xff]  ;;  %v3442_v11 = vsel %vm45_vm0, %v7483_v7, %v14005_v27  ;;  %v14009_v27 = vld [vmem:[#allocation8_spill] sm:$0xff] }
 0x376   :  { %v3552_v30 = vsel %vm3533_vm1, %v3487_v1, %v1970_v60  ;;  %v7465_v1 = vld [vmem:[%s13860_s0 + $0x2e0] ss:$2 sm:$0xff] }
 0x377   :  { %v3617_v47 = vsel %vm3598_vm3, %v3552_v30, %v2226_v44  ;;  %v14003_v60 = vld [vmem:[#allocation11_spill] sm:$0xff] }
 0x378   :  { %v3682_v46 = vsel %vm3663_vm4, %v3617_v47, %v2482_v19  ;;  %v7918_v19 = vld [vmem:[%s13860_s0 + $0x411] ss:$2 sm:$0xff]  ;;  %v3424_v30 = vsel %vm45_vm0, %v7465_v1, %v14003_v60  ;;  %v7852_v7 = vld [vmem:[%s13860_s0 + $0x3c0] ss:$2 sm:$0xff] }
 0x379   :  { %v3747_v5 = vsel %vm3728_vm5, %v3682_v46, %v2738_v26 }
 0x37a   :  { %2777 = vrot.lane.b32.xlu2 %v7868_v53, %s8211_s16  ;;  %2741 = vrot.lane.b32.xlu1 %v7850_v4, %s8211_s16  ;;  %v3812_v36 = vsel %vm3793_vm6, %v3747_v5, %v2994_v41  ;;  %v7723_v41 = vld [vmem:[%s13860_s0 + $0x359] ss:$2 sm:$0xff] }
 0x37b   :  { %2291 = vrot.lane.b32.xlu0 %v7753_v2, %s8207_s21  ;;  %v14004_v4 = vld [vmem:[#allocation46_spill] sm:$0xff] }
 0x37c   :  { %v3250_v39 = vpop.permute.xlu2 %3249  ;;  %v2032_v57 = vpop.permute.xlu1 %2031  ;;  %v3488_v46 = vsel %vm155_vm2, %v3424_v30, %v14004_v4  ;;  %v7979_v4 = vld [vmem:[%s13860_s0 + $0x382] ss:$2 sm:$0xff] }
 0x37d   :  { %v2262_v29 = vpop.permute.xlu0 %2261  ;;  %v3877_v14 = vsel %vm3858_vm7, %v3812_v36, %v3250_v39  ;;  %v3583_v43 = vsel %vm3533_vm1, %v3518_v25, %v2032_v57  ;;  %v7690_v57 = vld [vmem:[%s13860_s0 + $0x898] ss:$2 sm:$0xff]  ;;  %v3455_v25 = vsel %vm45_vm0, %v7496_v23, %v14006_v24 }
 0x37e   :  { %8040 = vmatmul.msk.f32.gmra.mxu0 %vm3932_vm8, %v3877_v14  ;;  %v3635_v26 = vsel %vm3598_vm3, %v3570_v62, %v2262_v29  ;;  %v7663_v36 = vld [vmem:[%s13860_s0 + $0x3f8] ss:$2 sm:$0xff]  ;;  %v7741_v14 = vld [vmem:[%s13860_s0 + $0x679] ss:$2 sm:$0xff] }
 0x37f   :  { %v7855_v62 = vld [vmem:[%s13860_s0 + $0x420] ss:$2 sm:$0xff]  ;;  %v14010_v24 = vld [vmem:[#allocation17_spill] sm:$0xff] }
 0x380   :  { %v7466_v23 = vld [vmem:[%s13860_s0 + $0x320] ss:$2 sm:$0xff] }
 0x382   :  { %2997 = vrot.lane.b32.xlu2 %v7914_v40, %s8210_s15  ;;  %2547 = vrot.lane.b32.xlu1 %v7817_v13, %s8206_s20 }
 0x383   :  { %2493 = vrot.lane.b32.xlu0 %v7790_v12, %s8206_s20 }
 0x384   :  { %v3312_v58 = vpop.permute.xlu2 %3311  ;;  %v2288_v44 = vpop.permute.xlu1 %2287 }
 0x385   :  { %v2518_v42 = vpop.permute.xlu0 %2517  ;;  %v3648_v28 = vsel %vm3598_vm3, %v3583_v43, %v2288_v44  ;;  %v14007_v43 = vld [vmem:[#allocation55_spill] sm:$0xff] }
 0x386   :  { %v3700_v31 = vsel %vm3663_vm4, %v3635_v26, %v2518_v42  ;;  %v3506_v26 = vsel %vm155_vm2, %v3442_v11, %v14007_v43  ;;  %v3425_v11 = vsel %vm45_vm0, %v7466_v23, %v14009_v27  ;;  %v7920_v23 = vld [vmem:[%s13860_s0 + $0x461] ss:$2 sm:$0xff]  ;;  %v8011_v27 = vld [vmem:[%s13860_s0 + $0x8d2] ss:$2 sm:$0xff] }
 0x38a   :  { %2803 = vrot.lane.b32.xlu2 %v7881_v49, %s8211_s16  ;;  %2749 = vrot.lane.b32.xlu1 %v7854_v8, %s8211_s16  ;;  %v7727_v49 = vld [vmem:[%s13860_s0 + $0x3f9] ss:$2 sm:$0xff]  ;;  %v7805_v8 = vld [vmem:[%s13860_s0 + $0x67a] ss:$2 sm:$0xff] }
 0x38b   :  { %3033 = vrot.lane.b32.xlu0 %v7932_v18, %s8210_s15  ;;  %v7787_v18 = vld [vmem:[%s13860_s0 + $0x35a] ss:$2 sm:$0xff] }
 0x38c   :  { %v2228_v61 = vpop.permute.xlu2 %2227  ;;  %v2544_v16 = vpop.permute.xlu1 %2543 }
 0x38d   :  { %v2774_v48 = vpop.permute.xlu0 %2773  ;;  %v3713_v45 = vsel %vm3663_vm4, %v3648_v28, %v2544_v16  ;;  %v14008_v28 = vld [vmem:[#allocation76_spill] sm:$0xff] }
 0x38e   :  { %v3765_v6 = vsel %vm3728_vm5, %v3700_v31, %v2774_v48  ;;  %v3519_v31 = vsel %vm155_vm2, %v3455_v25, %v14008_v28  ;;  %v14012_v28 = vld [vmem:[#allocation65_spill] sm:$0xff] }
 0x392   :  { %3005 = vrot.lane.b32.xlu2 %v7918_v19, %s8210_s15  ;;  %3289 = vrot.lane.b32.xlu1 %v7996_v37, %s8209_s14  ;;  %v7869_v19 = vld [vmem:[%s13860_s0 + $0x6a0] ss:$2 sm:$0xff] }
 0x393   :  { %3253 = vrot.lane.b32.xlu0 %v7978_v59, %s8209_s14  ;;  %v7851_v37 = vld [vmem:[%s13860_s0 + $0x380] ss:$2 sm:$0xff]  ;;  %v7754_v59 = vld [vmem:[%s13860_s0 + $0x899] ss:$2 sm:$0xff] }
 0x394   :  { %v2484_v0 = vpop.permute.xlu2 %2483  ;;  %v2800_v34 = vpop.permute.xlu1 %2799 }
 0x395   :  { %v3030_v50 = vpop.permute.xlu0 %3029  ;;  %v3778_v52 = vsel %vm3728_vm5, %v3713_v45, %v2800_v34  ;;  %v7915_v34 = vld [vmem:[%s13860_s0 + $0x381] ss:$2 sm:$0xff] }
 0x396   :  { %v3830_v51 = vsel %vm3793_vm6, %v3765_v6, %v3030_v50  ;;  %v7818_v50 = vld [vmem:[%s13860_s0 + $0x89a] ss:$2 sm:$0xff]  ;;  %v7933_v45 = vld [vmem:[%s13860_s0 + $0x6a1] ss:$2 sm:$0xff] }
 0x39a   :  { %3315 = vrot.lane.b32.xlu2 %v8009_v32, %s8209_s14  ;;  %3261 = vrot.lane.b32.xlu1 %v7982_v35, %s8209_s14 }
 0x39b   :  { %3059 = vrot.lane.b32.xlu0 %v7945_v9, %s8210_s15  ;;  %v7882_v9 = vld [vmem:[%s13860_s0 + $0x8c0] ss:$2 sm:$0xff] }
 0x39c   :  { %v2740_v55 = vpop.permute.xlu2 %2739  ;;  %v3056_v33 = vpop.permute.xlu1 %3055 }
 0x39d   :  { %v3843_v38 = vsel %vm3793_vm6, %v3778_v52, %v3056_v33  ;;  %v3286_v21 = vpop.permute.xlu0 %3285 }
 0x39e   :  { %v3895_v22 = vsel %vm3858_vm7, %v3830_v51, %v3286_v21  ;;  %v3908_v17 = vsel %vm3858_vm7, %v3843_v38, %v3312_v58 }
 0x39f   :  { %8058 = vmatmul.msk.f32.gmra.mxu2 %vm3932_vm8, %v3895_v22  ;;  %8071 = vmatmul.msk.f32.gmra.mxu3 %vm3932_vm8, %v3908_v17 }
 0x3a2   :  { %2231 = vrot.lane.b32.xlu2 %v7723_v41, %s8207_s21  ;;  %2011 = vrot.lane.b32.xlu1 %v7677_v15, %s8208_s22 }
 0x3a3   :  { %1975 = vrot.lane.b32.xlu0 %v7659_v20, %s8208_s22 }
 0x3a4   :  { %v2996_v47 = vpop.permute.xlu2 %2995  ;;  %v2008_v53 = vpop.permute.xlu1 %2007 }
 0x3a5   :  { %v1972_v2 = vpop.permute.xlu0 %1971  ;;  %v3571_v6 = vsel %vm3533_vm1, %v3506_v26, %v2008_v53  ;;  %v7997_v53 = vld [vmem:[%s13860_s0 + $0x6a2] ss:$2 sm:$0xff] }
 0x3a6   :  { %v3553_v5 = vsel %vm3533_vm1, %v3488_v46, %v1972_v2 }
 0x3a7   :  { %v3618_v39 = vsel %vm3598_vm3, %v3553_v5, %v2228_v61 }
 0x3a8   :  { %v3683_v29 = vsel %vm3663_vm4, %v3618_v39, %v2484_v0  ;;  %v8010_v39 = vld [vmem:[%s13860_s0 + $0x8c2] ss:$2 sm:$0xff] }
 0x3a9   :  { %v3748_v40 = vsel %vm3728_vm5, %v3683_v29, %v2740_v55 }
 0x3aa   :  { %2037 = vrot.lane.b32.xlu2 %v7690_v57, %s8208_s22  ;;  %1983 = vrot.lane.b32.xlu1 %v7663_v36, %s8208_s22  ;;  %v3813_v58 = vsel %vm3793_vm6, %v3748_v40, %v2996_v47  ;;  %v7919_v47 = vld [vmem:[%s13860_s0 + $0x421] ss:$2 sm:$0xff]  ;;  %v7983_v57 = vld [vmem:[%s13860_s0 + $0x422] ss:$2 sm:$0xff] }
 0x3ab   :  { %2267 = vrot.lane.b32.xlu0 %v7741_v14, %s8207_s21  ;;  %v7946_v36 = vld [vmem:[%s13860_s0 + $0x8c1] ss:$2 sm:$0xff] }
 0x3ac   :  { %v3252_v13 = vpop.permute.xlu2 %3251  ;;  %v2034_v12 = vpop.permute.xlu1 %2033 }
 0x3ad   :  { %v2264_v44 = vpop.permute.xlu0 %2263  ;;  %v3878_v42 = vsel %vm3858_vm7, %v3813_v58, %v3252_v13  ;;  %v3584_v52 = vsel %vm3533_vm1, %v3519_v31, %v2034_v12  ;;  %v7724_v13 = vld [vmem:[%s13860_s0 + $0x399] ss:$2 sm:$0xff]  ;;  %v7678_v12 = vld [vmem:[%s13860_s0 + $0x6b8] ss:$2 sm:$0xff] }
 0x3ae   :  { %8041 = vmatmul.msk.f32.gmra.mxu0 %vm3932_vm8, %v3878_v42  ;;  %v3636_v55 = vsel %vm3598_vm3, %v3571_v6, %v2264_v44  ;;  %v7660_v58 = vld [vmem:[%s13860_s0 + $0x398] ss:$2 sm:$0xff] }
 0x3b2   :  { %2239 = vrot.lane.b32.xlu2 %v7727_v49, %s8207_s21  ;;  %2523 = vrot.lane.b32.xlu1 %v7805_v8, %s8206_s20  ;;  %v7691_v8 = vld [vmem:[%s13860_s0 + $0x8a8] ss:$2 sm:$0xff] }
 0x3b3   :  { %2487 = vrot.lane.b32.xlu0 %v7787_v18, %s8206_s20  ;;  %v7664_v18 = vld [vmem:[%s13860_s0 + $0x438] ss:$2 sm:$0xff] }
 0x3b4   :  { %v3314_v61 = vpop.permute.xlu2 %3313  ;;  %v2290_v16 = vpop.permute.xlu1 %2289 }
 0x3b5   :  { %v2520_v48 = vpop.permute.xlu0 %2519  ;;  %v3649_v33 = vsel %vm3598_vm3, %v3584_v52, %v2290_v16 }
 0x3b6   :  { %v3701_v51 = vsel %vm3663_vm4, %v3636_v55, %v2520_v48  ;;  %v7470_v55 = vld [vmem:[%s13860_s0 + $0x3c0] ss:$2 sm:$0xff] }
 0x3ba   :  { %2779 = vrot.lane.b32.xlu2 %v7869_v19, %s8211_s16  ;;  %2743 = vrot.lane.b32.xlu1 %v7851_v37, %s8211_s16  ;;  %v7728_v37 = vld [vmem:[%s13860_s0 + $0x439] ss:$2 sm:$0xff] }
 0x3bb   :  { %2293 = vrot.lane.b32.xlu0 %v7754_v59, %s8207_s21  ;;  %v7806_v59 = vld [vmem:[%s13860_s0 + $0x6ba] ss:$2 sm:$0xff] }
 0x3bc   :  { %v10748_v3 = vpop.permute.xlu2 %2229  ;;  %v2546_v10 = vpop.permute.xlu1 %2545 }
 0x3bd   :  { %v2776_v0 = vpop.permute.xlu0 %2775  ;;  %v3714_v38 = vsel %vm3663_vm4, %v3649_v33, %v2546_v10  ;;  %v7788_v10 = vld [vmem:[%s13860_s0 + $0x39a] ss:$2 sm:$0xff] }
 0x3be   :  { %v3766_v21 = vsel %vm3728_vm5, %v3701_v51, %v2776_v0  ;;  %v7916_v51 = vld [vmem:[%s13860_s0 + $0x3c1] ss:$2 sm:$0xff] }
 0x3c2   :  { %2999 = vrot.lane.b32.xlu2 %v7915_v34, %s8210_s15  ;;  %2549 = vrot.lane.b32.xlu1 %v7818_v50, %s8206_s20 }
 0x3c3   :  { %2495 = vrot.lane.b32.xlu0 %v7791_v63, %s8206_s20  ;;  %v7870_v63 = vld [vmem:[%s13860_s0 + $0x6e0] ss:$2 sm:$0xff] }
 0x3c4   :  { %v10768_v54 = vpop.permute.xlu2 %2035  ;;  %v2802_v32 = vpop.permute.xlu1 %2801 }
 0x3c5   :  { %v3032_v35 = vpop.permute.xlu0 %3031  ;;  %v3779_v22 = vsel %vm3728_vm5, %v3714_v38, %v2802_v32  ;;  %v7755_v32 = vld [vmem:[%s13860_s0 + $0x8a9] ss:$2 sm:$0xff]  ;;  %v7819_v38 = vld [vmem:[%s13860_s0 + $0x8aa] ss:$2 sm:$0xff] }
 0x3c6   :  { %v3831_v15 = vsel %vm3793_vm6, %v3766_v21, %v3032_v35  ;;  %v7484_v35 = vld [vmem:[%s13860_s0 + $0x640] ss:$2 sm:$0xff] }
 0x3c7   :  { %v3443_v25 = vsel %vm45_vm0, %v7484_v35, %v14010_v24  ;;  %v7947_v24 = vld [vmem:[%s13860_s0 + $0x8d1] ss:$2 sm:$0xff] }
 0x3c8   :  { %v3507_v31 = vsel %vm155_vm2, %v3443_v25, %v14012_v28  ;;  %v7679_v28 = vld [vmem:[%s13860_s0 + $0x6c8] ss:$2 sm:$0xff] }
 0x3ca   :  { %2805 = vrot.lane.b32.xlu2 %v7882_v9, %s8211_s16  ;;  %2751 = vrot.lane.b32.xlu1 %v7855_v62, %s8211_s16  ;;  %v14011_v9 = vld [vmem:[#allocation52_spill] sm:$0xff] }
 0x3cb   :  { %3035 = vrot.lane.b32.xlu0 %v7933_v45, %s8210_s15  ;;  %v3489_v62 = vsel %vm155_vm2, %v3425_v11, %v14011_v9  ;;  %v7984_v11 = vld [vmem:[%s13860_s0 + $0x462] ss:$2 sm:$0xff] }
 0x3cc   :  { %v10798_v17 = vpop.permute.xlu2 %2237  ;;  %v3058_v41 = vpop.permute.xlu1 %3057 }
 0x3cd   :  { %v3844_v20 = vsel %vm3793_vm6, %v3779_v22, %v3058_v41  ;;  %v3288_v1 = vpop.permute.xlu0 %3287  ;;  %v7792_v41 = vld [vmem:[%s13860_s0 + $0x43a] ss:$2 sm:$0xff] }
 0x3ce   :  { %v3896_v60 = vsel %vm3858_vm7, %v3831_v15, %v3288_v1  ;;  %v3909_v30 = vsel %vm3858_vm7, %v3844_v20, %v3314_v61  ;;  %v7742_v61 = vld [vmem:[%s13860_s0 + $0x6b9] ss:$2 sm:$0xff]  ;;  %v14013_v20 = vld [vmem:[#allocation16_spill] sm:$0xff] }
 0x3cf   :  { %8059 = vmatmul.msk.f32.gmra.mxu2 %vm3932_vm8, %v3896_v60  ;;  %8072 = vmatmul.msk.f32.gmra.mxu3 %vm3932_vm8, %v3909_v30  ;;  %v3429_v1 = vsel %vm45_vm0, %v7470_v55, %v14013_v20  ;;  %v7497_v30 = vld [vmem:[%s13860_s0 + $0x830] ss:$2 sm:$0xff] }
 0x3d0   :  { %v7692_v55 = vld [vmem:[%s13860_s0 + $0x8e8] ss:$2 sm:$0xff] }
 0x3d1   :  { %v7789_v20 = vld [vmem:[%s13860_s0 + $0x3aa] ss:$2 sm:$0xff] }
 0x3d2   :  { %3007 = vrot.lane.b32.xlu2 %v7919_v47, %s8210_s15  ;;  %3291 = vrot.lane.b32.xlu1 %v7997_v53, %s8209_s14 }
 0x3d3   :  { %3255 = vrot.lane.b32.xlu0 %v7979_v4, %s8209_s14 }
 0x3d4   :  { %v10818_v46 = vpop.permute.xlu2 %2777  ;;  %v2010_v2 = vpop.permute.xlu1 %2009 }
 0x3d5   :  { %v1974_v5 = vpop.permute.xlu0 %1973  ;;  %v3572_v52 = vsel %vm3533_vm1, %v3507_v31, %v2010_v2  ;;  %v7661_v31 = vld [vmem:[%s13860_s0 + $0x3a8] ss:$2 sm:$0xff] }
 0x3d6   :  { %v3554_v45 = vsel %vm3533_vm1, %v3489_v62, %v1974_v5 }
 0x3d7   :  { %v3619_v22 = vsel %vm3598_vm3, %v3554_v45, %v10748_v3  ;;  %v14014_v3 = vld [vmem:[#allocation53_spill] sm:$0xff] }
 0x3d8   :  { %v3493_v47 = vsel %vm155_vm2, %v3429_v1, %v14014_v3  ;;  %v7871_v3 = vld [vmem:[%s13860_s0 + $0x6f0] ss:$2 sm:$0xff] }
 0x3da   :  { %3317 = vrot.lane.b32.xlu2 %v8010_v39, %s8209_s14  ;;  %3263 = vrot.lane.b32.xlu1 %v7983_v57, %s8209_s14 }
 0x3db   :  { %3061 = vrot.lane.b32.xlu0 %v7946_v36, %s8210_s15 }
 0x3dc   :  { %v10832_v29 = vpop.permute.xlu2 %2997  ;;  %v10834_v14 = vpop.permute.xlu1 %1981 }
 0x3dd   :  { %v2266_v40 = vpop.permute.xlu0 %2265  ;;  %v3558_v4 = vsel %vm3533_vm1, %v3493_v47, %v10834_v14  ;;  %v7853_v47 = vld [vmem:[%s13860_s0 + $0x3d0] ss:$2 sm:$0xff] }
 0x3de   :  { %v3637_v33 = vsel %vm3598_vm3, %v3572_v52, %v2266_v40 }
 0x3e2   :  { %2233 = vrot.lane.b32.xlu2 %v7724_v13, %s8207_s21  ;;  %2013 = vrot.lane.b32.xlu1 %v7678_v12, %s8208_s22  ;;  %v14015_v13 = vld [vmem:[#allocation38_spill] sm:$0xff] }
 0x3e3   :  { %1977 = vrot.lane.b32.xlu0 %v7660_v58, %s8208_s22  ;;  %v3456_v12 = vsel %vm45_vm0, %v7497_v30, %v14015_v13  ;;  %v14016_v58 = vld [vmem:[#allocation75_spill] sm:$0xff] }
 0x3e4   :  { %v10848_v44 = vpop.permute.xlu2 %2803  ;;  %v2522_v42 = vpop.permute.xlu1 %2521  ;;  %v3520_v14 = vsel %vm155_vm2, %v3456_v12, %v14016_v58  ;;  %v14019_v13 = vld [vmem:[#allocation51_spill] sm:$0xff] }
 0x3e5   :  { %v2486_v49 = vpop.permute.xlu0 %2485  ;;  %v3702_v21 = vsel %vm3663_vm4, %v3637_v33, %v2522_v42  ;;  %v3623_v42 = vsel %vm3598_vm3, %v3558_v4, %v10798_v17  ;;  %v7665_v33 = vld [vmem:[%s13860_s0 + $0x448] ss:$2 sm:$0xff]  ;;  %v7756_v4 = vld [vmem:[%s13860_s0 + $0x8e9] ss:$2 sm:$0xff] }
 0x3e6   :  { %v3684_v15 = vsel %vm3663_vm4, %v3619_v22, %v2486_v49  ;;  %v3767_v53 = vsel %vm3728_vm5, %v3702_v21, %v10818_v46  ;;  %v7856_v49 = vld [vmem:[%s13860_s0 + $0x460] ss:$2 sm:$0xff] }
 0x3ea   :  { %2039 = vrot.lane.b32.xlu2 %v7691_v8, %s8208_s22  ;;  %1985 = vrot.lane.b32.xlu1 %v7664_v18, %s8208_s22  ;;  %v3585_v8 = vsel %vm3533_vm1, %v3520_v14, %v10768_v54  ;;  %v14020_v14 = vld [vmem:[#allocation64_spill] sm:$0xff] }
 0x3eb   :  { %2269 = vrot.lane.b32.xlu0 %v7742_v61, %s8207_s21  ;;  %v7934_v61 = vld [vmem:[%s13860_s0 + $0x6e1] ss:$2 sm:$0xff] }
 0x3ec   :  { %v10862_v16 = vpop.permute.xlu2 %3005  ;;  %v2742_v48 = vpop.permute.xlu1 %2741 }
 0x3ed   :  { %v2292_v19 = vpop.permute.xlu0 %2291  ;;  %v3749_v60 = vsel %vm3728_vm5, %v3684_v15, %v2742_v48  ;;  %v7807_v15 = vld [vmem:[%s13860_s0 + $0x6ca] ss:$2 sm:$0xff] }
 0x3ee   :  { %v3814_v36 = vsel %vm3793_vm6, %v3749_v60, %v10832_v29  ;;  %v7883_v29 = vld [vmem:[%s13860_s0 + $0x8d0] ss:$2 sm:$0xff]  ;;  %v3650_v17 = vsel %vm3598_vm3, %v3585_v8, %v2292_v19 }
 0x3f2   :  { %2241 = vrot.lane.b32.xlu2 %v7728_v37, %s8207_s21  ;;  %2525 = vrot.lane.b32.xlu1 %v7806_v59, %s8206_s20 }
 0x3f3   :  { %2489 = vrot.lane.b32.xlu0 %v7788_v10, %s8206_s20 }
 0x3f4   :  { %v10876_v0 = vpop.permute.xlu2 %3315  ;;  %v2548_v34 = vpop.permute.xlu1 %2547 }
 0x3f5   :  { %v2494_v50 = vpop.permute.xlu0 %2493  ;;  %v3715_v37 = vsel %vm3663_vm4, %v3650_v17, %v2548_v34  ;;  %v7917_v17 = vld [vmem:[%s13860_s0 + $0x3d1] ss:$2 sm:$0xff] }
 0x3f6   :  { %v3688_v18 = vsel %vm3663_vm4, %v3623_v42, %v2494_v50  ;;  %v3780_v19 = vsel %vm3728_vm5, %v3715_v37, %v10848_v44  ;;  %v7980_v44 = vld [vmem:[%s13860_s0 + $0x3c2] ss:$2 sm:$0xff] }
 0x3fa   :  { %2781 = vrot.lane.b32.xlu2 %v7870_v63, %s8211_s16  ;;  %2745 = vrot.lane.b32.xlu1 %v7852_v7, %s8211_s16 }
 0x3fb   :  { %2295 = vrot.lane.b32.xlu0 %v7755_v32, %s8207_s21 }
 0x3fc   :  { %v10902_v43 = vpop.permute.xlu2 %2231  ;;  %v2750_v26 = vpop.permute.xlu1 %2749 }
 0x3fd   :  { %v3034_v6 = vpop.permute.xlu0 %3033  ;;  %v3753_v48 = vsel %vm3728_vm5, %v3688_v18, %v2750_v26  ;;  %v7725_v26 = vld [vmem:[%s13860_s0 + $0x3a9] ss:$2 sm:$0xff]  ;;  %v7471_v18 = vld [vmem:[%s13860_s0 + $0x3d0] ss:$2 sm:$0xff] }
 0x3fe   :  { %v3832_v2 = vsel %vm3793_vm6, %v3767_v53, %v3034_v6  ;;  %v3818_v10 = vsel %vm3793_vm6, %v3753_v48, %v10862_v16  ;;  %v7998_v16 = vld [vmem:[%s13860_s0 + $0x6e2] ss:$2 sm:$0xff] }
 0x3ff   :  { %v7467_v53 = vld [vmem:[%s13860_s0 + $0x330] ss:$2 sm:$0xff] }
 0x400   :  { %v7820_v48 = vld [vmem:[%s13860_s0 + $0x8ea] ss:$2 sm:$0xff] }
 0x402   :  { %3001 = vrot.lane.b32.xlu2 %v7916_v51, %s8210_s15  ;;  %2551 = vrot.lane.b32.xlu1 %v7819_v38, %s8206_s20  ;;  %v7743_v51 = vld [vmem:[%s13860_s0 + $0x6c9] ss:$2 sm:$0xff] }
 0x403   :  { %2497 = vrot.lane.b32.xlu0 %v7792_v41, %s8206_s20  ;;  %v7729_v41 = vld [vmem:[%s13860_s0 + $0x449] ss:$2 sm:$0xff] }
 0x404   :  { %v10941_v5 = vpop.permute.xlu2 %2037  ;;  %v3290_v39 = vpop.permute.xlu1 %3289 }
 0x405   :  { %v3254_v57 = vpop.permute.xlu0 %3253  ;;  %v3897_v40 = vsel %vm3858_vm7, %v3832_v2, %v3290_v39  ;;  %v7485_v2 = vld [vmem:[%s13860_s0 + $0x650] ss:$2 sm:$0xff] }
 0x406   :  { %v3879_v46 = vsel %vm3858_vm7, %v3814_v36, %v3254_v57  ;;  %8060 = vmatmul.msk.f32.gmra.mxu2 %vm3932_vm8, %v3897_v40  ;;  %v14017_v39 = vld [vmem:[#allocation14_spill] sm:$0xff] }
 0x407   :  { %8042 = vmatmul.msk.f32.gmra.mxu0 %vm3932_vm8, %v3879_v46  ;;  %v3426_v57 = vsel %vm45_vm0, %v7467_v53, %v14017_v39  ;;  %v14018_v36 = vld [vmem:[#allocation26_spill] sm:$0xff] }
 0x408   :  { %v3444_v40 = vsel %vm45_vm0, %v7485_v2, %v14018_v36  ;;  %v3490_v12 = vsel %vm155_vm2, %v3426_v57, %v14019_v13  ;;  %v7921_v53 = vld [vmem:[%s13860_s0 + $0x471] ss:$2 sm:$0xff]  ;;  %v8012_v39 = vld [vmem:[%s13860_s0 + $0x912] ss:$2 sm:$0xff] }
 0x409   :  { %v3508_v42 = vsel %vm155_vm2, %v3444_v40, %v14020_v14  ;;  %v7985_v57 = vld [vmem:[%s13860_s0 + $0x472] ss:$2 sm:$0xff]  ;;  %v7948_v36 = vld [vmem:[%s13860_s0 + $0x911] ss:$2 sm:$0xff] }
 0x40a   :  { %2807 = vrot.lane.b32.xlu2 %v7883_v29, %s8211_s16  ;;  %2753 = vrot.lane.b32.xlu1 %v7856_v49, %s8211_s16  ;;  %v7744_v14 = vld [vmem:[%s13860_s0 + $0x709] ss:$2 sm:$0xff] }
 0x40b   :  { %3037 = vrot.lane.b32.xlu0 %v7934_v61, %s8210_s15 }
 0x40c   :  { %v10973_v59 = vpop.permute.xlu2 %2239  ;;  %v3262_v54 = vpop.permute.xlu1 %3261 }
 0x40d   :  { %v3060_v50 = vpop.permute.xlu0 %3059  ;;  %v3883_v63 = vsel %vm3858_vm7, %v3818_v10, %v3262_v54  ;;  %v7793_v10 = vld [vmem:[%s13860_s0 + $0x44a] ss:$2 sm:$0xff] }
 0x40e   :  { %v3845_v34 = vsel %vm3793_vm6, %v3780_v19, %v3060_v50  ;;  %8046 = vmatmul.msk.f32.vlgmr.msra.gmra.mxu1 %vm3932_vm8, %v3883_v63  ;;  %v14021_v19 = vld [vmem:[#allocation15_spill] sm:$0xff] }
 0x40f   :  { %v3910_v7 = vsel %vm3858_vm7, %v3845_v34, %v10876_v0  ;;  %v3430_v63 = vsel %vm45_vm0, %v7471_v18, %v14021_v19  ;;  %v7730_v18 = vld [vmem:[%s13860_s0 + $0x489] ss:$2 sm:$0xff]  ;;  %v7757_v19 = vld [vmem:[%s13860_s0 + $0x8f9] ss:$2 sm:$0xff] }
 0x410   :  { %8073 = vmatmul.msk.f32.gmra.mxu3 %vm3932_vm8, %v3910_v7  ;;  %v7498_v7 = vld [vmem:[%s13860_s0 + $0x870] ss:$2 sm:$0xff] }
 0x412   :  { %3009 = vrot.lane.b32.xlu2 %v7920_v23, %s8210_s15  ;;  %3293 = vrot.lane.b32.xlu1 %v7998_v16, %s8209_s14 }
 0x413   :  { %3257 = vrot.lane.b32.xlu0 %v7980_v44, %s8209_s14 }
 0x414   :  { %v10997_v0 = vpop.permute.xlu2 %2779  ;;  %v2012_v32 = vpop.permute.xlu1 %2011 }
 0x415   :  { %v1976_v35 = vpop.permute.xlu0 %1975  ;;  %v3573_v8 = vsel %vm3533_vm1, %v3508_v42, %v2012_v32  ;;  %v7680_v42 = vld [vmem:[%s13860_s0 + $0x708] ss:$2 sm:$0xff] }
 0x416   :  { %v3555_v29 = vsel %vm3533_vm1, %v3490_v12, %v1976_v35 }
 0x417   :  { %v3620_v54 = vsel %vm3598_vm3, %v3555_v29, %v10902_v43  ;;  %v14022_v43 = vld [vmem:[#allocation48_spill] sm:$0xff] }
 0x418   :  { %v3494_v23 = vsel %vm155_vm2, %v3430_v63, %v14022_v43  ;;  %v7858_v43 = vld [vmem:[%s13860_s0 + $0x4b0] ss:$2 sm:$0xff] }
 0x41a   :  { %3319 = vrot.lane.b32.xlu2 %v8011_v27, %s8209_s14  ;;  %3265 = vrot.lane.b32.xlu1 %v7984_v11, %s8209_s14 }
 0x41b   :  { %3063 = vrot.lane.b32.xlu0 %v7947_v24, %s8210_s15 }
 0x41c   :  { %v11011_v25 = vpop.permute.xlu2 %2999  ;;  %v11013_v9 = vpop.permute.xlu1 %1983 }
 0x41d   :  { %v2268_v62 = vpop.permute.xlu0 %2267  ;;  %v3559_v44 = vsel %vm3533_vm1, %v3494_v23, %v11013_v9  ;;  %v7936_v23 = vld [vmem:[%s13860_s0 + $0x731] ss:$2 sm:$0xff] }
 0x41e   :  { %v3638_v61 = vsel %vm3598_vm3, %v3573_v8, %v2268_v62 }
 0x422   :  { %2235 = vrot.lane.b32.xlu2 %v7725_v26, %s8207_s21  ;;  %2015 = vrot.lane.b32.xlu1 %v7679_v28, %s8208_s22  ;;  %v14023_v26 = vld [vmem:[#allocation37_spill] sm:$0xff] }
 0x423   :  { %1979 = vrot.lane.b32.xlu0 %v7661_v31, %s8208_s22  ;;  %v3457_v28 = vsel %vm45_vm0, %v7498_v7, %v14023_v26  ;;  %v14024_v31 = vld [vmem:[#allocation66_spill] sm:$0xff] }
 0x424   :  { %v11027_v45 = vpop.permute.xlu2 %2805  ;;  %v2524_v6 = vpop.permute.xlu1 %2523  ;;  %v3521_v9 = vsel %vm155_vm2, %v3457_v28, %v14024_v31 }
 0x425   :  { %v2488_v52 = vpop.permute.xlu0 %2487  ;;  %v3703_v37 = vsel %vm3663_vm4, %v3638_v61, %v2524_v6  ;;  %v3624_v6 = vsel %vm3598_vm3, %v3559_v44, %v10973_v59  ;;  %v7808_v61 = vld [vmem:[%s13860_s0 + $0x70a] ss:$2 sm:$0xff]  ;;  %v7821_v44 = vld [vmem:[%s13860_s0 + $0x8fa] ss:$2 sm:$0xff] }
 0x426   :  { %v3685_v50 = vsel %vm3663_vm4, %v3620_v54, %v2488_v52  ;;  %v3768_v16 = vsel %vm3728_vm5, %v3703_v37, %v10997_v0  ;;  %v7857_v52 = vld [vmem:[%s13860_s0 + $0x470] ss:$2 sm:$0xff] }
 0x42a   :  { %2041 = vrot.lane.b32.xlu2 %v7692_v55, %s8208_s22  ;;  %1987 = vrot.lane.b32.xlu1 %v7665_v33, %s8208_s22  ;;  %v3586_v55 = vsel %vm3533_vm1, %v3521_v9, %v10941_v5 }
 0x42b   :  { %2271 = vrot.lane.b32.xlu0 %v7743_v51, %s8207_s21  ;;  %v7935_v51 = vld [vmem:[%s13860_s0 + $0x6f1] ss:$2 sm:$0xff] }
 0x42c   :  { %v11041_v38 = vpop.permute.xlu2 %3007  ;;  %v2744_v21 = vpop.permute.xlu1 %2743 }
 0x42d   :  { %v2294_v22 = vpop.permute.xlu0 %2293  ;;  %v3750_v34 = vsel %vm3728_vm5, %v3685_v50, %v2744_v21  ;;  %v7872_v50 = vld [vmem:[%s13860_s0 + $0x730] ss:$2 sm:$0xff] }
 0x42e   :  { %v3815_v24 = vsel %vm3793_vm6, %v3750_v34, %v11011_v25  ;;  %v7884_v25 = vld [vmem:[%s13860_s0 + $0x910] ss:$2 sm:$0xff]  ;;  %v3651_v59 = vsel %vm3598_vm3, %v3586_v55, %v2294_v22 }
 0x432   :  { %2243 = vrot.lane.b32.xlu2 %v7729_v41, %s8207_s21  ;;  %2527 = vrot.lane.b32.xlu1 %v7807_v15, %s8206_s20 }
 0x433   :  { %2491 = vrot.lane.b32.xlu0 %v7789_v20, %s8206_s20 }
 0x434   :  { %v11055_v1 = vpop.permute.xlu2 %3317  ;;  %v2550_v60 = vpop.permute.xlu1 %2549 }
 0x435   :  { %v2496_v30 = vpop.permute.xlu0 %2495  ;;  %v3716_v41 = vsel %vm3663_vm4, %v3651_v59, %v2550_v60  ;;  %v7472_v59 = vld [vmem:[%s13860_s0 + $0x410] ss:$2 sm:$0xff] }
 0x436   :  { %v3689_v33 = vsel %vm3663_vm4, %v3624_v6, %v2496_v30  ;;  %v3781_v22 = vsel %vm3728_vm5, %v3716_v41, %v11027_v45  ;;  %v7981_v45 = vld [vmem:[%s13860_s0 + $0x3d2] ss:$2 sm:$0xff] }
 0x43a   :  { %2783 = vrot.lane.b32.xlu2 %v7871_v3, %s8211_s16  ;;  %2747 = vrot.lane.b32.xlu1 %v7853_v47, %s8211_s16 }
 0x43b   :  { %2297 = vrot.lane.b32.xlu0 %v7756_v4, %s8207_s21 }
 0x43c   :  { %v11081_v46 = vpop.permute.xlu2 %2233  ;;  %v2752_v58 = vpop.permute.xlu1 %2751 }
 0x43d   :  { %v3036_v49 = vpop.permute.xlu0 %3035  ;;  %v3754_v21 = vsel %vm3728_vm5, %v3689_v33, %v2752_v58  ;;  %v7666_v58 = vld [vmem:[%s13860_s0 + $0x488] ss:$2 sm:$0xff]  ;;  %v7922_v33 = vld [vmem:[%s13860_s0 + $0x4b1] ss:$2 sm:$0xff] }
 0x43e   :  { %v3833_v32 = vsel %vm3793_vm6, %v3768_v16, %v3036_v49  ;;  %v3819_v20 = vsel %vm3793_vm6, %v3754_v21, %v11041_v38  ;;  %v7999_v38 = vld [vmem:[%s13860_s0 + $0x6f2] ss:$2 sm:$0xff] }
 0x43f   :  { %v7468_v16 = vld [vmem:[%s13860_s0 + $0x370] ss:$2 sm:$0xff] }
 0x442   :  { %3003 = vrot.lane.b32.xlu2 %v7917_v17, %s8210_s15  ;;  %2553 = vrot.lane.b32.xlu1 %v7820_v48, %s8206_s20  ;;  %v7693_v17 = vld [vmem:[%s13860_s0 + $0x8f8] ss:$2 sm:$0xff] }
 0x443   :  { %2499 = vrot.lane.b32.xlu0 %v7793_v10, %s8206_s20  ;;  %v7794_v10 = vld [vmem:[%s13860_s0 + $0x48a] ss:$2 sm:$0xff] }
 0x444   :  { %v11120_v35 = vpop.permute.xlu2 %2039  ;;  %v3292_v27 = vpop.permute.xlu1 %3291 }
 0x445   :  { %v3256_v11 = vpop.permute.xlu0 %3255  ;;  %v3898_v62 = vsel %vm3858_vm7, %v3833_v32, %v3292_v27  ;;  %v7486_v32 = vld [vmem:[%s13860_s0 + $0x690] ss:$2 sm:$0xff] }
 0x446   :  { %v3880_v0 = vsel %vm3858_vm7, %v3815_v24, %v3256_v11  ;;  %8061 = vmatmul.msk.f32.gmra.mxu2 %vm3932_vm8, %v3898_v62  ;;  %v14025_v27 = vld [vmem:[#allocation13_spill] sm:$0xff]  ;;  %v14026_v24 = vld [vmem:[#allocation47_spill] sm:$0xff] }
 0x447   :  { %8043 = vmatmul.msk.f32.gmra.mxu0 %vm3932_vm8, %v3880_v0  ;;  %v3427_v11 = vsel %vm45_vm0, %v7468_v16, %v14025_v27  ;;  %v14027_v0 = vld [vmem:[#allocation25_spill] sm:$0xff]  ;;  %v7873_v27 = vld [vmem:[%s13860_s0 + $0x740] ss:$2 sm:$0xff] }
 0x448   :  { %v3491_v62 = vsel %vm155_vm2, %v3427_v11, %v14026_v24  ;;  %v3445_v31 = vsel %vm45_vm0, %v7486_v32, %v14027_v0  ;;  %v7694_v16 = vld [vmem:[%s13860_s0 + $0x938] ss:$2 sm:$0xff]  ;;  %v7758_v11 = vld [vmem:[%s13860_s0 + $0x939] ss:$2 sm:$0xff] }
 0x449   :  { %v7809_v24 = vld [vmem:[%s13860_s0 + $0x71a] ss:$2 sm:$0xff] }
 0x44a   :  { %2809 = vrot.lane.b32.xlu2 %v7884_v25, %s8211_s16  ;;  %2755 = vrot.lane.b32.xlu1 %v7857_v52, %s8211_s16  ;;  %v14028_v25 = vld [vmem:[#allocation58_spill] sm:$0xff] }
 0x44b   :  { %3039 = vrot.lane.b32.xlu0 %v7935_v51, %s8210_s15  ;;  %v3509_v52 = vsel %vm155_vm2, %v3445_v31, %v14028_v25  ;;  %v8000_v51 = vld [vmem:[%s13860_s0 + $0x732] ss:$2 sm:$0xff] }
 0x44c   :  { %v11152_v15 = vpop.permute.xlu2 %2241  ;;  %v3264_v5 = vpop.permute.xlu1 %3263  ;;  %v7886_v31 = vld [vmem:[%s13860_s0 + $0x960] ss:$2 sm:$0xff] }
 0x44d   :  { %v3062_v30 = vpop.permute.xlu0 %3061  ;;  %v3884_v3 = vsel %vm3858_vm7, %v3819_v20, %v3264_v5  ;;  %v7885_v5 = vld [vmem:[%s13860_s0 + $0x920] ss:$2 sm:$0xff] }
 0x44e   :  { %v3846_v60 = vsel %vm3793_vm6, %v3781_v22, %v3062_v30  ;;  %8047 = vmatmul.msk.f32.gmra.mxu1 %vm3932_vm8, %v3884_v3  ;;  %v14029_v3 = vld [vmem:[#allocation10_spill] sm:$0xff] }
 0x44f   :  { %v3911_v47 = vsel %vm3858_vm7, %v3846_v60, %v11055_v1  ;;  %v3431_v60 = vsel %vm45_vm0, %v7472_v59, %v14029_v3  ;;  %v8001_v59 = vld [vmem:[%s13860_s0 + $0x742] ss:$2 sm:$0xff] }
 0x450   :  { %8074 = vmatmul.msk.f32.gmra.mxu3 %vm3932_vm8, %v3911_v47  ;;  %v14030_v47 = vld [vmem:[#allocation57_spill] sm:$0xff] }
 0x452   :  { %3011 = vrot.lane.b32.xlu2 %v7921_v53, %s8210_s15  ;;  %3295 = vrot.lane.b32.xlu1 %v7999_v38, %s8209_s14  ;;  %v3495_v53 = vsel %vm155_vm2, %v3431_v60, %v14030_v47  ;;  %v7874_v47 = vld [vmem:[%s13860_s0 + $0x780] ss:$2 sm:$0xff] }
 0x453   :  { %3259 = vrot.lane.b32.xlu0 %v7981_v45, %s8209_s14 }
 0x454   :  { %v11176_v1 = vpop.permute.xlu2 %2781  ;;  %v2014_v4 = vpop.permute.xlu1 %2013 }
 0x455   :  { %v1978_v2 = vpop.permute.xlu0 %1977  ;;  %v3574_v55 = vsel %vm3533_vm1, %v3509_v52, %v2014_v4 }
 0x456   :  { %v3556_v9 = vsel %vm3533_vm1, %v3491_v62, %v1978_v2 }
 0x457   :  { %v3621_v41 = vsel %vm3598_vm3, %v3556_v9, %v11081_v46  ;;  %v7499_v46 = vld [vmem:[%s13860_s0 + $0x880] ss:$2 sm:$0xff]  ;;  %v7937_v9 = vld [vmem:[%s13860_s0 + $0x741] ss:$2 sm:$0xff] }
 0x45a   :  { %3321 = vrot.lane.b32.xlu2 %v8012_v39, %s8209_s14  ;;  %3267 = vrot.lane.b32.xlu1 %v7985_v57, %s8209_s14 }
 0x45b   :  { %3065 = vrot.lane.b32.xlu0 %v7948_v36, %s8210_s15 }
 0x45c   :  { %v11190_v40 = vpop.permute.xlu2 %3001  ;;  %v11192_v13 = vpop.permute.xlu1 %1985 }
 0x45d   :  { %v2270_v12 = vpop.permute.xlu0 %2269  ;;  %v3560_v4 = vsel %vm3533_vm1, %v3495_v53, %v11192_v13  ;;  %v8013_v13 = vld [vmem:[%s13860_s0 + $0x922] ss:$2 sm:$0xff]  ;;  %v7759_v53 = vld [vmem:[%s13860_s0 + $0x949] ss:$2 sm:$0xff] }
 0x45e   :  { %v3639_v21 = vsel %vm3598_vm3, %v3574_v55, %v2270_v12  ;;  %v14031_v12 = vld [vmem:[#allocation27_spill] sm:$0xff] }
 0x462   :  { %1989 = vrot.lane.b32.xlu2 %v7666_v58, %s8208_s22  ;;  %2273 = vrot.lane.b32.xlu1 %v7744_v14, %s8207_s21  ;;  %v3458_v58 = vsel %vm45_vm0, %v7499_v46, %v14031_v12 }
 0x463   :  { %2017 = vrot.lane.b32.xlu0 %v7680_v42, %s8208_s22 }
 0x464   :  { %v11206_v29 = vpop.permute.xlu2 %2807  ;;  %v2526_v49 = vpop.permute.xlu1 %2525 }
 0x465   :  { %v2490_v8 = vpop.permute.xlu0 %2489  ;;  %v3704_v20 = vsel %vm3663_vm4, %v3639_v21, %v2526_v49 }
 0x466   :  { %v3686_v30 = vsel %vm3663_vm4, %v3621_v41, %v2490_v8  ;;  %v3769_v38 = vsel %vm3728_vm5, %v3704_v20, %v11176_v1  ;;  %v14032_v1 = vld [vmem:[#allocation78_spill] sm:$0xff]  ;;  %v7695_v20 = vld [vmem:[%s13860_s0 + $0x948] ss:$2 sm:$0xff] }
 0x467   :  { %v3522_v49 = vsel %vm155_vm2, %v3458_v58, %v14032_v1 }
 0x468   :  { %v3587_v8 = vsel %vm3533_vm1, %v3522_v49, %v11120_v35 }
 0x46a   :  { %2245 = vrot.lane.b32.xlu2 %v7730_v18, %s8207_s21  ;;  %2529 = vrot.lane.b32.xlu1 %v7808_v61, %s8206_s20  ;;  %v3625_v18 = vsel %vm3598_vm3, %v3560_v4, %v11152_v15  ;;  %v7949_v61 = vld [vmem:[%s13860_s0 + $0x921] ss:$2 sm:$0xff]  ;;  %v7810_v4 = vld [vmem:[%s13860_s0 + $0x75a] ss:$2 sm:$0xff] }
 0x46b   :  { %2043 = vrot.lane.b32.xlu0 %v7693_v17, %s8208_s22 }
 0x46c   :  { %v11220_v48 = vpop.permute.xlu2 %3009  ;;  %v2746_v37 = vpop.permute.xlu1 %2745 }
 0x46d   :  { %v2296_v54 = vpop.permute.xlu0 %2295  ;;  %v3751_v22 = vsel %vm3728_vm5, %v3686_v30, %v2746_v37  ;;  %v7746_v30 = vld [vmem:[%s13860_s0 + $0x759] ss:$2 sm:$0xff] }
 0x46e   :  { %v3816_v36 = vsel %vm3793_vm6, %v3751_v22, %v11190_v40  ;;  %v7986_v40 = vld [vmem:[%s13860_s0 + $0x4b2] ss:$2 sm:$0xff]  ;;  %v3652_v17 = vsel %vm3598_vm3, %v3587_v8, %v2296_v54 }
 0x46f   :  { %v7682_v22 = vld [vmem:[%s13860_s0 + $0x758] ss:$2 sm:$0xff] }
 0x472   :  { %2501 = vrot.lane.b32.xlu2 %v7794_v10, %s8206_s20  ;;  %2785 = vrot.lane.b32.xlu1 %v7872_v50, %s8211_s16 }
 0x473   :  { %2299 = vrot.lane.b32.xlu0 %v7757_v19, %s8207_s21 }
 0x474   :  { %v11234_v63 = vpop.permute.xlu2 %3319  ;;  %v2552_v34 = vpop.permute.xlu1 %2551 }
 0x475   :  { %v2498_v7 = vpop.permute.xlu0 %2497  ;;  %v3717_v10 = vsel %vm3663_vm4, %v3652_v17, %v2552_v34  ;;  %v7938_v17 = vld [vmem:[%s13860_s0 + $0x781] ss:$2 sm:$0xff] }
 0x476   :  { %v3690_v37 = vsel %vm3663_vm4, %v3625_v18, %v2498_v7 }
 0x47a   :  { %2757 = vrot.lane.b32.xlu2 %v7858_v43, %s8211_s16  ;;  %3041 = vrot.lane.b32.xlu1 %v7936_v23, %s8210_s15  ;;  %v3782_v43 = vsel %vm3728_vm5, %v3717_v10, %v11206_v29  ;;  %v7745_v29 = vld [vmem:[%s13860_s0 + $0x719] ss:$2 sm:$0xff] }
 0x47b   :  { %2555 = vrot.lane.b32.xlu0 %v7821_v44, %s8206_s20 }
 0x47c   :  { %v11258_v26 = vpop.permute.xlu2 %2235  ;;  %v2754_v28 = vpop.permute.xlu1 %2753 }
 0x47d   :  { %v3038_v6 = vpop.permute.xlu0 %3037  ;;  %v3755_v50 = vsel %vm3728_vm5, %v3690_v37, %v2754_v28  ;;  %v7473_v37 = vld [vmem:[%s13860_s0 + $0x420] ss:$2 sm:$0xff] }
 0x47e   :  { %v3834_v2 = vsel %vm3793_vm6, %v3769_v38, %v3038_v6  ;;  %v3820_v54 = vsel %vm3793_vm6, %v3755_v50, %v11220_v48  ;;  %v7681_v48 = vld [vmem:[%s13860_s0 + $0x718] ss:$2 sm:$0xff] }
 0x47f   :  { %v7822_v6 = vld [vmem:[%s13860_s0 + $0x93a] ss:$2 sm:$0xff] }
 0x480   :  { %v7469_v38 = vld [vmem:[%s13860_s0 + $0x380] ss:$2 sm:$0xff] }
 0x482   :  { %3013 = vrot.lane.b32.xlu2 %v7922_v33, %s8210_s15  ;;  %3297 = vrot.lane.b32.xlu1 %v8000_v51, %s8209_s14  ;;  %v8014_v33 = vld [vmem:[%s13860_s0 + $0x962] ss:$2 sm:$0xff]  ;;  %v7950_v51 = vld [vmem:[%s13860_s0 + $0x961] ss:$2 sm:$0xff] }
 0x483   :  { %2811 = vrot.lane.b32.xlu0 %v7885_v5, %s8211_s16 }
 0x484   :  { %v11296_v45 = vpop.permute.xlu2 %2041  ;;  %v3294_v39 = vpop.permute.xlu1 %3293 }
 0x485   :  { %v3258_v57 = vpop.permute.xlu0 %3257  ;;  %v3899_v42 = vsel %vm3858_vm7, %v3834_v2, %v3294_v39  ;;  %v7487_v2 = vld [vmem:[%s13860_s0 + $0x6a0] ss:$2 sm:$0xff]  ;;  %v14033_v39 = vld [vmem:[#allocation9_spill] sm:$0xff] }
 0x486   :  { %v3881_v14 = vsel %vm3858_vm7, %v3816_v36, %v3258_v57  ;;  %8062 = vmatmul.msk.f32.gmra.mxu2 %vm3932_vm8, %v3899_v42  ;;  %v3428_v57 = vsel %vm45_vm0, %v7469_v38, %v14033_v39  ;;  %v14034_v36 = vld [vmem:[#allocation54_spill] sm:$0xff]  ;;  %v7696_v38 = vld [vmem:[%s13860_s0 + $0x988] ss:$2 sm:$0xff] }
 0x487   :  { %8044 = vmatmul.msk.f32.gmra.mxu0 %vm3932_vm8, %v3881_v14  ;;  %v3492_v12 = vsel %vm155_vm2, %v3428_v57, %v14034_v36  ;;  %v14035_v14 = vld [vmem:[#allocation20_spill] sm:$0xff] }
 0x488   :  { %v3446_v42 = vsel %vm45_vm0, %v7487_v2, %v14035_v14  ;;  %v7875_v39 = vld [vmem:[%s13860_s0 + $0x790] ss:$2 sm:$0xff]  ;;  %v7760_v57 = vld [vmem:[%s13860_s0 + $0x989] ss:$2 sm:$0xff] }
 0x489   :  { %v7811_v36 = vld [vmem:[%s13860_s0 + $0x76a] ss:$2 sm:$0xff] }
 0x48a   :  { %3323 = vrot.lane.b32.xlu2 %v8013_v13, %s8209_s14  ;;  %3269 = vrot.lane.b32.xlu1 %v7986_v40, %s8209_s14  ;;  %v14036_v40 = vld [vmem:[#allocation68_spill] sm:$0xff] }
 0x48b   :  { %3067 = vrot.lane.b32.xlu0 %v7949_v61, %s8210_s15  ;;  %v3510_v8 = vsel %vm155_vm2, %v3446_v42, %v14036_v40  ;;  %v7887_v61 = vld [vmem:[%s13860_s0 + $0x970] ss:$2 sm:$0xff] }
 0x48c   :  { %v11331_v35 = vpop.permute.xlu2 %2243  ;;  %v3266_v15 = vpop.permute.xlu1 %3265 }
 0x48d   :  { %v3064_v19 = vpop.permute.xlu0 %3063  ;;  %v3885_v7 = vsel %vm3858_vm7, %v3820_v54, %v3266_v15  ;;  %v7823_v15 = vld [vmem:[%s13860_s0 + $0x94a] ss:$2 sm:$0xff] }
 0x48e   :  { %v3847_v34 = vsel %vm3793_vm6, %v3782_v43, %v3064_v19  ;;  %8048 = vmatmul.msk.f32.gmra.mxu1 %vm3932_vm8, %v3885_v7 }
 0x48f   :  { %v3912_v23 = vsel %vm3858_vm7, %v3847_v34, %v11234_v63  ;;  %v14037_v34 = vld [vmem:[#allocation19_spill] sm:$0xff] }
 0x490   :  { %8075 = vmatmul.msk.f32.gmra.mxu3 %vm3932_vm8, %v3912_v23  ;;  %v3432_v7 = vsel %vm45_vm0, %v7473_v37, %v14037_v34  ;;  %v14038_v23 = vld [vmem:[#allocation56_spill] sm:$0xff]  ;;  %v8003_v37 = vld [vmem:[%s13860_s0 + $0x792] ss:$2 sm:$0xff]  ;;  %v14042_v34 = vld [vmem:[#allocation67_spill] sm:$0xff] }
 0x492   :  { %2045 = vrot.lane.b32.xlu2 %v7694_v16, %s8208_s22  ;;  %2275 = vrot.lane.b32.xlu1 %v7745_v29, %s8207_s21  ;;  %v3496_v16 = vsel %vm155_vm2, %v3432_v7, %v14038_v23  ;;  %v7697_v23 = vld [vmem:[%s13860_s0 + $0x998] ss:$2 sm:$0xff] }
 0x493   :  { %2019 = vrot.lane.b32.xlu0 %v7681_v48, %s8208_s22 }
 0x494   :  { %v11355_v63 = vpop.permute.xlu2 %2783  ;;  %v2016_v44 = vpop.permute.xlu1 %2015 }
 0x495   :  { %v1980_v32 = vpop.permute.xlu0 %1979  ;;  %v3575_v18 = vsel %vm3533_vm1, %v3510_v8, %v2016_v44 }
 0x496   :  { %v3557_v1 = vsel %vm3533_vm1, %v3492_v12, %v1980_v32 }
 0x497   :  { %v3622_v50 = vsel %vm3598_vm3, %v3557_v1, %v11258_v26  ;;  %v7500_v26 = vld [vmem:[%s13860_s0 + $0x8c0] ss:$2 sm:$0xff]  ;;  %v7888_v1 = vld [vmem:[%s13860_s0 + $0x9b0] ss:$2 sm:$0xff] }
 0x49a   :  { %2787 = vrot.lane.b32.xlu2 %v7873_v27, %s8211_s16  ;;  %2301 = vrot.lane.b32.xlu1 %v7758_v11, %s8207_s21 }
 0x49b   :  { %2531 = vrot.lane.b32.xlu0 %v7809_v24, %s8206_s20 }
 0x49c   :  { %v11369_v62 = vpop.permute.xlu2 %3003  ;;  %v11371_v28 = vpop.permute.xlu1 %1987 }
 0x49d   :  { %v2272_v0 = vpop.permute.xlu0 %2271  ;;  %v3561_v44 = vsel %vm3533_vm1, %v3496_v16, %v11371_v28  ;;  %v8015_v28 = vld [vmem:[%s13860_s0 + $0x972] ss:$2 sm:$0xff]  ;;  %v7748_v16 = vld [vmem:[%s13860_s0 + $0x7a9] ss:$2 sm:$0xff] }
 0x49e   :  { %v3640_v10 = vsel %vm3598_vm3, %v3575_v18, %v2272_v0  ;;  %v14039_v0 = vld [vmem:[#allocation40_spill] sm:$0xff] }
 0x4a2   :  { %2813 = vrot.lane.b32.xlu2 %v7886_v31, %s8211_s16  ;;  %3043 = vrot.lane.b32.xlu1 %v7937_v9, %s8210_s15  ;;  %v3459_v31 = vsel %vm45_vm0, %v7500_v26, %v14039_v0  ;;  %v7501_v0 = vld [vmem:[%s13860_s0 + $0x8d0] ss:$2 sm:$0xff] }
 0x4a3   :  { %2557 = vrot.lane.b32.xlu0 %v7822_v6, %s8206_s20 }
 0x4a4   :  { %v11385_v25 = vpop.permute.xlu2 %2809  ;;  %v2528_v52 = vpop.permute.xlu1 %2527 }
 0x4a5   :  { %v2492_v55 = vpop.permute.xlu0 %2491  ;;  %v3705_v19 = vsel %vm3663_vm4, %v3640_v10, %v2528_v52  ;;  %v7488_v10 = vld [vmem:[%s13860_s0 + $0x6e0] ss:$2 sm:$0xff] }
 0x4a6   :  { %v3687_v43 = vsel %vm3663_vm4, %v3622_v50, %v2492_v55  ;;  %v3770_v29 = vsel %vm3728_vm5, %v3705_v19, %v11355_v63  ;;  %v14040_v63 = vld [vmem:[#allocation77_spill] sm:$0xff] }
 0x4a7   :  { %v3523_v52 = vsel %vm155_vm2, %v3459_v31, %v14040_v63 }
 0x4a8   :  { %v3588_v55 = vsel %vm3533_vm1, %v3523_v52, %v11296_v45  ;;  %v14043_v52 = vld [vmem:[#allocation18_spill] sm:$0xff] }
 0x4aa   :  { %3325 = vrot.lane.b32.xlu2 %v8014_v33, %s8209_s14  ;;  %3069 = vrot.lane.b32.xlu1 %v7950_v51, %s8210_s15  ;;  %v3626_v33 = vsel %vm3598_vm3, %v3561_v44, %v11331_v35  ;;  %v8002_v51 = vld [vmem:[%s13860_s0 + $0x782] ss:$2 sm:$0xff] }
 0x4ab   :  { %3299 = vrot.lane.b32.xlu0 %v8001_v59, %s8209_s14 }
 0x4ac   :  { %v11399_v21 = vpop.permute.xlu2 %3011  ;;  %v2748_v41 = vpop.permute.xlu1 %2747 }
 0x4ad   :  { %v2298_v5 = vpop.permute.xlu0 %2297  ;;  %v3752_v54 = vsel %vm3728_vm5, %v3687_v43, %v2748_v41 }
 0x4ae   :  { %v3817_v24 = vsel %vm3793_vm6, %v3752_v54, %v11369_v62  ;;  %v7951_v62 = vld [vmem:[%s13860_s0 + $0x971] ss:$2 sm:$0xff]  ;;  %v3653_v59 = vsel %vm3598_vm3, %v3588_v55, %v2298_v5  ;;  %v7876_v55 = vld [vmem:[%s13860_s0 + $0x7d0] ss:$2 sm:$0xff] }
 0x4b2   :  { %2047 = vrot.lane.b32.xlu2 %v7695_v20, %s8208_s22  ;;  %2277 = vrot.lane.b32.xlu1 %v7746_v30, %s8207_s21 }
 0x4b3   :  { %2021 = vrot.lane.b32.xlu0 %v7682_v22, %s8208_s22 }
 0x4b4   :  { %v11413_v3 = vpop.permute.xlu2 %3321  ;;  %v2554_v60 = vpop.permute.xlu1 %2553 }
 0x4b5   :  { %v2500_v46 = vpop.permute.xlu0 %2499  ;;  %v3718_v20 = vsel %vm3663_vm4, %v3653_v59, %v2554_v60  ;;  %v14045_v59 = vld [vmem:[#allocation49_spill] sm:$0xff] }
 0x4b6   :  { %v3691_v41 = vsel %vm3663_vm4, %v3626_v33, %v2500_v46  ;;  %v14044_v33 = vld [vmem:[#allocation39_spill] sm:$0xff] }
 0x4ba   :  { %2789 = vrot.lane.b32.xlu2 %v7874_v47, %s8211_s16  ;;  %2303 = vrot.lane.b32.xlu1 %v7759_v53, %s8207_s21  ;;  %v3783_v47 = vsel %vm3728_vm5, %v3718_v20, %v11385_v25  ;;  %v7747_v25 = vld [vmem:[%s13860_s0 + $0x769] ss:$2 sm:$0xff]  ;;  %v7812_v20 = vld [vmem:[%s13860_s0 + $0x7aa] ss:$2 sm:$0xff] }
 0x4bb   :  { %2533 = vrot.lane.b32.xlu0 %v7810_v4, %s8206_s20 }
 0x4bc   :  { %v11437_v58 = vpop.permute.xlu2 %1989  ;;  %v2756_v49 = vpop.permute.xlu1 %2755 }
 0x4bd   :  { %v3040_v13 = vpop.permute.xlu0 %3039  ;;  %v3756_v30 = vsel %vm3728_vm5, %v3691_v41, %v2756_v49  ;;  %v7939_v49 = vld [vmem:[%s13860_s0 + $0x791] ss:$2 sm:$0xff] }
 0x4be   :  { %v3835_v32 = vsel %vm3793_vm6, %v3770_v29, %v3040_v13  ;;  %v3821_v5 = vsel %vm3793_vm6, %v3756_v30, %v11399_v21  ;;  %v7683_v21 = vld [vmem:[%s13860_s0 + $0x768] ss:$2 sm:$0xff] }
 0x4bf   :  { %v7824_v13 = vld [vmem:[%s13860_s0 + $0x98a] ss:$2 sm:$0xff] }
 0x4c0   :  { %v7684_v29 = vld [vmem:[%s13860_s0 + $0x7a8] ss:$2 sm:$0xff] }
 0x4c1   :  { %v14046_v30 = vld [vmem:[#allocation69_spill] sm:$0xff] }
 0x4c2   :  { %2815 = vrot.lane.b32.xlu2 %v7887_v61, %s8211_s16  ;;  %3045 = vrot.lane.b32.xlu1 %v7938_v17, %s8210_s15  ;;  %v8016_v61 = vld [vmem:[%s13860_s0 + $0x9b2] ss:$2 sm:$0xff]  ;;  %v7952_v17 = vld [vmem:[%s13860_s0 + $0x9b1] ss:$2 sm:$0xff] }
 0x4c3   :  { %2559 = vrot.lane.b32.xlu0 %v7823_v15, %s8206_s20  ;;  %v14041_v15 = vld [vmem:[#allocation29_spill] sm:$0xff] }
 0x4c4   :  { %v11475_v48 = vpop.permute.xlu2 %2245  ;;  %v3296_v27 = vpop.permute.xlu1 %3295  ;;  %v3447_v19 = vsel %vm45_vm0, %v7488_v10, %v14041_v15  ;;  %v7762_v10 = vld [vmem:[%s13860_s0 + $0x9d9] ss:$2 sm:$0xff]  ;;  %v7826_v15 = vld [vmem:[%s13860_s0 + $0x9da] ss:$2 sm:$0xff] }
 0x4c5   :  { %v3260_v11 = vpop.permute.xlu0 %3259  ;;  %v3900_v6 = vsel %vm3858_vm7, %v3835_v32, %v3296_v27  ;;  %v3511_v7 = vsel %vm155_vm2, %v3447_v19, %v14042_v34  ;;  %v7474_v27 = vld [vmem:[%s13860_s0 + $0x460] ss:$2 sm:$0xff]  ;;  %v7489_v19 = vld [vmem:[%s13860_s0 + $0x6f0] ss:$2 sm:$0xff] }
 0x4c6   :  { %v3882_v9 = vsel %vm3858_vm7, %v3817_v24, %v3260_v11  ;;  %8063 = vmatmul.msk.f32.gmra.mxu2 %vm3932_vm8, %v3900_v6 }
 0x4c7   :  { %8045 = vmatmul.msk.f32.gmra.mxu0 %vm3932_vm8, %v3882_v9 }
 0x4ca   :  { %3327 = vrot.lane.b32.xlu2 %v8015_v28, %s8209_s14  ;;  %3071 = vrot.lane.b32.xlu1 %v7951_v62, %s8210_s15  ;;  %v3433_v28 = vsel %vm45_vm0, %v7474_v27, %v14043_v52  ;;  %v7761_v62 = vld [vmem:[%s13860_s0 + $0x999] ss:$2 sm:$0xff] }
 0x4cb   :  { %3301 = vrot.lane.b32.xlu0 %v8002_v51, %s8209_s14  ;;  %v3460_v51 = vsel %vm45_vm0, %v7501_v0, %v14044_v33  ;;  %v3497_v41 = vsel %vm155_vm2, %v3433_v28, %v14045_v59  ;;  %v14049_v27 = vld [vmem:[#allocation30_spill] sm:$0xff]  ;;  %v14050_v0 = vld [vmem:[#allocation80_spill] sm:$0xff] }
 0x4cc   :  { %v11510_v45 = vpop.permute.xlu2 %2501  ;;  %v3268_v35 = vpop.permute.xlu1 %3267 }
 0x4cd   :  { %v3066_v22 = vpop.permute.xlu0 %3065  ;;  %v3886_v46 = vsel %vm3858_vm7, %v3821_v5, %v3268_v35  ;;  %v3524_v35 = vsel %vm155_vm2, %v3460_v51, %v14046_v30 }
 0x4ce   :  { %v3848_v60 = vsel %vm3793_vm6, %v3783_v47, %v3066_v22  ;;  %8049 = vmatmul.msk.f32.gmra.mxu1 %vm3932_vm8, %v3886_v46  ;;  %v3562_v22 = vsel %vm3533_vm1, %v3497_v41, %v11437_v58 }
 0x4cf   :  { %v3913_v53 = vsel %vm3858_vm7, %v3848_v60, %v11413_v3  ;;  %v3627_v47 = vsel %vm3598_vm3, %v3562_v22, %v11475_v48 }
 0x4d0   :  { %8076 = vmatmul.msk.f32.gmra.mxu3 %vm3932_vm8, %v3913_v53  ;;  %v3692_v60 = vsel %vm3663_vm4, %v3627_v47, %v11510_v45 }
 0x4d2   :  { %2049 = vrot.lane.b32.xlu2 %v7696_v38, %s8208_s22  ;;  %2279 = vrot.lane.b32.xlu1 %v7747_v25, %s8207_s21 }
 0x4d3   :  { %2023 = vrot.lane.b32.xlu0 %v7683_v21, %s8208_s22 }
 0x4d4   :  { %v11534_v3 = vpop.permute.xlu2 %2757  ;;  %v2274_v4 = vpop.permute.xlu1 %2273 }
 0x4d5   :  { %v2018_v2 = vpop.permute.xlu0 %2017  ;;  %v3757_v53 = vsel %vm3728_vm5, %v3692_v60, %v11534_v3 }
 0x4d6   :  { %v3576_v26 = vsel %vm3533_vm1, %v3511_v7, %v2018_v2  ;;  %v7502_v7 = vld [vmem:[%s13860_s0 + $0x910] ss:$2 sm:$0xff] }
 0x4d7   :  { %v3641_v44 = vsel %vm3598_vm3, %v3576_v26, %v2274_v4  ;;  %v14048_v26 = vld [vmem:[#allocation59_spill] sm:$0xff] }
 0x4da   :  { %2791 = vrot.lane.b32.xlu2 %v7875_v39, %s8211_s16  ;;  %2305 = vrot.lane.b32.xlu1 %v7760_v57, %s8207_s21  ;;  %v11645_v39 = vpop.f32.mrf.mxu0  ;;  %v7940_v57 = vld [vmem:[%s13860_s0 + $0x7d1] ss:$2 sm:$0xff] }
 0x4db   :  { %2535 = vrot.lane.b32.xlu0 %v7811_v36, %s8206_s20  ;;  %v7889_v36 = vld [vmem:[%s13860_s0 + $0x9c0] ss:$2 sm:$0xff] }
 0x4dc   :  { %v3014_v12 = vpop.permute.xlu2 %3013  ;;  %v2530_v14 = vpop.permute.xlu1 %2529 }
 0x4dd   :  { %v2044_v42 = vpop.permute.xlu0 %2043  ;;  %v3706_v32 = vsel %vm3663_vm4, %v3641_v44, %v2530_v14  ;;  %v3822_v48 = vsel %vm3793_vm6, %v3757_v53, %v3014_v12  ;;  %v7825_v12 = vld [vmem:[%s13860_s0 + $0x99a] ss:$2 sm:$0xff] }
 0x4de   :  { %v3589_v5 = vsel %vm3533_vm1, %v3524_v35, %v2044_v42  ;;  %v7699_v53 = vld [vmem:[%s13860_s0 + $0x9e8] ss:$2 sm:$0xff] }
 0x4e2   :  { %2817 = vrot.lane.b32.xlu2 %v7888_v1, %s8211_s16  ;;  %3047 = vrot.lane.b32.xlu1 %v7939_v49, %s8210_s15  ;;  %v11662_v49 = vpop.f32.mrf.mxu0 }
 0x4e3   :  { %2561 = vrot.lane.b32.xlu0 %v7824_v13, %s8206_s20  ;;  %v7953_v13 = vld [vmem:[%s13860_s0 + $0x9c1] ss:$2 sm:$0xff] }
 0x4e4   :  { %v3324_v40 = vpop.permute.xlu2 %3323  ;;  %v2786_v8 = vpop.permute.xlu1 %2785 }
 0x4e5   :  { %v2300_v18 = vpop.permute.xlu0 %2299  ;;  %v3771_v11 = vsel %vm3728_vm5, %v3706_v32, %v2786_v8  ;;  %v8004_v8 = vld [vmem:[%s13860_s0 + $0x7d2] ss:$2 sm:$0xff] }
 0x4e6   :  { %v3654_v46 = vsel %vm3598_vm3, %v3589_v5, %v2300_v18 }
 0x4ea   :  { %3329 = vrot.lane.b32.xlu2 %v8016_v61, %s8209_s14  ;;  %3073 = vrot.lane.b32.xlu1 %v7952_v17, %s8210_s15 }
 0x4eb   :  { %3303 = vrot.lane.b32.xlu0 %v8003_v37, %s8209_s14  ;;  %v11678_v37 = vpop.f32.mrf.mxu0 }
 0x4ec   :  { %v11575_v50 = vpop.permute.xlu2 %2045  ;;  %v3042_v43 = vpop.permute.xlu1 %3041 }
 0x4ed   :  { %v2556_v54 = vpop.permute.xlu0 %2555  ;;  %v3836_v31 = vsel %vm3793_vm6, %v3771_v11, %v3042_v43  ;;  %v7698_v43 = vld [vmem:[%s13860_s0 + $0x9d8] ss:$2 sm:$0xff]  ;;  %v3461_v11 = vsel %vm45_vm0, %v7502_v7, %v14049_v27 }
 0x4ee   :  { %v3719_v58 = vsel %vm3663_vm4, %v3654_v46, %v2556_v54  ;;  %v14047_v54 = vld [vmem:[#allocation28_spill] sm:$0xff] }
 0x4ef   :  { %v3448_v34 = vsel %vm45_vm0, %v7489_v19, %v14047_v54  ;;  %v7827_v46 = vld [vmem:[%s13860_s0 + $0x9ea] ss:$2 sm:$0xff] }
 0x4f2   :  { %2051 = vrot.lane.b32.xlu2 %v7697_v23, %s8208_s22  ;;  %2281 = vrot.lane.b32.xlu1 %v7748_v16, %s8207_s21  ;;  %v3512_v23 = vsel %vm155_vm2, %v3448_v34, %v14048_v26  ;;  %v14054_v34 = vld [vmem:[#allocation79_spill] sm:$0xff] }
 0x4f3   :  { %2025 = vrot.lane.b32.xlu0 %v7684_v29, %s8208_s22 }
 0x4f4   :  { %v11600_v24 = vpop.permute.xlu2 %2787  ;;  %v3298_v9 = vpop.permute.xlu1 %3297 }
 0x4f5   :  { %v2812_v6 = vpop.permute.xlu0 %2811  ;;  %v3901_v63 = vsel %vm3858_vm7, %v3836_v31, %v3298_v9  ;;  %v3525_v31 = vsel %vm155_vm2, %v3461_v11, %v14050_v0  ;;  %v11709_v9 = vpop.f32.mrf.mxu0  ;;  %v7828_v11 = vld [vmem:[%s13860_s0 + $0xa2a] ss:$2 sm:$0xff] }
 0x4f6   :  { %8064 = vmatmul.msk.f32.gmra.mxu2 %vm3932_vm8, %v3901_v63  ;;  %v3784_v25 = vsel %vm3728_vm5, %v3719_v58, %v2812_v6  ;;  %v7954_v6 = vld [vmem:[%s13860_s0 + $0xa01] ss:$2 sm:$0xff]  ;;  %v8018_v63 = vld [vmem:[%s13860_s0 + $0xa02] ss:$2 sm:$0xff]  ;;  %v3590_v52 = vsel %vm3533_vm1, %v3525_v31, %v11575_v50 }
 0x4fa   :  { %2307 = vrot.lane.b32.xlu1 %v7761_v62, %s8207_s21  ;;  %2793 = vrot.lane.b32.xlu2 %v7876_v55, %s8211_s16  ;;  %v7890_v62 = vld [vmem:[%s13860_s0 + $0xa00] ss:$2 sm:$0xff] }
 0x4fb   :  { %2537 = vrot.lane.b32.xlu0 %v7812_v20, %s8206_s20 }
 0x4fc   :  { %v11639_v38 = vpop.permute.xlu2 %2813  ;;  %v3270_v21 = vpop.permute.xlu1 %3269 }
 0x4fd   :  { %v3068_v4 = vpop.permute.xlu0 %3067  ;;  %v3887_v45 = vsel %vm3858_vm7, %v3822_v48, %v3270_v21  ;;  %v11738_v5 = vpop.f32.mrf.mxu0  ;;  %v7955_v21 = vld [vmem:[%s13860_s0 + $0xa11] ss:$2 sm:$0xff] }
 0x4fe   :  { %v3849_v2 = vsel %vm3793_vm6, %v3784_v25, %v3068_v4  ;;  %8050 = vmatmul.msk.f32.gmra.mxu1 %vm3932_vm8, %v3887_v45  ;;  %v8019_v4 = vld [vmem:[%s13860_s0 + $0xa12] ss:$2 sm:$0xff] }
 0x4ff   :  { %v3914_v3 = vsel %vm3858_vm7, %v3849_v2, %v3324_v40  ;;  %v8017_v40 = vld [vmem:[%s13860_s0 + $0x9c2] ss:$2 sm:$0xff] }
 0x500   :  { %8077 = vmatmul.msk.f32.gmra.mxu3 %vm3932_vm8, %v3914_v3  ;;  %v7891_v2 = vld [vmem:[%s13860_s0 + $0xa10] ss:$2 sm:$0xff] }
 0x502   :  { %3049 = vrot.lane.b32.xlu1 %v7940_v57, %s8210_s15  ;;  %2819 = vrot.lane.b32.xlu2 %v7889_v36, %s8211_s16 }
 0x503   :  { %2563 = vrot.lane.b32.xlu0 %v7825_v12, %s8206_s20  ;;  %v7700_v12 = vld [vmem:[%s13860_s0 + $0xa28] ss:$2 sm:$0xff] }
 0x504   :  { %v3326_v14 = vpop.permute.xlu2 %3325  ;;  %v2276_v42 = vpop.permute.xlu1 %2275 }
 0x505   :  { %v2020_v1 = vpop.permute.xlu0 %2019  ;;  %v11755_v25 = vpop.f32.mrf.mxu0 }
 0x506   :  { %v3577_v29 = vsel %vm3533_vm1, %v3512_v23, %v2020_v1  ;;  %v7636_v1 = vld [vmem:[%s13860_s0 + $0xa02] ss:$2 sm:$0xff] }
 0x507   :  { %v3642_v28 = vsel %vm3598_vm3, %v3577_v29, %v2276_v42  ;;  %v7490_v42 = vld [vmem:[%s13860_s0 + $0x730] ss:$2 sm:$0xff]  ;;  %v7956_v29 = vld [vmem:[%s13860_s0 + $0xa51] ss:$2 sm:$0xff] }
 0x508   :  { %v7892_v23 = vld [vmem:[%s13860_s0 + $0xa50] ss:$2 sm:$0xff] }
 0x50a   :  { %3075 = vrot.lane.b32.xlu1 %v7953_v13, %s8210_s15  ;;  %3331 = vrot.lane.b32.xlu2 %v8017_v40, %s8209_s14  ;;  %v14051_v13 = vld [vmem:[#allocation21_spill] sm:$0xff] }
 0x50b   :  { %3305 = vrot.lane.b32.xlu0 %v8004_v8, %s8209_s14  ;;  %v3449_v40 = vsel %vm45_vm0, %v7490_v42, %v14051_v13  ;;  %v7503_v8 = vld [vmem:[%s13860_s0 + $0x920] ss:$2 sm:$0xff] }
 0x50c   :  { %v11676_v18 = vpop.permute.xlu2 %2047  ;;  %v2302_v61 = vpop.permute.xlu1 %2301 }
 0x50d   :  { %v2532_v17 = vpop.permute.xlu0 %2531  ;;  %v3655_v55 = vsel %vm3598_vm3, %v3590_v52, %v2302_v61  ;;  %v11771_v36 = vpop.f32.mrf.mxu0  ;;  %v14052_v61 = vld [vmem:[#allocation71_spill] sm:$0xff] }
 0x50e   :  { %v3707_v33 = vsel %vm3663_vm4, %v3642_v28, %v2532_v17  ;;  %v3513_v17 = vsel %vm155_vm2, %v3449_v40, %v14052_v61  ;;  %v14057_v40 = vld [vmem:[#allocation41_spill] sm:$0xff] }
 0x50f   :  { %v3772_v50 = vsel %vm3728_vm5, %v3707_v33, %v11600_v24  ;;  %v7763_v24 = vld [vmem:[%s13860_s0 + $0x9e9] ss:$2 sm:$0xff] }
 0x512   :  { %2309 = vrot.lane.b32.xlu1 %v7762_v10, %s8207_s21  ;;  %2565 = vrot.lane.b32.xlu2 %v7826_v15, %s8206_s20 }
 0x513   :  { %2053 = vrot.lane.b32.xlu0 %v7698_v43, %s8208_s22  ;;  %v14053_v43 = vld [vmem:[#allocation42_spill] sm:$0xff] }
 0x514   :  { %v11702_v16 = vpop.permute.xlu2 %2789  ;;  %v3044_v44 = vpop.permute.xlu1 %3043  ;;  %v3462_v54 = vsel %vm45_vm0, %v7503_v8, %v14053_v43 }
 0x515   :  { %v2558_v32 = vpop.permute.xlu0 %2557  ;;  %v3837_v41 = vsel %vm3793_vm6, %v3772_v50, %v3044_v44  ;;  %v3526_v7 = vsel %vm155_vm2, %v3462_v54, %v14054_v34  ;;  %v11800_v26 = vpop.f32.mrf.mxu0 }
 0x516   :  { %v3720_v51 = vsel %vm3663_vm4, %v3655_v55, %v2558_v32  ;;  %v3591_v44 = vsel %vm3533_vm1, %v3526_v7, %v11676_v18 }
 0x517   :  { %v3785_v30 = vsel %vm3728_vm5, %v3720_v51, %v11639_v38 }
 0x51a   :  { %3077 = vrot.lane.b32.xlu1 %v7954_v6, %s8210_s15  ;;  %3333 = vrot.lane.b32.xlu2 %v8018_v63, %s8209_s14 }
 0x51b   :  { %2821 = vrot.lane.b32.xlu0 %v7890_v62, %s8211_s16 }
 0x51c   :  { %v11731_v59 = vpop.permute.xlu2 %2815  ;;  %v3070_v20 = vpop.permute.xlu1 %3069 }
 0x51d   :  { %v3300_v35 = vpop.permute.xlu0 %3299  ;;  %v3850_v22 = vsel %vm3793_vm6, %v3785_v30, %v3070_v20  ;;  %v11827_v51 = vpop.f32.mrf.mxu0 }
 0x51e   :  { %v3902_v47 = vsel %vm3858_vm7, %v3837_v41, %v3300_v35  ;;  %v3915_v60 = vsel %vm3858_vm7, %v3850_v22, %v3326_v14  ;;  %v7764_v14 = vld [vmem:[%s13860_s0 + $0xa29] ss:$2 sm:$0xff]  ;;  %v7701_v41 = vld [vmem:[%s13860_s0 + $0xa38] ss:$2 sm:$0xff] }
 0x51f   :  { %8065 = vmatmul.msk.f32.gmra.mxu2 %vm3932_vm8, %v3902_v47  ;;  %8078 = vmatmul.msk.f32.gmra.mxu3 %vm3932_vm8, %v3915_v60  ;;  %v7829_v47 = vld [vmem:[%s13860_s0 + $0xa3a] ss:$2 sm:$0xff] }
 0x520   :  { %v7893_v60 = vld [vmem:[%s13860_s0 + $0xa60] ss:$2 sm:$0xff] }
 0x522   :  { %2311 = vrot.lane.b32.xlu1 %v7763_v24, %s8207_s21  ;;  %2567 = vrot.lane.b32.xlu2 %v7827_v46, %s8206_s20  ;;  %v7765_v24 = vld [vmem:[%s13860_s0 + $0xa39] ss:$2 sm:$0xff] }
 0x523   :  { %2055 = vrot.lane.b32.xlu0 %v7699_v53, %s8208_s22 }
 0x524   :  { %v3328_v58 = vpop.permute.xlu2 %3327  ;;  %v2278_v38 = vpop.permute.xlu1 %2277 }
 0x525   :  { %v2022_v48 = vpop.permute.xlu0 %2021  ;;  %v11844_v22 = vpop.f32.mrf.mxu0 }
 0x526   :  { %v3578_v10 = vsel %vm3533_vm1, %v3513_v17, %v2022_v48  ;;  %v8021_v48 = vld [vmem:[%s13860_s0 + $0xa62] ss:$2 sm:$0xff] }
 0x527   :  { %v3643_v32 = vsel %vm3598_vm3, %v3578_v10, %v2278_v38  ;;  %v14058_v17 = vld [vmem:[#allocation72_spill] sm:$0xff] }
 0x52a   :  { %3079 = vrot.lane.b32.xlu1 %v7955_v21, %s8210_s15  ;;  %3335 = vrot.lane.b32.xlu2 %v8019_v4, %s8209_s14  ;;  %v7491_v21 = vld [vmem:[%s13860_s0 + $0x740] ss:$2 sm:$0xff]  ;;  %v7957_v4 = vld [vmem:[%s13860_s0 + $0xa61] ss:$2 sm:$0xff] }
 0x52b   :  { %2823 = vrot.lane.b32.xlu0 %v7891_v2, %s8211_s16  ;;  %v14055_v2 = vld [vmem:[#allocation32_spill] sm:$0xff] }
 0x52c   :  { %v2304_v45 = vpop.permute.xlu1 %2303  ;;  %v11769_v57 = vpop.permute.xlu2 %2049 }
 0x52d   :  { %v2534_v3 = vpop.permute.xlu0 %2533  ;;  %v3656_v0 = vsel %vm3598_vm3, %v3591_v44, %v2304_v45  ;;  %v11858_v38 = vpop.f32.mrf.mxu0  ;;  %v3450_v45 = vsel %vm45_vm0, %v7491_v21, %v14055_v2 }
 0x52e   :  { %v3708_v31 = vsel %vm3663_vm4, %v3643_v32, %v2534_v3  ;;  %v7504_v3 = vld [vmem:[%s13860_s0 + $0x960] ss:$2 sm:$0xff] }
 0x52f   :  { %v3773_v18 = vsel %vm3728_vm5, %v3708_v31, %v11702_v16  ;;  %v7637_v16 = vld [vmem:[%s13860_s0 + $0xa12] ss:$2 sm:$0xff]  ;;  %v3463_v8 = vsel %vm45_vm0, %v7504_v3, %v14057_v40 }
 0x530   :  { %v3527_v10 = vsel %vm155_vm2, %v3463_v8, %v14058_v17 }
 0x532   :  { %2057 = vrot.lane.b32.xlu1 %v7700_v12, %s8208_s22  ;;  %2313 = vrot.lane.b32.xlu2 %v7764_v14, %s8207_s21  ;;  %v14056_v12 = vld [vmem:[#allocation70_spill] sm:$0xff] }
 0x533   :  { %1801 = vrot.lane.b32.xlu0 %v7636_v1, %s8205_s30  ;;  %v3514_v14 = vsel %vm155_vm2, %v3450_v45, %v14056_v12 }
 0x534   :  { %v3046_v15 = vpop.permute.xlu1 %3045  ;;  %v2792_v27 = vpop.permute.xlu2 %2791 }
 0x535   :  { %v2560_v19 = vpop.permute.xlu0 %2559  ;;  %v3838_v63 = vsel %vm3793_vm6, %v3773_v18, %v3046_v15  ;;  %v11883_v15 = vpop.f32.mrf.mxu0 }
 0x536   :  { %v3721_v6 = vsel %vm3663_vm4, %v3656_v0, %v2560_v19  ;;  %v3592_v19 = vsel %vm3533_vm1, %v3527_v10, %v11769_v57 }
 0x537   :  { %v3786_v28 = vsel %vm3728_vm5, %v3721_v6, %v11731_v59  ;;  %v8020_v59 = vld [vmem:[%s13860_s0 + $0xa52] ss:$2 sm:$0xff] }
 0x53a   :  { %2825 = vrot.lane.b32.xlu1 %v7892_v23, %s8211_s16  ;;  %3081 = vrot.lane.b32.xlu2 %v7956_v29, %s8210_s15 }
 0x53b   :  { %2569 = vrot.lane.b32.xlu0 %v7828_v11, %s8206_s20 }
 0x53c   :  { %v3072_v52 = vpop.permute.xlu1 %3071  ;;  %v2818_v20 = vpop.permute.xlu2 %2817 }
 0x53d   :  { %v3302_v62 = vpop.permute.xlu0 %3301  ;;  %v3851_v55 = vsel %vm3793_vm6, %v3786_v28, %v3072_v52  ;;  %v11896_v6 = vpop.f32.mrf.mxu0 }
 0x53e   :  { %v3903_v33 = vsel %vm3858_vm7, %v3838_v63, %v3302_v62  ;;  %v3916_v50 = vsel %vm3858_vm7, %v3851_v55, %v3328_v58 }
 0x53f   :  { %8066 = vmatmul.msk.f32.gmra.mxu2 %vm3932_vm8, %v3903_v33  ;;  %8079 = vmatmul.msk.f32.gmra.mxu3 %vm3932_vm8, %v3916_v50  ;;  %v7492_v50 = vld [vmem:[%s13860_s0 + $0x780] ss:$2 sm:$0xff] }
 0x542   :  { %1803 = vrot.lane.b32.xlu1 %v7637_v16, %s8205_s30  ;;  %2059 = vrot.lane.b32.xlu2 %v7701_v41, %s8208_s22  ;;  %v14059_v41 = vld [vmem:[#allocation31_spill] sm:$0xff] }
 0x543   :  { %3337 = vrot.lane.b32.xlu0 %v8020_v59, %s8209_s14  ;;  %v3451_v59 = vsel %vm45_vm0, %v7492_v50, %v14059_v41  ;;  %v4334_v41 = vsel %vm45_vm0, %v11645_v39, 0.0 }
 0x544   :  { %v2280_v30 = vpop.permute.xlu1 %2279  ;;  %v3330_v46 = vpop.permute.xlu2 %3329 }
 0x545   :  { %v2024_v35 = vpop.permute.xlu0 %2023  ;;  %v11901_v52 = vpop.f32.mrf.mxu0 }
 0x546   :  { %v3579_v42 = vsel %vm3533_vm1, %v3514_v14, %v2024_v35 }
 0x547   :  { %v3644_v43 = vsel %vm3598_vm3, %v3579_v42, %v2280_v30  ;;  %v14060_v30 = vld [vmem:[#allocation60_spill] sm:$0xff] }
 0x548   :  { %v3515_v35 = vsel %vm155_vm2, %v3451_v59, %v14060_v30  ;;  %v4337_v59 = vsel %vm45_vm0, %v11678_v37, 0.0 }
 0x54a   :  { %2571 = vrot.lane.b32.xlu1 %v7829_v47, %s8206_s20  ;;  %2827 = vrot.lane.b32.xlu2 %v7893_v60, %s8211_s16 }
 0x54b   :  { %2315 = vrot.lane.b32.xlu0 %v7765_v24, %s8207_s21 }
 0x54c   :  { %v2306_v53 = vpop.permute.xlu1 %2305  ;;  %v2052_v61 = vpop.permute.xlu2 %2051 }
 0x54d   :  { %v2536_v58 = vpop.permute.xlu0 %2535  ;;  %v3657_v54 = vsel %vm3598_vm3, %v3592_v19, %v2306_v53  ;;  %v11903_v33 = vpop.f32.mrf.mxu0 }
 0x54e   :  { %v3709_v34 = vsel %vm3663_vm4, %v3644_v43, %v2536_v58  ;;  %v14062_v58 = vld [vmem:[#allocation82_spill] sm:$0xff]  ;;  %v11937_v43 = vpop.f32.mrf.mxu2 }
 0x54f   :  { %v3774_v23 = vsel %vm3728_vm5, %v3709_v34, %v2792_v27  ;;  %v14063_v34 = vld [vmem:[#allocation44_spill] sm:$0xff] }
 0x552   :  { %3339 = vrot.lane.b32.xlu1 %v8021_v48, %s8209_s14 }
 0x553   :  { %3083 = vrot.lane.b32.xlu0 %v7957_v4, %s8210_s15 }
 0x554   :  { %v3048_v1 = vpop.permute.xlu1 %3047  ;;  %v2794_v31 = vpop.permute.xlu2 %2793 }
 0x555   :  { %v2562_v13 = vpop.permute.xlu0 %2561  ;;  %v3839_v29 = vsel %vm3793_vm6, %v3774_v23, %v3048_v1  ;;  %v11920_v21 = vpop.f32.mrf.mxu0 }
 0x556   :  { %v3722_v7 = vsel %vm3663_vm4, %v3657_v54, %v2562_v13  ;;  %v7506_v54 = vld [vmem:[%s13860_s0 + $0x9b0] ss:$2 sm:$0xff] }
 0x557   :  { %v3787_v32 = vsel %vm3728_vm5, %v3722_v7, %v2818_v20  ;;  %v7505_v20 = vld [vmem:[%s13860_s0 + $0x970] ss:$2 sm:$0xff]  ;;  %v3465_v7 = vsel %vm45_vm0, %v7506_v54, %v14063_v34 }
 0x55c   :  { %v3074_v44 = vpop.permute.xlu1 %3073  ;;  %v2820_v28 = vpop.permute.xlu2 %2819 }
 0x55d   :  { %v3304_v11 = vpop.permute.xlu0 %3303  ;;  %v3852_v0 = vsel %vm3793_vm6, %v3787_v32, %v3074_v44  ;;  %v11932_v10 = vpop.f32.mrf.mxu0  ;;  %v14064_v44 = vld [vmem:[#allocation81_spill] sm:$0xff] }
 0x55e   :  { %v3904_v57 = vsel %vm3858_vm7, %v3839_v29, %v3304_v11  ;;  %v3917_v18 = vsel %vm3858_vm7, %v3852_v0, %v3330_v46  ;;  %v14061_v46 = vld [vmem:[#allocation33_spill] sm:$0xff]  ;;  %v3529_v32 = vsel %vm155_vm2, %v3465_v7, %v14064_v44  ;;  %v4349_v7 = vsel %vm45_vm0, %v11827_v51, 0.0 }
 0x55f   :  { %8067 = vmatmul.msk.f32.gmra.mxu2 %vm3932_vm8, %v3904_v57  ;;  %8080 = vmatmul.msk.f32.gmra.mxu3 %vm3932_vm8, %v3917_v18  ;;  %v3464_v53 = vsel %vm45_vm0, %v7505_v20, %v14061_v46 }
 0x560   :  { %v3528_v48 = vsel %vm155_vm2, %v3464_v53, %v14062_v58  ;;  %v4341_v53 = vsel %vm45_vm0, %v11738_v5, 0.0  ;;  %v14065_v58 = vld [vmem:[#allocation43_spill] sm:$0xff] }
 0x561   :  { %v3593_v4 = vsel %vm3533_vm1, %v3528_v48, %v2052_v61 }
 0x564   :  { %v2282_v27 = vpop.permute.xlu1 %2281  ;;  %v3332_v16 = vpop.permute.xlu2 %3331 }
 0x565   :  { %v2026_v63 = vpop.permute.xlu0 %2025  ;;  %v11946_v0 = vpop.f32.mrf.mxu0 }
 0x566   :  { %v3580_v47 = vsel %vm3533_vm1, %v3515_v35, %v2026_v63 }
 0x567   :  { %v3645_v2 = vsel %vm3598_vm3, %v3580_v47, %v2282_v27 }
 0x56c   :  { %v2308_v62 = vpop.permute.xlu1 %2307  ;;  %v2566_v42 = vpop.permute.xlu2 %2565 }
 0x56d   :  { %v2538_v55 = vpop.permute.xlu0 %2537  ;;  %v3658_v45 = vsel %vm3598_vm3, %v3593_v4, %v2308_v62  ;;  %v4335_v62 = vsel %vm45_vm0, %v11662_v49, 0.0  ;;  %v11956_v50 = vpop.f32.mrf.mxu0 }
 0x56e   :  { %v3710_v3 = vsel %vm3663_vm4, %v3645_v2, %v2538_v55  ;;  %v4336_v35 = vadd.f32 %v4335_v62, %v4334_v41  ;;  %v4355_v41 = vsel %vm45_vm0, %v11883_v15, 0.0 }
 0x56f   :  { %v3775_v14 = vsel %vm3728_vm5, %v3710_v3, %v2794_v31  ;;  %v11949_v31 = vpop.f32.mrf.mxu2  ;;  %v14066_v3 = vld [vmem:[#allocation74_spill] sm:$0xff] }
 0x570   :  { %v4338_v46 = vadd.f32 %v4337_v59, %v4336_v35 }
 0x574   :  { %v3050_v60 = vpop.permute.xlu1 %3049  ;;  %v3334_v11 = vpop.permute.xlu2 %3333 }
 0x575   :  { %v2564_v24 = vpop.permute.xlu0 %2563  ;;  %v3840_v1 = vsel %vm3793_vm6, %v3775_v14, %v3050_v60  ;;  %v7507_v60 = vld [vmem:[%s13860_s0 + $0x9c0] ss:$2 sm:$0xff]  ;;  %v4343_v14 = vsel %vm45_vm0, %v11755_v25, 0.0 }
 0x576   :  { %v3723_v12 = vsel %vm3663_vm4, %v3658_v45, %v2564_v24  ;;  %v4339_v24 = vsel %vm45_vm0, %v11709_v9, 0.0  ;;  %v3466_v48 = vsel %vm45_vm0, %v7507_v60, %v14065_v58  ;;  %v14067_v58 = vld [vmem:[#allocation36_spill] sm:$0xff] }
 0x577   :  { %v3788_v13 = vsel %vm3728_vm5, %v3723_v12, %v2820_v28  ;;  %v11964_v47 = vpop.f32.mrf.mxu2  ;;  %v4340_v4 = vadd.f32 %v4339_v24, %v4338_v46  ;;  %v3530_v12 = vsel %vm155_vm2, %v3466_v48, %v14066_v3 }
 0x57c   :  { %v3076_v40 = vpop.permute.xlu1 %3075  ;;  %v2568_v30 = vpop.permute.xlu2 %2567 }
 0x57d   :  { %v3306_v8 = vpop.permute.xlu0 %3305  ;;  %v3853_v17 = vsel %vm3793_vm6, %v3788_v13, %v3076_v40  ;;  %v4345_v40 = vsel %vm45_vm0, %v11771_v36, 0.0 }
 0x57e   :  { %v3905_v61 = vsel %vm3858_vm7, %v3840_v1, %v3306_v8  ;;  %v3918_v19 = vsel %vm3858_vm7, %v3853_v17, %v3332_v16  ;;  %v11980_v1 = vpop.f32.mrf.mxu0 }
 0x57f   :  { %8068 = vmatmul.msk.f32.gmra.mxu2 %vm3932_vm8, %v3905_v61  ;;  %8081 = vmatmul.msk.f32.gmra.mxu3 %vm3932_vm8, %v3918_v19  ;;  %v11985_v17 = vpop.f32.mrf.mxu2  ;;  %v4347_v61 = vsel %vm45_vm0, %v11800_v26, 0.0 }
 0x584   :  { %v2310_v23 = vpop.permute.xlu1 %2309  ;;  %v3336_v54 = vpop.permute.xlu2 %3335 }
 0x585   :  { %v2054_v29 = vpop.permute.xlu0 %2053 }
 0x586   :  { %v3594_v57 = vsel %vm3533_vm1, %v3529_v32, %v2054_v29 }
 0x587   :  { %v3659_v18 = vsel %vm3598_vm3, %v3594_v57, %v2310_v23 }
 0x588   :  { %v3724_v27 = vsel %vm3663_vm4, %v3659_v18, %v2566_v42  ;;  %v4342_v42 = vadd.f32 %v4341_v53, %v4340_v4  ;;  %v4359_v53 = vsel %vm45_vm0, %v11901_v52, 0.0 }
 0x58a   :  { %v4344_v8 = vadd.f32 %v4343_v14, %v4342_v42  ;;  %v12023_v42 = vpop.f32.mrf.mxu1 }
 0x58c   :  { %v3078_v63 = vpop.permute.xlu1 %3077  ;;  %v4346_v34 = vadd.f32 %v4345_v40, %v4344_v8  ;;  %v2314_v35 = vpop.permute.xlu2 %2313 }
 0x58d   :  { %v2822_v28 = vpop.permute.xlu0 %2821 }
 0x58e   :  { %v3789_v55 = vsel %vm3728_vm5, %v3724_v27, %v2822_v28  ;;  %v4348_v23 = vadd.f32 %v4347_v61, %v4346_v34  ;;  %v11996_v27 = vpop.f32.mrf.mxu0  ;;  %v4353_v28 = vsel %vm45_vm0, %v11858_v38, 0.0  ;;  %v4365_v61 = vsel %vm45_vm0, %v11932_v10, 0.0 }
 0x58f   :  { %v3854_v16 = vsel %vm3793_vm6, %v3789_v55, %v3078_v63 }
 0x590   :  { %v3919_v20 = vsel %vm3858_vm7, %v3854_v16, %v3334_v11  ;;  %v4351_v11 = vsel %vm45_vm0, %v11844_v22, 0.0  ;;  %v4350_v18 = vadd.f32 %v4349_v7, %v4348_v23  ;;  %v12002_v16 = vpop.f32.mrf.mxu2  ;;  %v4367_v7 = vsel %vm45_vm0, %v11946_v0, 0.0 }
 0x591   :  { %8082 = vmatmul.msk.f32.gmra.mxu3 %vm3932_vm8, %v3919_v20  ;;  %v7508_v20 = vld [vmem:[%s13860_s0 + $0xa00] ss:$2 sm:$0xff] }
 0x592   :  { %v4352_v55 = vadd.f32 %v4351_v11, %v4350_v18  ;;  %v3467_v48 = vsel %vm45_vm0, %v7508_v20, %v14067_v58 }
 0x594   :  { %v2312_v2 = vpop.permute.xlu1 %2311  ;;  %v4354_v59 = vadd.f32 %v4353_v28, %v4352_v55  ;;  %v12040_v28 = vpop.f32.mrf.mxu1 }
 0x595   :  { %v2056_v45 = vpop.permute.xlu0 %2055 }
 0x596   :  { %v3595_v13 = vsel %vm3533_vm1, %v3530_v12, %v2056_v45  ;;  %v4356_v60 = vadd.f32 %v4355_v41, %v4354_v59  ;;  %v4361_v45 = vsel %vm45_vm0, %v11903_v33, 0.0  ;;  %v4373_v59 = vsel %vm45_vm0, %v11996_v27, 0.0 }
 0x597   :  { %v3660_v19 = vsel %vm3598_vm3, %v3595_v13, %v2312_v2  ;;  %v12016_v2 = vpop.f32.mrf.mxu0  ;;  %v4363_v13 = vsel %vm45_vm0, %v11920_v21, 0.0 }
 0x598   :  { %v3725_v29 = vsel %vm3663_vm4, %v3660_v19, %v2568_v30  ;;  %v4357_v30 = vsel %vm45_vm0, %v11896_v6, 0.0  ;;  %v12021_v14 = vpop.f32.mrf.mxu2 }
 0x599   :  { %v4358_v4 = vadd.f32 %v4357_v30, %v4356_v60 }
 0x59b   :  { %v4360_v12 = vadd.f32 %v4359_v53, %v4358_v4  ;;  %v7509_v53 = vld [vmem:[%s13860_s0 + $0xa10] ss:$2 sm:$0xff] }
 0x59c   :  { %v3080_v44 = vpop.permute.xlu1 %3079 }
 0x59d   :  { %v2824_v32 = vpop.permute.xlu0 %2823  ;;  %v4362_v40 = vadd.f32 %v4361_v45, %v4360_v12 }
 0x59e   :  { %v3790_v57 = vsel %vm3728_vm5, %v3725_v29, %v2824_v32  ;;  %v3082_v29 = vpop.permute.xlu2 %3081 }
 0x59f   :  { %v3855_v63 = vsel %vm3793_vm6, %v3790_v57, %v3080_v44  ;;  %v4364_v19 = vadd.f32 %v4363_v13, %v4362_v40  ;;  %v12033_v32 = vpop.f32.mrf.mxu0  ;;  %v4369_v57 = vsel %vm45_vm0, %v11956_v50, 0.0  ;;  %v12061_v13 = vpop.f32.mrf.mxu1  ;;  %v14068_v40 = vld [vmem:[#allocation45_spill] sm:$0xff] }
 0x5a0   :  { %v3920_v62 = vsel %vm3858_vm7, %v3855_v63, %v3336_v54  ;;  %v12038_v63 = vpop.f32.mrf.mxu2  ;;  %v4377_v4 = vsel %vm45_vm0, %v12033_v32, 0.0 }
 0x5a1   :  { %8083 = vmatmul.msk.f32.gmra.mxu3 %vm3932_vm8, %v3920_v62  ;;  %v4366_v44 = vadd.f32 %v4365_v61, %v4364_v19  ;;  %v4371_v62 = vsel %vm45_vm0, %v11980_v1, 0.0 }
 0x5a3   :  { %v4368_v18 = vadd.f32 %v4367_v7, %v4366_v44 }
 0x5a4   :  { %v2058_v24 = vpop.permute.xlu1 %2057 }
 0x5a5   :  { %v1802_v46 = vpop.permute.xlu0 %1801  ;;  %v4370_v41 = vadd.f32 %v4369_v57, %v4368_v18 }
 0x5a6   :  { %v3531_v3 = vsel %vm155_vm2, %v3467_v48, %v1802_v46  ;;  %v2060_v45 = vpop.permute.xlu2 %2059 }
 0x5a7   :  { %v3596_v8 = vsel %vm3533_vm1, %v3531_v3, %v2058_v24  ;;  %v4372_v20 = vadd.f32 %v4371_v62, %v4370_v41  ;;  %v4375_v24 = vsel %vm45_vm0, %v12016_v2, 0.0  ;;  %v12054_v48 = vpop.f32.mrf.mxu0  ;;  %v12074_v62 = vpop.f32.mrf.mxu1 }
 0x5a8   :  { %v3661_v23 = vsel %vm3598_vm3, %v3596_v8, %v2314_v35  ;;  %v12059_v3 = vpop.f32.mrf.mxu2  ;;  %v3468_v8 = vsel %vm45_vm0, %v7509_v53, %v14068_v40  ;;  %v4379_v61 = vsel %vm45_vm0, %v12054_v48, 0.0  ;;  %v4385_v53 = vsel %vm45_vm0, %v12061_v13, 0.0  ;;  %v12091_v40 = vpop.f32.mrf.mxu3 }
 0x5a9   :  { %v4374_v58 = vadd.f32 %v4373_v59, %v4372_v20  ;;  %v4383_v59 = vsel %vm45_vm0, %v12040_v28, 0.0 }
 0x5ab   :  { %v4376_v12 = vadd.f32 %v4375_v24, %v4374_v58 }
 0x5ac   :  { %v2826_v54 = vpop.permute.xlu1 %2825 }
 0x5ad   :  { %v2570_v34 = vpop.permute.xlu0 %2569  ;;  %v4378_v19 = vadd.f32 %v4377_v4, %v4376_v12  ;;  %v4387_v12 = vsel %vm45_vm0, %v12074_v62, 0.0 }
 0x5ae   :  { %v3726_v11 = vsel %vm3663_vm4, %v3661_v23, %v2570_v34  ;;  %v2828_v41 = vpop.permute.xlu2 %2827 }
 0x5af   :  { %v3791_v55 = vsel %vm3728_vm5, %v3726_v11, %v2826_v54  ;;  %v4380_v34 = vadd.f32 %v4379_v61, %v4378_v19  ;;  %v4381_v11 = vsel %vm45_vm0, %v12023_v42, 0.0 }
 0x5b0   :  { %v3856_v30 = vsel %vm3793_vm6, %v3791_v55, %v3082_v29  ;;  %v12072_v57 = vpop.f32.mrf.mxu2 }
 0x5b1   :  { %v4382_v18 = vadd.f32 %v4381_v11, %v4380_v34  ;;  %v4391_v34 = vsel %vm45_vm0, %v11937_v43, 0.0 }
 0x5b3   :  { %v4384_v20 = vadd.f32 %v4383_v59, %v4382_v18  ;;  %v4395_v18 = vsel %vm45_vm0, %v11964_v47, 0.0  ;;  %v4397_v59 = vsel %vm45_vm0, %v11985_v17, 0.0 }
 0x5b4   :  { %v1804_v35 = vpop.permute.xlu1 %1803 }
 0x5b5   :  { %v3338_v60 = vpop.permute.xlu0 %3337  ;;  %v3532_v54 = vsel %vm155_vm2, %v3468_v8, %v1804_v35  ;;  %v4386_v4 = vadd.f32 %v4385_v53, %v4384_v20 }
 0x5b6   :  { %v3921_v46 = vsel %vm3858_vm7, %v3856_v30, %v3338_v60  ;;  %v3597_v29 = vsel %vm3533_vm1, %v3532_v54, %v2060_v45  ;;  %v12087_v45 = vpop.f32.mrf.mxu1 }
 0x5b7   :  { %8084 = vmatmul.msk.f32.gmra.mxu3 %vm3932_vm8, %v3921_v46  ;;  %v4389_v8 = vsel %vm45_vm0, %v12087_v45, 0.0  ;;  %v4388_v61 = vadd.f32 %v4387_v12, %v4386_v4  ;;  %v4403_v12 = vsel %vm45_vm0, %v12038_v63, 0.0 }
 0x5b8   :  { %v12085_v58 = vpop.f32.mrf.mxu2 }
 0x5b9   :  { %v4390_v19 = vadd.f32 %v4389_v8, %v4388_v61 }
 0x5bc   :  { %v2572_v23 = vpop.permute.xlu1 %2571 }
 0x5bd   :  { %v2316_v7 = vpop.permute.xlu0 %2315 }
 0x5be   :  { %v3662_v44 = vsel %vm3598_vm3, %v3597_v29, %v2316_v7  ;;  %v12099_v7 = vpop.f32.mrf.mxu3  ;;  %v4393_v29 = vsel %vm45_vm0, %v11949_v31, 0.0 }
 0x5bf   :  { %v3727_v55 = vsel %vm3663_vm4, %v3662_v44, %v2572_v23  ;;  %v4392_v23 = vadd.f32 %v4391_v34, %v4390_v19  ;;  %v4405_v19 = vsel %vm45_vm0, %v12059_v3, 0.0 }
 0x5c0   :  { %v3792_v30 = vsel %vm3728_vm5, %v3727_v55, %v2828_v41  ;;  %v12095_v54 = vpop.f32.mrf.mxu2 }
 0x5c1   :  { %v4394_v44 = vadd.f32 %v4393_v29, %v4392_v23  ;;  %v4407_v29 = vsel %vm45_vm0, %v12072_v57, 0.0 }
 0x5c3   :  { %v4396_v41 = vadd.f32 %v4395_v18, %v4394_v44 }
 0x5c4   :  { %v3340_v60 = vpop.permute.xlu1 %3339 }
 0x5c5   :  { %v3084_v35 = vpop.permute.xlu0 %3083  ;;  %v4398_v20 = vadd.f32 %v4397_v59, %v4396_v41  ;;  %v4409_v41 = vsel %vm45_vm0, %v12085_v58, 0.0 }
 0x5c6   :  { %v3857_v24 = vsel %vm3793_vm6, %v3792_v30, %v3084_v35  ;;  %v12107_v55 = vpop.f32.mrf.mxu3  ;;  %v4399_v35 = vsel %vm45_vm0, %v12002_v16, 0.0 }
 0x5c7   :  { %v3922_v46 = vsel %vm3858_vm7, %v3857_v24, %v3340_v60  ;;  %v4400_v24 = vadd.f32 %v4399_v35, %v4398_v20  ;;  %v4411_v35 = vsel %vm45_vm0, %v12095_v54, 0.0 }
 0x5c8   :  { %8085 = vmatmul.msk.f32.gmra.mxu3 %vm3932_vm8, %v3922_v46  ;;  %v12103_v11 = vpop.f32.mrf.mxu2  ;;  %v4401_v46 = vsel %vm45_vm0, %v12021_v14, 0.0 }
 0x5c9   :  { %14069 = vst [vmem:[#allocation35_spill] sm:$0xff] %v12103_v11  ;;  %v4402_v53 = vadd.f32 %v4401_v46, %v4400_v24 }
 0x5cb   :  { %v4404_v61 = vadd.f32 %v4403_v12, %v4402_v53  ;;  %v4413_v53 = vsel %vm45_vm0, %v12103_v11, 0.0 }
 0x5cd   :  { %v4406_v34 = vadd.f32 %v4405_v19, %v4404_v61 }
 0x5ce   :  { %v12115_v60 = vpop.f32.mrf.mxu3 }
 0x5cf   :  { %14071 = vst [vmem:[#allocation73_spill] sm:$0xff] %v12115_v60  ;;  %v4408_v18 = vadd.f32 %v4407_v29, %v4406_v34 }
 0x5d0   :  { %v12111_v30 = vpop.f32.mrf.mxu2 }
 0x5d1   :  { %14070 = vst [vmem:[#allocation62_spill] sm:$0xff] %v12111_v30  ;;  %v4410_v59 = vadd.f32 %v4409_v41, %v4408_v18  ;;  %v4415_v19 = vsel %vm45_vm0, %v12111_v30, 0.0 }
 0x5d3   :  { %v4412_v46 = vadd.f32 %v4411_v35, %v4410_v59 }
 0x5d5   :  { %v4414_v12 = vadd.f32 %v4413_v53, %v4412_v46 }
 0x5d6   :  { %v12123_v8 = vpop.f32.mrf.mxu3 }
 0x5d7   :  { %14073 = vst [vmem:[#allocation50_spill] sm:$0xff] %v12123_v8  ;;  %v4416_v29 = vadd.f32 %v4415_v19, %v4414_v12 }
 0x5d8   :  { %v12119_v4 = vpop.f32.mrf.mxu2 }
 0x5d9   :  { %14072 = vst [vmem:[#allocation12_spill] sm:$0xff] %v12119_v4  ;;  %v4417_v18 = vsel %vm45_vm0, %v12119_v4, 0.0 }
 0x5da   :  { %v4418_v56 = vadd.f32 %v4417_v18, %v4416_v29  ;;  %v4427_v29 = vsel %vm45_vm0, %v12091_v40, 0.0 }
 0x5de   :  { %v12131_v44 = vpop.f32.mrf.mxu3 }
 0x5df   :  { %14075 = vst [vmem:[#allocation34_spill] sm:$0xff] %v12131_v44 }
 0x5e0   :  { %v12127_v23 = vpop.f32.mrf.mxu2 }
 0x5e1   :  { %14074 = vst [vmem:[#allocation23_spill] sm:$0xff] %v12127_v23  ;;  %v4419_v41 = vsel %vm45_vm0, %v12127_v23, 0.0 }
 0x5e2   :  { %v4420_v35 = vadd.f32 %v4419_v41, %v4418_v56  ;;  %v4429_v56 = vsel %vm45_vm0, %v12099_v7, 0.0 }
 0x5e6   :  { %v12139_v24 = vpop.f32.mrf.mxu3 }
 0x5e7   :  { %14077 = vst [vmem:[#allocation63_spill] sm:$0xff] %v12139_v24 }
 0x5e8   :  { %v12135_v20 = vpop.f32.mrf.mxu2 }
 0x5e9   :  { %14076 = vst [vmem:[#allocation61_spill] sm:$0xff] %v12135_v20  ;;  %v4421_v59 = vsel %vm45_vm0, %v12135_v20, 0.0 }
 0x5ea   :  { %v4422_v11 = vadd.f32 %v4421_v59, %v4420_v35 }
 0x5ee   :  { %v12147_v34 = vpop.f32.mrf.mxu3 }
 0x5ef   :  { %14079 = vst [vmem:[#allocation46_spill] sm:$0xff] %v12147_v34 }
 0x5f0   :  { %v12143_v61 = vpop.f32.mrf.mxu2 }
 0x5f1   :  { %14078 = vst [vmem:[#allocation11_spill] sm:$0xff] %v12143_v61  ;;  %v4423_v53 = vsel %vm45_vm0, %v12143_v61, 0.0  ;;  %v4431_v61 = vsel %vm45_vm0, %v12107_v55, 0.0 }
 0x5f2   :  { %v4424_v19 = vadd.f32 %v4423_v53, %v4422_v11  ;;  %v4433_v11 = vsel %vm45_vm0, %v12115_v60, 0.0  ;;  %v4435_v53 = vsel %vm45_vm0, %v12123_v8, 0.0 }
 0x5f6   :  { %v12159_v30 = vpop.f32.mrf.mxu3 }
 0x5f7   :  { %14080 = vst [vmem:[#allocation22_spill] sm:$0xff] %v12159_v30 }
 0x5fe   :  { %v12165_v18 = vpop.f32.mrf.mxu3 }
 0x5ff   :  { %14081 = vst [vmem:[#allocation24_spill] sm:$0xff] %v12165_v18 }
 0x602   :  { %v12155_v46 = vpop.f32.mrf.mxu2 }
 0x603   :  { %v4425_v12 = vsel %vm45_vm0, %v12155_v46, 0.0 }
 0x604   :  { %v4426_v4 = vadd.f32 %v4425_v12, %v4424_v19  ;;  %v4437_v19 = vsel %vm45_vm0, %v12131_v44, 0.0 }
 0x606   :  { %v4428_v20 = vadd.f32 %v4427_v29, %v4426_v4  ;;  %v12171_v23 = vpop.f32.mrf.mxu3  ;;  %v4439_v29 = vsel %vm45_vm0, %v12139_v24, 0.0 }
 0x607   :  { %14082 = vst [vmem:[#allocation55_spill] sm:$0xff] %v12171_v23 }
 0x608   :  { %v4430_v41 = vadd.f32 %v4429_v56, %v4428_v20 }
 0x60a   :  { %v4432_v59 = vadd.f32 %v4431_v61, %v4430_v41  ;;  %v4441_v41 = vsel %vm45_vm0, %v12147_v34, 0.0 }
 0x60c   :  { %v4434_v35 = vadd.f32 %v4433_v11, %v4432_v59  ;;  %v4443_v11 = vsel %vm45_vm0, %v12159_v30, 0.0 }
 0x60e   :  { %v12177_v12 = vpop.f32.mrf.mxu3  ;;  %v4436_v4 = vadd.f32 %v4435_v53, %v4434_v35  ;;  %v4445_v35 = vsel %vm45_vm0, %v12165_v18, 0.0 }
 0x60f   :  { %14083 = vst [vmem:[#allocation76_spill] sm:$0xff] %v12177_v12 }
 0x610   :  { %v4438_v20 = vadd.f32 %v4437_v19, %v4436_v4  ;;  %v4447_v4 = vsel %vm45_vm0, %v12171_v23, 0.0 }
 0x612   :  { %v4440_v61 = vadd.f32 %v4439_v29, %v4438_v20  ;;  %v4449_v20 = vsel %vm45_vm0, %v12177_v12, 0.0 }
 0x614   :  { %v4442_v59 = vadd.f32 %v4441_v41, %v4440_v61 }
 0x616   :  { %v12183_v56 = vpop.f32.mrf.mxu3  ;;  %v4444_v8 = vadd.f32 %v4443_v11, %v4442_v59 }
 0x617   :  { %14084 = vst [vmem:[#allocation8_spill] sm:$0xff] %v12183_v56  ;;  %v4451_v61 = vsel %vm45_vm0, %v12183_v56, 0.0 }
 0x618   :  { %v4446_v53 = vadd.f32 %v4445_v35, %v4444_v8 }
 0x61a   :  { %v4448_v19 = vadd.f32 %v4447_v4, %v4446_v53 }
 0x61c   :  { %v4450_v29 = vadd.f32 %v4449_v20, %v4448_v19  ;;  %v8213_v20 = vmov 512.0  }
 0x61d   :  { %8162 = vrcp.f32 %v8213_v20 }
 0x61e   :  { %v12189_v60 = vpop.f32.mrf.mxu3  ;;  %v4452_v41 = vadd.f32 %v4451_v61, %v4450_v29 }
 0x61f   :  { %14085 = vst [vmem:[#allocation17_spill] sm:$0xff] %v12189_v60  ;;  %v4453_v11 = vsel %vm45_vm0, %v12189_v60, 0.0 }
 0x620   :  { %v4454_v35 = vadd.f32 %v4453_v11, %v4452_v41 }
 0x623   :  { %v8163_v56 = vpop.eup %8162 }
 0x624   :  { %v4468_v60 = vmul.f32 512.0, %v8163_v56  ;;  %vm4472_vm10 = vweird.f32 %v8163_v56 }
 0x626   :  { %v12195_v24 = vpop.f32.mrf.mxu3  ;;  %v4469_v34 = vsub.f32 1.0, %v4468_v60 }
 0x627   :  { %14086 = vst [vmem:[#allocation52_spill] sm:$0xff] %v12195_v24  ;;  %v4455_v8 = vsel %vm45_vm0, %v12195_v24, 0.0 }
 0x628   :  { %v4456_v4 = vadd.f32 %v4455_v8, %v4454_v35  ;;  %v4470_v41 = vmul.f32 %v8163_v56, %v4469_v34 }
 0x62a   :  { %v4471_v44 = vadd.f32 %v8163_v56, %v4470_v41 }
 0x62c   :  { %v12210_v35 = vsel %vm4472_vm10, %v8163_v56, %v4471_v44 }
 0x63a   :  { %v4328_v59 = vpop.f32.mrf.mxu3 }
 0x63b   :  { %v4457_v53 = vsel %vm45_vm0, %v4328_v59, 0.0 }
 0x63c   :  { %v4458_v23 = vadd.f32 %v4457_v53, %v4456_v4 }
 0x64b   :  { %v12206_v18 = vpop.f32.mrf.mxu3 }
 0x64c   :  { %v4459_v19 = vsel %vm45_vm0, %v12206_v18, 0.0 }
 0x64d   :  { %v4460_v29 = vadd.f32 %v4459_v19, %v4458_v23 }
 0x64f   :  { %v4461_v61 = vrot.slane %v4460_v29, 4 }
 0x651   :  { %v4462_v12 = vadd.f32 %v4461_v61, %v4460_v29 }
 0x653   :  { %v4463_v30 = vrot.slane %v4462_v12, 2 }
 0x655   :  { %v4464_v24 = vadd.f32 %v4463_v30, %v4462_v12 }
 0x657   :  { %v4465_v11 = vrot.slane %v4464_v24, 1 }
 0x659   :  { %v4466_v8 = vadd.f32 %v4465_v11, %v4464_v24 }
 0x65b   :  { %v12213_v53 = vmul.f32 %v12210_v35, %v4466_v8 }
 0x65d   :  { %v12216_v4 = vsub.f32 %v4328_v59, %v12213_v53  ;;  %v12220_v23 = vsub.f32 %v11645_v39, %v12213_v53  ;;  %v12224_v30 = vsub.f32 %v11662_v49, %v12213_v53  ;;  %v12228_v60 = vsub.f32 %v11678_v37, %v12213_v53 }
 0x65e   :  { %v12232_v44 = vsub.f32 %v11709_v9, %v12213_v53  ;;  %v12240_v39 = vsub.f32 %v11738_v5, %v12213_v53  ;;  %v12246_v37 = vsub.f32 %v11755_v25, %v12213_v53  ;;  %v12254_v19 = vsub.f32 %v11771_v36, %v12213_v53 }
 0x65f   :  { %14087 = vst [vmem:[#allocation65_spill] sm:$0xff] %v12216_v4  ;;  %v4539_v24 = vmul.f32 %v12220_v23, %v12220_v23  ;;  %v4540_v34 = vmul.f32 %v12224_v30, %v12224_v30  ;;  %v4541_v49 = vmul.f32 %v12228_v60, %v12228_v60  ;;  %v12261_v25 = vsub.f32 %v11800_v26, %v12213_v53 }
 0x660   :  { %v4542_v9 = vmul.f32 %v12232_v44, %v12232_v44  ;;  %v4543_v5 = vmul.f32 %v12240_v39, %v12240_v39  ;;  %v4544_v61 = vmul.f32 %v12246_v37, %v12246_v37  ;;  %v12268_v36 = vsub.f32 %v11827_v51, %v12213_v53 }
 0x661   :  { %v4603_v12 = vsel %vm45_vm0, %v4539_v24, 0.0  ;;  %v4604_v56 = vsel %vm45_vm0, %v4540_v34, 0.0  ;;  %v4606_v20 = vsel %vm45_vm0, %v4541_v49, 0.0  ;;  %v4545_v8 = vmul.f32 %v12254_v19, %v12254_v19 }
 0x662   :  { %v4605_v59 = vadd.f32 %v4604_v56, %v4603_v12  ;;  %v4608_v41 = vsel %vm45_vm0, %v4542_v9, 0.0  ;;  %v4610_v24 = vsel %vm45_vm0, %v4543_v5, 0.0  ;;  %v12275_v26 = vsub.f32 %v11844_v22, %v12213_v53 }
 0x663   :  { %v4546_v49 = vmul.f32 %v12261_v25, %v12261_v25  ;;  %v4612_v9 = vsel %vm45_vm0, %v4544_v61, 0.0  ;;  %v12282_v51 = vsub.f32 %v11858_v38, %v12213_v53  ;;  %v4547_v56 = vmul.f32 %v12268_v36, %v12268_v36 }
 0x664   :  { %v4607_v29 = vadd.f32 %v4606_v20, %v4605_v59  ;;  %14088 = vst [vmem:[#allocation16_spill] sm:$0xff] %v12275_v26  ;;  %v4614_v59 = vsel %vm45_vm0, %v4545_v8, 0.0  ;;  %v12289_v22 = vsub.f32 %v11883_v15, %v12213_v53  ;;  %v4548_v20 = vmul.f32 %v12275_v26, %v12275_v26 }
 0x665   :  { %14089 = vst [vmem:[#allocation53_spill] sm:$0xff] %v12282_v51  ;;  %v12296_v38 = vsub.f32 %v11896_v6, %v12213_v53  ;;  %v12303_v15 = vsub.f32 %v11901_v52, %v12213_v53  ;;  %v12310_v6 = vsub.f32 %v11903_v33, %v12213_v53  ;;  %v12317_v52 = vsub.f32 %v11920_v21, %v12213_v53 }
 0x666   :  { %v4609_v11 = vadd.f32 %v4608_v41, %v4607_v29  ;;  %14090 = vst [vmem:[#allocation38_spill] sm:$0xff] %v12289_v22  ;;  %v4616_v29 = vsel %vm45_vm0, %v4546_v49, 0.0  ;;  %v4549_v41 = vmul.f32 %v12282_v51, %v12282_v51  ;;  %v12324_v33 = vsub.f32 %v11932_v10, %v12213_v53 }
 0x667   :  { %14091 = vst [vmem:[#allocation75_spill] sm:$0xff] %v12296_v38  ;;  %v12331_v21 = vsub.f32 %v11946_v0, %v12213_v53  ;;  %v12338_v10 = vsub.f32 %v11956_v50, %v12213_v53  ;;  %v12345_v0 = vsub.f32 %v11980_v1, %v12213_v53  ;;  %v12352_v50 = vsub.f32 %v11996_v27, %v12213_v53 }
 0x668   :  { %v4611_v34 = vadd.f32 %v4610_v24, %v4609_v11  ;;  %v4618_v11 = vsel %vm45_vm0, %v4547_v56, 0.0  ;;  %14092 = vst [vmem:[#allocation14_spill] sm:$0xff] %v12303_v15  ;;  %v4550_v24 = vmul.f32 %v12289_v22, %v12289_v22  ;;  %v12359_v1 = vsub.f32 %v12016_v2, %v12213_v53 }
 0x669   :  { %14093 = vst [vmem:[#allocation26_spill] sm:$0xff] %v12310_v6  ;;  %v12366_v27 = vsub.f32 %v12033_v32, %v12213_v53  ;;  %v12373_v2 = vsub.f32 %v12054_v48, %v12213_v53  ;;  %v12380_v32 = vsub.f32 %v12023_v42, %v12213_v53  ;;  %v12387_v48 = vsub.f32 %v12040_v28, %v12213_v53 }
 0x66a   :  { %v4613_v12 = vadd.f32 %v4612_v9, %v4611_v34  ;;  %v4620_v34 = vsel %vm45_vm0, %v4548_v20, 0.0  ;;  %v4551_v9 = vmul.f32 %v12296_v38, %v12296_v38  ;;  %14094 = vst [vmem:[#allocation51_spill] sm:$0xff] %v12317_v52  ;;  %v12394_v42 = vsub.f32 %v12061_v13, %v12213_v53 }
 0x66b   :  { %14095 = vst [vmem:[#allocation64_spill] sm:$0xff] %v12324_v33  ;;  %v12401_v28 = vsub.f32 %v12074_v62, %v12213_v53  ;;  %v12408_v13 = vsub.f32 %v12087_v45, %v12213_v53  ;;  %v12415_v62 = vsub.f32 %v11937_v43, %v12213_v53  ;;  %v12422_v45 = vsub.f32 %v11949_v31, %v12213_v53 }
 0x66c   :  { %v4615_v5 = vadd.f32 %v4614_v59, %v4613_v12  ;;  %v4622_v12 = vsel %vm45_vm0, %v4549_v41, 0.0  ;;  %v4552_v59 = vmul.f32 %v12303_v15, %v12303_v15  ;;  %14096 = vst [vmem:[#allocation15_spill] sm:$0xff] %v12331_v21  ;;  %v12429_v43 = vsub.f32 %v11964_v47, %v12213_v53 }
 0x66d   :  { %14097 = vst [vmem:[#allocation48_spill] sm:$0xff] %v12338_v10  ;;  %v12436_v31 = vsub.f32 %v11985_v17, %v12213_v53  ;;  %v12443_v47 = vsub.f32 %v12002_v16, %v12213_v53  ;;  %v12450_v17 = vsub.f32 %v12021_v14, %v12213_v53  ;;  %v12457_v16 = vsub.f32 %v12038_v63, %v12213_v53 }
 0x66e   :  { %v4617_v61 = vadd.f32 %v4616_v29, %v4615_v5  ;;  %v4624_v5 = vsel %vm45_vm0, %v4550_v24, 0.0  ;;  %v4553_v29 = vmul.f32 %v12310_v6, %v12310_v6  ;;  %v12464_v14 = vsub.f32 %v12059_v3, %v12213_v53 }
 0x66f   :  { %v12471_v63 = vsub.f32 %v12072_v57, %v12213_v53  ;;  %v12478_v3 = vsub.f32 %v12085_v58, %v12213_v53  ;;  %v12485_v57 = vsub.f32 %v12095_v54, %v12213_v53 }
 0x670   :  { %v4619_v8 = vadd.f32 %v4618_v11, %v4617_v61  ;;  %v4626_v61 = vsel %vm45_vm0, %v4551_v9, 0.0  ;;  %v4554_v11 = vmul.f32 %v12317_v52, %v12317_v52 }
 0x672   :  { %v4621_v49 = vadd.f32 %v4620_v34, %v4619_v8  ;;  %v4628_v8 = vsel %vm45_vm0, %v4552_v59, 0.0  ;;  %v4555_v34 = vmul.f32 %v12324_v33, %v12324_v33 }
 0x674   :  { %v4623_v56 = vadd.f32 %v4622_v12, %v4621_v49  ;;  %v4630_v49 = vsel %vm45_vm0, %v4553_v29, 0.0  ;;  %v4556_v12 = vmul.f32 %v12331_v21, %v12331_v21 }
 0x676   :  { %v4625_v20 = vadd.f32 %v4624_v5, %v4623_v56  ;;  %v4632_v56 = vsel %vm45_vm0, %v4554_v11, 0.0  ;;  %v4557_v5 = vmul.f32 %v12338_v10, %v12338_v10 }
 0x678   :  { %v4627_v41 = vadd.f32 %v4626_v61, %v4625_v20  ;;  %v4634_v20 = vsel %vm45_vm0, %v4555_v34, 0.0  ;;  %v4558_v61 = vmul.f32 %v12345_v0, %v12345_v0 }
 0x67a   :  { %v4629_v24 = vadd.f32 %v4628_v8, %v4627_v41  ;;  %v4636_v41 = vsel %vm45_vm0, %v4556_v12, 0.0  ;;  %v4559_v8 = vmul.f32 %v12352_v50, %v12352_v50 }
 0x67c   :  { %v4631_v9 = vadd.f32 %v4630_v49, %v4629_v24  ;;  %v4638_v24 = vsel %vm45_vm0, %v4557_v5, 0.0  ;;  %v4560_v49 = vmul.f32 %v12359_v1, %v12359_v1 }
 0x67e   :  { %v4633_v59 = vadd.f32 %v4632_v56, %v4631_v9  ;;  %v4640_v9 = vsel %vm45_vm0, %v4558_v61, 0.0  ;;  %v4561_v56 = vmul.f32 %v12366_v27, %v12366_v27 }
 0x680   :  { %v4635_v29 = vadd.f32 %v4634_v20, %v4633_v59  ;;  %v4642_v59 = vsel %vm45_vm0, %v4559_v8, 0.0  ;;  %v4562_v20 = vmul.f32 %v12373_v2, %v12373_v2 }
 0x682   :  { %v4637_v11 = vadd.f32 %v4636_v41, %v4635_v29  ;;  %v4644_v29 = vsel %vm45_vm0, %v4560_v49, 0.0  ;;  %v4563_v41 = vmul.f32 %v12380_v32, %v12380_v32 }
 0x684   :  { %v4639_v34 = vadd.f32 %v4638_v24, %v4637_v11  ;;  %v4646_v11 = vsel %vm45_vm0, %v4561_v56, 0.0  ;;  %v4564_v24 = vmul.f32 %v12387_v48, %v12387_v48 }
 0x686   :  { %v4641_v12 = vadd.f32 %v4640_v9, %v4639_v34  ;;  %v4648_v34 = vsel %vm45_vm0, %v4562_v20, 0.0  ;;  %v4565_v9 = vmul.f32 %v12394_v42, %v12394_v42 }
 0x688   :  { %v4643_v5 = vadd.f32 %v4642_v59, %v4641_v12  ;;  %v4650_v12 = vsel %vm45_vm0, %v4563_v41, 0.0  ;;  %v4566_v59 = vmul.f32 %v12401_v28, %v12401_v28 }
 0x68a   :  { %v4645_v61 = vadd.f32 %v4644_v29, %v4643_v5  ;;  %v4652_v5 = vsel %vm45_vm0, %v4564_v24, 0.0  ;;  %v4567_v29 = vmul.f32 %v12408_v13, %v12408_v13 }
 0x68c   :  { %v4647_v8 = vadd.f32 %v4646_v11, %v4645_v61  ;;  %v4654_v61 = vsel %vm45_vm0, %v4565_v9, 0.0  ;;  %v4568_v11 = vmul.f32 %v12415_v62, %v12415_v62 }
 0x68e   :  { %v4649_v49 = vadd.f32 %v4648_v34, %v4647_v8  ;;  %v4656_v8 = vsel %vm45_vm0, %v4566_v59, 0.0  ;;  %v4569_v34 = vmul.f32 %v12422_v45, %v12422_v45 }
 0x690   :  { %v4651_v56 = vadd.f32 %v4650_v12, %v4649_v49  ;;  %v4658_v49 = vsel %vm45_vm0, %v4567_v29, 0.0  ;;  %v4570_v12 = vmul.f32 %v12429_v43, %v12429_v43 }
 0x692   :  { %v4653_v20 = vadd.f32 %v4652_v5, %v4651_v56  ;;  %v4660_v56 = vsel %vm45_vm0, %v4568_v11, 0.0  ;;  %v4571_v5 = vmul.f32 %v12436_v31, %v12436_v31 }
 0x694   :  { %v4655_v41 = vadd.f32 %v4654_v61, %v4653_v20  ;;  %v4662_v20 = vsel %vm45_vm0, %v4569_v34, 0.0  ;;  %v4572_v61 = vmul.f32 %v12443_v47, %v12443_v47 }
 0x696   :  { %v4657_v24 = vadd.f32 %v4656_v8, %v4655_v41  ;;  %v4664_v41 = vsel %vm45_vm0, %v4570_v12, 0.0  ;;  %v4573_v8 = vmul.f32 %v12450_v17, %v12450_v17 }
 0x698   :  { %v4659_v9 = vadd.f32 %v4658_v49, %v4657_v24  ;;  %v4666_v24 = vsel %vm45_vm0, %v4571_v5, 0.0  ;;  %v4574_v49 = vmul.f32 %v12457_v16, %v12457_v16 }
 0x69a   :  { %v4661_v59 = vadd.f32 %v4660_v56, %v4659_v9  ;;  %v4668_v9 = vsel %vm45_vm0, %v4572_v61, 0.0  ;;  %v4575_v56 = vmul.f32 %v12464_v14, %v12464_v14 }
 0x69c   :  { %v4663_v29 = vadd.f32 %v4662_v20, %v4661_v59  ;;  %v4670_v59 = vsel %vm45_vm0, %v4573_v8, 0.0  ;;  %v4576_v20 = vmul.f32 %v12471_v63, %v12471_v63  ;;  %v4674_v8 = vsel %vm45_vm0, %v4575_v56, 0.0 }
 0x69e   :  { %v4665_v11 = vadd.f32 %v4664_v41, %v4663_v29  ;;  %v4672_v29 = vsel %vm45_vm0, %v4574_v49, 0.0  ;;  %v14098_v41 = vld [vmem:[#allocation35_spill] sm:$0xff]  ;;  %v4676_v49 = vsel %vm45_vm0, %v4576_v20, 0.0 }
 0x69f   :  { %v12492_v58 = vsub.f32 %v14098_v41, %v12213_v53  ;;  %v14101_v41 = vld [vmem:[#allocation23_spill] sm:$0xff] }
 0x6a0   :  { %v4667_v34 = vadd.f32 %v4666_v24, %v4665_v11  ;;  %v4577_v11 = vmul.f32 %v12478_v3, %v12478_v3 }
 0x6a2   :  { %v4669_v12 = vadd.f32 %v4668_v9, %v4667_v34  ;;  %v14099_v34 = vld [vmem:[#allocation62_spill] sm:$0xff]  ;;  %v4578_v9 = vmul.f32 %v12485_v57, %v12485_v57  ;;  %v4678_v56 = vsel %vm45_vm0, %v4577_v11, 0.0 }
 0x6a3   :  { %v12499_v54 = vsub.f32 %v14099_v34, %v12213_v53 }
 0x6a4   :  { %v4671_v5 = vadd.f32 %v4670_v59, %v4669_v12  ;;  %v14100_v59 = vld [vmem:[#allocation12_spill] sm:$0xff]  ;;  %v4680_v20 = vsel %vm45_vm0, %v4578_v9, 0.0 }
 0x6a5   :  { %v4580_v34 = vmul.f32 %v12499_v54, %v12499_v54 }
 0x6a6   :  { %v4673_v61 = vadd.f32 %v4672_v29, %v4671_v5  ;;  %v12506_v5 = vsub.f32 %v14100_v59, %v12213_v53  ;;  %v4579_v29 = vmul.f32 %v12492_v58, %v12492_v58 }
 0x6a7   :  { %v4684_v9 = vsel %vm45_vm0, %v4580_v34, 0.0 }
 0x6a8   :  { %v4675_v24 = vadd.f32 %v4674_v8, %v4673_v61  ;;  %v12513_v8 = vsub.f32 %v14101_v41, %v12213_v53  ;;  %v4581_v10 = vmul.f32 %v12506_v5, %v12506_v5  ;;  %v4682_v11 = vsel %vm45_vm0, %v4579_v29, 0.0 }
 0x6aa   :  { %v4677_v12 = vadd.f32 %v4676_v49, %v4675_v24  ;;  %v14102_v49 = vld [vmem:[#allocation61_spill] sm:$0xff]  ;;  %v4582_v21 = vmul.f32 %v12513_v8, %v12513_v8  ;;  %v4686_v29 = vsel %vm45_vm0, %v4581_v10, 0.0 }
 0x6ab   :  { %v12520_v59 = vsub.f32 %v14102_v49, %v12213_v53 }
 0x6ac   :  { %v4679_v61 = vadd.f32 %v4678_v56, %v4677_v12  ;;  %v14103_v56 = vld [vmem:[#allocation11_spill] sm:$0xff]  ;;  %v4688_v34 = vsel %vm45_vm0, %v4582_v21, 0.0 }
 0x6ad   :  { %v12527_v41 = vsub.f32 %v14103_v56, %v12213_v53  ;;  %v4583_v49 = vmul.f32 %v12520_v59, %v12520_v59 }
 0x6ae   :  { %v4681_v24 = vadd.f32 %v4680_v20, %v4679_v61  ;;  %v12534_v20 = vsub.f32 %v12155_v46, %v12213_v53  ;;  %v12548_v46 = vsub.f32 %v12099_v7, %v12213_v53 }
 0x6af   :  { %v4584_v56 = vmul.f32 %v12527_v41, %v12527_v41  ;;  %v4690_v10 = vsel %vm45_vm0, %v4583_v49, 0.0 }
 0x6b0   :  { %v4683_v12 = vadd.f32 %v4682_v11, %v4681_v24  ;;  %v12541_v11 = vsub.f32 %v12091_v40, %v12213_v53  ;;  %v12555_v40 = vsub.f32 %v12107_v55, %v12213_v53  ;;  %v4587_v33 = vmul.f32 %v12548_v46, %v12548_v46 }
 0x6b1   :  { %v4692_v21 = vsel %vm45_vm0, %v4584_v56, 0.0 }
 0x6b2   :  { %v4685_v61 = vadd.f32 %v4684_v9, %v4683_v12  ;;  %v4585_v9 = vmul.f32 %v12534_v20, %v12534_v20  ;;  %v4588_v52 = vmul.f32 %v12555_v40, %v12555_v40 }
 0x6b4   :  { %v4687_v24 = vadd.f32 %v4686_v29, %v4685_v61  ;;  %v4586_v29 = vmul.f32 %v12541_v11, %v12541_v11  ;;  %v4694_v49 = vsel %vm45_vm0, %v4585_v9, 0.0  ;;  %v4698_v9 = vsel %vm45_vm0, %v4587_v33, 0.0 }
 0x6b6   :  { %v4689_v12 = vadd.f32 %v4688_v34, %v4687_v24  ;;  %v14104_v34 = vld [vmem:[#allocation73_spill] sm:$0xff]  ;;  %v4696_v56 = vsel %vm45_vm0, %v4586_v29, 0.0  ;;  %v4700_v29 = vsel %vm45_vm0, %v4588_v52, 0.0 }
 0x6b7   :  { %v12562_v7 = vsub.f32 %v14104_v34, %v12213_v53 }
 0x6b8   :  { %v4691_v61 = vadd.f32 %v4690_v10, %v4689_v12  ;;  %v14105_v10 = vld [vmem:[#allocation50_spill] sm:$0xff] }
 0x6b9   :  { %v12569_v55 = vsub.f32 %v14105_v10, %v12213_v53  ;;  %v4589_v6 = vmul.f32 %v12562_v7, %v12562_v7 }
 0x6ba   :  { %v4693_v24 = vadd.f32 %v4692_v21, %v4691_v61  ;;  %v14106_v21 = vld [vmem:[#allocation34_spill] sm:$0xff] }
 0x6bb   :  { %v12576_v34 = vsub.f32 %v14106_v21, %v12213_v53  ;;  %v4590_v15 = vmul.f32 %v12569_v55, %v12569_v55  ;;  %v4702_v33 = vsel %vm45_vm0, %v4589_v6, 0.0 }
 0x6bc   :  { %v4695_v12 = vadd.f32 %v4694_v49, %v4693_v24  ;;  %v14108_v49 = vld [vmem:[#allocation63_spill] sm:$0xff] }
 0x6bd   :  { %14107 = vst [vmem:[#allocation37_spill] sm:$0xff] %v12576_v34  ;;  %v12583_v10 = vsub.f32 %v14108_v49, %v12213_v53  ;;  %v4591_v38 = vmul.f32 %v12576_v34, %v12576_v34  ;;  %v4704_v52 = vsel %vm45_vm0, %v4590_v15, 0.0 }
 0x6be   :  { %v4697_v61 = vadd.f32 %v4696_v56, %v4695_v12  ;;  %v14110_v56 = vld [vmem:[#allocation46_spill] sm:$0xff] }
 0x6bf   :  { %14109 = vst [vmem:[#allocation66_spill] sm:$0xff] %v12583_v10  ;;  %v12590_v21 = vsub.f32 %v14110_v56, %v12213_v53  ;;  %v4592_v22 = vmul.f32 %v12583_v10, %v12583_v10  ;;  %v4706_v6 = vsel %vm45_vm0, %v4591_v38, 0.0 }
 0x6c0   :  { %v4699_v24 = vadd.f32 %v4698_v9, %v4697_v61  ;;  %v14112_v9 = vld [vmem:[#allocation22_spill] sm:$0xff] }
 0x6c1   :  { %14111 = vst [vmem:[#allocation13_spill] sm:$0xff] %v12590_v21  ;;  %v12597_v49 = vsub.f32 %v14112_v9, %v12213_v53  ;;  %v4593_v51 = vmul.f32 %v12590_v21, %v12590_v21  ;;  %v4708_v15 = vsel %vm45_vm0, %v4592_v22, 0.0 }
 0x6c2   :  { %v4701_v12 = vadd.f32 %v4700_v29, %v4699_v24  ;;  %v14114_v29 = vld [vmem:[#allocation24_spill] sm:$0xff] }
 0x6c3   :  { %14113 = vst [vmem:[#allocation47_spill] sm:$0xff] %v12597_v49  ;;  %v12604_v56 = vsub.f32 %v14114_v29, %v12213_v53  ;;  %v4594_v26 = vmul.f32 %v12597_v49, %v12597_v49  ;;  %v4710_v38 = vsel %vm45_vm0, %v4593_v51, 0.0 }
 0x6c4   :  { %v4703_v61 = vadd.f32 %v4702_v33, %v4701_v12  ;;  %v14116_v33 = vld [vmem:[#allocation55_spill] sm:$0xff] }
 0x6c5   :  { %14115 = vst [vmem:[#allocation25_spill] sm:$0xff] %v12604_v56  ;;  %v12611_v9 = vsub.f32 %v14116_v33, %v12213_v53  ;;  %v4595_v21 = vmul.f32 %v12604_v56, %v12604_v56  ;;  %v4712_v22 = vsel %vm45_vm0, %v4594_v26, 0.0 }
 0x6c6   :  { %v4705_v24 = vadd.f32 %v4704_v52, %v4703_v61  ;;  %v14118_v52 = vld [vmem:[#allocation76_spill] sm:$0xff] }
 0x6c7   :  { %14117 = vst [vmem:[#allocation58_spill] sm:$0xff] %v12611_v9  ;;  %v12618_v29 = vsub.f32 %v14118_v52, %v12213_v53  ;;  %v4596_v49 = vmul.f32 %v12611_v9, %v12611_v9  ;;  %v4714_v51 = vsel %vm45_vm0, %v4595_v21, 0.0  ;;  %v4538_v21 = vsub.f32 %v12206_v18, %v12213_v53 }
 0x6c8   :  { %v4707_v12 = vadd.f32 %v4706_v6, %v4705_v24  ;;  %v14120_v6 = vld [vmem:[#allocation8_spill] sm:$0xff] }
 0x6c9   :  { %14119 = vst [vmem:[#allocation10_spill] sm:$0xff] %v12618_v29  ;;  %v12625_v33 = vsub.f32 %v14120_v6, %v12213_v53  ;;  %v4597_v56 = vmul.f32 %v12618_v29, %v12618_v29  ;;  %v4716_v26 = vsel %vm45_vm0, %v4596_v49, 0.0 }
 0x6ca   :  { %v4709_v61 = vadd.f32 %v4708_v15, %v4707_v12  ;;  %v14122_v15 = vld [vmem:[#allocation17_spill] sm:$0xff] }
 0x6cb   :  { %14121 = vst [vmem:[#allocation57_spill] sm:$0xff] %v12625_v33  ;;  %v12632_v52 = vsub.f32 %v14122_v15, %v12213_v53  ;;  %v4598_v9 = vmul.f32 %v12625_v33, %v12625_v33  ;;  %v4718_v15 = vsel %vm45_vm0, %v4597_v56, 0.0  ;;  %v4601_v33 = vmul.f32 %v12216_v4, %v12216_v4 }
 0x6cc   :  { %v4711_v24 = vadd.f32 %v4710_v38, %v4709_v61  ;;  %v14124_v38 = vld [vmem:[#allocation52_spill] sm:$0xff] }
 0x6cd   :  { %14123 = vst [vmem:[#allocation27_spill] sm:$0xff] %v12632_v52  ;;  %v12639_v6 = vsub.f32 %v14124_v38, %v12213_v53 }
 0x6ce   :  { %v4713_v12 = vadd.f32 %v4712_v22, %v4711_v24  ;;  %v4599_v22 = vmul.f32 %v12632_v52, %v12632_v52 }
 0x6cf   :  { %14125 = vst [vmem:[#allocation78_spill] sm:$0xff] %v12639_v6 }
 0x6d0   :  { %v4715_v61 = vadd.f32 %v4714_v51, %v4713_v12  ;;  %v4600_v12 = vmul.f32 %v12639_v6, %v12639_v6  ;;  %v4720_v51 = vsel %vm45_vm0, %v4598_v9, 0.0  ;;  %v4722_v49 = vsel %vm45_vm0, %v4599_v22, 0.0 }
 0x6d2   :  { %v4717_v24 = vadd.f32 %v4716_v26, %v4715_v61  ;;  %v4602_v26 = vmul.f32 %v4538_v21, %v4538_v21  ;;  %v4724_v52 = vsel %vm45_vm0, %v4600_v12, 0.0 }
 0x6d4   :  { %v4719_v10 = vadd.f32 %v4718_v15, %v4717_v24  ;;  %v4726_v24 = vsel %vm45_vm0, %v4601_v33, 0.0  ;;  %v4728_v18 = vsel %vm45_vm0, %v4602_v26, 0.0 }
 0x6d6   :  { %v4721_v38 = vadd.f32 %v4720_v51, %v4719_v10 }
 0x6d8   :  { %v4723_v61 = vadd.f32 %v4722_v49, %v4721_v38  ;;  %v5141_v38 = vld [vmem:[#allocation2 + $0x2] ss:$2 sm:$0xff] }
 0x6d9   :  { %5443 = vrot.lane.b32.xlu0 %v5141_v38, %s8205_s30  ;;  %v14130_v38 = vld [vmem:[#allocation37_spill] sm:$0xff] }
 0x6da   :  { %v4725_v56 = vadd.f32 %v4724_v52, %v4723_v61 }
 0x6dc   :  { %v4727_v15 = vadd.f32 %v4726_v24, %v4725_v56 }
 0x6de   :  { %v4729_v53 = vadd.f32 %v4728_v18, %v4727_v15 }
 0x6e0   :  { %v4730_v6 = vrot.slane %v4729_v53, 4 }
 0x6e2   :  { %v4731_v29 = vadd.f32 %v4730_v6, %v4729_v53  ;;  %v5109_v6 = vld [vmem:[#allocation2 + $0x1] ss:$2 sm:$0xff] }
 0x6e3   :  { %5379 = vrot.lane.b32.xlu2 %v5109_v6, %s14127_s1 }
 0x6e4   :  { %v4732_v9 = vrot.slane %v4731_v29, 2 }
 0x6e6   :  { %v4733_v10 = vadd.f32 %v4732_v9, %v4731_v29  ;;  %v12663_v29 = vld [vmem:[%s13862_s2] ss:$0 sm:$0xff] }
 0x6e8   :  { %v4734_v51 = vrot.slane %v4733_v10, 1 }
 0x6ea   :  { %v4735_v34 = vadd.f32 %v4734_v51, %v4733_v10 }
 0x6ec   :  { %v4736_v4 = vmul.f32 %v4735_v34, %v12210_v35 }
 0x6ee   :  { %v4737_v22 = vadd.f32 1e-05, %v4736_v4  ;;  %v12670_v4 = vld [vmem:[%s13863_s3] ss:$0 sm:$0xff] }
 0x6ef   :  { %14126 = vst [vmem:[#allocation9_spill] sm:$0xff] %v12670_v4 }
 0x6f0   :  { %8164 = vrsqrt.f32 %v4737_v22  ;;  %vm4744_vm12 = vweird.f32 %v4737_v22 }
 0x6f6   :  { %v8165_v52 = vpop.eup %8164 }
 0x6f7   :  { %v4739_v12 = vmul.f32 %v8165_v52, %v4737_v22  ;;  %vm4745_vm11 = vweird.f32 %v8165_v52 }
 0x6f8   :  { %vm4746_vm13 = vmor %vm4744_vm12, %vm4745_vm11 }
 0x6f9   :  { %v4740_v33 = vmul.f32 %v8165_v52, %v4739_v12  ;;  %v14132_v12 = vld [vmem:[#allocation13_spill] sm:$0xff] }
 0x6fb   :  { %v4741_v49 = vmul.f32 0.5, %v4740_v33  ;;  %v14133_v33 = vld [vmem:[#allocation47_spill] sm:$0xff] }
 0x6fd   :  { %v4742_v61 = vsub.f32 1.5, %v4741_v49  ;;  %v14134_v49 = vld [vmem:[#allocation25_spill] sm:$0xff] }
 0x6ff   :  { %v4743_v26 = vmul.f32 %v8165_v52, %v4742_v61  ;;  %v14135_v61 = vld [vmem:[#allocation58_spill] sm:$0xff] }
 0x701   :  { %v12665_v35 = vsel %vm4746_vm13, %v8165_v52, %v4743_v26  ;;  %v14131_v52 = vld [vmem:[#allocation66_spill] sm:$0xff]  ;;  %vm6666_vm13 = vcmask 254976  }
 0x702   :  { %v4811_v34 = vmul.f32 %v12665_v35, %v4538_v21  ;;  %v4748_v18 = vmul.f32 %v12665_v35, %v12220_v23  ;;  %v4749_v53 = vmul.f32 %v12665_v35, %v12224_v30  ;;  %v4750_v9 = vmul.f32 %v12665_v35, %v12228_v60  ;;  %v14136_v26 = vld [vmem:[#allocation10_spill] sm:$0xff] }
 0x703   :  { %v4751_v21 = vmul.f32 %v12665_v35, %v12232_v44  ;;  %v12687_v10 = vmul.f32 %v12665_v35, %v12240_v39  ;;  %v12691_v51 = vmul.f32 %v12665_v35, %v12246_v37  ;;  %v12695_v23 = vmul.f32 %v12665_v35, %v12254_v19 }
 0x704   :  { %v4879_v56 = vmul.f32 %v12663_v29, %v4811_v34  ;;  %v12699_v30 = vmul.f32 %v12665_v35, %v12261_v25  ;;  %v12703_v60 = vmul.f32 %v12665_v35, %v12268_v36  ;;  %v4767_v44 = vmul.f32 %v12665_v35, %v12345_v0  ;;  %v14137_v34 = vld [vmem:[#allocation57_spill] sm:$0xff] }
 0x705   :  { %v4768_v39 = vmul.f32 %v12665_v35, %v12352_v50  ;;  %v4769_v37 = vmul.f32 %v12665_v35, %v12359_v1  ;;  %v4770_v19 = vmul.f32 %v12665_v35, %v12366_v27  ;;  %v4771_v25 = vmul.f32 %v12665_v35, %v12373_v2 }
 0x706   :  { %v4947_v24 = vadd.f32 %v12670_v4, %v4879_v56  ;;  %14128 = vst [vmem:[#allocation54_spill] sm:$0xff] %v12699_v30  ;;  %v4772_v22 = vmul.f32 %v12665_v35, %v12380_v32  ;;  %v4773_v36 = vmul.f32 %v12665_v35, %v12387_v48  ;;  %v4774_v0 = vmul.f32 %v12665_v35, %v12394_v42  ;;  %v14138_v56 = vld [vmem:[#allocation27_spill] sm:$0xff] }
 0x707   :  { %14129 = vst [vmem:[#allocation20_spill] sm:$0xff] %v12703_v60  ;;  %v4775_v50 = vmul.f32 %v12665_v35, %v12401_v28  ;;  %v4776_v1 = vmul.f32 %v12665_v35, %v12408_v13  ;;  %v4777_v27 = vmul.f32 %v12665_v35, %v12415_v62  ;;  %v4778_v2 = vmul.f32 %v12665_v35, %v12422_v45  ;;  %v14146_v30 = vld [vmem:[#allocation75_spill] sm:$0xff] }
 0x708   :  { %v5011_v15 = vmax.f32 %v4947_v24, 0.0  ;;  %v4779_v32 = vmul.f32 %v12665_v35, %v12429_v43  ;;  %v4780_v48 = vmul.f32 %v12665_v35, %v12436_v31  ;;  %v4781_v42 = vmul.f32 %v12665_v35, %v12443_v47 }
 0x709   :  { %v4782_v28 = vmul.f32 %v12665_v35, %v12450_v17  ;;  %v4783_v13 = vmul.f32 %v12665_v35, %v12457_v16  ;;  %v4784_v62 = vmul.f32 %v12665_v35, %v12464_v14  ;;  %v4785_v45 = vmul.f32 %v12665_v35, %v12471_v63 }
 0x70a   :  { %5076 = vst.msk [vmem:[#allocation2 + $0x339] sm:$0xff] %vm45_vm0, %v5011_v15  ;;  %v4786_v43 = vmul.f32 %v12665_v35, %v12478_v3  ;;  %v4787_v31 = vmul.f32 %v12665_v35, %v12485_v57  ;;  %v4788_v47 = vmul.f32 %v12665_v35, %v12492_v58  ;;  %v4789_v17 = vmul.f32 %v12665_v35, %v12499_v54  ;;  %v14139_v15 = vld [vmem:[#allocation78_spill] sm:$0xff] }
 0x70b   :  { %v4790_v16 = vmul.f32 %v12665_v35, %v12506_v5  ;;  %v4791_v14 = vmul.f32 %v12665_v35, %v12513_v8  ;;  %v4792_v63 = vmul.f32 %v12665_v35, %v12520_v59  ;;  %v4793_v3 = vmul.f32 %v12665_v35, %v12527_v41 }
 0x70c   :  { %v4794_v57 = vmul.f32 %v12665_v35, %v12534_v20  ;;  %v4795_v58 = vmul.f32 %v12665_v35, %v12541_v11  ;;  %v4796_v54 = vmul.f32 %v12665_v35, %v12548_v46  ;;  %v4797_v5 = vmul.f32 %v12665_v35, %v12555_v40 }
 0x70d   :  { %v4798_v8 = vmul.f32 %v12665_v35, %v12562_v7  ;;  %v4799_v59 = vmul.f32 %v12665_v35, %v12569_v55  ;;  %v4800_v41 = vmul.f32 %v12665_v35, %v14130_v38  ;;  %v4801_v20 = vmul.f32 %v12665_v35, %v14131_v52  ;;  %v14140_v52 = vld [vmem:[#allocation65_spill] sm:$0xff] }
 0x70e   :  { %v4802_v11 = vmul.f32 %v12665_v35, %v14132_v12  ;;  %v4803_v46 = vmul.f32 %v12665_v35, %v14133_v33  ;;  %v4804_v40 = vmul.f32 %v12665_v35, %v14134_v49  ;;  %v4805_v7 = vmul.f32 %v12665_v35, %v14135_v61 }
 0x70f   :  { %v4806_v55 = vmul.f32 %v12665_v35, %v14136_v26  ;;  %v4807_v6 = vmul.f32 %v12665_v35, %v14137_v34  ;;  %v4808_v24 = vmul.f32 %v12665_v35, %v14138_v56  ;;  %v4809_v38 = vmul.f32 %v12665_v35, %v14139_v15 }
 0x710   :  { %v4810_v12 = vmul.f32 %v12665_v35, %v14140_v52  ;;  %v4816_v33 = vmul.f32 %v12663_v29, %v4748_v18  ;;  %v4817_v49 = vmul.f32 %v12663_v29, %v4749_v53  ;;  %v4818_v61 = vmul.f32 %v12663_v29, %v4750_v9 }
 0x711   :  { %v4819_v26 = vmul.f32 %v12663_v29, %v4751_v21  ;;  %v4835_v4 = vmul.f32 %v12663_v29, %v4767_v44  ;;  %v4836_v34 = vmul.f32 %v12663_v29, %v4768_v39  ;;  %v4837_v56 = vmul.f32 %v12663_v29, %v4769_v37 }
 0x712   :  { %v4838_v60 = vmul.f32 %v12663_v29, %v4770_v19  ;;  %v4839_v15 = vmul.f32 %v12663_v29, %v4771_v25  ;;  %v4840_v52 = vmul.f32 %v12663_v29, %v4772_v22  ;;  %v4841_v18 = vmul.f32 %v12663_v29, %v4773_v36 }
 0x713   :  { %v4842_v53 = vmul.f32 %v12663_v29, %v4774_v0  ;;  %v4843_v9 = vmul.f32 %v12663_v29, %v4775_v50  ;;  %v4844_v21 = vmul.f32 %v12663_v29, %v4776_v1  ;;  %v4845_v44 = vmul.f32 %v12663_v29, %v4777_v27 }
 0x714   :  { %v4846_v39 = vmul.f32 %v12663_v29, %v4778_v2  ;;  %v4847_v37 = vmul.f32 %v12663_v29, %v4779_v32  ;;  %v4848_v19 = vmul.f32 %v12663_v29, %v4780_v48  ;;  %v4849_v25 = vmul.f32 %v12663_v29, %v4781_v42 }
 0x715   :  { %v4850_v22 = vmul.f32 %v12663_v29, %v4782_v28  ;;  %v4851_v36 = vmul.f32 %v12663_v29, %v4783_v13  ;;  %v4852_v0 = vmul.f32 %v12663_v29, %v4784_v62  ;;  %v4853_v50 = vmul.f32 %v12663_v29, %v4785_v45 }
 0x716   :  { %v4854_v1 = vmul.f32 %v12663_v29, %v4786_v43  ;;  %v4855_v27 = vmul.f32 %v12663_v29, %v4787_v31  ;;  %v4856_v2 = vmul.f32 %v12663_v29, %v4788_v47  ;;  %v4857_v32 = vmul.f32 %v12663_v29, %v4789_v17 }
 0x717   :  { %v4858_v48 = vmul.f32 %v12663_v29, %v4790_v16  ;;  %v4859_v42 = vmul.f32 %v12663_v29, %v4791_v14  ;;  %v4860_v28 = vmul.f32 %v12663_v29, %v4792_v63  ;;  %v4861_v13 = vmul.f32 %v12663_v29, %v4793_v3 }
 0x718   :  { %v4862_v62 = vmul.f32 %v12663_v29, %v4794_v57  ;;  %v4863_v45 = vmul.f32 %v12663_v29, %v4795_v58  ;;  %v4864_v43 = vmul.f32 %v12663_v29, %v4796_v54  ;;  %v4865_v31 = vmul.f32 %v12663_v29, %v4797_v5 }
 0x719   :  { %v4866_v47 = vmul.f32 %v12663_v29, %v4798_v8  ;;  %v4867_v17 = vmul.f32 %v12663_v29, %v4799_v59  ;;  %v4868_v16 = vmul.f32 %v12663_v29, %v4800_v41  ;;  %v4869_v14 = vmul.f32 %v12663_v29, %v4801_v20 }
 0x71a   :  { %v4870_v63 = vmul.f32 %v12663_v29, %v4802_v11  ;;  %v4871_v3 = vmul.f32 %v12663_v29, %v4803_v46  ;;  %v4872_v57 = vmul.f32 %v12663_v29, %v4804_v40  ;;  %v4873_v58 = vmul.f32 %v12663_v29, %v4805_v7  ;;  %v14141_v40 = vld [vmem:[#allocation16_spill] sm:$0xff] }
 0x71b   :  { %v4874_v54 = vmul.f32 %v12663_v29, %v4806_v55  ;;  %v4875_v5 = vmul.f32 %v12663_v29, %v4807_v6  ;;  %v4876_v8 = vmul.f32 %v12663_v29, %v4808_v24  ;;  %v4820_v59 = vmul.f32 %v12663_v29, %v12687_v10  ;;  %v14142_v55 = vld [vmem:[#allocation53_spill] sm:$0xff]  ;;  %v14144_v24 = vld [vmem:[#allocation38_spill] sm:$0xff] }
 0x71c   :  { %v4821_v41 = vmul.f32 %v12663_v29, %v12691_v51  ;;  %v4877_v20 = vmul.f32 %v12663_v29, %v4809_v38  ;;  %v4878_v11 = vmul.f32 %v12663_v29, %v4810_v12  ;;  %v4822_v46 = vmul.f32 %v12663_v29, %v12695_v23  ;;  %v14148_v38 = vld [vmem:[#allocation54_spill] sm:$0xff]  ;;  %v14149_v23 = vld [vmem:[#allocation20_spill] sm:$0xff] }
 0x71d   :  { %v4757_v7 = vmul.f32 %v12665_v35, %v14141_v40  ;;  %v12851_v6 = vmul.f32 %v12665_v35, %v14142_v55  ;;  %v12855_v10 = vmul.f32 %v12665_v35, %v14144_v24  ;;  %v12859_v51 = vmul.f32 %v12665_v35, %v14146_v30  ;;  %v14150_v55 = vld [vmem:[#allocation9_spill] sm:$0xff] }
 0x71e   :  { %v4823_v12 = vmul.f32 %v12663_v29, %v14148_v38  ;;  %v12865_v40 = vmul.f32 %v12663_v29, %v14149_v23  ;;  %v12869_v24 = vadd.f32 %v14150_v55, %v4817_v49  ;;  %v12875_v30 = vadd.f32 %v14150_v55, %v4819_v26 }
 0x71f   :  { %14143 = vst [vmem:[#allocation68_spill] sm:$0xff] %v12851_v6  ;;  %v4884_v6 = vadd.f32 %v14150_v55, %v4816_v33  ;;  %v12881_v38 = vadd.f32 %v14150_v55, %v4821_v41  ;;  %v12884_v23 = vadd.f32 %v14150_v55, %v4822_v46  ;;  %v12887_v33 = vadd.f32 %v14150_v55, %v4835_v4 }
 0x720   :  { %14145 = vst [vmem:[#allocation19_spill] sm:$0xff] %v12855_v10  ;;  %v12872_v10 = vadd.f32 %v14150_v55, %v4818_v61  ;;  %v12890_v49 = vadd.f32 %v14150_v55, %v4836_v34  ;;  %v12893_v61 = vadd.f32 %v14150_v55, %v4837_v56  ;;  %v12896_v26 = vadd.f32 %v14150_v55, %v4838_v60 }
 0x721   :  { %14147 = vst [vmem:[#allocation56_spill] sm:$0xff] %v12859_v51  ;;  %v12878_v51 = vadd.f32 %v14150_v55, %v4820_v59  ;;  %v12899_v59 = vadd.f32 %v14150_v55, %v4839_v15  ;;  %v12902_v41 = vadd.f32 %v14150_v55, %v4840_v52  ;;  %v12905_v46 = vadd.f32 %v14150_v55, %v4841_v18 }
 0x722   :  { %v12908_v4 = vadd.f32 %v14150_v55, %v4842_v53  ;;  %v12911_v34 = vadd.f32 %v14150_v55, %v4843_v9  ;;  %v12914_v56 = vadd.f32 %v14150_v55, %v4844_v21  ;;  %v12917_v60 = vadd.f32 %v14150_v55, %v4845_v44 }
 0x723   :  { %v12920_v15 = vadd.f32 %v14150_v55, %v4846_v39  ;;  %v12923_v52 = vadd.f32 %v14150_v55, %v4847_v37  ;;  %v12926_v18 = vadd.f32 %v14150_v55, %v4848_v19  ;;  %v12929_v53 = vadd.f32 %v14150_v55, %v4849_v25 }
 0x724   :  { %v12932_v9 = vadd.f32 %v14150_v55, %v4850_v22  ;;  %v12935_v21 = vadd.f32 %v14150_v55, %v4851_v36  ;;  %v12938_v44 = vadd.f32 %v14150_v55, %v4852_v0  ;;  %v12941_v39 = vadd.f32 %v14150_v55, %v4853_v50 }
 0x725   :  { %v12944_v37 = vadd.f32 %v14150_v55, %v4854_v1  ;;  %v12947_v19 = vadd.f32 %v14150_v55, %v4855_v27  ;;  %v12950_v25 = vadd.f32 %v14150_v55, %v4856_v2  ;;  %v12953_v22 = vadd.f32 %v14150_v55, %v4857_v32 }
 0x726   :  { %v12956_v36 = vadd.f32 %v14150_v55, %v4858_v48  ;;  %v12959_v0 = vadd.f32 %v14150_v55, %v4859_v42  ;;  %v12962_v50 = vadd.f32 %v14150_v55, %v4860_v28  ;;  %v12965_v1 = vadd.f32 %v14150_v55, %v4861_v13 }
 0x727   :  { %v12968_v27 = vadd.f32 %v14150_v55, %v4862_v62  ;;  %v12971_v2 = vadd.f32 %v14150_v55, %v4863_v45  ;;  %v12974_v32 = vadd.f32 %v14150_v55, %v4864_v43  ;;  %v12977_v48 = vadd.f32 %v14150_v55, %v4865_v31 }
 0x728   :  { %v12980_v42 = vadd.f32 %v14150_v55, %v4866_v47  ;;  %v12983_v28 = vadd.f32 %v14150_v55, %v4867_v17  ;;  %v12986_v13 = vadd.f32 %v14150_v55, %v4868_v16  ;;  %v12989_v62 = vadd.f32 %v14150_v55, %v4869_v14 }
 0x729   :  { %v12992_v45 = vadd.f32 %v14150_v55, %v4870_v63  ;;  %v12995_v43 = vadd.f32 %v14150_v55, %v4871_v3  ;;  %v12998_v31 = vadd.f32 %v14150_v55, %v4872_v57  ;;  %v13001_v47 = vadd.f32 %v14150_v55, %v4873_v58 }
 0x72a   :  { %v13004_v17 = vadd.f32 %v14150_v55, %v4874_v54  ;;  %v13007_v16 = vadd.f32 %v14150_v55, %v4875_v5  ;;  %v13010_v14 = vadd.f32 %v14150_v55, %v4876_v8  ;;  %v13013_v63 = vadd.f32 %v14150_v55, %v4877_v20 }
 0x72b   :  { %14151 = vst [vmem:[#allocation40_spill] sm:$0xff] %v12995_v43  ;;  %v13016_v3 = vadd.f32 %v14150_v55, %v4878_v11  ;;  %v4948_v57 = vmax.f32 %v4884_v6, 0.0  ;;  %v4950_v58 = vmax.f32 %v12872_v10, 0.0  ;;  %v4825_v5 = vmul.f32 %v12663_v29, %v4757_v7  ;;  %v14162_v10 = vld [vmem:[#allocation51_spill] sm:$0xff] }
 0x72c   :  { %14152 = vst [vmem:[#allocation77_spill] sm:$0xff] %v12998_v31  ;;  %v4949_v31 = vmax.f32 %v12869_v24, 0.0  ;;  %v4951_v8 = vmax.f32 %v12875_v30, 0.0  ;;  %v4952_v6 = vmax.f32 %v12878_v51, 0.0  ;;  %v4763_v24 = vmul.f32 %v12665_v35, %v14162_v10  ;;  %v14164_v30 = vld [vmem:[#allocation64_spill] sm:$0xff]  ;;  %v14166_v10 = vld [vmem:[#allocation15_spill] sm:$0xff] }
 0x72d   :  { %14153 = vst [vmem:[#allocation29_spill] sm:$0xff] %v13001_v47  ;;  %v14159_v47 = vld [vmem:[#allocation14_spill] sm:$0xff]  ;;  %v4954_v51 = vmax.f32 %v12884_v23, 0.0 }
 0x72e   :  { %14154 = vst [vmem:[#allocation67_spill] sm:$0xff] %v13004_v17  ;;  %v4761_v54 = vmul.f32 %v12665_v35, %v14159_v47  ;;  %v14163_v47 = vld [vmem:[#allocation19_spill] sm:$0xff]  ;;  %v4831_v23 = vmul.f32 %v12663_v29, %v4763_v24 }
 0x72f   :  { %14155 = vst [vmem:[#allocation18_spill] sm:$0xff] %v13007_v16  ;;  %v4891_v16 = vadd.f32 %v14150_v55, %v4823_v12  ;;  %v4827_v7 = vmul.f32 %v12663_v29, %v14163_v47  ;;  %v4953_v12 = vmax.f32 %v12881_v38, 0.0  ;;  %v4765_v47 = vmul.f32 %v12665_v35, %v14166_v10 }
 0x730   :  { %14156 = vst [vmem:[#allocation39_spill] sm:$0xff] %v13010_v14  ;;  %v14160_v14 = vld [vmem:[#allocation26_spill] sm:$0xff]  ;;  %v4893_v38 = vadd.f32 %v14150_v55, %v4825_v5 }
 0x731   :  { %14157 = vst [vmem:[#allocation49_spill] sm:$0xff] %v13013_v63  ;;  %v4762_v20 = vmul.f32 %v12665_v35, %v14160_v14  ;;  %v14161_v63 = vld [vmem:[#allocation68_spill] sm:$0xff]  ;;  %v4764_v14 = vmul.f32 %v12665_v35, %v14164_v30  ;;  %v4955_v17 = vmax.f32 %v4891_v16, 0.0 }
 0x732   :  { %14158 = vst [vmem:[#allocation69_spill] sm:$0xff] %v13016_v3  ;;  %v4826_v11 = vmul.f32 %v12663_v29, %v14161_v63  ;;  %v14165_v3 = vld [vmem:[#allocation56_spill] sm:$0xff] }
 0x733   :  { %5013 = vst.msk [vmem:[#allocation2 + $0x19] sm:$0xff] %vm45_vm0, %v4948_v57  ;;  %v4828_v63 = vmul.f32 %v12663_v29, %v14165_v3  ;;  %v4892_v57 = vadd.f32 %v14150_v55, %v12865_v40  ;;  %v14167_v30 = vld [vmem:[#allocation48_spill] sm:$0xff]  ;;  %v4830_v43 = vmul.f32 %v12663_v29, %v4762_v20  ;;  %v4957_v20 = vmax.f32 %v4893_v38, 0.0 }
 0x734   :  { %5014 = vst.msk [vmem:[#allocation2 + $0x21] sm:$0xff] %vm45_vm0, %v4949_v31  ;;  %v4829_v31 = vmul.f32 %v12663_v29, %v4761_v54  ;;  %v4766_v3 = vmul.f32 %v12665_v35, %v14167_v30  ;;  %v4894_v40 = vadd.f32 %v14150_v55, %v4826_v11  ;;  %v4832_v54 = vmul.f32 %v12663_v29, %v4764_v14 }
 0x735   :  { %5015 = vst.msk [vmem:[#allocation2 + $0x31] sm:$0xff] %vm45_vm0, %v4950_v58  ;;  %v4895_v58 = vadd.f32 %v14150_v55, %v4827_v7  ;;  %v4896_v16 = vadd.f32 %v14150_v55, %v4828_v63  ;;  %v4956_v5 = vmax.f32 %v4892_v57, 0.0  ;;  %v4833_v35 = vmul.f32 %v12663_v29, %v4765_v47 }
 0x736   :  { %5016 = vst.msk [vmem:[#allocation2 + $0x39] sm:$0xff] %vm45_vm0, %v4951_v8  ;;  %v4897_v8 = vadd.f32 %v14150_v55, %v4829_v31  ;;  %v4834_v11 = vmul.f32 %v12663_v29, %v4766_v3  ;;  %v4958_v7 = vmax.f32 %v4894_v40, 0.0  ;;  %v4900_v57 = vadd.f32 %v14150_v55, %v4832_v54 }
 0x737   :  { %5017 = vst.msk [vmem:[#allocation2 + $0x49] sm:$0xff] %vm45_vm0, %v4952_v6  ;;  %v4898_v6 = vadd.f32 %v14150_v55, %v4830_v43  ;;  %v4959_v14 = vmax.f32 %v4895_v58, 0.0  ;;  %v4967_v3 = vmax.f32 %v12887_v33, 0.0  ;;  %v4969_v40 = vmax.f32 %v12893_v61, 0.0 }
 0x738   :  { %5018 = vst.msk [vmem:[#allocation2 + $0x51] sm:$0xff] %vm45_vm0, %v4953_v12  ;;  %v4899_v12 = vadd.f32 %v14150_v55, %v4831_v23  ;;  %v4961_v29 = vmax.f32 %v4897_v8, 0.0  ;;  %v4902_v43 = vadd.f32 %v14150_v55, %v4834_v11  ;;  %v4964_v31 = vmax.f32 %v4900_v57, 0.0 }
 0x739   :  { %5019 = vst.msk [vmem:[#allocation2 + $0x61] sm:$0xff] %vm45_vm0, %v4954_v51  ;;  %v4960_v51 = vmax.f32 %v4896_v16, 0.0  ;;  %v4962_v10 = vmax.f32 %v4898_v6, 0.0  ;;  %v4970_v23 = vmax.f32 %v12896_v26, 0.0  ;;  %v4971_v58 = vmax.f32 %v12899_v59, 0.0 }
 0x73a   :  { %5020 = vst.msk [vmem:[#allocation2 + $0x69] sm:$0xff] %vm45_vm0, %v4955_v17  ;;  %v4901_v17 = vadd.f32 %v14150_v55, %v4833_v35  ;;  %v4963_v47 = vmax.f32 %v4899_v12, 0.0  ;;  %v4966_v30 = vmax.f32 %v4902_v43, 0.0  ;;  %v4968_v55 = vmax.f32 %v12890_v49, 0.0  ;;  %v14173_v43 = vld [vmem:[#allocation39_spill] sm:$0xff] }
 0x73b   :  { %v5172_v24 = vld [vmem:[#allocation2 + $0x18] ss:$2 sm:$0xff]  ;;  %5021 = vst.msk [vmem:[#allocation2 + $0x79] sm:$0xff] %vm45_vm0, %v4956_v5  ;;  %v4972_v33 = vmax.f32 %v12902_v41, 0.0  ;;  %v4973_v49 = vmax.f32 %v12905_v46, 0.0  ;;  %v4974_v61 = vmax.f32 %v12908_v4, 0.0 }
 0x73c   :  { %5507 = vrot.lane.b32.xlu1 %v5172_v24, %s8208_s22  ;;  %v5236_v63 = vld [vmem:[#allocation2 + $0x1a] ss:$2 sm:$0xff]  ;;  %5022 = vst.msk [vmem:[#allocation2 + $0x81] sm:$0xff] %vm45_vm0, %v4957_v20  ;;  %v4965_v38 = vmax.f32 %v4901_v17, 0.0  ;;  %v4975_v26 = vmax.f32 %v12911_v34, 0.0  ;;  %v4976_v59 = vmax.f32 %v12914_v56, 0.0 }
 0x73d   :  { %5635 = vrot.lane.b32.xlu0 %v5236_v63, %s8206_s20  ;;  %5023 = vst.msk [vmem:[#allocation2 + $0x91] sm:$0xff] %vm45_vm0, %v4958_v7  ;;  %v4977_v41 = vmax.f32 %v12917_v60, 0.0  ;;  %v4978_v46 = vmax.f32 %v12920_v15, 0.0  ;;  %v4979_v4 = vmax.f32 %v12923_v52, 0.0  ;;  %v4980_v34 = vmax.f32 %v12926_v18, 0.0  ;;  %v14169_v7 = vld [vmem:[#allocation77_spill] sm:$0xff] }
 0x73e   :  { %5024 = vst.msk [vmem:[#allocation2 + $0x99] sm:$0xff] %vm45_vm0, %v4959_v14  ;;  %v4981_v56 = vmax.f32 %v12929_v53, 0.0  ;;  %v4982_v60 = vmax.f32 %v12932_v9, 0.0  ;;  %v5204_v54 = vld [vmem:[#allocation2 + $0x19] ss:$2 sm:$0xff]  ;;  %v4983_v16 = vmax.f32 %v12935_v21, 0.0 }
 0x73f   :  { %5025 = vst.msk [vmem:[#allocation2 + $0xa9] sm:$0xff] %vm45_vm0, %v4960_v51  ;;  %v5268_v15 = vld [vmem:[#allocation2 + $0x30] ss:$2 sm:$0xff]  ;;  %5571 = vrot.lane.b32.xlu2 %v5204_v54, %s8207_s21  ;;  %v4984_v18 = vmax.f32 %v12938_v44, 0.0  ;;  %v4985_v53 = vmax.f32 %v12941_v39, 0.0  ;;  %v4986_v9 = vmax.f32 %v12944_v37, 0.0 }
 0x740   :  { %5026 = vst.msk [vmem:[#allocation2 + $0xb1] sm:$0xff] %vm45_vm0, %v4961_v29  ;;  %v5332_v52 = vld [vmem:[#allocation2 + $0x32] ss:$2 sm:$0xff]  ;;  %v4987_v21 = vmax.f32 %v12947_v19, 0.0  ;;  %v4988_v5 = vmax.f32 %v12950_v25, 0.0  ;;  %v4989_v44 = vmax.f32 %v12953_v22, 0.0 }
 0x741   :  { %5027 = vst.msk [vmem:[#allocation2 + $0xc1] sm:$0xff] %vm45_vm0, %v4962_v10  ;;  %v4990_v39 = vmax.f32 %v12956_v36, 0.0  ;;  %v5300_v35 = vld [vmem:[#allocation2 + $0x31] ss:$2 sm:$0xff]  ;;  %v4991_v8 = vmax.f32 %v12959_v0, 0.0  ;;  %v4992_v25 = vmax.f32 %v12962_v50, 0.0 }
 0x742   :  { %5028 = vst.msk [vmem:[#allocation2 + $0xc9] sm:$0xff] %vm45_vm0, %v4963_v47  ;;  %v5111_v37 = vld [vmem:[#allocation2 + $0x31] ss:$2 sm:$0xff]  ;;  %v5174_v19 = vld [vmem:[#allocation2 + $0x48] ss:$2 sm:$0xff]  ;;  %v4993_v22 = vmax.f32 %v12965_v1, 0.0 }
 0x743   :  { %5029 = vst.msk [vmem:[#allocation2 + $0xd9] sm:$0xff] %vm45_vm0, %v4964_v31  ;;  %v4994_v36 = vmax.f32 %v12968_v27, 0.0  ;;  %v4995_v0 = vmax.f32 %v12971_v2, 0.0  ;;  %v4996_v20 = vmax.f32 %v12974_v32, 0.0  ;;  %v4997_v50 = vmax.f32 %v12977_v48, 0.0  ;;  %v14171_v63 = vld [vmem:[#allocation67_spill] sm:$0xff] }
 0x744   :  { %5030 = vst.msk [vmem:[#allocation2 + $0xe1] sm:$0xff] %vm45_vm0, %v4965_v38  ;;  %5699 = vrot.lane.b32.xlu1 %v5268_v15, %s8211_s16  ;;  %v4998_v1 = vmax.f32 %v12980_v42, 0.0  ;;  %v5143_v11 = vld [vmem:[#allocation2 + $0x32] ss:$2 sm:$0xff]  ;;  %v5206_v27 = vld [vmem:[#allocation2 + $0x49] ss:$2 sm:$0xff] }
 0x745   :  { %5031 = vst.msk [vmem:[#allocation2 + $0xf1] sm:$0xff] %vm45_vm0, %v4966_v30  ;;  %5827 = vrot.lane.b32.xlu0 %v5332_v52, %s8209_s14  ;;  %v4999_v6 = vmax.f32 %v12983_v28, 0.0  ;;  %v5270_v2 = vld [vmem:[#allocation2 + $0x60] ss:$2 sm:$0xff]  ;;  %v5000_v32 = vmax.f32 %v12986_v13, 0.0  ;;  %v5001_v48 = vmax.f32 %v12989_v62, 0.0 }
 0x746   :  { %5032 = vst.msk [vmem:[#allocation2 + $0xf9] sm:$0xff] %vm45_vm0, %v4967_v3  ;;  %v5002_v42 = vmax.f32 %v12992_v45, 0.0  ;;  %v14168_v28 = vld [vmem:[#allocation40_spill] sm:$0xff]  ;;  %v5004_v12 = vmax.f32 %v14169_v7, 0.0  ;;  %v14170_v13 = vld [vmem:[#allocation29_spill] sm:$0xff]  ;;  %v5006_v62 = vmax.f32 %v14171_v63, 0.0 }
 0x747   :  { %5033 = vst.msk [vmem:[#allocation2 + $0x109] sm:$0xff] %vm45_vm0, %v4968_v55  ;;  %5763 = vrot.lane.b32.xlu2 %v5300_v35, %s8210_s15  ;;  %v5003_v24 = vmax.f32 %v14168_v28, 0.0  ;;  %v5005_v14 = vmax.f32 %v14170_v13, 0.0  ;;  %v5238_v57 = vld [vmem:[#allocation2 + $0x4a] ss:$2 sm:$0xff]  ;;  %v5008_v10 = vmax.f32 %v14173_v43, 0.0 }
 0x748   :  { %5034 = vst.msk [vmem:[#allocation2 + $0x111] sm:$0xff] %vm45_vm0, %v4969_v40  ;;  %v5302_v45 = vld [vmem:[#allocation2 + $0x61] ss:$2 sm:$0xff]  ;;  %v14172_v51 = vld [vmem:[#allocation18_spill] sm:$0xff]  ;;  %v5334_v3 = vld [vmem:[#allocation2 + $0x62] ss:$2 sm:$0xff] }
 0x749   :  { %5035 = vst.msk [vmem:[#allocation2 + $0x121] sm:$0xff] %vm45_vm0, %v4970_v23  ;;  %v5007_v17 = vmax.f32 %v14172_v51, 0.0  ;;  %v5113_v29 = vld [vmem:[#allocation2 + $0x61] ss:$2 sm:$0xff]  ;;  %v5145_v55 = vld [vmem:[#allocation2 + $0x62] ss:$2 sm:$0xff] }
 0x74a   :  { %5036 = vst.msk [vmem:[#allocation2 + $0x129] sm:$0xff] %vm45_vm0, %v4971_v58  ;;  %v14174_v47 = vld [vmem:[#allocation49_spill] sm:$0xff]  ;;  %v5208_v40 = vld [vmem:[#allocation2 + $0x79] ss:$2 sm:$0xff]  ;;  %v5176_v23 = vld [vmem:[#allocation2 + $0x78] ss:$2 sm:$0xff] }
 0x74b   :  { %5037 = vst.msk [vmem:[#allocation2 + $0x139] sm:$0xff] %vm45_vm0, %v4972_v33  ;;  %v5009_v31 = vmax.f32 %v14174_v47, 0.0  ;;  %v14175_v38 = vld [vmem:[#allocation69_spill] sm:$0xff]  ;;  %v5240_v58 = vld [vmem:[#allocation2 + $0x7a] ss:$2 sm:$0xff] }
 0x74c   :  { %5038 = vst.msk [vmem:[#allocation2 + $0x141] sm:$0xff] %vm45_vm0, %v4973_v49  ;;  %5381 = vrot.lane.b32.xlu1 %v5111_v37, %s14127_s1  ;;  %v5010_v30 = vmax.f32 %v14175_v38, 0.0  ;;  %v5304_v33 = vld [vmem:[#allocation2 + $0x91] ss:$2 sm:$0xff]  ;;  %v5272_v49 = vld [vmem:[#allocation2 + $0x90] ss:$2 sm:$0xff] }
 0x74d   :  { %5039 = vst.msk [vmem:[#allocation2 + $0x151] sm:$0xff] %vm45_vm0, %v4974_v61  ;;  %5509 = vrot.lane.b32.xlu0 %v5174_v19, %s8208_s22  ;;  %v5336_v61 = vld [vmem:[#allocation2 + $0x92] ss:$2 sm:$0xff]  ;;  %v5117_v54 = vld [vmem:[#allocation2 + $0xc1] ss:$2 sm:$0xff] }
 0x74e   :  { %5040 = vst.msk [vmem:[#allocation2 + $0x159] sm:$0xff] %vm45_vm0, %v4975_v26  ;;  %v5147_v26 = vld [vmem:[#allocation2 + $0x92] ss:$2 sm:$0xff]  ;;  %v5119_v19 = vld [vmem:[#allocation2 + $0xf1] ss:$2 sm:$0xff] }
 0x74f   :  { %5041 = vst.msk [vmem:[#allocation2 + $0x169] sm:$0xff] %vm45_vm0, %v4976_v59  ;;  %5445 = vrot.lane.b32.xlu2 %v5143_v11, %s8205_s30  ;;  %v5115_v59 = vld [vmem:[#allocation2 + $0x91] ss:$2 sm:$0xff]  ;;  %v5180_v15 = vld [vmem:[#allocation2 + $0xd8] ss:$2 sm:$0xff] }
 0x750   :  { %5042 = vst.msk [vmem:[#allocation2 + $0x171] sm:$0xff] %vm45_vm0, %v4977_v41  ;;  %v5178_v41 = vld [vmem:[#allocation2 + $0xa8] ss:$2 sm:$0xff]  ;;  %v5214_v11 = vld [vmem:[#allocation2 + $0x109] ss:$2 sm:$0xff] }
 0x751   :  { %5043 = vst.msk [vmem:[#allocation2 + $0x181] sm:$0xff] %vm45_vm0, %v4978_v46  ;;  %v5242_v46 = vld [vmem:[#allocation2 + $0xaa] ss:$2 sm:$0xff]  ;;  %v5244_v37 = vld [vmem:[#allocation2 + $0xda] ss:$2 sm:$0xff] }
 0x752   :  { %5044 = vst.msk [vmem:[#allocation2 + $0x189] sm:$0xff] %vm45_vm0, %v4979_v4  ;;  %v5210_v4 = vld [vmem:[#allocation2 + $0xa9] ss:$2 sm:$0xff] }
 0x753   :  { %5045 = vst.msk [vmem:[#allocation2 + $0x1c9] sm:$0xff] %vm45_vm0, %v4980_v34  ;;  %v5274_v34 = vld [vmem:[#allocation2 + $0xc0] ss:$2 sm:$0xff]  ;;  %v6010_v52 = vld [vmem:[%s13864_s4 + $0x38] sm:$0xff] }
 0x754   :  { %5046 = vst.msk [vmem:[#allocation2 + $0x1d1] sm:$0xff] %vm45_vm0, %v4981_v56  ;;  %5573 = vrot.lane.b32.xlu1 %v5206_v27, %s8207_s21  ;;  %v5338_v56 = vld [vmem:[#allocation2 + $0xc2] ss:$2 sm:$0xff] }
 0x755   :  { %5047 = vst.msk [vmem:[#allocation2 + $0x1e1] sm:$0xff] %vm45_vm0, %v4982_v60  ;;  %5701 = vrot.lane.b32.xlu0 %v5270_v2, %s8211_s16  ;;  %v5306_v60 = vld [vmem:[#allocation2 + $0xc1] ss:$2 sm:$0xff]  ;;  %v6006_v35 = vld [vmem:[%s13864_s4 + $0x18] sm:$0xff]  ;;  %v5184_v38 = vld [vmem:[#allocation2 + $0x138] ss:$2 sm:$0xff] }
 0x756   :  { %5048 = vst.msk [vmem:[#allocation2 + $0x1e9] sm:$0xff] %vm45_vm0, %v4983_v16  ;;  %v6011_v16 = vld [vmem:[%s13864_s4 + $0x40] sm:$0xff]  ;;  %v5182_v2 = vld [vmem:[#allocation2 + $0x108] ss:$2 sm:$0xff] }
 0x757   :  { %5049 = vst.msk [vmem:[#allocation2 + $0x1f9] sm:$0xff] %vm45_vm0, %v4984_v18  ;;  %5637 = vrot.lane.b32.xlu2 %v5238_v57, %s8206_s20  ;;  %6067 = vmatpush.msrb.mxu1 %v6011_v16  ;;  %v5149_v18 = vld [vmem:[#allocation2 + $0xc2] ss:$2 sm:$0xff] }
 0x758   :  { %5050 = vst.msk [vmem:[#allocation2 + $0x201] sm:$0xff] %vm45_vm0, %v4985_v53  ;;  %v5212_v53 = vld [vmem:[#allocation2 + $0xd9] ss:$2 sm:$0xff]  ;;  %v5153_v57 = vld [vmem:[#allocation2 + $0x122] ss:$2 sm:$0xff] }
 0x759   :  { %5051 = vst.msk [vmem:[#allocation2 + $0x211] sm:$0xff] %vm45_vm0, %v4986_v9  ;;  %6068 = vmatpush.msrb.mxu1 %v6010_v52  ;;  %v5380_v9 = vpop.permute.xlu2 %5379 }
 0x75a   :  { %5052 = vst.msk [vmem:[#allocation2 + $0x219] sm:$0xff] %vm45_vm0, %v4987_v21  ;;  %v5276_v21 = vld [vmem:[#allocation2 + $0xf0] ss:$2 sm:$0xff] }
 0x75b   :  { %5053 = vst.msk [vmem:[#allocation2 + $0x229] sm:$0xff] %vm45_vm0, %v4988_v5  ;;  %v6009_v5 = vld [vmem:[%s13864_s4 + $0x30] sm:$0xff] }
 0x75c   :  { %5054 = vst.msk [vmem:[#allocation2 + $0x231] sm:$0xff] %vm45_vm0, %v4989_v44  ;;  %5765 = vrot.lane.b32.xlu1 %v5302_v45, %s8210_s15  ;;  %6069 = vmatpush.msrb.mxu1 %v6009_v5  ;;  %v6008_v44 = vld [vmem:[%s13864_s4 + $0x28] sm:$0xff] }
 0x75d   :  { %5055 = vst.msk [vmem:[#allocation2 + $0x241] sm:$0xff] %vm45_vm0, %v4990_v39  ;;  %5383 = vrot.lane.b32.xlu0 %v5113_v29, %s14127_s1  ;;  %v6007_v39 = vld [vmem:[%s13864_s4 + $0x20] sm:$0xff] }
 0x75e   :  { %5056 = vst.msk [vmem:[#allocation2 + $0x249] sm:$0xff] %vm45_vm0, %v4991_v8  ;;  %6070 = vmatpush.msrb.mxu1 %v6008_v44  ;;  %v5308_v8 = vld [vmem:[#allocation2 + $0xf1] ss:$2 sm:$0xff]  ;;  %v5155_v5 = vld [vmem:[#allocation2 + $0x152] ss:$2 sm:$0xff] }
 0x75f   :  { %5057 = vst.msk [vmem:[#allocation2 + $0x259] sm:$0xff] %vm45_vm0, %v4992_v25  ;;  %5829 = vrot.lane.b32.xlu2 %v5334_v3, %s8209_s14  ;;  %v6005_v25 = vld [vmem:[%s13864_s4 + $0x10] sm:$0xff] }
 0x760   :  { %5058 = vst.msk [vmem:[#allocation2 + $0x261] sm:$0xff] %vm45_vm0, %v4993_v22  ;;  %6071 = vmatpush.msrb.mxu1 %v6007_v39  ;;  %v5218_v44 = vld [vmem:[#allocation2 + $0x169] ss:$2 sm:$0xff]  ;;  %v5282_v39 = vld [vmem:[#allocation2 + $0x180] ss:$2 sm:$0xff] }
 0x761   :  { %5059 = vst.msk [vmem:[#allocation2 + $0x271] sm:$0xff] %vm45_vm0, %v4994_v36  ;;  %v6004_v36 = vld [vmem:[%s13864_s4 + $0x8] sm:$0xff] }
 0x762   :  { %5060 = vst.msk [vmem:[#allocation2 + $0x279] sm:$0xff] %vm45_vm0, %v4995_v0  ;;  %6072 = vmatpush.msrb.mxu1 %v6006_v35  ;;  %v6003_v0 = vld [vmem:[%s13864_s4] sm:$0xff] }
 0x763   :  { %5061 = vst.msk [vmem:[#allocation2 + $0x289] sm:$0xff] %vm45_vm0, %v4996_v20  ;;  %v5340_v20 = vld [vmem:[#allocation2 + $0xf2] ss:$2 sm:$0xff] }
 0x764   :  { %5062 = vst.msk [vmem:[#allocation2 + $0x291] sm:$0xff] %vm45_vm0, %v4997_v50  ;;  %5447 = vrot.lane.b32.xlu1 %v5145_v55, %s8205_s30  ;;  %6073 = vmatpush.msrb.mxu1 %v6005_v25  ;;  %v5151_v50 = vld [vmem:[#allocation2 + $0xf2] ss:$2 sm:$0xff] }
 0x765   :  { %5063 = vst.msk [vmem:[#allocation2 + $0x2a1] sm:$0xff] %vm45_vm0, %v4998_v1  ;;  %5575 = vrot.lane.b32.xlu0 %v5208_v40, %s8207_s21  ;;  %v5444_v1 = vpop.permute.xlu0 %5443 }
 0x766   :  { %5064 = vst.msk [vmem:[#allocation2 + $0x2a9] sm:$0xff] %vm45_vm0, %v4999_v6  ;;  %6074 = vmatpush.msrb.mxu1 %v6004_v36  ;;  %v5077_v6 = vld [vmem:[#allocation2] ss:$2 sm:$0xff]  ;;  %v5125_v36 = vld [vmem:[#allocation2 + $0x1b1] ss:$2 sm:$0xff] }
 0x767   :  { %5065 = vst.msk [vmem:[#allocation2 + $0x2b9] sm:$0xff] %vm45_vm0, %v5000_v32  ;;  %5511 = vrot.lane.b32.xlu2 %v5176_v23, %s8208_s22  ;;  %v5246_v32 = vld [vmem:[#allocation2 + $0x10a] ss:$2 sm:$0xff] }
 0x768   :  { %5066 = vst.msk [vmem:[#allocation2 + $0x2c1] sm:$0xff] %vm45_vm0, %v5001_v48  ;;  %6075 = vmatpush.msrb.mxu1 %v6003_v0  ;;  %v5875_v48 = vsel %vm45_vm0, %v5077_v6, %v5380_v9  ;;  %v5079_v23 = vld [vmem:[#allocation2 + $0x30] ss:$2 sm:$0xff] }
 0x769   :  { %5067 = vst.msk [vmem:[#allocation2 + $0x2d1] sm:$0xff] %vm45_vm0, %v5002_v42  ;;  %v5310_v42 = vld [vmem:[#allocation2 + $0x121] ss:$2 sm:$0xff]  ;;  %v5250_v0 = vld [vmem:[#allocation2 + $0x16a] ss:$2 sm:$0xff] }
 0x76a   :  { %5068 = vst.msk [vmem:[#allocation2 + $0x2d9] sm:$0xff] %vm45_vm0, %v5003_v24 }
 0x76b   :  { %5069 = vst.msk [vmem:[#allocation2 + $0x2e9] sm:$0xff] %vm45_vm0, %v5004_v12  ;;  %v5891_v12 = vsel %vm155_vm2, %v5875_v48, %v5444_v1  ;;  %v5346_v48 = vld [vmem:[#allocation2 + $0x182] ss:$2 sm:$0xff] }
 0x76c   :  { %5070 = vst.msk [vmem:[#allocation2 + $0x2f1] sm:$0xff] %vm45_vm0, %v5005_v14  ;;  %5639 = vrot.lane.b32.xlu1 %v5240_v58, %s8206_s20  ;;  %v5278_v14 = vld [vmem:[#allocation2 + $0x120] ss:$2 sm:$0xff] }
 0x76d   :  { %5071 = vst.msk [vmem:[#allocation2 + $0x301] sm:$0xff] %vm45_vm0, %v5006_v62  ;;  %5767 = vrot.lane.b32.xlu0 %v5304_v33, %s8210_s15  ;;  %v5342_v62 = vld [vmem:[#allocation2 + $0x122] ss:$2 sm:$0xff]  ;;  %v5216_v33 = vld [vmem:[#allocation2 + $0x139] ss:$2 sm:$0xff] }
 0x76e   :  { %5072 = vst.msk [vmem:[#allocation2 + $0x309] sm:$0xff] %vm45_vm0, %v5007_v17 }
 0x76f   :  { %5073 = vst.msk [vmem:[#allocation2 + $0x319] sm:$0xff] %vm45_vm0, %v5008_v10  ;;  %5703 = vrot.lane.b32.xlu2 %v5272_v49, %s8211_s16  ;;  %v5280_v49 = vld [vmem:[#allocation2 + $0x150] ss:$2 sm:$0xff] }
 0x770   :  { %5074 = vst.msk [vmem:[#allocation2 + $0x321] sm:$0xff] %vm45_vm0, %v5009_v31  ;;  %v5121_v31 = vld [vmem:[#allocation2 + $0x121] ss:$2 sm:$0xff] }
 0x771   :  { %5075 = vst.msk [vmem:[#allocation2 + $0x331] sm:$0xff] %vm45_vm0, %v5010_v30  ;;  %v5248_v30 = vld [vmem:[#allocation2 + $0x13a] ss:$2 sm:$0xff] }
 0x774   :  { %5831 = vrot.lane.b32.xlu1 %v5336_v61, %s8209_s14 }
 0x775   :  { %5449 = vrot.lane.b32.xlu0 %v5147_v26, %s8205_s30  ;;  %v5344_v26 = vld [vmem:[#allocation2 + $0x152] ss:$2 sm:$0xff] }
 0x777   :  { %5385 = vrot.lane.b32.xlu2 %v5115_v59, %s14127_s1 }
 0x77c   :  { %5513 = vrot.lane.b32.xlu1 %v5178_v41, %s8208_s22 }
 0x77d   :  { %5641 = vrot.lane.b32.xlu0 %v5242_v46, %s8206_s20 }
 0x77f   :  { %5577 = vrot.lane.b32.xlu2 %v5210_v4, %s8207_s21 }
 0x784   :  { %5705 = vrot.lane.b32.xlu1 %v5274_v34, %s8211_s16 }
 0x785   :  { %5833 = vrot.lane.b32.xlu0 %v5338_v56, %s8209_s14  ;;  %v5312_v56 = vld [vmem:[#allocation2 + $0x151] ss:$2 sm:$0xff] }
 0x787   :  { %5769 = vrot.lane.b32.xlu2 %v5306_v60, %s8210_s15 }
 0x78c   :  { %5387 = vrot.lane.b32.xlu1 %v5117_v54, %s14127_s1  ;;  %v5123_v54 = vld [vmem:[#allocation2 + $0x151] ss:$2 sm:$0xff] }
 0x78d   :  { %5515 = vrot.lane.b32.xlu0 %v5180_v15, %s8208_s22  ;;  %v5186_v15 = vld [vmem:[#allocation2 + $0x168] ss:$2 sm:$0xff] }
 0x78f   :  { %5451 = vrot.lane.b32.xlu2 %v5149_v18, %s8205_s30 }
 0x794   :  { %5579 = vrot.lane.b32.xlu1 %v5212_v53, %s8207_s21 }
 0x795   :  { %5707 = vrot.lane.b32.xlu0 %v5276_v21, %s8211_s16 }
 0x797   :  { %5643 = vrot.lane.b32.xlu2 %v5244_v37, %s8206_s20 }
 0x799   :  { %v5572_v22 = vpop.permute.xlu2 %5571 }
 0x79c   :  { %5771 = vrot.lane.b32.xlu1 %v5308_v8, %s8210_s15  ;;  %v5081_v8 = vld [vmem:[#allocation2 + $0x60] ss:$2 sm:$0xff] }
 0x79d   :  { %5389 = vrot.lane.b32.xlu0 %v5119_v19, %s14127_s1 }
 0x79f   :  { %5835 = vrot.lane.b32.xlu2 %v5340_v20, %s8209_s14  ;;  %v5314_v20 = vld [vmem:[#allocation2 + $0x181] ss:$2 sm:$0xff] }
 0x7a1   :  { %v5764_v27 = vpop.permute.xlu2 %5763 }
 0x7a4   :  { %5453 = vrot.lane.b32.xlu1 %v5151_v50, %s8205_s30 }
 0x7a5   :  { %5581 = vrot.lane.b32.xlu0 %v5214_v11, %s8207_s21 }
 0x7a7   :  { %5517 = vrot.lane.b32.xlu2 %v5182_v2, %s8208_s22 }
 0x7a9   :  { %v5446_v7 = vpop.permute.xlu2 %5445 }
 0x7ac   :  { %5645 = vrot.lane.b32.xlu1 %v5246_v32, %s8206_s20  ;;  %v5157_v32 = vld [vmem:[#allocation2 + $0x1b2] ss:$2 sm:$0xff] }
 0x7ad   :  { %5773 = vrot.lane.b32.xlu0 %v5310_v42, %s8210_s15 }
 0x7ae   :  { %v5508_v28 = vpop.permute.xlu1 %5507 }
 0x7af   :  { %v5636_v24 = vpop.permute.xlu0 %5635  ;;  %v5907_v13 = vsel %vm3533_vm1, %v5891_v12, %v5508_v28  ;;  %5709 = vrot.lane.b32.xlu2 %v5278_v14, %s8211_s16  ;;  %v5220_v28 = vld [vmem:[#allocation2 + $0x1c9] ss:$2 sm:$0xff] }
 0x7b0   :  { %v5923_v63 = vsel %vm3598_vm3, %v5907_v13, %v5572_v22 }
 0x7b1   :  { %v5939_v45 = vsel %vm3663_vm4, %v5923_v63, %v5636_v24  ;;  %v5638_v51 = vpop.permute.xlu2 %5637  ;;  %v5188_v63 = vld [vmem:[#allocation2 + $0x1c8] ss:$2 sm:$0xff] }
 0x7b4   :  { %5837 = vrot.lane.b32.xlu1 %v5342_v62, %s8209_s14  ;;  %v5252_v62 = vld [vmem:[#allocation2 + $0x1ca] ss:$2 sm:$0xff] }
 0x7b5   :  { %5455 = vrot.lane.b32.xlu0 %v5153_v57, %s8205_s30  ;;  %v5316_v57 = vld [vmem:[#allocation2 + $0x1e1] ss:$2 sm:$0xff] }
 0x7b6   :  { %v5700_v17 = vpop.permute.xlu1 %5699 }
 0x7b7   :  { %v5955_v29 = vsel %vm3728_vm5, %v5939_v45, %v5700_v17  ;;  %v5828_v43 = vpop.permute.xlu0 %5827  ;;  %5391 = vrot.lane.b32.xlu2 %v5121_v31, %s14127_s1  ;;  %v5083_v45 = vld [vmem:[#allocation2 + $0x90] ss:$2 sm:$0xff]  ;;  %v5284_v31 = vld [vmem:[#allocation2 + $0x1e0] ss:$2 sm:$0xff] }
 0x7b8   :  { %v5971_v10 = vsel %vm3793_vm6, %v5955_v29, %v5764_v27 }
 0x7b9   :  { %v5987_v47 = vsel %vm3858_vm7, %v5971_v10, %v5828_v43  ;;  %v5830_v3 = vpop.permute.xlu2 %5829 }
 0x7ba   :  { %8086 = vmatmul.msk.f32.vlgmr.msrb.gmra.mxu1 %vm3932_vm8, %v5987_v47 }
 0x7bc   :  { %5519 = vrot.lane.b32.xlu1 %v5184_v38, %s8208_s22 }
 0x7bd   :  { %5647 = vrot.lane.b32.xlu0 %v5248_v30, %s8206_s20  ;;  %v5348_v30 = vld [vmem:[#allocation2 + $0x1e2] ss:$2 sm:$0xff] }
 0x7be   :  { %v5382_v55 = vpop.permute.xlu1 %5381 }
 0x7bf   :  { %v5510_v40 = vpop.permute.xlu0 %5509  ;;  %v5876_v58 = vsel %vm45_vm0, %v5079_v23, %v5382_v55  ;;  %5583 = vrot.lane.b32.xlu2 %v5216_v33, %s8207_s21 }
 0x7c0   :  { %v5892_v61 = vsel %vm155_vm2, %v5876_v58, %v5446_v7 }
 0x7c1   :  { %v5512_v59 = vpop.permute.xlu2 %5511  ;;  %v5908_v46 = vsel %vm3533_vm1, %v5892_v61, %v5510_v40 }
 0x7c4   :  { %5711 = vrot.lane.b32.xlu1 %v5280_v49, %s8211_s16 }
 0x7c5   :  { %5839 = vrot.lane.b32.xlu0 %v5344_v26, %s8209_s14  ;;  %v5127_v26 = vld [vmem:[#allocation2 + $0x1e1] ss:$2 sm:$0xff] }
 0x7c6   :  { %v5574_v41 = vpop.permute.xlu1 %5573 }
 0x7c7   :  { %v5702_v4 = vpop.permute.xlu0 %5701  ;;  %v5924_v34 = vsel %vm3598_vm3, %v5908_v46, %v5574_v41  ;;  %5775 = vrot.lane.b32.xlu2 %v5312_v56, %s8210_s15  ;;  %v5254_v41 = vld [vmem:[#allocation2 + $0x1fa] ss:$2 sm:$0xff] }
 0x7c8   :  { %v5940_v60 = vsel %vm3663_vm4, %v5924_v34, %v5638_v51  ;;  %v5085_v56 = vld [vmem:[#allocation2 + $0xc0] ss:$2 sm:$0xff] }
 0x7c9   :  { %v5956_v16 = vsel %vm3728_vm5, %v5940_v60, %v5702_v4  ;;  %v5704_v52 = vpop.permute.xlu2 %5703 }
 0x7cc   :  { %5393 = vrot.lane.b32.xlu1 %v5123_v54, %s14127_s1  ;;  %v5222_v54 = vld [vmem:[#allocation2 + $0x1f9] ss:$2 sm:$0xff] }
 0x7cd   :  { %5521 = vrot.lane.b32.xlu0 %v5186_v15, %s8208_s22  ;;  %v5286_v15 = vld [vmem:[#allocation2 + $0x210] ss:$2 sm:$0xff] }
 0x7ce   :  { %v5766_v18 = vpop.permute.xlu1 %5765 }
 0x7cf   :  { %v5972_v53 = vsel %vm3793_vm6, %v5956_v16, %v5766_v18  ;;  %v5384_v9 = vpop.permute.xlu0 %5383  ;;  %5457 = vrot.lane.b32.xlu2 %v5155_v5, %s8205_s30 }
 0x7d0   :  { %v5988_v21 = vsel %vm3858_vm7, %v5972_v53, %v5830_v3  ;;  %v5877_v25 = vsel %vm45_vm0, %v5081_v8, %v5384_v9  ;;  %v5159_v3 = vld [vmem:[#allocation2 + $0x1e2] ss:$2 sm:$0xff] }
 0x7d1   :  { %8087 = vmatmul.msk.f32.gmra.mxu1 %vm3932_vm8, %v5988_v21  ;;  %v5386_v35 = vpop.permute.xlu2 %5385 }
 0x7d2   :  { %v5878_v51 = vsel %vm45_vm0, %v5083_v45, %v5386_v35  ;;  %v5129_v35 = vld [vmem:[#allocation2 + $0x211] ss:$2 sm:$0xff] }
 0x7d4   :  { %5585 = vrot.lane.b32.xlu1 %v5218_v44, %s8207_s21  ;;  %v5318_v44 = vld [vmem:[#allocation2 + $0x211] ss:$2 sm:$0xff] }
 0x7d5   :  { %5713 = vrot.lane.b32.xlu0 %v5282_v39, %s8211_s16 }
 0x7d6   :  { %v5448_v37 = vpop.permute.xlu1 %5447 }
 0x7d7   :  { %v5576_v19 = vpop.permute.xlu0 %5575  ;;  %v5893_v22 = vsel %vm155_vm2, %v5877_v25, %v5448_v37  ;;  %5649 = vrot.lane.b32.xlu2 %v5250_v0, %s8206_s20  ;;  %v5192_v37 = vld [vmem:[#allocation2 + $0x228] ss:$2 sm:$0xff] }
 0x7d8   :  { %v5909_v50 = vsel %vm3533_vm1, %v5893_v22, %v5512_v59  ;;  %v5190_v59 = vld [vmem:[#allocation2 + $0x1f8] ss:$2 sm:$0xff] }
 0x7d9   :  { %v5578_v1 = vpop.permute.xlu2 %5577  ;;  %v5925_v27 = vsel %vm3598_vm3, %v5909_v50, %v5576_v19  ;;  %v5224_v50 = vld [vmem:[#allocation2 + $0x229] ss:$2 sm:$0xff] }
 0x7dc   :  { %5777 = vrot.lane.b32.xlu1 %v5314_v20, %s8210_s15  ;;  %v5161_v20 = vld [vmem:[#allocation2 + $0x212] ss:$2 sm:$0xff] }
 0x7dd   :  { %5395 = vrot.lane.b32.xlu0 %v5125_v36, %s14127_s1 }
 0x7de   :  { %v5640_v11 = vpop.permute.xlu1 %5639 }
 0x7df   :  { %v5768_v6 = vpop.permute.xlu0 %5767  ;;  %v5941_v2 = vsel %vm3663_vm4, %v5925_v27, %v5640_v11  ;;  %5841 = vrot.lane.b32.xlu2 %v5346_v48, %s8209_s14 }
 0x7e0   :  { %v5957_v42 = vsel %vm3728_vm5, %v5941_v2, %v5704_v52  ;;  %v5350_v52 = vld [vmem:[#allocation2 + $0x212] ss:$2 sm:$0xff] }
 0x7e1   :  { %v5973_v24 = vsel %vm3793_vm6, %v5957_v42, %v5768_v6  ;;  %v5770_v7 = vpop.permute.xlu2 %5769  ;;  %v5087_v6 = vld [vmem:[#allocation2 + $0xf0] ss:$2 sm:$0xff] }
 0x7e2   :  { %v5256_v42 = vld [vmem:[#allocation2 + $0x22a] ss:$2 sm:$0xff] }
 0x7e4   :  { %5459 = vrot.lane.b32.xlu1 %v5157_v32, %s8205_s30 }
 0x7e5   :  { %5587 = vrot.lane.b32.xlu0 %v5220_v28, %s8207_s21  ;;  %v5320_v28 = vld [vmem:[#allocation2 + $0x241] ss:$2 sm:$0xff] }
 0x7e6   :  { %v5832_v12 = vpop.permute.xlu1 %5831 }
 0x7e7   :  { %v5450_v13 = vpop.permute.xlu0 %5449  ;;  %v5989_v14 = vsel %vm3858_vm7, %v5973_v24, %v5832_v12  ;;  %5523 = vrot.lane.b32.xlu2 %v5188_v63, %s8208_s22 }
 0x7e8   :  { %8088 = vmatmul.msk.f32.gmra.mxu1 %vm3932_vm8, %v5989_v14  ;;  %v5894_v43 = vsel %vm155_vm2, %v5878_v51, %v5450_v13  ;;  %v5163_v51 = vld [vmem:[#allocation2 + $0x242] ss:$2 sm:$0xff] }
 0x7e9   :  { %v5452_v17 = vpop.permute.xlu2 %5451 }
 0x7ec   :  { %5651 = vrot.lane.b32.xlu1 %v5252_v62, %s8206_s20 }
 0x7ed   :  { %5779 = vrot.lane.b32.xlu0 %v5316_v57, %s8210_s15  ;;  %v5352_v57 = vld [vmem:[#allocation2 + $0x242] ss:$2 sm:$0xff] }
 0x7ee   :  { %v5514_v29 = vpop.permute.xlu1 %5513 }
 0x7ef   :  { %v5642_v10 = vpop.permute.xlu0 %5641  ;;  %v5910_v47 = vsel %vm3533_vm1, %v5894_v43, %v5514_v29  ;;  %5715 = vrot.lane.b32.xlu2 %v5284_v31, %s8211_s16 }
 0x7f0   :  { %v5926_v38 = vsel %vm3598_vm3, %v5910_v47, %v5578_v1  ;;  %v5288_v1 = vld [vmem:[#allocation2 + $0x240] ss:$2 sm:$0xff] }
 0x7f1   :  { %v5942_v55 = vsel %vm3663_vm4, %v5926_v38, %v5642_v10  ;;  %v5644_v40 = vpop.permute.xlu2 %5643  ;;  %v5194_v38 = vld [vmem:[#allocation2 + $0x258] ss:$2 sm:$0xff] }
 0x7f4   :  { %5843 = vrot.lane.b32.xlu1 %v5348_v30, %s8209_s14  ;;  %v5258_v30 = vld [vmem:[#allocation2 + $0x25a] ss:$2 sm:$0xff] }
 0x7f5   :  { %5461 = vrot.lane.b32.xlu0 %v5159_v3, %s8205_s30  ;;  %v5322_v3 = vld [vmem:[#allocation2 + $0x271] ss:$2 sm:$0xff] }
 0x7f6   :  { %v5706_v23 = vpop.permute.xlu1 %5705 }
 0x7f7   :  { %v5958_v58 = vsel %vm3728_vm5, %v5942_v55, %v5706_v23  ;;  %v5834_v33 = vpop.permute.xlu0 %5833  ;;  %5397 = vrot.lane.b32.xlu2 %v5127_v26, %s14127_s1  ;;  %v5089_v55 = vld [vmem:[#allocation2 + $0x120] ss:$2 sm:$0xff]  ;;  %v5290_v26 = vld [vmem:[#allocation2 + $0x270] ss:$2 sm:$0xff] }
 0x7f8   :  { %v5974_v49 = vsel %vm3793_vm6, %v5958_v58, %v5770_v7  ;;  %v5131_v7 = vld [vmem:[#allocation2 + $0x241] ss:$2 sm:$0xff] }
 0x7f9   :  { %v5990_v61 = vsel %vm3858_vm7, %v5974_v49, %v5834_v33  ;;  %v5836_v46 = vpop.permute.xlu2 %5835 }
 0x7fa   :  { %8089 = vmatmul.msk.f32.gmra.mxu1 %vm3932_vm8, %v5990_v61 }
 0x7fc   :  { %5525 = vrot.lane.b32.xlu1 %v5190_v59, %s8208_s22 }
 0x7fd   :  { %5653 = vrot.lane.b32.xlu0 %v5254_v41, %s8206_s20  ;;  %v5354_v41 = vld [vmem:[#allocation2 + $0x272] ss:$2 sm:$0xff] }
 0x7fe   :  { %v5388_v4 = vpop.permute.xlu1 %5387 }
 0x7ff   :  { %v5516_v34 = vpop.permute.xlu0 %5515  ;;  %v5879_v60 = vsel %vm45_vm0, %v5085_v56, %v5388_v4  ;;  %5589 = vrot.lane.b32.xlu2 %v5222_v54, %s8207_s21 }
 0x800   :  { %v5895_v16 = vsel %vm155_vm2, %v5879_v60, %v5452_v17  ;;  %v5226_v17 = vld [vmem:[#allocation2 + $0x259] ss:$2 sm:$0xff] }
 0x801   :  { %v5518_v18 = vpop.permute.xlu2 %5517  ;;  %v5911_v9 = vsel %vm3533_vm1, %v5895_v16, %v5516_v34 }
 0x804   :  { %5717 = vrot.lane.b32.xlu1 %v5286_v15, %s8211_s16 }
 0x805   :  { %5845 = vrot.lane.b32.xlu0 %v5350_v52, %s8209_s14  ;;  %v5133_v52 = vld [vmem:[#allocation2 + $0x271] ss:$2 sm:$0xff] }
 0x806   :  { %v5580_v53 = vpop.permute.xlu1 %5579 }
 0x807   :  { %v5708_v21 = vpop.permute.xlu0 %5707  ;;  %v5927_v5 = vsel %vm3598_vm3, %v5911_v9, %v5580_v53  ;;  %5781 = vrot.lane.b32.xlu2 %v5318_v44, %s8210_s15  ;;  %v5260_v53 = vld [vmem:[#allocation2 + $0x28a] ss:$2 sm:$0xff] }
 0x808   :  { %v5943_v39 = vsel %vm3663_vm4, %v5927_v5, %v5644_v40  ;;  %v5091_v44 = vld [vmem:[#allocation2 + $0x150] ss:$2 sm:$0xff] }
 0x809   :  { %v5959_v8 = vsel %vm3728_vm5, %v5943_v39, %v5708_v21  ;;  %v5710_v19 = vpop.permute.xlu2 %5709 }
 0x80c   :  { %5399 = vrot.lane.b32.xlu1 %v5129_v35, %s14127_s1  ;;  %v5228_v35 = vld [vmem:[#allocation2 + $0x289] ss:$2 sm:$0xff] }
 0x80d   :  { %5527 = vrot.lane.b32.xlu0 %v5192_v37, %s8208_s22  ;;  %v5292_v37 = vld [vmem:[#allocation2 + $0x2a0] ss:$2 sm:$0xff] }
 0x80e   :  { %v5772_v25 = vpop.permute.xlu1 %5771 }
 0x80f   :  { %v5975_v22 = vsel %vm3793_vm6, %v5959_v8, %v5772_v25  ;;  %v5390_v36 = vpop.permute.xlu0 %5389  ;;  %5463 = vrot.lane.b32.xlu2 %v5161_v20, %s8205_s30 }
 0x810   :  { %v5991_v0 = vsel %vm3858_vm7, %v5975_v22, %v5836_v46  ;;  %v5880_v32 = vsel %vm45_vm0, %v5087_v6, %v5390_v36  ;;  %v5165_v46 = vld [vmem:[#allocation2 + $0x272] ss:$2 sm:$0xff] }
 0x811   :  { %8090 = vmatmul.msk.f32.gmra.mxu1 %vm3932_vm8, %v5991_v0  ;;  %v5392_v11 = vpop.permute.xlu2 %5391 }
 0x812   :  { %v5881_v40 = vsel %vm45_vm0, %v5089_v55, %v5392_v11  ;;  %v5135_v11 = vld [vmem:[#allocation2 + $0x2a1] ss:$2 sm:$0xff] }
 0x814   :  { %5591 = vrot.lane.b32.xlu1 %v5224_v50, %s8207_s21  ;;  %v5324_v50 = vld [vmem:[#allocation2 + $0x2a1] ss:$2 sm:$0xff] }
 0x815   :  { %5719 = vrot.lane.b32.xlu0 %v5288_v1, %s8211_s16 }
 0x816   :  { %v5454_v27 = vpop.permute.xlu1 %5453 }
 0x817   :  { %v5582_v2 = vpop.permute.xlu0 %5581  ;;  %v5896_v48 = vsel %vm155_vm2, %v5880_v32, %v5454_v27  ;;  %5655 = vrot.lane.b32.xlu2 %v5256_v42, %s8206_s20  ;;  %v5198_v27 = vld [vmem:[#allocation2 + $0x2b8] ss:$2 sm:$0xff] }
 0x818   :  { %v5912_v24 = vsel %vm3533_vm1, %v5896_v48, %v5518_v18  ;;  %v5196_v18 = vld [vmem:[#allocation2 + $0x288] ss:$2 sm:$0xff] }
 0x819   :  { %v5584_v12 = vpop.permute.xlu2 %5583  ;;  %v5928_v14 = vsel %vm3598_vm3, %v5912_v24, %v5582_v2  ;;  %v5167_v24 = vld [vmem:[#allocation2 + $0x2a2] ss:$2 sm:$0xff] }
 0x81c   :  { %5783 = vrot.lane.b32.xlu1 %v5320_v28, %s8210_s15 }
 0x81d   :  { %5401 = vrot.lane.b32.xlu0 %v5131_v7, %s14127_s1  ;;  %v5230_v7 = vld [vmem:[#allocation2 + $0x2b9] ss:$2 sm:$0xff] }
 0x81e   :  { %v5646_v13 = vpop.permute.xlu1 %5645 }
 0x81f   :  { %v5774_v63 = vpop.permute.xlu0 %5773  ;;  %v5944_v62 = vsel %vm3663_vm4, %v5928_v14, %v5646_v13  ;;  %5847 = vrot.lane.b32.xlu2 %v5352_v57, %s8209_s14  ;;  %v5093_v13 = vld [vmem:[#allocation2 + $0x1b0] ss:$2 sm:$0xff] }
 0x820   :  { %v5960_v45 = vsel %vm3728_vm5, %v5944_v62, %v5710_v19  ;;  %v5356_v19 = vld [vmem:[#allocation2 + $0x2a2] ss:$2 sm:$0xff] }
 0x821   :  { %v5976_v29 = vsel %vm3793_vm6, %v5960_v45, %v5774_v63  ;;  %v5776_v43 = vpop.permute.xlu2 %5775 }
 0x824   :  { %5465 = vrot.lane.b32.xlu1 %v5163_v51, %s8205_s30  ;;  %v5262_v51 = vld [vmem:[#allocation2 + $0x2ba] ss:$2 sm:$0xff] }
 0x825   :  { %5593 = vrot.lane.b32.xlu0 %v5226_v17, %s8207_s21  ;;  %v5326_v17 = vld [vmem:[#allocation2 + $0x2d1] ss:$2 sm:$0xff] }
 0x826   :  { %v5838_v10 = vpop.permute.xlu1 %5837 }
 0x827   :  { %v5456_v47 = vpop.permute.xlu0 %5455  ;;  %v5992_v31 = vsel %vm3858_vm7, %v5976_v29, %v5838_v10  ;;  %5529 = vrot.lane.b32.xlu2 %v5194_v38, %s8208_s22 }
 0x828   :  { %8091 = vmatmul.msk.f32.gmra.mxu1 %vm3932_vm8, %v5992_v31  ;;  %v5897_v33 = vsel %vm155_vm2, %v5881_v40, %v5456_v47  ;;  %v5169_v40 = vld [vmem:[#allocation2 + $0x2d2] ss:$2 sm:$0xff] }
 0x829   :  { %v5458_v23 = vpop.permute.xlu2 %5457 }
 0x82c   :  { %5657 = vrot.lane.b32.xlu1 %v5258_v30, %s8206_s20 }
 0x82d   :  { %5785 = vrot.lane.b32.xlu0 %v5322_v3, %s8210_s15  ;;  %v5358_v3 = vld [vmem:[#allocation2 + $0x2d2] ss:$2 sm:$0xff] }
 0x82e   :  { %v5520_v58 = vpop.permute.xlu1 %5519 }
 0x82f   :  { %v5648_v49 = vpop.permute.xlu0 %5647  ;;  %v5913_v61 = vsel %vm3533_vm1, %v5897_v33, %v5520_v58  ;;  %5721 = vrot.lane.b32.xlu2 %v5290_v26, %s8211_s16 }
 0x830   :  { %v5929_v59 = vsel %vm3598_vm3, %v5913_v61, %v5584_v12  ;;  %v5294_v12 = vld [vmem:[#allocation2 + $0x2d0] ss:$2 sm:$0xff] }
 0x831   :  { %v5945_v4 = vsel %vm3663_vm4, %v5929_v59, %v5648_v49  ;;  %v5650_v34 = vpop.permute.xlu2 %5649  ;;  %v5200_v59 = vld [vmem:[#allocation2 + $0x2e8] ss:$2 sm:$0xff] }
 0x834   :  { %5849 = vrot.lane.b32.xlu1 %v5354_v41, %s8209_s14  ;;  %v5264_v41 = vld [vmem:[#allocation2 + $0x2ea] ss:$2 sm:$0xff] }
 0x835   :  { %5467 = vrot.lane.b32.xlu0 %v5165_v46, %s8205_s30  ;;  %v5328_v46 = vld [vmem:[#allocation2 + $0x301] ss:$2 sm:$0xff] }
 0x836   :  { %v5712_v56 = vpop.permute.xlu1 %5711 }
 0x837   :  { %v5961_v60 = vsel %vm3728_vm5, %v5945_v4, %v5712_v56  ;;  %v5840_v54 = vpop.permute.xlu0 %5839  ;;  %5403 = vrot.lane.b32.xlu2 %v5133_v52, %s14127_s1  ;;  %v5095_v4 = vld [vmem:[#allocation2 + $0x1e0] ss:$2 sm:$0xff] }
 0x838   :  { %v5977_v15 = vsel %vm3793_vm6, %v5961_v60, %v5776_v43  ;;  %v5137_v43 = vld [vmem:[#allocation2 + $0x2d1] ss:$2 sm:$0xff]  ;;  %v5296_v52 = vld [vmem:[#allocation2 + $0x300] ss:$2 sm:$0xff] }
 0x839   :  { %v5993_v16 = vsel %vm3858_vm7, %v5977_v15, %v5840_v54  ;;  %v5842_v9 = vpop.permute.xlu2 %5841 }
 0x83a   :  { %8092 = vmatmul.msk.f32.gmra.mxu1 %vm3932_vm8, %v5993_v16 }
 0x83c   :  { %5531 = vrot.lane.b32.xlu1 %v5196_v18, %s8208_s22 }
 0x83d   :  { %5659 = vrot.lane.b32.xlu0 %v5260_v53, %s8206_s20  ;;  %v5360_v53 = vld [vmem:[#allocation2 + $0x302] ss:$2 sm:$0xff] }
 0x83e   :  { %v5394_v21 = vpop.permute.xlu1 %5393 }
 0x83f   :  { %v5522_v5 = vpop.permute.xlu0 %5521  ;;  %v5882_v39 = vsel %vm45_vm0, %v5091_v44, %v5394_v21  ;;  %5595 = vrot.lane.b32.xlu2 %v5228_v35, %s8207_s21 }
 0x840   :  { %v5898_v8 = vsel %vm155_vm2, %v5882_v39, %v5458_v23  ;;  %v5232_v23 = vld [vmem:[#allocation2 + $0x2e9] ss:$2 sm:$0xff] }
 0x841   :  { %v5524_v25 = vpop.permute.xlu2 %5523  ;;  %v5914_v36 = vsel %vm3533_vm1, %v5898_v8, %v5522_v5 }
 0x844   :  { %5723 = vrot.lane.b32.xlu1 %v5292_v37, %s8211_s16 }
 0x845   :  { %5851 = vrot.lane.b32.xlu0 %v5356_v19, %s8209_s14  ;;  %v5139_v19 = vld [vmem:[#allocation2 + $0x301] ss:$2 sm:$0xff] }
 0x846   :  { %v5586_v22 = vpop.permute.xlu1 %5585 }
 0x847   :  { %v5714_v0 = vpop.permute.xlu0 %5713  ;;  %v5930_v20 = vsel %vm3598_vm3, %v5914_v36, %v5586_v22  ;;  %5787 = vrot.lane.b32.xlu2 %v5324_v50, %s8210_s15  ;;  %v5266_v22 = vld [vmem:[#allocation2 + $0x31a] ss:$2 sm:$0xff] }
 0x848   :  { %v5946_v1 = vsel %vm3663_vm4, %v5930_v20, %v5650_v34  ;;  %v5097_v50 = vld [vmem:[#allocation2 + $0x210] ss:$2 sm:$0xff] }
 0x849   :  { %v5962_v6 = vsel %vm3728_vm5, %v5946_v1, %v5714_v0  ;;  %v5716_v2 = vpop.permute.xlu2 %5715 }
 0x84c   :  { %5405 = vrot.lane.b32.xlu1 %v5135_v11, %s14127_s1  ;;  %v5234_v11 = vld [vmem:[#allocation2 + $0x319] ss:$2 sm:$0xff] }
 0x84d   :  { %5533 = vrot.lane.b32.xlu0 %v5198_v27, %s8208_s22  ;;  %v5298_v27 = vld [vmem:[#allocation2 + $0x330] ss:$2 sm:$0xff] }
 0x84e   :  { %v5778_v32 = vpop.permute.xlu1 %5777 }
 0x84f   :  { %v5978_v48 = vsel %vm3793_vm6, %v5962_v6, %v5778_v32  ;;  %v5396_v42 = vpop.permute.xlu0 %5395  ;;  %5469 = vrot.lane.b32.xlu2 %v5167_v24, %s8205_s30 }
 0x850   :  { %v5994_v28 = vsel %vm3858_vm7, %v5978_v48, %v5842_v9  ;;  %v5883_v57 = vsel %vm45_vm0, %v5093_v13, %v5396_v42  ;;  %v5171_v9 = vld [vmem:[#allocation2 + $0x302] ss:$2 sm:$0xff] }
 0x851   :  { %8093 = vmatmul.msk.f32.gmra.mxu1 %vm3932_vm8, %v5994_v28  ;;  %v5398_v14 = vpop.permute.xlu2 %5397 }
 0x852   :  { %v5884_v34 = vsel %vm45_vm0, %v5095_v4, %v5398_v14 }
 0x854   :  { %5597 = vrot.lane.b32.xlu1 %v5230_v7, %s8207_s21  ;;  %v5330_v7 = vld [vmem:[#allocation2 + $0x331] ss:$2 sm:$0xff] }
 0x855   :  { %5725 = vrot.lane.b32.xlu0 %v5294_v12, %s8211_s16 }
 0x856   :  { %v5460_v63 = vpop.permute.xlu1 %5459 }
 0x857   :  { %v5588_v62 = vpop.permute.xlu0 %5587  ;;  %v5899_v45 = vsel %vm155_vm2, %v5883_v57, %v5460_v63  ;;  %5661 = vrot.lane.b32.xlu2 %v5262_v51, %s8206_s20 }
 0x858   :  { %v5915_v29 = vsel %vm3533_vm1, %v5899_v45, %v5524_v25  ;;  %v5202_v25 = vld [vmem:[#allocation2 + $0x318] ss:$2 sm:$0xff] }
 0x859   :  { %v5590_v10 = vpop.permute.xlu2 %5589  ;;  %v5931_v31 = vsel %vm3598_vm3, %v5915_v29, %v5588_v62  ;;  %v5099_v29 = vld [vmem:[#allocation2 + $0x240] ss:$2 sm:$0xff] }
 0x85c   :  { %5789 = vrot.lane.b32.xlu1 %v5326_v17, %s8210_s15 }
 0x85d   :  { %5407 = vrot.lane.b32.xlu0 %v5137_v43, %s14127_s1 }
 0x85e   :  { %v5652_v47 = vpop.permute.xlu1 %5651 }
 0x85f   :  { %v5780_v38 = vpop.permute.xlu0 %5779  ;;  %v5947_v30 = vsel %vm3663_vm4, %v5931_v31, %v5652_v47  ;;  %5853 = vrot.lane.b32.xlu2 %v5358_v3, %s8209_s14 }
 0x860   :  { %v5963_v55 = vsel %vm3728_vm5, %v5947_v30, %v5716_v2  ;;  %v5362_v2 = vld [vmem:[#allocation2 + $0x332] ss:$2 sm:$0xff] }
 0x861   :  { %v5979_v58 = vsel %vm3793_vm6, %v5963_v55, %v5780_v38  ;;  %v5782_v33 = vpop.permute.xlu2 %5781 }
 0x864   :  { %5471 = vrot.lane.b32.xlu1 %v5169_v40, %s8205_s30 }
 0x865   :  { %5599 = vrot.lane.b32.xlu0 %v5232_v23, %s8207_s21 }
 0x866   :  { %v5844_v49 = vpop.permute.xlu1 %5843 }
 0x867   :  { %v5462_v61 = vpop.permute.xlu0 %5461  ;;  %v5995_v26 = vsel %vm3858_vm7, %v5979_v58, %v5844_v49  ;;  %5535 = vrot.lane.b32.xlu2 %v5200_v59, %s8208_s22  ;;  %v5101_v59 = vld [vmem:[#allocation2 + $0x270] ss:$2 sm:$0xff] }
 0x868   :  { %8094 = vmatmul.msk.f32.gmra.mxu1 %vm3932_vm8, %v5995_v26  ;;  %v5900_v54 = vsel %vm155_vm2, %v5884_v34, %v5462_v61 }
 0x869   :  { %v5464_v56 = vpop.permute.xlu2 %5463 }
 0x86c   :  { %5663 = vrot.lane.b32.xlu1 %v5264_v41, %s8206_s20 }
 0x86d   :  { %5791 = vrot.lane.b32.xlu0 %v5328_v46, %s8210_s15 }
 0x86e   :  { %v5526_v60 = vpop.permute.xlu1 %5525 }
 0x86f   :  { %v5654_v15 = vpop.permute.xlu0 %5653  ;;  %v5916_v16 = vsel %vm3533_vm1, %v5900_v54, %v5526_v60  ;;  %5727 = vrot.lane.b32.xlu2 %v5296_v52, %s8211_s16 }
 0x870   :  { %v5932_v18 = vsel %vm3598_vm3, %v5916_v16, %v5590_v10 }
 0x871   :  { %v5948_v21 = vsel %vm3663_vm4, %v5932_v18, %v5654_v15  ;;  %v5656_v5 = vpop.permute.xlu2 %5655 }
 0x874   :  { %5855 = vrot.lane.b32.xlu1 %v5360_v53, %s8209_s14 }
 0x875   :  { %5473 = vrot.lane.b32.xlu0 %v5171_v9, %s8205_s30 }
 0x876   :  { %v5718_v44 = vpop.permute.xlu1 %5717 }
 0x877   :  { %v5964_v39 = vsel %vm3728_vm5, %v5948_v21, %v5718_v44  ;;  %v5846_v35 = vpop.permute.xlu0 %5845  ;;  %5409 = vrot.lane.b32.xlu2 %v5139_v19, %s14127_s1  ;;  %s8216_s1 = smov 96  }
 0x878   :  { %v5980_v37 = vsel %vm3793_vm6, %v5964_v39, %v5782_v33  ;;  %v5103_v39 = vld [vmem:[#allocation2 + $0x2a0] ss:$2 sm:$0xff] }
 0x879   :  { %v5996_v8 = vsel %vm3858_vm7, %v5980_v37, %v5846_v35  ;;  %v5848_v36 = vpop.permute.xlu2 %5847 }
 0x87a   :  { %8095 = vmatmul.msk.f32.gmra.mxu1 %vm3932_vm8, %v5996_v8 }
 0x87c   :  { %5537 = vrot.lane.b32.xlu1 %v5202_v25, %s8208_s22 }
 0x87d   :  { %5665 = vrot.lane.b32.xlu0 %v5266_v22, %s8206_s20 }
 0x87e   :  { %v5400_v0 = vpop.permute.xlu1 %5399 }
 0x87f   :  { %v5528_v20 = vpop.permute.xlu0 %5527  ;;  %v5885_v1 = vsel %vm45_vm0, %v5097_v50, %v5400_v0  ;;  %5601 = vrot.lane.b32.xlu2 %v5234_v11, %s8207_s21 }
 0x880   :  { %v5901_v6 = vsel %vm155_vm2, %v5885_v1, %v5464_v56 }
 0x881   :  { %v5530_v32 = vpop.permute.xlu2 %5529  ;;  %v5917_v42 = vsel %vm3533_vm1, %v5901_v6, %v5528_v20 }
 0x884   :  { %5729 = vrot.lane.b32.xlu1 %v5298_v27, %s8211_s16 }
 0x885   :  { %5857 = vrot.lane.b32.xlu0 %v5362_v2, %s8209_s14 }
 0x886   :  { %v5592_v48 = vpop.permute.xlu1 %5591 }
 0x887   :  { %v5720_v28 = vpop.permute.xlu0 %5719  ;;  %v5933_v24 = vsel %vm3598_vm3, %v5917_v42, %v5592_v48  ;;  %5793 = vrot.lane.b32.xlu2 %v5330_v7, %s8210_s15 }
 0x888   :  { %v5949_v12 = vsel %vm3663_vm4, %v5933_v24, %v5656_v5 }
 0x889   :  { %v5965_v13 = vsel %vm3728_vm5, %v5949_v12, %v5720_v28  ;;  %v5722_v14 = vpop.permute.xlu2 %5721 }
 0x88e   :  { %v5784_v63 = vpop.permute.xlu1 %5783 }
 0x88f   :  { %v5981_v62 = vsel %vm3793_vm6, %v5965_v13, %v5784_v63  ;;  %v5402_v57 = vpop.permute.xlu0 %5401 }
 0x890   :  { %v5997_v45 = vsel %vm3858_vm7, %v5981_v62, %v5848_v36  ;;  %v5886_v10 = vsel %vm45_vm0, %v5099_v29, %v5402_v57 }
 0x891   :  { %8096 = vmatmul.msk.f32.gmra.mxu1 %vm3932_vm8, %v5997_v45  ;;  %v5404_v51 = vpop.permute.xlu2 %5403 }
 0x892   :  { %v5887_v41 = vsel %vm45_vm0, %v5101_v59, %v5404_v51  ;;  %v13466_v59 = vpop.f32.mrf.mxu1 }
 0x896   :  { %v5466_v17 = vpop.permute.xlu1 %5465 }
 0x897   :  { %v5594_v43 = vpop.permute.xlu0 %5593  ;;  %v5902_v47 = vsel %vm155_vm2, %v5886_v10, %v5466_v17 }
 0x898   :  { %v5918_v31 = vsel %vm3533_vm1, %v5902_v47, %v5530_v32  ;;  %v5105_v32 = vld [vmem:[#allocation2 + $0x2d0] ss:$2 sm:$0xff] }
 0x899   :  { %v5596_v38 = vpop.permute.xlu2 %5595  ;;  %v5934_v3 = vsel %vm3598_vm3, %v5918_v31, %v5594_v43  ;;  %v5107_v43 = vld [vmem:[#allocation2 + $0x300] ss:$2 sm:$0xff] }
 0x89e   :  { %v5658_v30 = vpop.permute.xlu1 %5657 }
 0x89f   :  { %v5786_v55 = vpop.permute.xlu0 %5785  ;;  %v5950_v40 = vsel %vm3663_vm4, %v5934_v3, %v5658_v30 }
 0x8a0   :  { %v5966_v23 = vsel %vm3728_vm5, %v5950_v40, %v5722_v14 }
 0x8a1   :  { %v5982_v58 = vsel %vm3793_vm6, %v5966_v23, %v5786_v55  ;;  %v5788_v49 = vpop.permute.xlu2 %5787 }
 0x8a6   :  { %v5850_v33 = vpop.permute.xlu1 %5849 }
 0x8a7   :  { %v5468_v61 = vpop.permute.xlu0 %5467  ;;  %v5998_v26 = vsel %vm3858_vm7, %v5982_v58, %v5850_v33 }
 0x8a8   :  { %8097 = vmatmul.msk.f32.gmra.mxu1 %vm3932_vm8, %v5998_v26  ;;  %v5903_v4 = vsel %vm155_vm2, %v5887_v41, %v5468_v61  ;;  %v13468_v41 = vpop.f32.mrf.mxu1 }
 0x8a9   :  { %v5470_v60 = vpop.permute.xlu2 %5469 }
 0x8ae   :  { %v5532_v46 = vpop.permute.xlu1 %5531 }
 0x8af   :  { %v5660_v34 = vpop.permute.xlu0 %5659  ;;  %v5919_v56 = vsel %vm3533_vm1, %v5903_v4, %v5532_v46 }
 0x8b0   :  { %v5935_v54 = vsel %vm3598_vm3, %v5919_v56, %v5596_v38  ;;  %v13470_v46 = vpop.f32.mrf.mxu1 }
 0x8b1   :  { %v5951_v15 = vsel %vm3663_vm4, %v5935_v54, %v5660_v34  ;;  %v5662_v21 = vpop.permute.xlu2 %5661 }
 0x8b6   :  { %v5724_v16 = vpop.permute.xlu1 %5723 }
 0x8b7   :  { %v5967_v52 = vsel %vm3728_vm5, %v5951_v15, %v5724_v16  ;;  %v5852_v18 = vpop.permute.xlu0 %5851 }
 0x8b8   :  { %v5983_v53 = vsel %vm3793_vm6, %v5967_v52, %v5788_v49  ;;  %v13472_v4 = vpop.f32.mrf.mxu1 }
 0x8b9   :  { %v5999_v9 = vsel %vm3858_vm7, %v5983_v53, %v5852_v18  ;;  %v5854_v8 = vpop.permute.xlu2 %5853  ;;  %v6126_v53 = vsel %vm155_vm2, %v13468_v41, 0.0 }
 0x8ba   :  { %8098 = vmatmul.msk.f32.gmra.mxu1 %vm3932_vm8, %v5999_v9  ;;  %v6125_v9 = vsel %vm155_vm2, %v13466_v59, 0.0 }
 0x8be   :  { %v5406_v5 = vpop.permute.xlu1 %5405 }
 0x8bf   :  { %v5534_v44 = vpop.permute.xlu0 %5533  ;;  %v5888_v35 = vsel %vm45_vm0, %v5103_v39, %v5406_v5  ;;  %v6127_v5 = vadd.f32 %v6126_v53, %v6125_v9 }
 0x8c0   :  { %v5904_v37 = vsel %vm155_vm2, %v5888_v35, %v5470_v60  ;;  %v13474_v34 = vpop.f32.mrf.mxu1 }
 0x8c1   :  { %v5920_v25 = vsel %vm3533_vm1, %v5904_v37, %v5534_v44  ;;  %v5536_v1 = vpop.permute.xlu2 %5535  ;;  %v6130_v44 = vsel %vm155_vm2, %v13472_v4, 0.0  ;;  %v6132_v37 = vsel %vm155_vm2, %v13474_v34, 0.0 }
 0x8c6   :  { %v5598_v19 = vpop.permute.xlu1 %5597 }
 0x8c7   :  { %v5726_v22 = vpop.permute.xlu0 %5725  ;;  %v5936_v36 = vsel %vm3598_vm3, %v5920_v25, %v5598_v19 }
 0x8c8   :  { %v5952_v0 = vsel %vm3663_vm4, %v5936_v36, %v5662_v21  ;;  %v13476_v56 = vpop.f32.mrf.mxu1  ;;  %v6128_v21 = vsel %vm155_vm2, %v13470_v46, 0.0 }
 0x8c9   :  { %v5968_v20 = vsel %vm3728_vm5, %v5952_v0, %v5726_v22  ;;  %v5728_v28 = vpop.permute.xlu2 %5727  ;;  %v6129_v39 = vadd.f32 %v6128_v21, %v6127_v5  ;;  %v6134_v19 = vsel %vm155_vm2, %v13476_v56, 0.0 }
 0x8ce   :  { %v5790_v50 = vpop.permute.xlu1 %5789 }
 0x8cf   :  { %v5984_v11 = vsel %vm3793_vm6, %v5968_v20, %v5790_v50  ;;  %v5408_v27 = vpop.permute.xlu0 %5407 }
 0x8d0   :  { %v6000_v6 = vsel %vm3858_vm7, %v5984_v11, %v5854_v8  ;;  %v5889_v42 = vsel %vm45_vm0, %v5105_v32, %v5408_v27  ;;  %v13478_v60 = vpop.f32.mrf.mxu1  ;;  %v6131_v8 = vadd.f32 %v6130_v44, %v6129_v39 }
 0x8d1   :  { %8099 = vmatmul.msk.f32.gmra.mxu1 %vm3932_vm8, %v6000_v6  ;;  %v5410_v62 = vpop.permute.xlu2 %5409  ;;  %v6136_v22 = vsel %vm155_vm2, %v13478_v60, 0.0 }
 0x8d2   :  { %v5890_v47 = vsel %vm45_vm0, %v5107_v43, %v5410_v62  ;;  %v6133_v25 = vadd.f32 %v6132_v37, %v6131_v8 }
 0x8d4   :  { %v6135_v36 = vadd.f32 %v6134_v19, %v6133_v25 }
 0x8d6   :  { %v5472_v2 = vpop.permute.xlu1 %5471  ;;  %v6137_v20 = vadd.f32 %v6136_v22, %v6135_v36 }
 0x8d7   :  { %v5600_v48 = vpop.permute.xlu0 %5599  ;;  %v5905_v24 = vsel %vm155_vm2, %v5889_v42, %v5472_v2  ;;  %v8214_v2 = vmov 128.0  }
 0x8d8   :  { %v5921_v7 = vsel %vm3533_vm1, %v5905_v24, %v5536_v1  ;;  %v13480_v54 = vpop.f32.mrf.mxu1  ;;  %8166 = vrcp.f32 %v8214_v2 }
 0x8d9   :  { %v5937_v13 = vsel %vm3598_vm3, %v5921_v7, %v5600_v48  ;;  %v5602_v10 = vpop.permute.xlu2 %5601  ;;  %v6138_v0 = vsel %vm155_vm2, %v13480_v54, 0.0 }
 0x8da   :  { %v6139_v11 = vadd.f32 %v6138_v0, %v6137_v20 }
 0x8de   :  { %v5664_v12 = vpop.permute.xlu1 %5663 }
 0x8df   :  { %v5792_v14 = vpop.permute.xlu0 %5791  ;;  %v5953_v63 = vsel %vm3663_vm4, %v5937_v13, %v5664_v12  ;;  %v8167_v12 = vpop.eup %8166 }
 0x8e0   :  { %v5969_v57 = vsel %vm3728_vm5, %v5953_v63, %v5728_v28  ;;  %vm6167_vm14 = vweird.f32 %v8167_v12 }
 0x8e1   :  { %v5985_v45 = vsel %vm3793_vm6, %v5969_v57, %v5792_v14  ;;  %v5794_v58 = vpop.permute.xlu2 %5793  ;;  %v6163_v57 = vmul.f32 128.0, %v8167_v12 }
 0x8e3   :  { %v6164_v43 = vsub.f32 1.0, %v6163_v57 }
 0x8e5   :  { %v13482_v15 = vpop.f32.mrf.mxu1 }
 0x8e6   :  { %v5856_v51 = vpop.permute.xlu1 %5855  ;;  %v6140_v1 = vsel %vm155_vm2, %v13482_v15, 0.0 }
 0x8e7   :  { %v5474_v17 = vpop.permute.xlu0 %5473  ;;  %v6001_v29 = vsel %vm3858_vm7, %v5985_v45, %v5856_v51  ;;  %v6141_v6 = vadd.f32 %v6140_v1, %v6139_v11 }
 0x8e8   :  { %8100 = vmatmul.msk.f32.gmra.mxu1 %vm3932_vm8, %v6001_v29  ;;  %v5906_v38 = vsel %vm155_vm2, %v5890_v47, %v5474_v17 }
 0x8ee   :  { %v5538_v31 = vpop.permute.xlu1 %5537 }
 0x8ef   :  { %v5666_v30 = vpop.permute.xlu0 %5665  ;;  %v5922_v3 = vsel %vm3533_vm1, %v5906_v38, %v5538_v31  ;;  %v6165_v31 = vmul.f32 %v8167_v12, %v6164_v43 }
 0x8f0   :  { %v5938_v55 = vsel %vm3598_vm3, %v5922_v3, %v5602_v10 }
 0x8f1   :  { %v5954_v40 = vsel %vm3663_vm4, %v5938_v55, %v5666_v30  ;;  %v6166_v3 = vadd.f32 %v8167_v12, %v6165_v31  ;;  %vm6544_vm4 = vcmask 654336  }
 0x8f6   :  { %v5730_v23 = vpop.permute.xlu1 %5729 }
 0x8f7   :  { %v5970_v33 = vsel %vm3728_vm5, %v5954_v40, %v5730_v23  ;;  %v5858_v49 = vpop.permute.xlu0 %5857  ;;  %v13484_v16 = vpop.f32.mrf.mxu1  ;;  %v13530_v23 = vsel %vm6167_vm14, %v8167_v12, %v6166_v3  ;;  %vm6866_vm14 = vcmask 517120  }
 0x8f8   :  { %v5986_v61 = vsel %vm3793_vm6, %v5970_v33, %v5794_v58  ;;  %v6142_v27 = vsel %vm155_vm2, %v13484_v16, 0.0  ;;  %vm197_vm6 = vcmask 257024  }
 0x8f9   :  { %v6002_v26 = vsel %vm3858_vm7, %v5986_v61, %v5858_v49  ;;  %v6143_v48 = vadd.f32 %v6142_v27, %v6141_v6 }
 0x8fa   :  { %8101 = vmatmul.msk.f32.gmra.mxu1 %vm3932_vm8, %v6002_v26  ;;  %vm6546_vm8 = vcmask 785408  }
 0x90e   :  { %v13486_v52 = vpop.f32.mrf.mxu1 }
 0x90f   :  { %v6144_v32 = vsel %vm155_vm2, %v13486_v52, 0.0 }
 0x910   :  { %v6145_v28 = vadd.f32 %v6144_v32, %v6143_v48 }
 0x925   :  { %v13488_v18 = vpop.f32.mrf.mxu1 }
 0x926   :  { %v6146_v42 = vsel %vm155_vm2, %v13488_v18, 0.0 }
 0x927   :  { %v6147_v13 = vadd.f32 %v6146_v42, %v6145_v28 }
 0x937   :  { %v13498_v35 = vpop.f32.mrf.mxu1 }
 0x938   :  { %v6148_v7 = vsel %vm155_vm2, %v13498_v35, 0.0 }
 0x939   :  { %v6149_v63 = vadd.f32 %v6148_v7, %v6147_v13 }
 0x94e   :  { %v13508_v50 = vpop.f32.mrf.mxu1 }
 0x94f   :  { %v6150_v14 = vsel %vm155_vm2, %v13508_v50, 0.0 }
 0x950   :  { %v6151_v45 = vadd.f32 %v6150_v14, %v6149_v63 }
 0x965   :  { %v13518_v24 = vpop.f32.mrf.mxu1 }
 0x966   :  { %v6152_v62 = vsel %vm155_vm2, %v13518_v24, 0.0 }
 0x967   :  { %v6153_v51 = vadd.f32 %v6152_v62, %v6151_v45 }
 0x977   :  { %v13526_v17 = vpop.f32.mrf.mxu1 }
 0x978   :  { %v6154_v29 = vsel %vm155_vm2, %v13526_v17, 0.0 }
 0x979   :  { %v6155_v10 = vadd.f32 %v6154_v29, %v6153_v51 }
 0x97b   :  { %v6156_v47 = vrot.slane %v6155_v10, 4 }
 0x97d   :  { %v6157_v38 = vadd.f32 %v6156_v47, %v6155_v10 }
 0x97f   :  { %v6158_v30 = vrot.slane %v6157_v38, 2 }
 0x981   :  { %v6159_v55 = vadd.f32 %v6158_v30, %v6157_v38 }
 0x983   :  { %v6160_v40 = vrot.slane %v6159_v55, 1 }
 0x985   :  { %v6161_v58 = vadd.f32 %v6160_v40, %v6159_v55 }
 0x987   :  { %v6169_v33 = vmul.f32 %v13530_v23, %v6161_v58 }
 0x989   :  { %v13534_v49 = vsub.f32 %v13466_v59, %v6169_v33  ;;  %v13537_v61 = vsub.f32 %v13468_v41, %v6169_v33  ;;  %v6172_v26 = vsub.f32 %v13470_v46, %v6169_v33  ;;  %v13541_v53 = vsub.f32 %v13472_v4, %v6169_v33 }
 0x98a   :  { %v13548_v5 = vsub.f32 %v13474_v34, %v6169_v33  ;;  %v13551_v59 = vsub.f32 %v13476_v56, %v6169_v33  ;;  %v6176_v37 = vsub.f32 %v13478_v60, %v6169_v33  ;;  %v6177_v25 = vsub.f32 %v13480_v54, %v6169_v33 }
 0x98b   :  { %v6186_v9 = vmul.f32 %v13534_v49, %v13534_v49  ;;  %v6187_v21 = vmul.f32 %v13537_v61, %v13537_v61  ;;  %v6188_v44 = vmul.f32 %v6172_v26, %v6172_v26  ;;  %v6189_v41 = vmul.f32 %v13541_v53, %v13541_v53 }
 0x98c   :  { %v6190_v8 = vmul.f32 %v13548_v5, %v13548_v5  ;;  %v6191_v56 = vmul.f32 %v13551_v59, %v13551_v59  ;;  %v13566_v0 = vsub.f32 %v13482_v15, %v6169_v33  ;;  %v6192_v20 = vmul.f32 %v6176_v37, %v6176_v37 }
 0x98d   :  { %v6202_v46 = vsel %vm155_vm2, %v6186_v9, 0.0  ;;  %v6203_v4 = vsel %vm155_vm2, %v6187_v21, 0.0  ;;  %v6205_v34 = vsel %vm155_vm2, %v6188_v44, 0.0  ;;  %v6207_v22 = vsel %vm155_vm2, %v6189_v41, 0.0 }
 0x98e   :  { %v6204_v39 = vadd.f32 %v6203_v4, %v6202_v46  ;;  %v6209_v60 = vsel %vm155_vm2, %v6190_v8, 0.0  ;;  %v13570_v11 = vsub.f32 %v13484_v16, %v6169_v33  ;;  %v6193_v27 = vmul.f32 %v6177_v25, %v6177_v25 }
 0x98f   :  { %v6211_v6 = vsel %vm155_vm2, %v6191_v56, 0.0  ;;  %v6180_v2 = vsub.f32 %v13486_v52, %v6169_v33  ;;  %v6194_v32 = vmul.f32 %v13566_v0, %v13566_v0  ;;  %v6213_v48 = vsel %vm155_vm2, %v6192_v20, 0.0 }
 0x990   :  { %v6206_v19 = vadd.f32 %v6205_v34, %v6204_v39  ;;  %v13578_v42 = vsub.f32 %v13488_v18, %v6169_v33  ;;  %v6195_v28 = vmul.f32 %v13570_v11, %v13570_v11  ;;  %v6215_v16 = vsel %vm155_vm2, %v6193_v27, 0.0 }
 0x991   :  { %v13584_v12 = vsub.f32 %v13498_v35, %v6169_v33  ;;  %v6196_v13 = vmul.f32 %v6180_v2, %v6180_v2  ;;  %v6217_v52 = vsel %vm155_vm2, %v6194_v32, 0.0  ;;  %v13588_v63 = vsub.f32 %v13508_v50, %v6169_v33 }
 0x992   :  { %v6208_v36 = vadd.f32 %v6207_v22, %v6206_v19  ;;  %v6197_v18 = vmul.f32 %v13578_v42, %v13578_v42  ;;  %v6219_v62 = vsel %vm155_vm2, %v6195_v28, 0.0  ;;  %v6184_v45 = vsub.f32 %v13518_v24, %v6169_v33  ;;  %v6340_v22 = vld [vmem:[#allocation3] ss:$4 sm:$0x3] }
 0x993   :  { %v6198_v51 = vmul.f32 %v13584_v12, %v13584_v12  ;;  %v6221_v35 = vsel %vm155_vm2, %v6196_v13, 0.0  ;;  %v6185_v43 = vsub.f32 %v13526_v17, %v6169_v33  ;;  %v6199_v50 = vmul.f32 %v13588_v63, %v13588_v63  ;;  %6414 = vst [vmem:[#allocation1] ss:$4 sm:$0xff] %v6340_v22  ;;  %v6563_v22 = vld [vmem:[%s13867_s7 + $0x68] sm:$0xff] }
 0x994   :  { %v6210_v1 = vadd.f32 %v6209_v60, %v6208_v36  ;;  %v6223_v10 = vsel %vm155_vm2, %v6197_v18, 0.0  ;;  %v6200_v31 = vmul.f32 %v6184_v45, %v6184_v45  ;;  %v6344_v36 = vld [vmem:[#allocation3 + $0xa0] ss:$4 sm:$0x3] }
 0x995   :  { %v6225_v38 = vsel %vm155_vm2, %v6198_v51, 0.0  ;;  %v6201_v3 = vmul.f32 %v6185_v43, %v6185_v43  ;;  %v6227_v24 = vsel %vm155_vm2, %v6199_v50, 0.0  ;;  %6418 = vst [vmem:[#allocation1 + $0x2] ss:$4 sm:$0xff] %v6344_v36 }
 0x996   :  { %v6212_v54 = vadd.f32 %v6211_v6, %v6210_v1  ;;  %v6229_v40 = vsel %vm155_vm2, %v6200_v31, 0.0  ;;  %v8156_v1 = vld [vmem:[%s13865_s5] ss:$0 sm:$0xff] }
 0x997   :  { %v6231_v26 = vsel %vm155_vm2, %v6201_v3, 0.0 }
 0x998   :  { %v6214_v15 = vadd.f32 %v6213_v48, %v6212_v54  ;;  %v8157_v48 = vld [vmem:[%s13866_s6] ss:$0 sm:$0xff] }
 0x99a   :  { %v6216_v7 = vadd.f32 %v6215_v16, %v6214_v15 }
 0x99c   :  { %v6218_v14 = vadd.f32 %v6217_v52, %v6216_v7 }
 0x99e   :  { %v6220_v57 = vadd.f32 %v6219_v62, %v6218_v14 }
 0x9a0   :  { %v6222_v29 = vadd.f32 %v6221_v35, %v6220_v57 }
 0x9a2   :  { %v6224_v47 = vadd.f32 %v6223_v10, %v6222_v29 }
 0x9a4   :  { %v6226_v30 = vadd.f32 %v6225_v38, %v6224_v47 }
 0x9a6   :  { %v6228_v55 = vadd.f32 %v6227_v24, %v6226_v30 }
 0x9a8   :  { %v6230_v58 = vadd.f32 %v6229_v40, %v6228_v55 }
 0x9aa   :  { %v6232_v17 = vadd.f32 %v6231_v26, %v6230_v58  ;;  %v6348_v58 = vld [vmem:[#allocation3 + $0x1] ss:$4 sm:$0x3] }
 0x9ab   :  { %v6352_v26 = vld [vmem:[#allocation3 + $0xa1] ss:$4 sm:$0x3] }
 0x9ac   :  { %v6233_v33 = vrot.slane %v6232_v17, 4 }
 0x9ae   :  { %v6234_v9 = vadd.f32 %v6233_v33, %v6232_v17 }
 0x9b0   :  { %v6235_v21 = vrot.slane %v6234_v9, 2 }
 0x9b2   :  { %v6236_v44 = vadd.f32 %v6235_v21, %v6234_v9  ;;  %v6565_v21 = vld [vmem:[%s13867_s7 + $0x78] sm:$0xff] }
 0x9b3   :  { %6570 = vmatpush.msrb.mxu2 %v6565_v21  ;;  %v14176_v21 = vmov 0.0  }
 0x9b4   :  { %v6237_v41 = vrot.slane %v6236_v44, 1  ;;  %199 = vst.msk [vmem:[#allocation4 + $0x4] sm:$0xf] %vm197_vm6, %v14176_v21 }
 0x9b5   :  { %200 = vst.msk [vmem:[#allocation4 + $0x8] sm:$0xf] %vm197_vm6, %v14176_v21 }
 0x9b6   :  { %v6238_v46 = vadd.f32 %v6237_v41, %v6236_v44  ;;  %v6356_v44 = vld [vmem:[#allocation3 + $0x2] ss:$4 sm:$0x3]  ;;  %203 = vst.msk [vmem:[#allocation4 + $0x14] sm:$0xf] %vm197_vm6, %v14176_v21 }
 0x9b7   :  { %v6360_v41 = vld [vmem:[#allocation3 + $0xa2] ss:$4 sm:$0x3]  ;;  %204 = vst.msk [vmem:[#allocation4 + $0x18] sm:$0xf] %vm197_vm6, %v14176_v21 }
 0x9b8   :  { %v6239_v4 = vmul.f32 %v6238_v46, %v13530_v23  ;;  %198 = vst.msk [vmem:[#allocation4] sm:$0xf] %vm197_vm6, %v14176_v21 }
 0x9b9   :  { %202 = vst.msk [vmem:[#allocation4 + $0x10] sm:$0xf] %vm197_vm6, %v14176_v21  ;;  %v6796_v21 = vld [vmem:[%s13870_s10 + $0xe0] sm:$0xff] }
 0x9ba   :  { %v6240_v39 = vadd.f32 1e-05, %v6239_v4 }
 0x9bc   :  { %8168 = vrsqrt.f32 %v6240_v39  ;;  %vm6247_vm0 = vweird.f32 %v6240_v39 }
 0x9c2   :  { %v8169_v37 = vpop.eup %8168 }
 0x9c3   :  { %v6242_v8 = vmul.f32 %v8169_v37, %v6240_v39  ;;  %vm6248_vm15 = vweird.f32 %v8169_v37 }
 0x9c4   :  { %vm6249_vm1 = vmor %vm6247_vm0, %vm6248_vm15 }
 0x9c5   :  { %v6243_v34 = vmul.f32 %v8169_v37, %v6242_v8  ;;  %v6564_v8 = vld [vmem:[%s13867_s7 + $0x70] sm:$0xff] }
 0x9c6   :  { %6571 = vmatpush.msrb.mxu2 %v6564_v8 }
 0x9c7   :  { %v6244_v19 = vmul.f32 0.5, %v6243_v34 }
 0x9c8   :  { %6572 = vmatpush.msrb.mxu2 %v6563_v22 }
 0x9c9   :  { %v6245_v25 = vsub.f32 1.5, %v6244_v19 }
 0x9cb   :  { %v6246_v56 = vmul.f32 %v8169_v37, %v6245_v25 }
 0x9cd   :  { %v6250_v20 = vsel %vm6249_vm1, %v8169_v37, %v6246_v56  ;;  %v6567_v37 = vld [vmem:[%s13867_s7 + $0x88] sm:$0xff]  ;;  %vm6918_vm1 = vcmask 516096  }
 0x9ce   :  { %v6251_v60 = vmul.f32 %v6250_v20, %v13534_v49  ;;  %v6252_v23 = vmul.f32 %v6250_v20, %v13537_v61  ;;  %v6254_v27 = vmul.f32 %v6250_v20, %v13541_v53  ;;  %v6256_v6 = vmul.f32 %v6250_v20, %v13551_v59  ;;  %6604 = vmatpush.msrb.mxu3 %v6567_v37 }
 0x9cf   :  { %v6255_v54 = vmul.f32 %v6250_v20, %v13548_v5  ;;  %v6259_v49 = vmul.f32 %v6250_v20, %v13566_v0  ;;  %v6260_v28 = vmul.f32 %v6250_v20, %v13570_v11  ;;  %v6262_v53 = vmul.f32 %v6250_v20, %v13578_v42 }
 0x9d0   :  { %v6271_v2 = vmul.f32 %v8156_v1, %v6251_v60  ;;  %v6272_v32 = vmul.f32 %v8156_v1, %v6252_v23  ;;  %v6274_v15 = vmul.f32 %v8156_v1, %v6254_v27  ;;  %v6276_v16 = vmul.f32 %v8156_v1, %v6256_v6  ;;  %v6562_v27 = vld [vmem:[%s13867_s7 + $0x60] sm:$0xff] }
 0x9d1   :  { %v6275_v61 = vmul.f32 %v8156_v1, %v6255_v54  ;;  %v6263_v5 = vmul.f32 %v6250_v20, %v13584_v12  ;;  %v6264_v52 = vmul.f32 %v6250_v20, %v13588_v63  ;;  %v6279_v14 = vmul.f32 %v8156_v1, %v6259_v49  ;;  %6573 = vmatpush.msrb.mxu2 %v6562_v27  ;;  %v6566_v49 = vld [vmem:[%s13867_s7 + $0x80] sm:$0xff] }
 0x9d2   :  { %v6291_v7 = vadd.f32 %v8157_v48, %v6271_v2  ;;  %v6292_v13 = vadd.f32 %v8157_v48, %v6272_v32  ;;  %v6294_v59 = vadd.f32 %v8157_v48, %v6274_v15  ;;  %v6280_v62 = vmul.f32 %v8156_v1, %v6260_v28  ;;  %6605 = vmatpush.msrb.mxu3 %v6566_v49 }
 0x9d3   :  { %v6295_v18 = vadd.f32 %v8157_v48, %v6275_v61  ;;  %v6296_v57 = vadd.f32 %v8157_v48, %v6276_v16  ;;  %v6282_v0 = vmul.f32 %v8156_v1, %v6262_v53  ;;  %v6283_v29 = vmul.f32 %v8156_v1, %v6263_v5  ;;  %v6561_v61 = vld [vmem:[%s13867_s7 + $0x58] sm:$0xff]  ;;  %v6560_v53 = vld [vmem:[%s13867_s7 + $0x50] sm:$0xff] }
 0x9d4   :  { %v6307_v45 = vmax.f32 %v6291_v7, 0.0  ;;  %v6308_v51 = vmax.f32 %v6292_v13, 0.0  ;;  %v6310_v35 = vmax.f32 %v6294_v59, 0.0  ;;  %v6299_v11 = vadd.f32 %v8157_v48, %v6279_v14  ;;  %6574 = vmatpush.msrb.mxu2 %v6561_v61  ;;  %v6559_v59 = vld [vmem:[%s13867_s7 + $0x48] sm:$0xff]  ;;  %v6557_v14 = vld [vmem:[%s13867_s7 + $0x38] sm:$0xff] }
 0x9d5   :  { %v6311_v43 = vmax.f32 %v6295_v18, 0.0  ;;  %v6284_v50 = vmul.f32 %v8156_v1, %v6264_v52  ;;  %v6300_v42 = vadd.f32 %v8157_v48, %v6280_v62  ;;  %v6312_v10 = vmax.f32 %v6296_v57, 0.0  ;;  %v6558_v52 = vld [vmem:[%s13867_s7 + $0x40] sm:$0xff] }
 0x9d6   :  { %6324 = vst.msk [vmem:[#allocation3 + $0x11] sm:$0xff] %vm155_vm2, %v6307_v45  ;;  %v6302_v12 = vadd.f32 %v8157_v48, %v6282_v0  ;;  %v6303_v63 = vadd.f32 %v8157_v48, %v6283_v29  ;;  %v6315_v47 = vmax.f32 %v6299_v11, 0.0  ;;  %6575 = vmatpush.msrb.mxu2 %v6560_v53 }
 0x9d7   :  { %6325 = vst.msk [vmem:[#allocation3 + $0x21] sm:$0xff] %vm155_vm2, %v6308_v51  ;;  %v6304_v31 = vadd.f32 %v8157_v48, %v6284_v50  ;;  %v6316_v38 = vmax.f32 %v6300_v42, 0.0  ;;  %v6556_v50 = vld [vmem:[%s13867_s7 + $0x30] sm:$0xff]  ;;  %v6555_v42 = vld [vmem:[%s13867_s7 + $0x28] sm:$0xff] }
 0x9d8   :  { %6327 = vst.msk [vmem:[#allocation3 + $0x41] sm:$0xff] %vm155_vm2, %v6310_v35  ;;  %v6318_v30 = vmax.f32 %v6302_v12, 0.0  ;;  %v6319_v3 = vmax.f32 %v6303_v63, 0.0  ;;  %6576 = vmatpush.msrb.mxu2 %v6559_v59  ;;  %v6554_v12 = vld [vmem:[%s13867_s7 + $0x20] sm:$0xff]  ;;  %v6553_v63 = vld [vmem:[%s13867_s7 + $0x18] sm:$0xff] }
 0x9d9   :  { %6328 = vst.msk [vmem:[#allocation3 + $0x51] sm:$0xff] %vm155_vm2, %v6311_v43  ;;  %v6320_v24 = vmax.f32 %v6304_v31, 0.0  ;;  %v6551_v31 = vld [vmem:[%s13867_s7 + $0x8] sm:$0xff] }
 0x9da   :  { %6329 = vst.msk [vmem:[#allocation3 + $0x61] sm:$0xff] %vm155_vm2, %v6312_v10  ;;  %6577 = vmatpush.msrb.mxu2 %v6558_v52  ;;  %v6679_v52 = vld [vmem:[#allocation4 + $0x2] ss:$2 sm:$0x1] }
 0x9db   :  { %6332 = vst.msk [vmem:[#allocation3 + $0xb1] sm:$0xff] %vm155_vm2, %v6315_v47  ;;  %v6552_v47 = vld [vmem:[%s13867_s7 + $0x10] sm:$0xff] }
 0x9dc   :  { %6333 = vst.msk [vmem:[#allocation3 + $0xc1] sm:$0xff] %vm155_vm2, %v6316_v38  ;;  %6578 = vmatpush.msrb.mxu2 %v6557_v14  ;;  %v6550_v38 = vld [vmem:[%s13867_s7] sm:$0xff]  ;;  %v6681_v14 = vld [vmem:[#allocation4 + $0x12] ss:$2 sm:$0x1] }
 0x9dd   :  { %6335 = vst.msk [vmem:[#allocation3 + $0xe1] sm:$0xff] %vm155_vm2, %v6318_v30  ;;  %v6363_v34 = vld [vmem:[#allocation3 + $0x10] ss:$4 sm:$0x3] }
 0x9de   :  { %6336 = vst.msk [vmem:[#allocation3 + $0xf1] sm:$0xff] %vm155_vm2, %v6319_v3  ;;  %v6371_v20 = vld [vmem:[#allocation3 + $0x11] ss:$4 sm:$0x3]  ;;  %6579 = vmatpush.msrb.mxu2 %v6556_v50 }
 0x9df   :  { %6337 = vst.msk [vmem:[#allocation3 + $0x101] sm:$0xff] %vm155_vm2, %v6320_v24  ;;  %v6342_v55 = vld [vmem:[#allocation3 + $0x40] ss:$4 sm:$0x3] }
 0x9e0   :  { %6416 = vst [vmem:[#allocation1 + $0x1] ss:$4 sm:$0xff] %v6342_v55  ;;  %v6350_v33 = vld [vmem:[#allocation3 + $0x41] ss:$4 sm:$0x3]  ;;  %6580 = vmatpush.msrb.mxu2 %v6555_v42 }
 0x9e1   :  { %v6358_v4 = vld [vmem:[#allocation3 + $0x42] ss:$4 sm:$0x3]  ;;  %v6365_v25 = vld [vmem:[#allocation3 + $0x50] ss:$4 sm:$0x3] }
 0x9e2   :  { %v6367_v56 = vld [vmem:[#allocation3 + $0xb0] ss:$4 sm:$0x3]  ;;  %v6373_v23 = vld [vmem:[#allocation3 + $0x51] ss:$4 sm:$0x3]  ;;  %6581 = vmatpush.msrb.mxu2 %v6554_v12 }
 0x9e3   :  { %v6375_v1 = vld [vmem:[#allocation3 + $0xb1] ss:$4 sm:$0x3]  ;;  %v6379_v54 = vld [vmem:[#allocation3 + $0x12] ss:$4 sm:$0x3] }
 0x9e4   :  { %v6346_v40 = vld [vmem:[#allocation3 + $0xe0] ss:$4 sm:$0x3]  ;;  %v6354_v9 = vld [vmem:[#allocation3 + $0xe1] ss:$4 sm:$0x3]  ;;  %6582 = vmatpush.msrb.mxu2 %v6553_v63 }
 0x9e5   :  { %6420 = vst [vmem:[#allocation1 + $0x3] ss:$4 sm:$0xff] %v6346_v40  ;;  %v6362_v39 = vld [vmem:[#allocation3 + $0xe2] ss:$4 sm:$0x3] }
 0x9e6   :  { %v6369_v36 = vld [vmem:[#allocation3 + $0xf0] ss:$4 sm:$0x3]  ;;  %v6377_v6 = vld [vmem:[#allocation3 + $0xf1] ss:$4 sm:$0x3]  ;;  %6583 = vmatpush.msrb.mxu2 %v6552_v47 }
 0x9e7   :  { %v6381_v32 = vld [vmem:[#allocation3 + $0x52] ss:$4 sm:$0x3]  ;;  %v6393_v28 = vld [vmem:[#allocation3 + $0x100] ss:$4 sm:$0x3] }
 0x9e8   :  { %v6383_v48 = vld [vmem:[#allocation3 + $0xb2] ss:$4 sm:$0x3]  ;;  %v6387_v7 = vld [vmem:[#allocation3 + $0x20] ss:$4 sm:$0x3]  ;;  %6584 = vmatpush.msrb.mxu2 %v6551_v31 }
 0x9e9   :  { %v6385_v15 = vld [vmem:[#allocation3 + $0xf2] ss:$4 sm:$0x3]  ;;  %v6389_v13 = vld [vmem:[#allocation3 + $0x60] ss:$4 sm:$0x3] }
 0x9ea   :  { %v6391_v5 = vld [vmem:[#allocation3 + $0xc0] ss:$4 sm:$0x3]  ;;  %v6395_v62 = vld [vmem:[#allocation3 + $0x21] ss:$4 sm:$0x3]  ;;  %6585 = vmatpush.msrb.mxu2 %v6550_v38 }
 0x9eb   :  { %v6397_v57 = vld [vmem:[#allocation3 + $0x61] ss:$4 sm:$0x3]  ;;  %v6403_v0 = vld [vmem:[#allocation3 + $0x22] ss:$4 sm:$0x3] }
 0x9ec   :  { %v13632_v17 = vld.sshfl [vmem:[#allocation1] sm:$0xff pattern:$0x73625140]  ;;  %v6399_v45 = vld [vmem:[#allocation3 + $0xc1] ss:$4 sm:$0x3] }
 0x9ed   :  { %6427 = vst [vmem:[#allocation1] ss:$4 sm:$0xff] %v6348_v58  ;;  %v6401_v51 = vld [vmem:[#allocation3 + $0x101] ss:$4 sm:$0x3]  ;;  %v6783_v31 = vld [vmem:[%s13870_s10 + $0x78] sm:$0xff] }
 0x9ee   :  { %6429 = vst [vmem:[#allocation1 + $0x1] ss:$4 sm:$0xff] %v6350_v33  ;;  %v6405_v29 = vld [vmem:[#allocation3 + $0x62] ss:$4 sm:$0x3]  ;;  %v6782_v38 = vld [vmem:[%s13870_s10 + $0x70] sm:$0xff]  ;;  %6806 = vmatpush.msra.mxu3 %v6783_v31 }
 0x9ef   :  { %6431 = vst [vmem:[#allocation1 + $0x2] ss:$4 sm:$0xff] %v6352_v26  ;;  %v6407_v11 = vld [vmem:[#allocation3 + $0xc2] ss:$4 sm:$0x3] }
 0x9f0   :  { %6433 = vst [vmem:[#allocation1 + $0x3] ss:$4 sm:$0xff] %v6354_v9  ;;  %v6409_v43 = vld [vmem:[#allocation3 + $0x102] ss:$4 sm:$0x3]  ;;  %6807 = vmatpush.msra.mxu3 %v6782_v38 }
 0x9f1   :  { %v8159_v47 = vld [vmem:[%s13869_s9] ss:$0 sm:$0xff] }
 0x9f7   :  { %v6434_v46 = vld.sshfl [vmem:[#allocation1] sm:$0xff pattern:$0x73625140] }
 0x9f8   :  { %6442 = vst [vmem:[#allocation1] ss:$4 sm:$0xff] %v6356_v44  ;;  %6435 = vrot.lane.b32.xlu1 %v6434_v46, %s8205_s30 }
 0x9f9   :  { %6444 = vst [vmem:[#allocation1 + $0x1] ss:$4 sm:$0xff] %v6358_v4 }
 0x9fa   :  { %6446 = vst [vmem:[#allocation1 + $0x2] ss:$4 sm:$0xff] %v6360_v41 }
 0x9fb   :  { %6448 = vst [vmem:[#allocation1 + $0x3] ss:$4 sm:$0xff] %v6362_v39  ;;  %v8218_v39 = vmov 8.0  }
 0x9fc   :  { %8170 = vrcp.f32 %v8218_v39  ;;  %v6677_v39 = vld [vmem:[#allocation4 + $0x11] ss:$2 sm:$0x1] }
 0xa02   :  { %v6449_v19 = vld.sshfl [vmem:[#allocation1] sm:$0xff pattern:$0x73625140]  ;;  %v8171_v37 = vpop.eup %8170 }
 0xa03   :  { %6457 = vst [vmem:[#allocation1] ss:$4 sm:$0xff] %v6363_v34  ;;  %6450 = vrot.lane.b32.xlu2 %v6449_v19, %s8207_s21  ;;  %v6618_v8 = vmul.f32 8.0, %v8171_v37 }
 0xa04   :  { %6459 = vst [vmem:[#allocation1 + $0x1] ss:$4 sm:$0xff] %v6365_v25 }
 0xa05   :  { %6461 = vst [vmem:[#allocation1 + $0x2] ss:$4 sm:$0xff] %v6367_v56  ;;  %v6619_v56 = vsub.f32 1.0, %v6618_v8  ;;  %v6775_v8 = vld [vmem:[%s13870_s10 + $0x38] sm:$0xff] }
 0xa06   :  { %6463 = vst [vmem:[#allocation1 + $0x3] ss:$4 sm:$0xff] %v6369_v36 }
 0xa0d   :  { %v6464_v60 = vld.sshfl [vmem:[#allocation1] sm:$0xff pattern:$0x73625140] }
 0xa0e   :  { %6472 = vst [vmem:[#allocation1] ss:$4 sm:$0xff] %v6371_v20  ;;  %6465 = vrot.lane.b32.xlu0 %v6464_v60, %s8211_s16  ;;  %v6620_v20 = vmul.f32 %v8171_v37, %v6619_v56 }
 0xa0f   :  { %6474 = vst [vmem:[#allocation1 + $0x1] ss:$4 sm:$0xff] %v6373_v23 }
 0xa10   :  { %6476 = vst [vmem:[#allocation1 + $0x2] ss:$4 sm:$0xff] %v6375_v1  ;;  %v6621_v1 = vadd.f32 %v8171_v37, %v6620_v20 }
 0xa11   :  { %6478 = vst [vmem:[#allocation1 + $0x3] ss:$4 sm:$0xff] %v6377_v6 }
 0xa18   :  { %v6479_v2 = vld.sshfl [vmem:[#allocation1] sm:$0xff pattern:$0x73625140] }
 0xa19   :  { %6480 = vrot.lane.b32.xlu1 %v6479_v2, %s8209_s14  ;;  %6487 = vst [vmem:[#allocation1] ss:$4 sm:$0xff] %v6379_v54 }
 0xa1a   :  { %6489 = vst [vmem:[#allocation1 + $0x1] ss:$4 sm:$0xff] %v6381_v32 }
 0xa1b   :  { %6491 = vst [vmem:[#allocation1 + $0x2] ss:$4 sm:$0xff] %v6383_v48 }
 0xa1c   :  { %6493 = vst [vmem:[#allocation1 + $0x3] ss:$4 sm:$0xff] %v6385_v15 }
 0xa23   :  { %v6494_v16 = vld.sshfl [vmem:[#allocation1] sm:$0xff pattern:$0x73625140] }
 0xa24   :  { %6495 = vrot.lane.b32.xlu2 %v6494_v16, %s8215_s28  ;;  %6508 = vst [vmem:[#allocation1 + $0x3] ss:$4 sm:$0xff] %v6393_v28 }
 0xa25   :  { %6502 = vst [vmem:[#allocation1] ss:$4 sm:$0xff] %v6387_v7 }
 0xa26   :  { %6504 = vst [vmem:[#allocation1 + $0x1] ss:$4 sm:$0xff] %v6389_v13 }
 0xa27   :  { %6506 = vst [vmem:[#allocation1 + $0x2] ss:$4 sm:$0xff] %v6391_v5 }
 0xa2e   :  { %v6509_v18 = vld.sshfl [vmem:[#allocation1] sm:$0xff pattern:$0x73625140] }
 0xa2f   :  { %6510 = vrot.lane.b32.xlu0 %v6509_v18, %s8216_s1  ;;  %6517 = vst [vmem:[#allocation1] ss:$4 sm:$0xff] %v6395_v62  ;;  %v6682_v18 = vld [vmem:[#allocation4 + $0x4] ss:$2 sm:$0x1]  ;;  %v6720_v62 = vrot.slane %v6681_v14, 7 }
 0xa30   :  { %6519 = vst [vmem:[#allocation1 + $0x1] ss:$4 sm:$0xff] %v6397_v57  ;;  %v6684_v57 = vld [vmem:[#allocation4 + $0x14] ss:$2 sm:$0x1] }
 0xa31   :  { %6521 = vst [vmem:[#allocation1 + $0x2] ss:$4 sm:$0xff] %v6399_v45  ;;  %v6727_v45 = vrot.slane %v6684_v57, 7  ;;  %v6803_v14 = vld [vmem:[%s13870_s10 + $0x118] sm:$0xff]  ;;  %v6790_v57 = vld [vmem:[%s13870_s10 + $0xb0] sm:$0xff] }
 0xa32   :  { %6523 = vst [vmem:[#allocation1 + $0x3] ss:$4 sm:$0xff] %v6401_v51 }
 0xa39   :  { %v6524_v35 = vld.sshfl [vmem:[#allocation1] sm:$0xff pattern:$0x73625140] }
 0xa3a   :  { %6525 = vrot.lane.b32.xlu1 %v6524_v35, %s8217_s19  ;;  %6532 = vst [vmem:[#allocation1] ss:$4 sm:$0xff] %v6403_v0  ;;  %s6927_s19 = sshll.u32 %s13873_s13, 4  ;;  %s6928_s19 = int_to_ptr.hbm [resolvable:$true] %s6927_s19 }
 0xa3b   :  { %6534 = vst [vmem:[#allocation1 + $0x1] ss:$4 sm:$0xff] %v6405_v29 }
 0xa3c   :  { %6536 = vst [vmem:[#allocation1 + $0x2] ss:$4 sm:$0xff] %v6407_v11 }
 0xa3d   :  { %6538 = vst [vmem:[#allocation1 + $0x3] ss:$4 sm:$0xff] %v6409_v43 }
 0xa44   :  { %v6539_v10 = vld.sshfl [vmem:[#allocation1] sm:$0xff pattern:$0x73625140] }
 0xa45   :  { %8102 = vmatmul.msk.f32.vlgmr.msrb.gmra.mxu3 %vm155_vm2, %v6539_v10  ;;  %v8158_v10 = vld [vmem:[%s13868_s8] ss:$0 sm:$0xff] }
 0xa5d   :  { %v6451_v24 = vpop.permute.xlu2 %6450 }
 0xa6a   :  { %v6436_v30 = vpop.permute.xlu1 %6435 }
 0xa6b   :  { %v6540_v55 = vsel %vm155_vm2, %v13632_v17, %v6436_v30  ;;  %vm6622_vm2 = vweird.f32 %v8171_v37 }
 0xa6c   :  { %v6541_v58 = vsel %vm3598_vm3, %v6540_v55, %v6451_v24  ;;  %v6623_v54 = vsel %vm6622_vm2, %v8171_v37, %v6621_v1  ;;  %v6799_v24 = vld [vmem:[%s13870_s10 + $0xf8] sm:$0xff]  ;;  %v6776_v37 = vld [vmem:[%s13870_s10 + $0x40] sm:$0xff] }
 0xa6d   :  { %6826 = vmatpush.msra.mxu2 %v6799_v24 }
 0xa7e   :  { %v6496_v44 = vpop.permute.xlu2 %6495 }
 0xa80   :  { %v6466_v3 = vpop.permute.xlu0 %6465 }
 0xa81   :  { %v6542_v26 = vsel %vm3728_vm5, %v6541_v58, %v6466_v3  ;;  %vm6708_vm5 = vcmask 1041409   ;;  %v6781_v3 = vld [vmem:[%s13870_s10 + $0x68] sm:$0xff]  ;;  %v6798_v58 = vld [vmem:[%s13870_s10 + $0xf0] sm:$0xff] }
 0xa82   :  { %v6721_v51 = vsel %vm6708_vm5, %v6720_v62, %v6679_v52  ;;  %v6728_v0 = vsel %vm6708_vm5, %v6727_v45, %v6682_v18  ;;  %6808 = vmatpush.msra.mxu3 %v6781_v3  ;;  %6827 = vmatpush.msra.mxu2 %v6798_v58  ;;  %v6792_v52 = vld [vmem:[%s13870_s10 + $0xc0] sm:$0xff]  ;;  %v6791_v18 = vld [vmem:[%s13870_s10 + $0xb8] sm:$0xff]  ;;  %v6802_v62 = vld [vmem:[%s13870_s10 + $0x110] sm:$0xff] }
 0xa83   :  { %6722 = vrot.lane.b32.xlu0 %v6721_v51, %s8209_s14  ;;  %6729 = vrot.lane.b32.xlu1 %v6728_v0, %s8216_s1  ;;  %v6801_v45 = vld [vmem:[%s13870_s10 + $0x108] sm:$0xff]  ;;  %v6800_v0 = vld [vmem:[%s13870_s10 + $0x100] sm:$0xff] }
 0xa84   :  { %v6789_v51 = vld [vmem:[%s13870_s10 + $0xa8] sm:$0xff] }
 0xa8b   :  { %v6481_v40 = vpop.permute.xlu1 %6480 }
 0xa8c   :  { %v6543_v33 = vsel %vm3858_vm7, %v6542_v26, %v6481_v40  ;;  %v6780_v40 = vld [vmem:[%s13870_s10 + $0x60] sm:$0xff]  ;;  %v6797_v26 = vld [vmem:[%s13870_s10 + $0xe8] sm:$0xff] }
 0xa8d   :  { %v6545_v41 = vsel %vm6544_vm4, %v6543_v33, %v6496_v44  ;;  %6809 = vmatpush.msra.mxu3 %v6780_v40  ;;  %6828 = vmatpush.msra.mxu2 %v6797_v26 }
 0xa8f   :  { %6829 = vmatpush.msra.mxu2 %v6796_v21 }
 0xaa1   :  { %v6511_v9 = vpop.permute.xlu0 %6510 }
 0xaa2   :  { %v6547_v17 = vsel %vm6546_vm8, %v6545_v41, %v6511_v9  ;;  %v6779_v9 = vld [vmem:[%s13870_s10 + $0x58] sm:$0xff] }
 0xaa3   :  { %6810 = vmatpush.msra.mxu3 %v6779_v9 }
 0xaac   :  { %v6526_v46 = vpop.permute.xlu1 %6525 }
 0xaad   :  { %v6549_v4 = vsel %vm6548_vm9, %v6547_v17, %v6526_v46  ;;  %v6778_v46 = vld [vmem:[%s13870_s10 + $0x50] sm:$0xff] }
 0xaae   :  { %6586 = vmatmul.f32.vlgmr.msrb.gmra.mxu2 %v6549_v4  ;;  %v6777_v4 = vld [vmem:[%s13870_s10 + $0x48] sm:$0xff]  ;;  %6811 = vmatpush.msra.mxu3 %v6778_v46 }
 0xab0   :  { %6812 = vmatpush.msra.mxu3 %v6777_v4 }
 0xab2   :  { %6813 = vmatpush.msra.mxu3 %v6776_v37 }
 0xab4   :  { %6814 = vmatpush.msra.mxu3 %v6775_v8 }
 0xac8   :  { %v6607_v34 = vpop.f32.mrf.mxu3 }
 0xaf5   :  { %v6723_v38 = vpop.permute.xlu0 %6722 }
 0xb31   :  { %v6587_v19 = vpop.f32.mrf.mxu2 }
 0xb32   :  { %v6608_v25 = vadd.f32 %v6607_v34, %v6587_v19  ;;  %v6713_v34 = vrot.slane %v6677_v39, 7  ;;  %v6675_v19 = vld [vmem:[#allocation4 + $0x1] ss:$2 sm:$0x1] }
 0xb34   :  { %v6610_v22 = vsel %vm3598_vm3, %v6608_v25, 0.0  ;;  %v6714_v20 = vsel %vm6708_vm5, %v6713_v34, %v6675_v19  ;;  %v8219_v34 = vmov 2.0  }
 0xb35   :  { %v6611_v36 = vrot.slane %v6610_v22, 4 }
 0xb37   :  { %v6612_v60 = vadd.f32 %v6611_v36, %v6610_v22  ;;  %v6773_v22 = vld [vmem:[%s13870_s10 + $0x28] sm:$0xff] }
 0xb39   :  { %v6613_v23 = vrot.slane %v6612_v60, 2 }
 0xb3b   :  { %v6614_v27 = vadd.f32 %v6613_v23, %v6612_v60 }
 0xb3d   :  { %v6615_v6 = vrot.slane %v6614_v27, 1 }
 0xb3f   :  { %v6616_v2 = vadd.f32 %v6615_v6, %v6614_v27  ;;  %v6772_v27 = vld [vmem:[%s13870_s10 + $0x20] sm:$0xff] }
 0xb41   :  { %v6624_v32 = vmul.f32 %v6623_v54, %v6616_v2 }
 0xb43   :  { %v6625_v48 = vsub.f32 %v6608_v25, %v6624_v32  ;;  %v6774_v25 = vld [vmem:[%s13870_s10 + $0x30] sm:$0xff] }
 0xb44   :  { %6815 = vmatpush.msra.mxu3 %v6774_v25 }
 0xb45   :  { %v6626_v15 = vmul.f32 %v6625_v48, %v6625_v48 }
 0xb46   :  { %6816 = vmatpush.msra.mxu3 %v6773_v22 }
 0xb47   :  { %v6627_v49 = vsel %vm3598_vm3, %v6626_v15, 0.0  ;;  %v6771_v15 = vld [vmem:[%s13870_s10 + $0x18] sm:$0xff] }
 0xb48   :  { %v6628_v61 = vrot.slane %v6627_v49, 4  ;;  %6817 = vmatpush.msra.mxu3 %v6772_v27 }
 0xb4a   :  { %v6629_v28 = vadd.f32 %v6628_v61, %v6627_v49  ;;  %6818 = vmatpush.msra.mxu3 %v6771_v15  ;;  %v6694_v61 = vld [vmem:[#allocation4 + $0x8] ss:$2 sm:$0x1] }
 0xb4c   :  { %v6630_v16 = vrot.slane %v6629_v28, 2 }
 0xb4e   :  { %v6631_v7 = vadd.f32 %v6630_v16, %v6629_v28  ;;  %v6770_v16 = vld [vmem:[%s13870_s10 + $0x10] sm:$0xff] }
 0xb4f   :  { %6819 = vmatpush.msra.mxu3 %v6770_v16 }
 0xb50   :  { %v6632_v13 = vrot.slane %v6631_v7, 1 }
 0xb52   :  { %v6633_v53 = vadd.f32 %v6632_v13, %v6631_v7  ;;  %v6795_v7 = vld [vmem:[%s13870_s10 + $0xd8] sm:$0xff]  ;;  %v6769_v13 = vld [vmem:[%s13870_s10 + $0x8] sm:$0xff] }
 0xb53   :  { %6830 = vmatpush.msra.mxu2 %v6795_v7  ;;  %6820 = vmatpush.msra.mxu3 %v6769_v13 }
 0xb54   :  { %v6634_v59 = vmul.f32 %v6633_v53, %v6623_v54  ;;  %v6794_v53 = vld [vmem:[%s13870_s10 + $0xd0] sm:$0xff] }
 0xb55   :  { %6831 = vmatpush.msra.mxu2 %v6794_v53 }
 0xb56   :  { %v6635_v5 = vadd.f32 1e-05, %v6634_v59  ;;  %v6768_v59 = vld [vmem:[%s13870_s10] sm:$0xff] }
 0xb57   :  { %6821 = vmatpush.msra.mxu3 %v6768_v59 }
 0xb58   :  { %8172 = vrsqrt.f32 %v6635_v5  ;;  %vm6642_vm11 = vweird.f32 %v6635_v5 }
 0xb59   :  { %6858 = vmatpush.msrb.mxu3 %v6803_v14  ;;  %8174 = vrcp.f32 %v8219_v34 }
 0xb5b   :  { %6859 = vmatpush.msrb.mxu3 %v6802_v62 }
 0xb5d   :  { %6860 = vmatpush.msrb.mxu3 %v6801_v45 }
 0xb5e   :  { %v8173_v35 = vpop.eup %8172 }
 0xb5f   :  { %v6637_v29 = vmul.f32 %v8173_v35, %v6635_v5  ;;  %vm6643_vm10 = vweird.f32 %v8173_v35  ;;  %v6793_v5 = vld [vmem:[%s13870_s10 + $0xc8] sm:$0xff]  ;;  %6861 = vmatpush.msrb.mxu3 %v6800_v0  ;;  %v8175_v25 = vpop.eup %8174 }
 0xb60   :  { %vm6644_vm12 = vmor %vm6642_vm11, %vm6643_vm10  ;;  %6832 = vmatpush.msra.mxu2 %v6793_v5 }
 0xb61   :  { %v6638_v11 = vmul.f32 %v8173_v35, %v6637_v29  ;;  %v6787_v29 = vld [vmem:[%s13870_s10 + $0x98] sm:$0xff] }
 0xb62   :  { %6833 = vmatpush.msra.mxu2 %v6792_v52 }
 0xb63   :  { %v6639_v43 = vmul.f32 0.5, %v6638_v11  ;;  %v6786_v11 = vld [vmem:[%s13870_s10 + $0x90] sm:$0xff] }
 0xb64   :  { %6834 = vmatpush.msra.mxu2 %v6791_v18 }
 0xb65   :  { %v6640_v50 = vsub.f32 1.5, %v6639_v43  ;;  %v6785_v43 = vld [vmem:[%s13870_s10 + $0x88] sm:$0xff] }
 0xb66   :  { %6835 = vmatpush.msra.mxu2 %v6790_v57 }
 0xb67   :  { %v6641_v42 = vmul.f32 %v8173_v35, %v6640_v50  ;;  %v6784_v50 = vld [vmem:[%s13870_s10 + $0x80] sm:$0xff] }
 0xb68   :  { %6836 = vmatpush.msra.mxu2 %v6789_v51 }
 0xb69   :  { %v6645_v12 = vsel %vm6644_vm12, %v8173_v35, %v6641_v42  ;;  %v6788_v35 = vld [vmem:[%s13870_s10 + $0xa0] sm:$0xff]  ;;  %v6673_v42 = vld [vmem:[#allocation4 + $0x10] ss:$2 sm:$0x1] }
 0xb6a   :  { %v6646_v63 = vmul.f32 %v6645_v12, %v6625_v48  ;;  %v6696_v48 = vld [vmem:[#allocation4 + $0x18] ss:$2 sm:$0x1]  ;;  %6837 = vmatpush.msra.mxu2 %v6788_v35  ;;  %v6671_v12 = vld [vmem:[#allocation4] ss:$2 sm:$0x1] }
 0xb6b   :  { %v6746_v49 = vrot.slane %v6696_v48, 7 }
 0xb6c   :  { %v6651_v30 = vmul.f32 %v8158_v10, %v6646_v63  ;;  %6838 = vmatpush.msra.mxu2 %v6787_v29  ;;  %v6707_v10 = vrot.slane %v6673_v42, 7 }
 0xb6d   :  { %v6747_v28 = vsel %vm6708_vm5, %v6746_v49, %v6694_v61 }
 0xb6e   :  { %v6656_v55 = vadd.f32 %v8159_v47, %v6651_v30  ;;  %6839 = vmatpush.msra.mxu2 %v6786_v11  ;;  %v6709_v47 = vsel %vm6708_vm5, %v6707_v10, %v6671_v12  ;;  %v6730_v30 = vpop.permute.xlu1 %6729  ;;  %v8161_v10 = vld [vmem:[%s13872_s12] ss:$0 sm:$0xff] }
 0xb70   :  { %v6657_v33 = vmax.f32 %v6656_v55, 0.0  ;;  %6840 = vmatpush.msra.mxu2 %v6785_v43  ;;  %v8160_v43 = vld [vmem:[%s13871_s11] ss:$0 sm:$0xff]  ;;  %s8221_s11 = smov 1  }
 0xb72   :  { %v6659_v44 = vrot.slane %v6657_v33, 2  ;;  %v6660_v41 = vrot.slane %v6657_v33, 4  ;;  %v6661_v17 = vrot.slane %v6657_v33, 6  ;;  %6667 = vst.msk [vmem:[#allocation4 + $0x5] sm:$0x3] %vm6666_vm13, %v6657_v33  ;;  %6841 = vmatpush.msra.mxu2 %v6784_v50 }
 0xb74   :  { %6668 = vst.msk [vmem:[#allocation4 + $0x9] sm:$0x3] %vm6666_vm13, %v6659_v44 }
 0xb75   :  { %6669 = vst.msk [vmem:[#allocation4 + $0x15] sm:$0x3] %vm6666_vm13, %v6660_v41 }
 0xb76   :  { %6670 = vst.msk [vmem:[#allocation4 + $0x19] sm:$0x3] %vm6666_vm13, %v6661_v17 }
 0xb79   :  { %v6690_v1 = vld [vmem:[#allocation4 + $0x6] ss:$2 sm:$0x1]  ;;  %v6686_v41 = vld [vmem:[#allocation4 + $0x5] ss:$2 sm:$0x1] }
 0xb7b   :  { %v6698_v6 = vld [vmem:[#allocation4 + $0x9] ss:$2 sm:$0x1]  ;;  %v6702_v26 = vld [vmem:[#allocation4 + $0xa] ss:$2 sm:$0x1] }
 0xb7c   :  { %v6692_v56 = vld [vmem:[#allocation4 + $0x16] ss:$2 sm:$0x1]  ;;  %v6688_v9 = vld [vmem:[#allocation4 + $0x15] ss:$2 sm:$0x1] }
 0xb7d   :  { %v6700_v36 = vld [vmem:[#allocation4 + $0x19] ss:$2 sm:$0x1]  ;;  %v6739_v60 = vrot.slane %v6692_v56, 7  ;;  %v6734_v21 = vrot.slane %v6688_v9, 7  ;;  %v6875_v56 = vmul.f32 2.0, %v8175_v25 }
 0xb7e   :  { %v6753_v23 = vrot.slane %v6700_v36, 7  ;;  %v6704_v40 = vld [vmem:[#allocation4 + $0x1a] ss:$2 sm:$0x1] }
 0xb7f   :  { %v6740_v54 = vsel %vm6708_vm5, %v6739_v60, %v6690_v1  ;;  %v6760_v58 = vrot.slane %v6704_v40, 7  ;;  %v6735_v46 = vsel %vm6708_vm5, %v6734_v21, %v6686_v41 }
 0xb80   :  { %v6754_v2 = vsel %vm6708_vm5, %v6753_v23, %v6698_v6  ;;  %v8149_v32 = vpack.i.bf16 %v6740_v54, %v6714_v20  ;;  %v6876_v23 = vsub.f32 1.0, %v6875_v56 }
 0xb81   :  { %6755 = vrot.lane.b32.xlu0 %v6754_v2, %s8216_s1  ;;  %v6761_v33 = vsel %vm6708_vm5, %v6760_v58, %v6702_v26 }
 0xb82   :  { %8150 = vrot.lane.b32.xlu2 %v8149_v32, %s8207_s21  ;;  %v6877_v6 = vmul.f32 %v8175_v25, %v6876_v23 }
 0xb84   :  { %v6878_v32 = vadd.f32 %v8175_v25, %v6877_v6 }
 0xb8a   :  { %6748 = vrot.lane.b32.xlu2 %v6747_v28, %s8209_s14 }
 0xbdc   :  { %v8151_v63 = vpop.permute.xlu2 %8150 }
 0xbdd   :  { %v8152_v31 = vunpack.i.l.bf16 %v8151_v63  ;;  %v8153_v44 = vunpack.i.h.bf16 %v8151_v63 }
 0xbdf   :  { %v6762_v3 = vsel %vm3598_vm3, %v6709_v47, %v8152_v31  ;;  %v6765_v4 = vsel %vm3598_vm3, %v6735_v46, %v8153_v44 }
 0xbe0   :  { %v6763_v24 = vsel %vm3858_vm7, %v6762_v3, %v6723_v38 }
 0xbe1   :  { %v6764_v55 = vsel %vm6546_vm8, %v6763_v24, %v6730_v30 }
 0xbe2   :  { %6822 = vmatmul.f32.vlgmr.msra.gmra.mxu3 %v6764_v55 }
 0xbe4   :  { %v6749_v17 = vpop.permute.xlu2 %6748 }
 0xbe5   :  { %v6766_v39 = vsel %vm3858_vm7, %v6765_v4, %v6749_v17 }
 0xbea   :  { %8103 = vmatmul.msk.f32.vlgmr.msrb.gmra.mxu3 %vm3598_vm3, %v6761_v33  ;;  %vm6879_vm3 = vweird.f32 %v8175_v25 }
 0xbeb   :  { %v6880_v49 = vsel %vm6879_vm3, %v8175_v25, %v6878_v32 }
 0xbf3   :  { %v6756_v37 = vpop.permute.xlu0 %6755 }
 0xbf4   :  { %v6767_v8 = vsel %vm6546_vm8, %v6766_v39, %v6756_v37 }
 0xbf5   :  { %6842 = vmatmul.f32.vlgmr.msra.gmra.mxu2 %v6767_v8 }
 0xc65   :  { %v6823_v19 = vpop.f32.mrf.mxu3 }
 0xc6d   :  { %v6863_v20 = vpop.f32.mrf.mxu3 }
 0xc78   :  { %v6843_v22 = vpop.f32.mrf.mxu2 }
 0xc79   :  { %v6844_v36 = vadd.f32 %v6843_v22, %v6823_v19 }
 0xc7b   :  { %v6864_v60 = vadd.f32 %v6863_v20, %v6844_v36 }
 0xc7d   :  { %v6867_v1 = vsel %vm6866_vm14, %v6864_v60, 0.0 }
 0xc7e   :  { %v6868_v27 = vrot.slane %v6867_v1, 4 }
 0xc80   :  { %v6869_v54 = vadd.f32 %v6868_v27, %v6867_v1 }
 0xc82   :  { %v6870_v2 = vrot.slane %v6869_v54, 2 }
 0xc84   :  { %v6871_v48 = vadd.f32 %v6870_v2, %v6869_v54 }
 0xc86   :  { %v6872_v15 = vrot.slane %v6871_v48, 1 }
 0xc88   :  { %v6873_v61 = vadd.f32 %v6872_v15, %v6871_v48 }
 0xc8a   :  { %v6881_v28 = vmul.f32 %v6880_v49, %v6873_v61 }
 0xc8c   :  { %v6882_v16 = vsub.f32 %v6864_v60, %v6881_v28 }
 0xc8e   :  { %v6883_v7 = vmul.f32 %v6882_v16, %v6882_v16 }
 0xc90   :  { %v6884_v13 = vsel %vm6866_vm14, %v6883_v7, 0.0 }
 0xc91   :  { %v6885_v53 = vrot.slane %v6884_v13, 4 }
 0xc93   :  { %v6886_v59 = vadd.f32 %v6885_v53, %v6884_v13 }
 0xc95   :  { %v6887_v5 = vrot.slane %v6886_v59, 2 }
 0xc97   :  { %v6888_v52 = vadd.f32 %v6887_v5, %v6886_v59 }
 0xc99   :  { %v6889_v14 = vrot.slane %v6888_v52, 1 }
 0xc9b   :  { %v6890_v18 = vadd.f32 %v6889_v14, %v6888_v52 }
 0xc9d   :  { %v6891_v62 = vmul.f32 %v6890_v18, %v6880_v49 }
 0xc9f   :  { %v6892_v57 = vadd.f32 1e-05, %v6891_v62 }
 0xca1   :  { %8176 = vrsqrt.f32 %v6892_v57  ;;  %vm6899_vm15 = vweird.f32 %v6892_v57 }
 0xca7   :  { %v8177_v45 = vpop.eup %8176 }
 0xca8   :  { %v6894_v51 = vmul.f32 %v8177_v45, %v6892_v57  ;;  %vm6900_vm7 = vweird.f32 %v8177_v45 }
 0xca9   :  { %vm6901_vm0 = vmor %vm6899_vm15, %vm6900_vm7 }
 0xcaa   :  { %v6895_v0 = vmul.f32 %v8177_v45, %v6894_v51 }
 0xcac   :  { %v6896_v35 = vmul.f32 0.5, %v6895_v0 }
 0xcae   :  { %v6897_v29 = vsub.f32 1.5, %v6896_v35 }
 0xcb0   :  { %v6898_v11 = vmul.f32 %v8177_v45, %v6897_v29 }
 0xcb2   :  { %v6902_v50 = vsel %vm6901_vm0, %v8177_v45, %v6898_v11 }
 0xcb3   :  { %v6903_v42 = vmul.f32 %v6902_v50, %v6882_v16 }
 0xcb5   :  { %v6908_v12 = vmul.f32 %v8160_v43, %v6903_v42 }
 0xcb7   :  { %v6913_v63 = vadd.f32 %v8161_v10, %v6908_v12 }
 0xcb9   :  { %v6914_v47 = vmax.f32 %v6913_v63, 0.0 }
 0xcbb   :  { %v6916_v31 = vrot.slane %v6914_v47, 1  ;;  %6919 = vst.msk [vmem:[#allocation5] sm:$0x1] %vm6918_vm1, %v6914_v47 }
 0xcbd   :  { %6920 = vst.msk [vmem:[#allocation5 + $0x1] sm:$0x1] %vm6918_vm1, %v6916_v31 }
 0xcbe   :  { %6933 = dma.vmem_to_hbm [thread:$0]  %s6926_s24, 32, %s6928_s19, [#allocation6], %s8205_s30, %s8205_s30, %s8221_s11  }
 0xcbf   :  { %8202 = dma.done.wait [#allocation6], 32  }
 0xcc0   :  { %8203 = vsyncadd [#allocation6], 4294967264 }
 0xcc1   :  { %6938 = vsyncpa [#allocation6], 1 }

</bundles_post_ra>
